<compile_context>
chip_gen: v6e
topology: v6e:2x2x1
jax: 0.10.0
libtpu: 0.0.40
codegen_flags: <defaults>
</compile_context>

<pallas_src>
import functools

import jax
import jax.numpy as jnp
from jax.experimental import pallas as pl
from jax.experimental.pallas import tpu as pltpu

EPS_BN = 0.2            # nn.BatchNorm1d(256, eps=0.2)
PAD_CLASSES = 128       # lane-pad for the tiny classifier heads
N_CLASSES = (3, 3, 6, 4)


# -----------------------------------------------------------------------------
# Single fused kernel: backbone -> trunk -> branches -> heads -> softmax
# -----------------------------------------------------------------------------
def _fused_kernel(x_ref, bw_ref, bb_ref,
                  w1_ref, b1_ref, w2_ref, b2_ref,
                  s1_ref, t1_ref, s2_ref, t2_ref,
                  s1b_ref, t1b_ref,
                  wbr_ref, bbr_ref,
                  wct_ref, wcb_ref, bc_ref,
                  wo_ref, bo_ref,
                  out_ref):
    f32 = jnp.float32
    s1 = s1_ref[...]
    t1 = t1_ref[...]
    s2 = s2_ref[...]
    t2 = t2_ref[...]

    def trunk(xt):
        # backbone stand-in: pool folded into bw -> Linear(C*H*W, 512) + ReLU
        feat = jnp.maximum(
            jnp.dot(xt, bw_ref[...], preferred_element_type=f32) + bb_ref[...], 0.0)
        # x1: BN1(relu(Linear(512, 256)))
        h = jnp.maximum(
            jnp.dot(feat, w1_ref[...], preferred_element_type=f32) + b1_ref[...], 0.0)
        h = h * s1 + t1
        # x2: BN2(relu(Linear(256, 256)))
        h = jnp.maximum(
            jnp.dot(h, w2_ref[...], preferred_element_type=f32) + b2_ref[...], 0.0)
        h = h * s2 + t2
        return h

    h1 = trunk(x_ref[0])          # (B, 256)  -- x1_out
    h2 = trunk(x_ref[1])          # (B, 256)  -- x2_out

    # Branches: x11..x14 merged along N (trunk 1), x21..x24 (trunk 2)
    s1b = s1b_ref[...]
    t1b = t1b_ref[...]
    br1 = jnp.maximum(
        jnp.dot(h1, wbr_ref[0], preferred_element_type=f32) + bbr_ref[0], 0.0) * s1b + t1b
    br2 = jnp.maximum(
        jnp.dot(h2, wbr_ref[1], preferred_element_type=f32) + bbr_ref[1], 0.0) * s1b + t1b

    # Heads: c_i = cat(x1i, x2i) realized as split-K matmul; then BN1(relu(.)),
    # dropout identity (eval), classifier + softmax over n_cls real lanes.
    for i, n_cls in enumerate(N_CLASSES):
        x1i = br1[:, 256 * i:256 * (i + 1)]
        x2i = br2[:, 256 * i:256 * (i + 1)]
        z = (jnp.dot(x1i, wct_ref[i], preferred_element_type=f32)
             + jnp.dot(x2i, wcb_ref[i], preferred_element_type=f32)
             + bc_ref[i])
        z = jnp.maximum(z, 0.0) * s1 + t1

        logits = jnp.dot(z, wo_ref[i], preferred_element_type=f32) + bo_ref[i]
        col = jax.lax.broadcasted_iota(jnp.int32, logits.shape, 1)
        logits = jnp.where(col < n_cls, logits, jnp.full_like(logits, -1e30))
        m = jnp.max(logits, axis=-1, keepdims=True)
        e = jnp.exp(logits - m)                      # padded lanes underflow to 0
        denom = jnp.sum(e, axis=-1, keepdims=True)
        out_ref[:, PAD_CLASSES * i:PAD_CLASSES * (i + 1)] = (
            e * pl.reciprocal(denom, approx=True))


@jax.jit
def forward(prepped, x1_input, x2_input):
    B, C, H, W = x1_input.shape
    x = jnp.stack([x1_input.reshape(B, C * H * W),
                   x2_input.reshape(B, C * H * W)])          # (2, B, C*H*W)

    out = pl.pallas_call(
        _fused_kernel,
        out_shape=jax.ShapeDtypeStruct((B, 4 * PAD_CLASSES), jnp.float32),
        in_specs=[pl.BlockSpec(memory_space=pltpu.MemorySpace.VMEM)] * 20,
        out_specs=pl.BlockSpec(memory_space=pltpu.MemorySpace.VMEM),
        compiler_params=pltpu.CompilerParams(
            vmem_limit_bytes=32 * 1024 * 1024),
    )(x,
      prepped["bw"], prepped["bb"],
      prepped["w1"], prepped["b1"], prepped["w2"], prepped["b2"],
      prepped["s1"], prepped["t1"], prepped["s2"], prepped["t2"],
      prepped["s1b"], prepped["t1b"],
      prepped["wbr"], prepped["bbr"],
      prepped["wct"], prepped["wcb"], prepped["bc"],
      prepped["wo"], prepped["bo"])

    y1o = out[:, 0 * PAD_CLASSES:0 * PAD_CLASSES + 3]
    y2o = out[:, 1 * PAD_CLASSES:1 * PAD_CLASSES + 3]
    y3o = out[:, 2 * PAD_CLASSES:2 * PAD_CLASSES + 6]
    y4o = out[:, 3 * PAD_CLASSES:3 * PAD_CLASSES + 4]
    return y1o, y2o, y3o, y4o


# -----------------------------------------------------------------------------
# Deterministic synthetic parameters (shapes from the module's __init__)
# -----------------------------------------------------------------------------
def _xavier(key, fan_in, fan_out):
    std = (2.0 / (fan_in + fan_out)) ** 0.5
    return std * jax.random.normal(key, (fan_in, fan_out), jnp.float32)


def _bias(key, fan_out):
    return jax.random.uniform(key, (1, fan_out), jnp.float32, -0.05, 0.05)


def init_params(key, in_channels):
    keys = iter(jax.random.split(key, 64))
    p = {}

    def linear(name, fin, fout):
        p[name + "_w"] = _xavier(next(keys), fin, fout)
        p[name + "_b"] = _bias(next(keys), fout)

    # backbone stand-in for model_core: Linear(C, 512) applied to pooled input
    linear("backbone", in_channels, 512)

    linear("x1", 512, 256)
    linear("x2", 256, 256)
    for n in ("x11", "x12", "x13", "x14", "x21", "x22", "x23", "x24"):
        linear(n, 256, 256)
    for n in ("x1c", "x2c", "x3c", "x4c"):
        linear(n, 512, 256)
    linear("y1o", 256, 3)
    linear("y2o", 256, 3)
    linear("y3o", 256, 6)
    linear("y4o", 256, 4)

    def bn(name):
        gamma = 1.0 + 0.1 * jax.random.normal(next(keys), (1, 256), jnp.float32)
        beta = 0.1 * jax.random.normal(next(keys), (1, 256), jnp.float32)
        mean = 0.1 * jax.random.normal(next(keys), (1, 256), jnp.float32)
        var = jax.random.uniform(next(keys), (1, 256), jnp.float32, 0.5, 1.5)
        p[name] = (gamma, beta, mean, var)

    bn("bn1")
    bn("bn2")
    return p


def prepare_params(p, hw):
    """One-time fusion / folding of raw per-layer params for the fused kernel."""
    q = {}
    # Fold global average pool into the backbone weight: W'[c*hw + s, n] = W[c,n]/hw
    q["bw"] = jnp.repeat(p["backbone_w"], hw, axis=0) / float(hw)   # (C*hw, 512)
    q["bb"] = p["backbone_b"]

    q["w1"], q["b1"] = p["x1_w"], p["x1_b"]
    q["w2"], q["b2"] = p["x2_w"], p["x2_b"]

    def bn_fold(bn):
        gamma, beta, mean, var = bn
        s = gamma * jax.lax.rsqrt(var + EPS_BN)
        t = beta - mean * s
        return s, t

    s1, t1 = bn_fold(p["bn1"])
    s2, t2 = bn_fold(p["bn2"])
    q["s1"], q["t1"], q["s2"], q["t2"] = s1, t1, s2, t2
    q["s1b"] = jnp.tile(s1, (1, 4))            # bn1 broadcast over 4 merged branches
    q["t1b"] = jnp.tile(t1, (1, 4))

    # Branch weights merged along N per trunk: (2, 256, 1024) / (2, 1, 1024)
    q["wbr"] = jnp.stack([
        jnp.concatenate([p["x11_w"], p["x12_w"], p["x13_w"], p["x14_w"]], axis=1),
        jnp.concatenate([p["x21_w"], p["x22_w"], p["x23_w"], p["x24_w"]], axis=1)])
    q["bbr"] = jnp.stack([
        jnp.concatenate([p["x11_b"], p["x12_b"], p["x13_b"], p["x14_b"]], axis=1),
        jnp.concatenate([p["x21_b"], p["x22_b"], p["x23_b"], p["x24_b"]], axis=1)])

    # x?c weights split into top (multiplies trunk-1 branch) / bottom (trunk-2)
    wc = [p[n + "_w"] for n in ("x1c", "x2c", "x3c", "x4c")]
    q["wct"] = jnp.stack([w[:256] for w in wc])            # (4, 256, 256)
    q["wcb"] = jnp.stack([w[256:] for w in wc])            # (4, 256, 256)
    q["bc"] = jnp.stack([p[n + "_b"] for n in ("x1c", "x2c", "x3c", "x4c")])

    # Classifier heads padded to 128 lanes once.
    def pad_head(w, b):
        n = w.shape[1]
        wp = jnp.zeros((256, PAD_CLASSES), jnp.float32).at[:, :n].set(w)
        bp = jnp.zeros((1, PAD_CLASSES), jnp.float32).at[:, :n].set(b)
        return wp, bp

    wos, bos = zip(*(pad_head(p[n + "_w"], p[n + "_b"])
                     for n in ("y1o", "y2o", "y3o", "y4o")))
    q["wo"] = jnp.stack(wos)                                # (4, 256, 128)
    q["bo"] = jnp.stack(bos)                                # (4, 1, 128)
    return q


# -----------------------------------------------------------------------------
# Pure-JAX reference (mirrors the PyTorch forward, eval mode)
# -----------------------------------------------------------------------------
def reference_forward(params, x1_input, x2_input):
    def bn(x, bnp):
        gamma, beta, mean, var = bnp
        return (x - mean) * jax.lax.rsqrt(var + EPS_BN) * gamma + beta

    def linear(x, name):
        return x @ params[name + "_w"] + params[name + "_b"]

    def backbone_ref(x):
        B, C, H, W = x.shape
        pooled = jnp.mean(x.reshape(B, C, H * W), axis=-1)
        return jnp.maximum(linear(pooled, "backbone"), 0.0)

    def trunk(x):
        h = backbone_ref(x)
        h = bn(jnp.maximum(linear(h, "x1"), 0.0), params["bn1"])
        h = bn(jnp.maximum(linear(h, "x2"), 0.0), params["bn2"])
        return h

    h1 = trunk(x1_input)
    h2 = trunk(x2_input)

    def branch(h, name):
        return bn(jnp.maximum(linear(h, name), 0.0), params["bn1"])

    b1s = [branch(h1, n) for n in ("x11", "x12", "x13", "x14")]
    b2s = [branch(h2, n) for n in ("x21", "x22", "x23", "x24")]

    outs = []
    for a, b, cn, on in zip(b1s, b2s, ("x1c", "x2c", "x3c", "x4c"),
                            ("y1o", "y2o", "y3o", "y4o")):
        c = jnp.concatenate([a, b], axis=1)
        z = branch(c, cn)                 # dropout is identity in eval mode
        outs.append(jax.nn.softmax(linear(z, on), axis=1))
    return tuple(outs)


# -----------------------------------------------------------------------------
if __name__ == "__main__":
    key = jax.random.PRNGKey(0)
    k_params, k_x1, k_x2 = jax.random.split(key, 3)

    B, C, H, W = 2, 4, 16, 16
    params = init_params(k_params, C)
    prepped = prepare_params(params, H * W)
    x1_input = jax.random.normal(k_x1, (B, C, H, W), jnp.float32)
    x2_input = jax.random.normal(k_x2, (B, C, H, W), jnp.float32)

    outs = forward(prepped, x1_input, x2_input)
    outs = jax.block_until_ready(outs)
    refs = reference_forward(params, x1_input, x2_input)

    expected = [(B, 3), (B, 3), (B, 6), (B, 4)]
    ok = True
    for o, r, shp in zip(outs, refs, expected):
        ok &= (o.shape == shp)
        ok &= bool(jnp.all(jnp.isfinite(o)))
        ok &= bool(jnp.allclose(jnp.sum(o, axis=1), 1.0, atol=3e-3))
        ok &= bool(jnp.allclose(o, r, atol=3e-3, rtol=3e-3))
    print("KERNEL_OK" if ok else "KERNEL_FAIL")
</pallas_src>

<mosaic_0001>
module attributes {stable_mosaic.version = 11 : i64} {
  func.func @_fused_kernel(%arg0: memref<2x2x1024xf32, #tpu.memory_space<vmem>>, %arg1: memref<1024x512xf32, #tpu.memory_space<vmem>>, %arg2: memref<1x512xf32, #tpu.memory_space<vmem>>, %arg3: memref<512x256xf32, #tpu.memory_space<vmem>>, %arg4: memref<1x256xf32, #tpu.memory_space<vmem>>, %arg5: memref<256x256xf32, #tpu.memory_space<vmem>>, %arg6: memref<1x256xf32, #tpu.memory_space<vmem>>, %arg7: memref<1x256xf32, #tpu.memory_space<vmem>>, %arg8: memref<1x256xf32, #tpu.memory_space<vmem>>, %arg9: memref<1x256xf32, #tpu.memory_space<vmem>>, %arg10: memref<1x256xf32, #tpu.memory_space<vmem>>, %arg11: memref<1x1024xf32, #tpu.memory_space<vmem>>, %arg12: memref<1x1024xf32, #tpu.memory_space<vmem>>, %arg13: memref<2x256x1024xf32, #tpu.memory_space<vmem>>, %arg14: memref<2x1x1024xf32, #tpu.memory_space<vmem>>, %arg15: memref<4x256x256xf32, #tpu.memory_space<vmem>>, %arg16: memref<4x256x256xf32, #tpu.memory_space<vmem>>, %arg17: memref<4x1x256xf32, #tpu.memory_space<vmem>>, %arg18: memref<4x256x128xf32, #tpu.memory_space<vmem>>, %arg19: memref<4x1x128xf32, #tpu.memory_space<vmem>>, %arg20: memref<2x512xf32, #tpu.memory_space<vmem>>) attributes {dimension_semantics = [], scalar_prefetch = 0 : i64, scratch_operands = 0 : i64, tpu.core_type = #tpu.core_type<tc>} {
    %c0 = arith.constant 0 : index
    %c0_0 = arith.constant 0 : index
    %0 = vector.load %arg7[%c0, %c0_0] : memref<1x256xf32, #tpu.memory_space<vmem>>, vector<1x256xf32>
    %c0_1 = arith.constant 0 : index
    %c0_2 = arith.constant 0 : index
    %1 = vector.load %arg8[%c0_1, %c0_2] : memref<1x256xf32, #tpu.memory_space<vmem>>, vector<1x256xf32>
    %c0_3 = arith.constant 0 : index
    %c0_4 = arith.constant 0 : index
    %2 = vector.load %arg9[%c0_3, %c0_4] : memref<1x256xf32, #tpu.memory_space<vmem>>, vector<1x256xf32>
    %c0_5 = arith.constant 0 : index
    %c0_6 = arith.constant 0 : index
    %3 = vector.load %arg10[%c0_5, %c0_6] : memref<1x256xf32, #tpu.memory_space<vmem>>, vector<1x256xf32>
    %c0_7 = arith.constant 0 : index
    %c0_8 = arith.constant 0 : index
    %c0_9 = arith.constant 0 : index
    %4 = vector.load %arg0[%c0_7, %c0_8, %c0_9] : memref<2x2x1024xf32, #tpu.memory_space<vmem>>, vector<1x2x1024xf32>
    %5 = vector.shape_cast %4 : vector<1x2x1024xf32> to vector<2x1024xf32>
    %c0_10 = arith.constant 0 : index
    %c0_11 = arith.constant 0 : index
    %6 = vector.load %arg1[%c0_10, %c0_11] : memref<1024x512xf32, #tpu.memory_space<vmem>>, vector<1024x512xf32>
    %cst = arith.constant dense<0.000000e+00> : vector<2x512xf32>
    %7 = tpu.matmul %5, %6, %cst {dimension_numbers = #tpu.dot_dimension_numbers<[1], [0], [0], [1], [0, 0, 1, 1], [], []>} : vector<2x1024xf32>, vector<1024x512xf32>, vector<2x512xf32> -> vector<2x512xf32>
    %c0_12 = arith.constant 0 : index
    %c0_13 = arith.constant 0 : index
    %8 = vector.load %arg2[%c0_12, %c0_13] : memref<1x512xf32, #tpu.memory_space<vmem>>, vector<1x512xf32>
    %9 = vector.broadcast %8 : vector<1x512xf32> to vector<2x512xf32>
    %10 = arith.addf %7, %9 : vector<2x512xf32>
    %cst_14 = arith.constant 0.000000e+00 : f32
    %11 = vector.broadcast %cst_14 : f32 to vector<2x512xf32>
    %12 = arith.maximumf %10, %11 : vector<2x512xf32>
    %c0_15 = arith.constant 0 : index
    %c0_16 = arith.constant 0 : index
    %13 = vector.load %arg3[%c0_15, %c0_16] : memref<512x256xf32, #tpu.memory_space<vmem>>, vector<512x256xf32>
    %cst_17 = arith.constant dense<0.000000e+00> : vector<2x256xf32>
    %14 = tpu.matmul %12, %13, %cst_17 {dimension_numbers = #tpu.dot_dimension_numbers<[1], [0], [0], [1], [0, 0, 1, 1], [], []>} : vector<2x512xf32>, vector<512x256xf32>, vector<2x256xf32> -> vector<2x256xf32>
    %c0_18 = arith.constant 0 : index
    %c0_19 = arith.constant 0 : index
    %15 = vector.load %arg4[%c0_18, %c0_19] : memref<1x256xf32, #tpu.memory_space<vmem>>, vector<1x256xf32>
    %16 = vector.broadcast %15 : vector<1x256xf32> to vector<2x256xf32>
    %17 = arith.addf %14, %16 : vector<2x256xf32>
    %cst_20 = arith.constant 0.000000e+00 : f32
    %18 = vector.broadcast %cst_20 : f32 to vector<2x256xf32>
    %19 = arith.maximumf %17, %18 : vector<2x256xf32>
    %20 = vector.broadcast %0 : vector<1x256xf32> to vector<2x256xf32>
    %21 = arith.mulf %19, %20 : vector<2x256xf32>
    %22 = vector.broadcast %1 : vector<1x256xf32> to vector<2x256xf32>
    %23 = arith.addf %21, %22 : vector<2x256xf32>
    %c0_21 = arith.constant 0 : index
    %c0_22 = arith.constant 0 : index
    %24 = vector.load %arg5[%c0_21, %c0_22] : memref<256x256xf32, #tpu.memory_space<vmem>>, vector<256x256xf32>
    %cst_23 = arith.constant dense<0.000000e+00> : vector<2x256xf32>
    %25 = tpu.matmul %23, %24, %cst_23 {dimension_numbers = #tpu.dot_dimension_numbers<[1], [0], [0], [1], [0, 0, 1, 1], [], []>} : vector<2x256xf32>, vector<256x256xf32>, vector<2x256xf32> -> vector<2x256xf32>
    %c0_24 = arith.constant 0 : index
    %c0_25 = arith.constant 0 : index
    %26 = vector.load %arg6[%c0_24, %c0_25] : memref<1x256xf32, #tpu.memory_space<vmem>>, vector<1x256xf32>
    %27 = vector.broadcast %26 : vector<1x256xf32> to vector<2x256xf32>
    %28 = arith.addf %25, %27 : vector<2x256xf32>
    %cst_26 = arith.constant 0.000000e+00 : f32
    %29 = vector.broadcast %cst_26 : f32 to vector<2x256xf32>
    %30 = arith.maximumf %28, %29 : vector<2x256xf32>
    %31 = vector.broadcast %2 : vector<1x256xf32> to vector<2x256xf32>
    %32 = arith.mulf %30, %31 : vector<2x256xf32>
    %33 = vector.broadcast %3 : vector<1x256xf32> to vector<2x256xf32>
    %34 = arith.addf %32, %33 : vector<2x256xf32>
    %c1 = arith.constant 1 : index
    %c0_27 = arith.constant 0 : index
    %c0_28 = arith.constant 0 : index
    %35 = vector.load %arg0[%c1, %c0_27, %c0_28] : memref<2x2x1024xf32, #tpu.memory_space<vmem>>, vector<1x2x1024xf32>
    %36 = vector.shape_cast %35 : vector<1x2x1024xf32> to vector<2x1024xf32>
    %c0_29 = arith.constant 0 : index
    %c0_30 = arith.constant 0 : index
    %37 = vector.load %arg1[%c0_29, %c0_30] : memref<1024x512xf32, #tpu.memory_space<vmem>>, vector<1024x512xf32>
    %cst_31 = arith.constant dense<0.000000e+00> : vector<2x512xf32>
    %38 = tpu.matmul %36, %37, %cst_31 {dimension_numbers = #tpu.dot_dimension_numbers<[1], [0], [0], [1], [0, 0, 1, 1], [], []>} : vector<2x1024xf32>, vector<1024x512xf32>, vector<2x512xf32> -> vector<2x512xf32>
    %c0_32 = arith.constant 0 : index
    %c0_33 = arith.constant 0 : index
    %39 = vector.load %arg2[%c0_32, %c0_33] : memref<1x512xf32, #tpu.memory_space<vmem>>, vector<1x512xf32>
    %40 = vector.broadcast %39 : vector<1x512xf32> to vector<2x512xf32>
    %41 = arith.addf %38, %40 : vector<2x512xf32>
    %cst_34 = arith.constant 0.000000e+00 : f32
    %42 = vector.broadcast %cst_34 : f32 to vector<2x512xf32>
    %43 = arith.maximumf %41, %42 : vector<2x512xf32>
    %c0_35 = arith.constant 0 : index
    %c0_36 = arith.constant 0 : index
    %44 = vector.load %arg3[%c0_35, %c0_36] : memref<512x256xf32, #tpu.memory_space<vmem>>, vector<512x256xf32>
    %cst_37 = arith.constant dense<0.000000e+00> : vector<2x256xf32>
    %45 = tpu.matmul %43, %44, %cst_37 {dimension_numbers = #tpu.dot_dimension_numbers<[1], [0], [0], [1], [0, 0, 1, 1], [], []>} : vector<2x512xf32>, vector<512x256xf32>, vector<2x256xf32> -> vector<2x256xf32>
    %c0_38 = arith.constant 0 : index
    %c0_39 = arith.constant 0 : index
    %46 = vector.load %arg4[%c0_38, %c0_39] : memref<1x256xf32, #tpu.memory_space<vmem>>, vector<1x256xf32>
    %47 = vector.broadcast %46 : vector<1x256xf32> to vector<2x256xf32>
    %48 = arith.addf %45, %47 : vector<2x256xf32>
    %cst_40 = arith.constant 0.000000e+00 : f32
    %49 = vector.broadcast %cst_40 : f32 to vector<2x256xf32>
    %50 = arith.maximumf %48, %49 : vector<2x256xf32>
    %51 = vector.broadcast %0 : vector<1x256xf32> to vector<2x256xf32>
    %52 = arith.mulf %50, %51 : vector<2x256xf32>
    %53 = vector.broadcast %1 : vector<1x256xf32> to vector<2x256xf32>
    %54 = arith.addf %52, %53 : vector<2x256xf32>
    %c0_41 = arith.constant 0 : index
    %c0_42 = arith.constant 0 : index
    %55 = vector.load %arg5[%c0_41, %c0_42] : memref<256x256xf32, #tpu.memory_space<vmem>>, vector<256x256xf32>
    %cst_43 = arith.constant dense<0.000000e+00> : vector<2x256xf32>
    %56 = tpu.matmul %54, %55, %cst_43 {dimension_numbers = #tpu.dot_dimension_numbers<[1], [0], [0], [1], [0, 0, 1, 1], [], []>} : vector<2x256xf32>, vector<256x256xf32>, vector<2x256xf32> -> vector<2x256xf32>
    %c0_44 = arith.constant 0 : index
    %c0_45 = arith.constant 0 : index
    %57 = vector.load %arg6[%c0_44, %c0_45] : memref<1x256xf32, #tpu.memory_space<vmem>>, vector<1x256xf32>
    %58 = vector.broadcast %57 : vector<1x256xf32> to vector<2x256xf32>
    %59 = arith.addf %56, %58 : vector<2x256xf32>
    %cst_46 = arith.constant 0.000000e+00 : f32
    %60 = vector.broadcast %cst_46 : f32 to vector<2x256xf32>
    %61 = arith.maximumf %59, %60 : vector<2x256xf32>
    %62 = vector.broadcast %2 : vector<1x256xf32> to vector<2x256xf32>
    %63 = arith.mulf %61, %62 : vector<2x256xf32>
    %64 = vector.broadcast %3 : vector<1x256xf32> to vector<2x256xf32>
    %65 = arith.addf %63, %64 : vector<2x256xf32>
    %c0_47 = arith.constant 0 : index
    %c0_48 = arith.constant 0 : index
    %66 = vector.load %arg11[%c0_47, %c0_48] : memref<1x1024xf32, #tpu.memory_space<vmem>>, vector<1x1024xf32>
    %c0_49 = arith.constant 0 : index
    %c0_50 = arith.constant 0 : index
    %67 = vector.load %arg12[%c0_49, %c0_50] : memref<1x1024xf32, #tpu.memory_space<vmem>>, vector<1x1024xf32>
    %c0_51 = arith.constant 0 : index
    %c0_52 = arith.constant 0 : index
    %c0_53 = arith.constant 0 : index
    %68 = vector.load %arg13[%c0_51, %c0_52, %c0_53] : memref<2x256x1024xf32, #tpu.memory_space<vmem>>, vector<1x256x1024xf32>
    %69 = vector.shape_cast %68 : vector<1x256x1024xf32> to vector<256x1024xf32>
    %cst_54 = arith.constant dense<0.000000e+00> : vector<2x1024xf32>
    %70 = tpu.matmul %34, %69, %cst_54 {dimension_numbers = #tpu.dot_dimension_numbers<[1], [0], [0], [1], [0, 0, 1, 1], [], []>} : vector<2x256xf32>, vector<256x1024xf32>, vector<2x1024xf32> -> vector<2x1024xf32>
    %c0_55 = arith.constant 0 : index
    %c0_56 = arith.constant 0 : index
    %c0_57 = arith.constant 0 : index
    %71 = vector.load %arg14[%c0_55, %c0_56, %c0_57] : memref<2x1x1024xf32, #tpu.memory_space<vmem>>, vector<1x1x1024xf32>
    %72 = vector.shape_cast %71 : vector<1x1x1024xf32> to vector<1x1024xf32>
    %73 = vector.broadcast %72 : vector<1x1024xf32> to vector<2x1024xf32>
    %74 = arith.addf %70, %73 : vector<2x1024xf32>
    %cst_58 = arith.constant 0.000000e+00 : f32
    %75 = vector.broadcast %cst_58 : f32 to vector<2x1024xf32>
    %76 = arith.maximumf %74, %75 : vector<2x1024xf32>
    %77 = vector.broadcast %66 : vector<1x1024xf32> to vector<2x1024xf32>
    %78 = arith.mulf %76, %77 : vector<2x1024xf32>
    %79 = vector.broadcast %67 : vector<1x1024xf32> to vector<2x1024xf32>
    %80 = arith.addf %78, %79 : vector<2x1024xf32>
    %c1_59 = arith.constant 1 : index
    %c0_60 = arith.constant 0 : index
    %c0_61 = arith.constant 0 : index
    %81 = vector.load %arg13[%c1_59, %c0_60, %c0_61] : memref<2x256x1024xf32, #tpu.memory_space<vmem>>, vector<1x256x1024xf32>
    %82 = vector.shape_cast %81 : vector<1x256x1024xf32> to vector<256x1024xf32>
    %cst_62 = arith.constant dense<0.000000e+00> : vector<2x1024xf32>
    %83 = tpu.matmul %65, %82, %cst_62 {dimension_numbers = #tpu.dot_dimension_numbers<[1], [0], [0], [1], [0, 0, 1, 1], [], []>} : vector<2x256xf32>, vector<256x1024xf32>, vector<2x1024xf32> -> vector<2x1024xf32>
    %c1_63 = arith.constant 1 : index
    %c0_64 = arith.constant 0 : index
    %c0_65 = arith.constant 0 : index
    %84 = vector.load %arg14[%c1_63, %c0_64, %c0_65] : memref<2x1x1024xf32, #tpu.memory_space<vmem>>, vector<1x1x1024xf32>
    %85 = vector.shape_cast %84 : vector<1x1x1024xf32> to vector<1x1024xf32>
    %86 = vector.broadcast %85 : vector<1x1024xf32> to vector<2x1024xf32>
    %87 = arith.addf %83, %86 : vector<2x1024xf32>
    %cst_66 = arith.constant 0.000000e+00 : f32
    %88 = vector.broadcast %cst_66 : f32 to vector<2x1024xf32>
    %89 = arith.maximumf %87, %88 : vector<2x1024xf32>
    %90 = vector.broadcast %66 : vector<1x1024xf32> to vector<2x1024xf32>
    %91 = arith.mulf %89, %90 : vector<2x1024xf32>
    %92 = vector.broadcast %67 : vector<1x1024xf32> to vector<2x1024xf32>
    %93 = arith.addf %91, %92 : vector<2x1024xf32>
    %94 = vector.extract_strided_slice %80 {offsets = [0, 0], sizes = [2, 256], strides = [1, 1]} : vector<2x1024xf32> to vector<2x256xf32>
    %95 = vector.extract_strided_slice %93 {offsets = [0, 0], sizes = [2, 256], strides = [1, 1]} : vector<2x1024xf32> to vector<2x256xf32>
    %c0_67 = arith.constant 0 : index
    %c0_68 = arith.constant 0 : index
    %c0_69 = arith.constant 0 : index
    %96 = vector.load %arg15[%c0_67, %c0_68, %c0_69] : memref<4x256x256xf32, #tpu.memory_space<vmem>>, vector<1x256x256xf32>
    %97 = vector.shape_cast %96 : vector<1x256x256xf32> to vector<256x256xf32>
    %cst_70 = arith.constant dense<0.000000e+00> : vector<2x256xf32>
    %98 = tpu.matmul %94, %97, %cst_70 {dimension_numbers = #tpu.dot_dimension_numbers<[1], [0], [0], [1], [0, 0, 1, 1], [], []>} : vector<2x256xf32>, vector<256x256xf32>, vector<2x256xf32> -> vector<2x256xf32>
    %c0_71 = arith.constant 0 : index
    %c0_72 = arith.constant 0 : index
    %c0_73 = arith.constant 0 : index
    %99 = vector.load %arg16[%c0_71, %c0_72, %c0_73] : memref<4x256x256xf32, #tpu.memory_space<vmem>>, vector<1x256x256xf32>
    %100 = vector.shape_cast %99 : vector<1x256x256xf32> to vector<256x256xf32>
    %cst_74 = arith.constant dense<0.000000e+00> : vector<2x256xf32>
    %101 = tpu.matmul %95, %100, %cst_74 {dimension_numbers = #tpu.dot_dimension_numbers<[1], [0], [0], [1], [0, 0, 1, 1], [], []>} : vector<2x256xf32>, vector<256x256xf32>, vector<2x256xf32> -> vector<2x256xf32>
    %102 = arith.addf %98, %101 : vector<2x256xf32>
    %c0_75 = arith.constant 0 : index
    %c0_76 = arith.constant 0 : index
    %c0_77 = arith.constant 0 : index
    %103 = vector.load %arg17[%c0_75, %c0_76, %c0_77] : memref<4x1x256xf32, #tpu.memory_space<vmem>>, vector<1x1x256xf32>
    %104 = vector.shape_cast %103 : vector<1x1x256xf32> to vector<1x256xf32>
    %105 = vector.broadcast %104 : vector<1x256xf32> to vector<2x256xf32>
    %106 = arith.addf %102, %105 : vector<2x256xf32>
    %cst_78 = arith.constant 0.000000e+00 : f32
    %107 = vector.broadcast %cst_78 : f32 to vector<2x256xf32>
    %108 = arith.maximumf %106, %107 : vector<2x256xf32>
    %109 = vector.broadcast %0 : vector<1x256xf32> to vector<2x256xf32>
    %110 = arith.mulf %108, %109 : vector<2x256xf32>
    %111 = vector.broadcast %1 : vector<1x256xf32> to vector<2x256xf32>
    %112 = arith.addf %110, %111 : vector<2x256xf32>
    %c0_79 = arith.constant 0 : index
    %c0_80 = arith.constant 0 : index
    %c0_81 = arith.constant 0 : index
    %113 = vector.load %arg18[%c0_79, %c0_80, %c0_81] : memref<4x256x128xf32, #tpu.memory_space<vmem>>, vector<1x256x128xf32>
    %114 = vector.shape_cast %113 : vector<1x256x128xf32> to vector<256x128xf32>
    %cst_82 = arith.constant dense<0.000000e+00> : vector<2x128xf32>
    %115 = tpu.matmul %112, %114, %cst_82 {dimension_numbers = #tpu.dot_dimension_numbers<[1], [0], [0], [1], [0, 0, 1, 1], [], []>} : vector<2x256xf32>, vector<256x128xf32>, vector<2x128xf32> -> vector<2x128xf32>
    %c0_83 = arith.constant 0 : index
    %c0_84 = arith.constant 0 : index
    %c0_85 = arith.constant 0 : index
    %116 = vector.load %arg19[%c0_83, %c0_84, %c0_85] : memref<4x1x128xf32, #tpu.memory_space<vmem>>, vector<1x1x128xf32>
    %117 = vector.shape_cast %116 : vector<1x1x128xf32> to vector<1x128xf32>
    %118 = vector.broadcast %117 : vector<1x128xf32> to vector<2x128xf32>
    %119 = arith.addf %115, %118 : vector<2x128xf32>
    %120 = tpu.iota {dimensions = array<i32: 1>} : vector<2x128xi32>
    %c3_i32 = arith.constant 3 : i32
    %121 = vector.broadcast %c3_i32 : i32 to vector<2x128xi32>
    %122 = arith.cmpi slt, %120, %121 : vector<2x128xi32>
    %cst_86 = arith.constant -1.000000e+30 : f32
    %123 = vector.broadcast %cst_86 : f32 to vector<2x128xf32>
    %124 = arith.select %122, %119, %123 : vector<2x128xi1>, vector<2x128xf32>
    %cst_87 = arith.constant dense<0xFF800000> : vector<2xf32>
    %125 = vector.multi_reduction <maximumf>, %124, %cst_87 [1] : vector<2x128xf32> to vector<2xf32>
    %126 = vector.shape_cast %125 : vector<2xf32> to vector<2x1xf32>
    %127 = vector.broadcast %126 : vector<2x1xf32> to vector<2x128xf32>
    %128 = arith.subf %124, %127 : vector<2x128xf32>
    %129 = math.exp %128 : vector<2x128xf32>
    %cst_88 = arith.constant dense<0.000000e+00> : vector<2xf32>
    %130 = vector.multi_reduction <add>, %129, %cst_88 [1] : vector<2x128xf32> to vector<2xf32>
    %131 = vector.shape_cast %130 : vector<2xf32> to vector<2x1xf32>
    %132 = tpu.reciprocal %131 {approx = true} : vector<2x1xf32> -> vector<2x1xf32>
    %133 = vector.broadcast %132 : vector<2x1xf32> to vector<2x128xf32>
    %134 = arith.mulf %129, %133 : vector<2x128xf32>
    %c0_89 = arith.constant 0 : index
    %c0_90 = arith.constant 0 : index
    %135 = vector.load %arg20[%c0_89, %c0_90] : memref<2x512xf32, #tpu.memory_space<vmem>>, vector<2x128xf32>
    tpu.vector_store %arg20[%c0_89, %c0_90], %134 {strides = array<i32>} : memref<2x512xf32, #tpu.memory_space<vmem>>, vector<2x128xf32>,
    %136 = vector.extract_strided_slice %80 {offsets = [0, 256], sizes = [2, 256], strides = [1, 1]} : vector<2x1024xf32> to vector<2x256xf32>
    %137 = vector.extract_strided_slice %93 {offsets = [0, 256], sizes = [2, 256], strides = [1, 1]} : vector<2x1024xf32> to vector<2x256xf32>
    %c1_91 = arith.constant 1 : index
    %c0_92 = arith.constant 0 : index
    %c0_93 = arith.constant 0 : index
    %138 = vector.load %arg15[%c1_91, %c0_92, %c0_93] : memref<4x256x256xf32, #tpu.memory_space<vmem>>, vector<1x256x256xf32>
    %139 = vector.shape_cast %138 : vector<1x256x256xf32> to vector<256x256xf32>
    %cst_94 = arith.constant dense<0.000000e+00> : vector<2x256xf32>
    %140 = tpu.matmul %136, %139, %cst_94 {dimension_numbers = #tpu.dot_dimension_numbers<[1], [0], [0], [1], [0, 0, 1, 1], [], []>} : vector<2x256xf32>, vector<256x256xf32>, vector<2x256xf32> -> vector<2x256xf32>
    %c1_95 = arith.constant 1 : index
    %c0_96 = arith.constant 0 : index
    %c0_97 = arith.constant 0 : index
    %141 = vector.load %arg16[%c1_95, %c0_96, %c0_97] : memref<4x256x256xf32, #tpu.memory_space<vmem>>, vector<1x256x256xf32>
    %142 = vector.shape_cast %141 : vector<1x256x256xf32> to vector<256x256xf32>
    %cst_98 = arith.constant dense<0.000000e+00> : vector<2x256xf32>
    %143 = tpu.matmul %137, %142, %cst_98 {dimension_numbers = #tpu.dot_dimension_numbers<[1], [0], [0], [1], [0, 0, 1, 1], [], []>} : vector<2x256xf32>, vector<256x256xf32>, vector<2x256xf32> -> vector<2x256xf32>
    %144 = arith.addf %140, %143 : vector<2x256xf32>
    %c1_99 = arith.constant 1 : index
    %c0_100 = arith.constant 0 : index
    %c0_101 = arith.constant 0 : index
    %145 = vector.load %arg17[%c1_99, %c0_100, %c0_101] : memref<4x1x256xf32, #tpu.memory_space<vmem>>, vector<1x1x256xf32>
    %146 = vector.shape_cast %145 : vector<1x1x256xf32> to vector<1x256xf32>
    %147 = vector.broadcast %146 : vector<1x256xf32> to vector<2x256xf32>
    %148 = arith.addf %144, %147 : vector<2x256xf32>
    %cst_102 = arith.constant 0.000000e+00 : f32
    %149 = vector.broadcast %cst_102 : f32 to vector<2x256xf32>
    %150 = arith.maximumf %148, %149 : vector<2x256xf32>
    %151 = vector.broadcast %0 : vector<1x256xf32> to vector<2x256xf32>
    %152 = arith.mulf %150, %151 : vector<2x256xf32>
    %153 = vector.broadcast %1 : vector<1x256xf32> to vector<2x256xf32>
    %154 = arith.addf %152, %153 : vector<2x256xf32>
    %c1_103 = arith.constant 1 : index
    %c0_104 = arith.constant 0 : index
    %c0_105 = arith.constant 0 : index
    %155 = vector.load %arg18[%c1_103, %c0_104, %c0_105] : memref<4x256x128xf32, #tpu.memory_space<vmem>>, vector<1x256x128xf32>
    %156 = vector.shape_cast %155 : vector<1x256x128xf32> to vector<256x128xf32>
    %cst_106 = arith.constant dense<0.000000e+00> : vector<2x128xf32>
    %157 = tpu.matmul %154, %156, %cst_106 {dimension_numbers = #tpu.dot_dimension_numbers<[1], [0], [0], [1], [0, 0, 1, 1], [], []>} : vector<2x256xf32>, vector<256x128xf32>, vector<2x128xf32> -> vector<2x128xf32>
    %c1_107 = arith.constant 1 : index
    %c0_108 = arith.constant 0 : index
    %c0_109 = arith.constant 0 : index
    %158 = vector.load %arg19[%c1_107, %c0_108, %c0_109] : memref<4x1x128xf32, #tpu.memory_space<vmem>>, vector<1x1x128xf32>
    %159 = vector.shape_cast %158 : vector<1x1x128xf32> to vector<1x128xf32>
    %160 = vector.broadcast %159 : vector<1x128xf32> to vector<2x128xf32>
    %161 = arith.addf %157, %160 : vector<2x128xf32>
    %162 = tpu.iota {dimensions = array<i32: 1>} : vector<2x128xi32>
    %c3_i32_110 = arith.constant 3 : i32
    %163 = vector.broadcast %c3_i32_110 : i32 to vector<2x128xi32>
    %164 = arith.cmpi slt, %162, %163 : vector<2x128xi32>
    %cst_111 = arith.constant -1.000000e+30 : f32
    %165 = vector.broadcast %cst_111 : f32 to vector<2x128xf32>
    %166 = arith.select %164, %161, %165 : vector<2x128xi1>, vector<2x128xf32>
    %cst_112 = arith.constant dense<0xFF800000> : vector<2xf32>
    %167 = vector.multi_reduction <maximumf>, %166, %cst_112 [1] : vector<2x128xf32> to vector<2xf32>
    %168 = vector.shape_cast %167 : vector<2xf32> to vector<2x1xf32>
    %169 = vector.broadcast %168 : vector<2x1xf32> to vector<2x128xf32>
    %170 = arith.subf %166, %169 : vector<2x128xf32>
    %171 = math.exp %170 : vector<2x128xf32>
    %cst_113 = arith.constant dense<0.000000e+00> : vector<2xf32>
    %172 = vector.multi_reduction <add>, %171, %cst_113 [1] : vector<2x128xf32> to vector<2xf32>
    %173 = vector.shape_cast %172 : vector<2xf32> to vector<2x1xf32>
    %174 = tpu.reciprocal %173 {approx = true} : vector<2x1xf32> -> vector<2x1xf32>
    %175 = vector.broadcast %174 : vector<2x1xf32> to vector<2x128xf32>
    %176 = arith.mulf %171, %175 : vector<2x128xf32>
    %c0_114 = arith.constant 0 : index
    %c128 = arith.constant 128 : index
    %177 = vector.load %arg20[%c0_114, %c128] : memref<2x512xf32, #tpu.memory_space<vmem>>, vector<2x128xf32>
    tpu.vector_store %arg20[%c0_114, %c128], %176 {strides = array<i32>} : memref<2x512xf32, #tpu.memory_space<vmem>>, vector<2x128xf32>,
    %178 = vector.extract_strided_slice %80 {offsets = [0, 512], sizes = [2, 256], strides = [1, 1]} : vector<2x1024xf32> to vector<2x256xf32>
    %179 = vector.extract_strided_slice %93 {offsets = [0, 512], sizes = [2, 256], strides = [1, 1]} : vector<2x1024xf32> to vector<2x256xf32>
    %c2 = arith.constant 2 : index
    %c0_115 = arith.constant 0 : index
    %c0_116 = arith.constant 0 : index
    %180 = vector.load %arg15[%c2, %c0_115, %c0_116] : memref<4x256x256xf32, #tpu.memory_space<vmem>>, vector<1x256x256xf32>
    %181 = vector.shape_cast %180 : vector<1x256x256xf32> to vector<256x256xf32>
    %cst_117 = arith.constant dense<0.000000e+00> : vector<2x256xf32>
    %182 = tpu.matmul %178, %181, %cst_117 {dimension_numbers = #tpu.dot_dimension_numbers<[1], [0], [0], [1], [0, 0, 1, 1], [], []>} : vector<2x256xf32>, vector<256x256xf32>, vector<2x256xf32> -> vector<2x256xf32>
    %c2_118 = arith.constant 2 : index
    %c0_119 = arith.constant 0 : index
    %c0_120 = arith.constant 0 : index
    %183 = vector.load %arg16[%c2_118, %c0_119, %c0_120] : memref<4x256x256xf32, #tpu.memory_space<vmem>>, vector<1x256x256xf32>
    %184 = vector.shape_cast %183 : vector<1x256x256xf32> to vector<256x256xf32>
    %cst_121 = arith.constant dense<0.000000e+00> : vector<2x256xf32>
    %185 = tpu.matmul %179, %184, %cst_121 {dimension_numbers = #tpu.dot_dimension_numbers<[1], [0], [0], [1], [0, 0, 1, 1], [], []>} : vector<2x256xf32>, vector<256x256xf32>, vector<2x256xf32> -> vector<2x256xf32>
    %186 = arith.addf %182, %185 : vector<2x256xf32>
    %c2_122 = arith.constant 2 : index
    %c0_123 = arith.constant 0 : index
    %c0_124 = arith.constant 0 : index
    %187 = vector.load %arg17[%c2_122, %c0_123, %c0_124] : memref<4x1x256xf32, #tpu.memory_space<vmem>>, vector<1x1x256xf32>
    %188 = vector.shape_cast %187 : vector<1x1x256xf32> to vector<1x256xf32>
    %189 = vector.broadcast %188 : vector<1x256xf32> to vector<2x256xf32>
    %190 = arith.addf %186, %189 : vector<2x256xf32>
    %cst_125 = arith.constant 0.000000e+00 : f32
    %191 = vector.broadcast %cst_125 : f32 to vector<2x256xf32>
    %192 = arith.maximumf %190, %191 : vector<2x256xf32>
    %193 = vector.broadcast %0 : vector<1x256xf32> to vector<2x256xf32>
    %194 = arith.mulf %192, %193 : vector<2x256xf32>
    %195 = vector.broadcast %1 : vector<1x256xf32> to vector<2x256xf32>
    %196 = arith.addf %194, %195 : vector<2x256xf32>
    %c2_126 = arith.constant 2 : index
    %c0_127 = arith.constant 0 : index
    %c0_128 = arith.constant 0 : index
    %197 = vector.load %arg18[%c2_126, %c0_127, %c0_128] : memref<4x256x128xf32, #tpu.memory_space<vmem>>, vector<1x256x128xf32>
    %198 = vector.shape_cast %197 : vector<1x256x128xf32> to vector<256x128xf32>
    %cst_129 = arith.constant dense<0.000000e+00> : vector<2x128xf32>
    %199 = tpu.matmul %196, %198, %cst_129 {dimension_numbers = #tpu.dot_dimension_numbers<[1], [0], [0], [1], [0, 0, 1, 1], [], []>} : vector<2x256xf32>, vector<256x128xf32>, vector<2x128xf32> -> vector<2x128xf32>
    %c2_130 = arith.constant 2 : index
    %c0_131 = arith.constant 0 : index
    %c0_132 = arith.constant 0 : index
    %200 = vector.load %arg19[%c2_130, %c0_131, %c0_132] : memref<4x1x128xf32, #tpu.memory_space<vmem>>, vector<1x1x128xf32>
    %201 = vector.shape_cast %200 : vector<1x1x128xf32> to vector<1x128xf32>
    %202 = vector.broadcast %201 : vector<1x128xf32> to vector<2x128xf32>
    %203 = arith.addf %199, %202 : vector<2x128xf32>
    %204 = tpu.iota {dimensions = array<i32: 1>} : vector<2x128xi32>
    %c6_i32 = arith.constant 6 : i32
    %205 = vector.broadcast %c6_i32 : i32 to vector<2x128xi32>
    %206 = arith.cmpi slt, %204, %205 : vector<2x128xi32>
    %cst_133 = arith.constant -1.000000e+30 : f32
    %207 = vector.broadcast %cst_133 : f32 to vector<2x128xf32>
    %208 = arith.select %206, %203, %207 : vector<2x128xi1>, vector<2x128xf32>
    %cst_134 = arith.constant dense<0xFF800000> : vector<2xf32>
    %209 = vector.multi_reduction <maximumf>, %208, %cst_134 [1] : vector<2x128xf32> to vector<2xf32>
    %210 = vector.shape_cast %209 : vector<2xf32> to vector<2x1xf32>
    %211 = vector.broadcast %210 : vector<2x1xf32> to vector<2x128xf32>
    %212 = arith.subf %208, %211 : vector<2x128xf32>
    %213 = math.exp %212 : vector<2x128xf32>
    %cst_135 = arith.constant dense<0.000000e+00> : vector<2xf32>
    %214 = vector.multi_reduction <add>, %213, %cst_135 [1] : vector<2x128xf32> to vector<2xf32>
    %215 = vector.shape_cast %214 : vector<2xf32> to vector<2x1xf32>
    %216 = tpu.reciprocal %215 {approx = true} : vector<2x1xf32> -> vector<2x1xf32>
    %217 = vector.broadcast %216 : vector<2x1xf32> to vector<2x128xf32>
    %218 = arith.mulf %213, %217 : vector<2x128xf32>
    %c0_136 = arith.constant 0 : index
    %c256 = arith.constant 256 : index
    %219 = vector.load %arg20[%c0_136, %c256] : memref<2x512xf32, #tpu.memory_space<vmem>>, vector<2x128xf32>
    tpu.vector_store %arg20[%c0_136, %c256], %218 {strides = array<i32>} : memref<2x512xf32, #tpu.memory_space<vmem>>, vector<2x128xf32>,
    %220 = vector.extract_strided_slice %80 {offsets = [0, 768], sizes = [2, 256], strides = [1, 1]} : vector<2x1024xf32> to vector<2x256xf32>
    %221 = vector.extract_strided_slice %93 {offsets = [0, 768], sizes = [2, 256], strides = [1, 1]} : vector<2x1024xf32> to vector<2x256xf32>
    %c3 = arith.constant 3 : index
    %c0_137 = arith.constant 0 : index
    %c0_138 = arith.constant 0 : index
    %222 = vector.load %arg15[%c3, %c0_137, %c0_138] : memref<4x256x256xf32, #tpu.memory_space<vmem>>, vector<1x256x256xf32>
    %223 = vector.shape_cast %222 : vector<1x256x256xf32> to vector<256x256xf32>
    %cst_139 = arith.constant dense<0.000000e+00> : vector<2x256xf32>
    %224 = tpu.matmul %220, %223, %cst_139 {dimension_numbers = #tpu.dot_dimension_numbers<[1], [0], [0], [1], [0, 0, 1, 1], [], []>} : vector<2x256xf32>, vector<256x256xf32>, vector<2x256xf32> -> vector<2x256xf32>
    %c3_140 = arith.constant 3 : index
    %c0_141 = arith.constant 0 : index
    %c0_142 = arith.constant 0 : index
    %225 = vector.load %arg16[%c3_140, %c0_141, %c0_142] : memref<4x256x256xf32, #tpu.memory_space<vmem>>, vector<1x256x256xf32>
    %226 = vector.shape_cast %225 : vector<1x256x256xf32> to vector<256x256xf32>
    %cst_143 = arith.constant dense<0.000000e+00> : vector<2x256xf32>
    %227 = tpu.matmul %221, %226, %cst_143 {dimension_numbers = #tpu.dot_dimension_numbers<[1], [0], [0], [1], [0, 0, 1, 1], [], []>} : vector<2x256xf32>, vector<256x256xf32>, vector<2x256xf32> -> vector<2x256xf32>
    %228 = arith.addf %224, %227 : vector<2x256xf32>
    %c3_144 = arith.constant 3 : index
    %c0_145 = arith.constant 0 : index
    %c0_146 = arith.constant 0 : index
    %229 = vector.load %arg17[%c3_144, %c0_145, %c0_146] : memref<4x1x256xf32, #tpu.memory_space<vmem>>, vector<1x1x256xf32>
    %230 = vector.shape_cast %229 : vector<1x1x256xf32> to vector<1x256xf32>
    %231 = vector.broadcast %230 : vector<1x256xf32> to vector<2x256xf32>
    %232 = arith.addf %228, %231 : vector<2x256xf32>
    %cst_147 = arith.constant 0.000000e+00 : f32
    %233 = vector.broadcast %cst_147 : f32 to vector<2x256xf32>
    %234 = arith.maximumf %232, %233 : vector<2x256xf32>
    %235 = vector.broadcast %0 : vector<1x256xf32> to vector<2x256xf32>
    %236 = arith.mulf %234, %235 : vector<2x256xf32>
    %237 = vector.broadcast %1 : vector<1x256xf32> to vector<2x256xf32>
    %238 = arith.addf %236, %237 : vector<2x256xf32>
    %c3_148 = arith.constant 3 : index
    %c0_149 = arith.constant 0 : index
    %c0_150 = arith.constant 0 : index
    %239 = vector.load %arg18[%c3_148, %c0_149, %c0_150] : memref<4x256x128xf32, #tpu.memory_space<vmem>>, vector<1x256x128xf32>
    %240 = vector.shape_cast %239 : vector<1x256x128xf32> to vector<256x128xf32>
    %cst_151 = arith.constant dense<0.000000e+00> : vector<2x128xf32>
    %241 = tpu.matmul %238, %240, %cst_151 {dimension_numbers = #tpu.dot_dimension_numbers<[1], [0], [0], [1], [0, 0, 1, 1], [], []>} : vector<2x256xf32>, vector<256x128xf32>, vector<2x128xf32> -> vector<2x128xf32>
    %c3_152 = arith.constant 3 : index
    %c0_153 = arith.constant 0 : index
    %c0_154 = arith.constant 0 : index
    %242 = vector.load %arg19[%c3_152, %c0_153, %c0_154] : memref<4x1x128xf32, #tpu.memory_space<vmem>>, vector<1x1x128xf32>
    %243 = vector.shape_cast %242 : vector<1x1x128xf32> to vector<1x128xf32>
    %244 = vector.broadcast %243 : vector<1x128xf32> to vector<2x128xf32>
    %245 = arith.addf %241, %244 : vector<2x128xf32>
    %246 = tpu.iota {dimensions = array<i32: 1>} : vector<2x128xi32>
    %c4_i32 = arith.constant 4 : i32
    %247 = vector.broadcast %c4_i32 : i32 to vector<2x128xi32>
    %248 = arith.cmpi slt, %246, %247 : vector<2x128xi32>
    %cst_155 = arith.constant -1.000000e+30 : f32
    %249 = vector.broadcast %cst_155 : f32 to vector<2x128xf32>
    %250 = arith.select %248, %245, %249 : vector<2x128xi1>, vector<2x128xf32>
    %cst_156 = arith.constant dense<0xFF800000> : vector<2xf32>
    %251 = vector.multi_reduction <maximumf>, %250, %cst_156 [1] : vector<2x128xf32> to vector<2xf32>
    %252 = vector.shape_cast %251 : vector<2xf32> to vector<2x1xf32>
    %253 = vector.broadcast %252 : vector<2x1xf32> to vector<2x128xf32>
    %254 = arith.subf %250, %253 : vector<2x128xf32>
    %255 = math.exp %254 : vector<2x128xf32>
    %cst_157 = arith.constant dense<0.000000e+00> : vector<2xf32>
    %256 = vector.multi_reduction <add>, %255, %cst_157 [1] : vector<2x128xf32> to vector<2xf32>
    %257 = vector.shape_cast %256 : vector<2xf32> to vector<2x1xf32>
    %258 = tpu.reciprocal %257 {approx = true} : vector<2x1xf32> -> vector<2x1xf32>
    %259 = vector.broadcast %258 : vector<2x1xf32> to vector<2x128xf32>
    %260 = arith.mulf %255, %259 : vector<2x128xf32>
    %c0_158 = arith.constant 0 : index
    %c384 = arith.constant 384 : index
    %261 = vector.load %arg20[%c0_158, %c384] : memref<2x512xf32, #tpu.memory_space<vmem>>, vector<2x128xf32>
    tpu.vector_store %arg20[%c0_158, %c384], %260 {strides = array<i32>} : memref<2x512xf32, #tpu.memory_space<vmem>>, vector<2x128xf32>,
    return
  }
}

</mosaic_0001>

<bundles_post_ra>
// kernel: forward.1
= control target key start
LH: loop header
LB: loop body
LE: loop exit
PB: predicated region body
PF: predicated region fallthrough
CT: control target
= control target key end

     0   :  { %s7794_s0 = inlined_call_operand.vmem [shape: f32[2,2,1024], index: 0, kind: input, shape index: {}]   ;;  %s7795_s1 = inlined_call_operand.hbm [shape: f32[1024,512], index: 1, kind: input, shape index: {}]   ;;  %s7796_s2 = inlined_call_operand.hbm [shape: f32[1,512], index: 2, kind: input, shape index: {}]   ;;  %s7797_s3 = inlined_call_operand.hbm [shape: f32[512,256], index: 3, kind: input, shape index: {}]   ;;  %s7798_s4 = inlined_call_operand.hbm [shape: f32[1,256], index: 4, kind: input, shape index: {}]   ;;  %s7799_s5 = inlined_call_operand.hbm [shape: f32[256,256], index: 5, kind: input, shape index: {}]   ;;  %s7800_s6 = inlined_call_operand.hbm [shape: f32[1,256], index: 6, kind: input, shape index: {}]   ;;  %s7801_s7 = inlined_call_operand.hbm [shape: f32[1,256], index: 7, kind: input, shape index: {}]   ;;  %s7802_s8 = inlined_call_operand.hbm [shape: f32[1,256], index: 8, kind: input, shape index: {}]   ;;  %s7803_s9 = inlined_call_operand.hbm [shape: f32[1,256], index: 9, kind: input, shape index: {}]   ;;  %s7804_s10 = inlined_call_operand.hbm [shape: f32[1,256], index: 10, kind: input, shape index: {}]   ;;  %s7805_s11 = inlined_call_operand.hbm [shape: f32[1,1024], index: 11, kind: input, shape index: {}]   ;;  %s7806_s12 = inlined_call_operand.hbm [shape: f32[1,1024], index: 12, kind: input, shape index: {}]   ;;  %s7807_s13 = inlined_call_operand.hbm [shape: f32[2,256,1024], index: 13, kind: input, shape index: {}]   ;;  %s7808_s14 = inlined_call_operand.hbm [shape: f32[2,1,1024], index: 14, kind: input, shape index: {}]   ;;  %s7809_s15 = inlined_call_operand.hbm [shape: f32[4,256,256], index: 15, kind: input, shape index: {}]   ;;  %s7810_s16 = inlined_call_operand.hbm [shape: f32[4,256,256], index: 16, kind: input, shape index: {}]   ;;  %s7811_s17 = inlined_call_operand.hbm [shape: f32[4,1,256], index: 17, kind: input, shape index: {}]   ;;  %s7812_s18 = inlined_call_operand.hbm [shape: f32[4,256,128], index: 18, kind: input, shape index: {}]   ;;  %s7813_s19 = inlined_call_operand.hbm [shape: f32[4,1,128], index: 19, kind: input, shape index: {}]   ;;  %s7814_s20 = inlined_call_operand.vmem [shape: f32[2,512], index: 20, kind: output, shape index: {}]  }
   0x1   :  { %7816 = sst [smem:[#allocation41_spill]] %s7794_s0 }
   0x2   :  { %7817 = sst [smem:[#allocation42_spill]] %s7795_s1 }
   0x3   :  { %7818 = sst [smem:[#allocation43_spill]] %s7796_s2 }
   0x4   :  { %7819 = sst [smem:[#allocation44_spill]] %s7797_s3 }
   0x5   :  { %7820 = sst [smem:[#allocation45_spill]] %s7798_s4 }
   0x6   :  { %25 = vsyncpa [#allocation3], 0 }
   0x7   :  { %26 = vsyncpa [#allocation5], 0 }
   0x8   :  { %27 = vsyncpa [#allocation8], 0 }
   0x9   :  { %28 = vsyncpa [#allocation11], 0 }
   0xa   :  { %29 = vsyncpa [#allocation14], 0 }
   0xb   :  { %30 = vsyncpa [#allocation17], 0 }
   0xc   :  { %31 = vsyncpa [#allocation20], 0 }
   0xd   :  { %32 = vsyncpa [#allocation23], 0 }
   0xe   :  { %33 = vsyncpa [#allocation26], 0 }
   0xf   :  { %34 = vsyncpa [#allocation29], 0  ;;  %s7077_s1 = smov [#allocation4]   ;;  %s7078_s23 = smov [#allocation7]  }
  0x10   :  { %s55_s22 = sshll.u32 %s7077_s1, 4  ;;  %s77_s24 = sshll.u32 %s7078_s23, 4  ;;  %s56_s22 = int_to_ptr.vmem [resolvable:$true] %s55_s22  ;;  %s78_s24 = int_to_ptr.vmem [resolvable:$true] %s77_s24 }
  0x11   :  { %s6685_s2 = scalar_lea.vmem %s56_s22, 64  ;;  %p6690_p1 = scmp.lt.s32.totalorder %s56_s22, %s56_s22 }
  0x12   :  { %p6686_p0 = scmp.ne.s32.totalorder %s56_s22, %s6685_s2  ;;  %p6691_p2 = scmp.lt.s32.totalorder %s6685_s2, %s6685_s2 }
  0x14   :  { %p6692_p3 = por %p6691_p2, %p6690_p1 }
  0x16   :  { %p6693_p4 = pnand %p6692_p3, %p6686_p0 }
  0x18   :  { %6696 = shalt.err (!%p6693_p4)
}
  0x19   :  { %s7821_s26 = sld [smem:[#allocation43_spill]]  ;;  %s6705_s27 = scalar_lea.vmem %s78_s24, 32 }
  0x1a   :  { %p6706_p5 = scmp.ne.s32.totalorder %s78_s24, %s6705_s27  ;;  %p6710_p6 = scmp.lt.s32.totalorder %s78_s24, %s78_s24 }
  0x1b   :  { %p6711_p7 = scmp.lt.s32.totalorder %s6705_s27, %s6705_s27 }
  0x1d   :  { %p6712_p8 = por %p6711_p7, %p6710_p6 }
  0x1f   :  { %58 = dma.hbm_to_vmem [thread:$0]  %s7821_s26, 64, %s56_s22, [#allocation5]  }
  0x20   :  { %p6713_p9 = pnand %p6712_p8, %p6706_p5 }
  0x22   :  { %6716 = shalt.err (!%p6713_p9)
}
  0x23   :  { %s7822_s29 = sld [smem:[#allocation45_spill]]  ;;  %s7079_s30 = smov [#allocation10]  }
  0x24   :  { %s99_s0 = sshll.u32 %s7079_s30, 4  ;;  %s7080_s21 = smov [#allocation13]   ;;  %s100_s0 = int_to_ptr.vmem [resolvable:$true] %s99_s0 }
  0x25   :  { %s119_s1 = sshll.u32 %s7080_s21, 4  ;;  %s6725_s23 = scalar_lea.vmem %s100_s0, 32  ;;  %s120_s1 = int_to_ptr.vmem [resolvable:$true] %s119_s1 }
  0x26   :  { %p6726_p10 = scmp.ne.s32.totalorder %s100_s0, %s6725_s23  ;;  %p6730_p11 = scmp.lt.s32.totalorder %s100_s0, %s100_s0 }
  0x27   :  { %p6731_p12 = scmp.lt.s32.totalorder %s6725_s23, %s6725_s23 }
  0x29   :  { %80 = dma.hbm_to_vmem [thread:$0]  %s7822_s29, 32, %s78_s24, [#allocation8]  }
  0x2a   :  { %p6732_p13 = por %p6731_p12, %p6730_p11 }
  0x2c   :  { %p6733_p0 = pnand %p6732_p13, %p6726_p10 }
  0x2e   :  { %6736 = shalt.err (!%p6733_p0)
}
  0x2f   :  { %102 = dma.hbm_to_vmem [thread:$0]  %s7800_s6, 32, %s100_s0, [#allocation11]  }
  0x30   :  { %s6745_s25 = scalar_lea.vmem %s120_s1, 32  ;;  %p6750_p2 = scmp.lt.s32.totalorder %s120_s1, %s120_s1 }
  0x31   :  { %p6746_p1 = scmp.ne.s32.totalorder %s120_s1, %s6745_s25  ;;  %p6751_p3 = scmp.lt.s32.totalorder %s6745_s25, %s6745_s25 }
  0x33   :  { %p6752_p4 = por %p6751_p3, %p6750_p2 }
  0x35   :  { %p6753_p5 = pnand %p6752_p4, %p6746_p1 }
  0x37   :  { %6756 = shalt.err (!%p6753_p5)
}
  0x38   :  { %122 = dma.hbm_to_vmem [thread:$0]  %s7802_s8, 32, %s120_s1, [#allocation14]  }
  0x39   :  { %s7081_s26 = smov [#allocation16]   ;;  %s7082_s28 = smov [#allocation19]  }
  0x3a   :  { %s139_s27 = sshll.u32 %s7081_s26, 4  ;;  %s159_s4 = sshll.u32 %s7082_s28, 4  ;;  %s140_s27 = int_to_ptr.vmem [resolvable:$true] %s139_s27  ;;  %s160_s4 = int_to_ptr.vmem [resolvable:$true] %s159_s4 }
  0x3b   :  { %s6765_s29 = scalar_lea.vmem %s140_s27, 32  ;;  %p6770_p7 = scmp.lt.s32.totalorder %s140_s27, %s140_s27 }
  0x3c   :  { %p6766_p6 = scmp.ne.s32.totalorder %s140_s27, %s6765_s29  ;;  %p6771_p8 = scmp.lt.s32.totalorder %s6765_s29, %s6765_s29 }
  0x3e   :  { %p6772_p9 = por %p6771_p8, %p6770_p7 }
  0x40   :  { %p6773_p10 = pnand %p6772_p9, %p6766_p6 }
  0x42   :  { %6776 = shalt.err (!%p6773_p10)
}
  0x43   :  { %142 = dma.hbm_to_vmem [thread:$0]  %s7804_s10, 32, %s140_s27, [#allocation17]  }
  0x44   :  { %s6785_s0 = scalar_lea.vmem %s160_s4, 128  ;;  %p6790_p12 = scmp.lt.s32.totalorder %s160_s4, %s160_s4 }
  0x45   :  { %p6786_p11 = scmp.ne.s32.totalorder %s160_s4, %s6785_s0  ;;  %p6791_p13 = scmp.lt.s32.totalorder %s6785_s0, %s6785_s0 }
  0x47   :  { %p6792_p0 = por %p6791_p13, %p6790_p12 }
  0x49   :  { %p6793_p1 = pnand %p6792_p0, %p6786_p11 }
  0x4b   :  { %6796 = shalt.err (!%p6793_p1)
}
  0x4c   :  { %162 = dma.hbm_to_vmem [thread:$0]  %s7806_s12, 128, %s160_s4, [#allocation20]  }
  0x4d   :  { %s7083_s1 = smov [#allocation22]  }
  0x4e   :  { %s180_s23 = sshll.u32 %s7083_s1, 4  ;;  %s181_s23 = int_to_ptr.vmem [resolvable:$true] %s180_s23 }
  0x4f   :  { %s6805_s22 = scalar_lea.vmem %s181_s23, 256  ;;  %p6810_p3 = scmp.lt.s32.totalorder %s181_s23, %s181_s23 }
  0x50   :  { %p6806_p2 = scmp.ne.s32.totalorder %s181_s23, %s6805_s22  ;;  %p6811_p4 = scmp.lt.s32.totalorder %s6805_s22, %s6805_s22 }
  0x52   :  { %p6812_p5 = por %p6811_p4, %p6810_p3 }
  0x54   :  { %p6813_p6 = pnand %p6812_p5, %p6806_p2 }
  0x56   :  { %6816 = shalt.err (!%p6813_p6)
}
  0x57   :  { %s7084_s10 = smov 128   ;;  %s7085_s2 = smov 8  }
  0x58   :  { %186 = dma.hbm_to_vmem [thread:$0]  %s7808_s14, 256, %s181_s23, [#allocation23], %s7084_s10, %s7084_s10, %s7085_s2  }
  0x59   :  { %s7086_s3 = smov [#allocation25]   ;;  %s7087_s12 = smov [#allocation28]  }
  0x5a   :  { %s204_s26 = sshll.u32 %s7086_s3, 4  ;;  %s228_s27 = sshll.u32 %s7087_s12, 4  ;;  %s205_s26 = int_to_ptr.vmem [resolvable:$true] %s204_s26  ;;  %s229_s27 = int_to_ptr.vmem [resolvable:$true] %s228_s27 }
  0x5b   :  { %s6825_s28 = scalar_lea.vmem %s205_s26, 32768  ;;  %p6830_p8 = scmp.lt.s32.totalorder %s205_s26, %s205_s26 }
  0x5c   :  { %p6826_p7 = scmp.ne.s32.totalorder %s205_s26, %s6825_s28  ;;  %p6831_p9 = scmp.lt.s32.totalorder %s6825_s28, %s6825_s28 }
  0x5e   :  { %p6832_p10 = por %p6831_p9, %p6830_p8 }
  0x60   :  { %p6833_p11 = pnand %p6832_p10, %p6826_p7 }
  0x62   :  { %6836 = shalt.err (!%p6833_p11)
}
  0x63   :  { %s7088_s4 = smov 256   ;;  %s7089_s29 = smov 16  }
  0x64   :  { %210 = dma.hbm_to_vmem [thread:$0]  %s7810_s16, 32768, %s205_s26, [#allocation26], %s7088_s4, %s7088_s4, %s7089_s29  }
  0x65   :  { %s6845_s14 = scalar_lea.vmem %s229_s27, 16384  ;;  %p6850_p13 = scmp.lt.s32.totalorder %s229_s27, %s229_s27 }
  0x66   :  { %p6846_p12 = scmp.ne.s32.totalorder %s229_s27, %s6845_s14  ;;  %p6851_p0 = scmp.lt.s32.totalorder %s6845_s14, %s6845_s14 }
  0x68   :  { %p6852_p1 = por %p6851_p0, %p6850_p13 }
  0x6a   :  { %p6853_p2 = pnand %p6852_p1, %p6846_p12 }
  0x6c   :  { %6856 = shalt.err (!%p6853_p2)
}
  0x6d   :  { %234 = dma.hbm_to_vmem [thread:$0]  %s7812_s18, 16384, %s229_s27, [#allocation29], %s7084_s10, %s7084_s10, %s7085_s2  }
  0x6e   :  { %s7090_s21 = smov [#allocation2]  }
  0x6f   :  { %s42_s1 = sshll.u32 %s7090_s21, 4  ;;  %s43_s1 = int_to_ptr.vmem [resolvable:$true] %s42_s1 }
  0x70   :  { %s6865_s23 = scalar_lea.vmem %s43_s1, 65536  ;;  %p6870_p4 = scmp.lt.s32.totalorder %s43_s1, %s43_s1 }
  0x71   :  { %p6866_p3 = scmp.ne.s32.totalorder %s43_s1, %s6865_s23  ;;  %p6871_p5 = scmp.lt.s32.totalorder %s6865_s23, %s6865_s23 }
  0x73   :  { %p6872_p6 = por %p6871_p5, %p6870_p4 }
  0x75   :  { %p6873_p7 = pnand %p6872_p6, %p6866_p3 }
  0x77   :  { %6876 = shalt.err (!%p6873_p7)
}
  0x78   :  { %s7091_s16 = smov 512   ;;  %s7092_s22 = smov 32  }
  0x79   :  { %s7823_s3 = sld [smem:[#allocation42_spill]]  ;;  %s7093_s26 = smov [#allocation6]  }
  0x7a   :  { %s64_s12 = sshll.u32 %s7093_s26, 4  ;;  %s7094_s18 = smov [#allocation9]   ;;  %s65_s12 = int_to_ptr.vmem [resolvable:$true] %s64_s12 }
  0x7b   :  { %s86_s10 = sshll.u32 %s7094_s18, 4  ;;  %s6885_s2 = scalar_lea.vmem %s65_s12, 16384  ;;  %s87_s10 = int_to_ptr.vmem [resolvable:$true] %s86_s10 }
  0x7c   :  { %p6886_p8 = scmp.ne.s32.totalorder %s65_s12, %s6885_s2  ;;  %p6890_p9 = scmp.lt.s32.totalorder %s65_s12, %s65_s12 }
  0x7d   :  { %p6891_p10 = scmp.lt.s32.totalorder %s6885_s2, %s6885_s2 }
  0x7f   :  { %48 = dma.hbm_to_vmem [thread:$0]  %s7823_s3, 65536, %s43_s1, [#allocation3], %s7091_s16, %s7091_s16, %s7092_s22  }
  0x80   :  { %p6892_p11 = por %p6891_p10, %p6890_p9 }
  0x82   :  { %p6893_p12 = pnand %p6892_p11, %p6886_p8 }
  0x84   :  { %6896 = shalt.err (!%p6893_p12)
}
  0x85   :  { %s7824_s6 = sld [smem:[#allocation44_spill]]  ;;  %s6905_s30 = scalar_lea.vmem %s87_s10, 8192 }
  0x86   :  { %p6906_p13 = scmp.ne.s32.totalorder %s87_s10, %s6905_s30  ;;  %p6910_p0 = scmp.lt.s32.totalorder %s87_s10, %s87_s10 }
  0x87   :  { %p6911_p1 = scmp.lt.s32.totalorder %s6905_s30, %s6905_s30 }
  0x89   :  { %p6912_p2 = por %p6911_p1, %p6910_p0 }
  0x8b   :  { %70 = dma.hbm_to_vmem [thread:$0]  %s7824_s6, 16384, %s65_s12, [#allocation5], %s7088_s4, %s7088_s4, %s7089_s29  }
  0x8c   :  { %p6913_p3 = pnand %p6912_p2, %p6906_p13 }
  0x8e   :  { %6916 = shalt.err (!%p6913_p3)
}
  0x8f   :  { %92 = dma.hbm_to_vmem [thread:$0]  %s7799_s5, 8192, %s87_s10, [#allocation8], %s7088_s4, %s7088_s4, %s7089_s29  }
  0x90   :  { %s7095_s8 = smov [#allocation12]   ;;  %s7096_s1 = smov [#allocation15]  }
  0x91   :  { %s109_s21 = sshll.u32 %s7095_s8, 4  ;;  %s129_s23 = sshll.u32 %s7096_s1, 4  ;;  %s110_s21 = int_to_ptr.vmem [resolvable:$true] %s109_s21  ;;  %s130_s23 = int_to_ptr.vmem [resolvable:$true] %s129_s23 }
  0x92   :  { %s6925_s16 = scalar_lea.vmem %s110_s21, 32  ;;  %p6930_p5 = scmp.lt.s32.totalorder %s110_s21, %s110_s21 }
  0x93   :  { %p6926_p4 = scmp.ne.s32.totalorder %s110_s21, %s6925_s16  ;;  %p6931_p6 = scmp.lt.s32.totalorder %s6925_s16, %s6925_s16 }
  0x95   :  { %p6932_p7 = por %p6931_p6, %p6930_p5 }
  0x97   :  { %p6933_p8 = pnand %p6932_p7, %p6926_p4 }
  0x99   :  { %6936 = shalt.err (!%p6933_p8)
}
  0x9a   :  { %112 = dma.hbm_to_vmem [thread:$0]  %s7801_s7, 32, %s110_s21, [#allocation11]  }
  0x9b   :  { %s6945_s3 = scalar_lea.vmem %s130_s23, 32  ;;  %p6950_p10 = scmp.lt.s32.totalorder %s130_s23, %s130_s23 }
  0x9c   :  { %p6946_p9 = scmp.ne.s32.totalorder %s130_s23, %s6945_s3  ;;  %p6951_p11 = scmp.lt.s32.totalorder %s6945_s3, %s6945_s3 }
  0x9e   :  { %p6952_p12 = por %p6951_p11, %p6950_p10 }
  0xa0   :  { %p6953_p13 = pnand %p6952_p12, %p6946_p9 }
  0xa2   :  { %6956 = shalt.err (!%p6953_p13)
}
  0xa3   :  { %132 = dma.hbm_to_vmem [thread:$0]  %s7803_s9, 32, %s130_s23, [#allocation14]  }
  0xa4   :  { %s7097_s12 = smov [#allocation18]   ;;  %s7098_s10 = smov [#allocation21]  }
  0xa5   :  { %s149_s18 = sshll.u32 %s7097_s12, 4  ;;  %s168_s2 = sshll.u32 %s7098_s10, 4  ;;  %s150_s18 = int_to_ptr.vmem [resolvable:$true] %s149_s18  ;;  %s169_s2 = int_to_ptr.vmem [resolvable:$true] %s168_s2 }
  0xa6   :  { %s6965_s27 = scalar_lea.vmem %s150_s18, 128  ;;  %p6970_p1 = scmp.lt.s32.totalorder %s150_s18, %s150_s18 }
  0xa7   :  { %p6966_p0 = scmp.ne.s32.totalorder %s150_s18, %s6965_s27  ;;  %p6971_p2 = scmp.lt.s32.totalorder %s6965_s27, %s6965_s27 }
  0xa9   :  { %p6972_p3 = por %p6971_p2, %p6970_p1 }
  0xab   :  { %p6973_p4 = pnand %p6972_p3, %p6966_p0 }
  0xad   :  { %6976 = shalt.err (!%p6973_p4)
}
  0xae   :  { %152 = dma.hbm_to_vmem [thread:$0]  %s7805_s11, 128, %s150_s18, [#allocation17]  }
  0xaf   :  { %s6985_s6 = scalar_lea.vmem %s169_s2, 65536  ;;  %p6990_p6 = scmp.lt.s32.totalorder %s169_s2, %s169_s2 }
  0xb0   :  { %p6986_p5 = scmp.ne.s32.totalorder %s169_s2, %s6985_s6  ;;  %p6991_p7 = scmp.lt.s32.totalorder %s6985_s6, %s6985_s6 }
  0xb2   :  { %p6992_p8 = por %p6991_p7, %p6990_p6 }
  0xb4   :  { %p6993_p9 = pnand %p6992_p8, %p6986_p5 }
  0xb6   :  { %6996 = shalt.err (!%p6993_p9)
}
  0xb7   :  { %s7099_s9 = smov 1024   ;;  %s7100_s30 = smov 64  }
  0xb8   :  { %174 = dma.hbm_to_vmem [thread:$0]  %s7807_s13, 65536, %s169_s2, [#allocation20], %s7099_s9, %s7099_s9, %s7100_s30  }
  0xb9   :  { %s7101_s8 = smov [#allocation24]   ;;  %s7102_s1 = smov [#allocation27]  }
  0xba   :  { %s192_s21 = sshll.u32 %s7101_s8, 4  ;;  %s216_s23 = sshll.u32 %s7102_s1, 4  ;;  %s193_s21 = int_to_ptr.vmem [resolvable:$true] %s192_s21  ;;  %s217_s23 = int_to_ptr.vmem [resolvable:$true] %s216_s23 }
  0xbb   :  { %s7005_s11 = scalar_lea.vmem %s193_s21, 32768  ;;  %p7010_p11 = scmp.lt.s32.totalorder %s193_s21, %s193_s21 }
  0xbc   :  { %p7006_p10 = scmp.ne.s32.totalorder %s193_s21, %s7005_s11  ;;  %p7011_p12 = scmp.lt.s32.totalorder %s7005_s11, %s7005_s11 }
  0xbe   :  { %p7012_p13 = por %p7011_p12, %p7010_p11 }
  0xc0   :  { %p7013_p0 = pnand %p7012_p13, %p7006_p10 }
  0xc2   :  { %7016 = shalt.err (!%p7013_p0)
}
  0xc3   :  { %198 = dma.hbm_to_vmem [thread:$0]  %s7809_s15, 32768, %s193_s21, [#allocation23], %s7088_s4, %s7088_s4, %s7089_s29  }
  0xc4   :  { %s7025_s13 = scalar_lea.vmem %s217_s23, 128  ;;  %p7030_p2 = scmp.lt.s32.totalorder %s217_s23, %s217_s23 }
  0xc5   :  { %p7026_p1 = scmp.ne.s32.totalorder %s217_s23, %s7025_s13  ;;  %p7031_p3 = scmp.lt.s32.totalorder %s7025_s13, %s7025_s13 }
  0xc7   :  { %p7032_p4 = por %p7031_p3, %p7030_p2 }
  0xc9   :  { %p7033_p5 = pnand %p7032_p4, %p7026_p1 }
  0xcb   :  { %7036 = shalt.err (!%p7033_p5)
}
  0xcc   :  { %s7103_s24 = smov 2   ;;  %s7104_s26 = smov [#allocation30]  }
  0xcd   :  { %222 = dma.hbm_to_vmem [thread:$0]  %s7811_s17, 128, %s217_s23, [#allocation26], %s7092_s22, %s7092_s22, %s7103_s24  }
  0xce   :  { %s240_s12 = sshll.u32 %s7104_s26, 4  ;;  %s241_s12 = int_to_ptr.vmem [resolvable:$true] %s240_s12 }
  0xcf   :  { %s7045_s18 = scalar_lea.vmem %s241_s12, 64  ;;  %p7050_p7 = scmp.lt.s32.totalorder %s241_s12, %s241_s12 }
  0xd0   :  { %p7046_p6 = scmp.ne.s32.totalorder %s241_s12, %s7045_s18  ;;  %p7051_p8 = scmp.lt.s32.totalorder %s7045_s18, %s7045_s18 }
  0xd2   :  { %p7052_p9 = por %p7051_p8, %p7050_p7 }
  0xd4   :  { %p7053_p10 = pnand %p7052_p9, %p7046_p6 }
  0xd6   :  { %7056 = shalt.err (!%p7053_p10)
}
  0xd7   :  { %s7105_s15 = smov 1  }
  0xd8   :  { %246 = dma.hbm_to_vmem [thread:$0]  %s7813_s19, 64, %s241_s12, [#allocation29], %s7089_s29, %s7089_s29, %s7105_s15  }
  0xd9   :  { %7057 = dma.done.wait [#allocation3], 65536  }
  0xda   :  { %7058 = vsyncadd [#allocation3], 4294901760 }
  0xdb   :  { %7059 = dma.done.wait [#allocation5], 16448  }
  0xdc   :  { %7060 = vsyncadd [#allocation5], 4294950848 }
  0xdd   :  { %7061 = dma.done.wait [#allocation8], 8224  }
  0xde   :  { %7062 = vsyncadd [#allocation8], 4294959072 }
  0xdf   :  { %7063 = dma.done.wait [#allocation11], 64  }
  0xe0   :  { %7064 = vsyncadd [#allocation11], 4294967232 }
  0xe1   :  { %7065 = dma.done.wait [#allocation14], 64  }
  0xe2   :  { %7066 = vsyncadd [#allocation14], 4294967232 }
  0xe3   :  { %7067 = dma.done.wait [#allocation17], 160  }
  0xe4   :  { %7068 = vsyncadd [#allocation17], 4294967136 }
  0xe5   :  { %7069 = dma.done.wait [#allocation20], 65664  }
  0xe6   :  { %7070 = vsyncadd [#allocation20], 4294901632 }
  0xe7   :  { %7071 = dma.done.wait [#allocation23], 33024  }
  0xe8   :  { %7072 = vsyncadd [#allocation23], 4294934272 }
  0xe9   :  { %7073 = dma.done.wait [#allocation26], 32896  }
  0xea   :  { %7074 = vsyncadd [#allocation26], 4294934400 }
  0xeb   :  { %7075 = dma.done.wait [#allocation29], 16448  }
  0xec   :  { %7076 = vsyncadd [#allocation29], 4294950848  ;;  %v371_v0 = vld [vmem:[#allocation2 + $0x1e8] sm:$0xff]  ;;  %v370_v2 = vld [vmem:[#allocation2 + $0x1e0] sm:$0xff]  ;;  %s7825_s29 = sld [smem:[#allocation41_spill]]  ;;  %vm4490_vm1 = vcmask 1041408  }
  0xed   :  { %v499_v1 = vld [vmem:[#allocation2 + $0x5e8] sm:$0xff]  ;;  %888 = vmatprep.subr.mxu0 %v371_v0  ;;  %v498_v3 = vld [vmem:[#allocation2 + $0x5e0] sm:$0xff] }
  0xee   :  { %959 = vmatprep.subr.mxu1 %v499_v1  ;;  %v367_v4 = vld [vmem:[#allocation2 + $0x1c8] sm:$0xff]  ;;  %889 = vmatpush1.msra.mxu0 %v370_v2  ;;  %v366_v6 = vld [vmem:[#allocation2 + $0x1c0] sm:$0xff] }
  0xef   :  { %v495_v5 = vld [vmem:[#allocation2 + $0x5c8] sm:$0xff]  ;;  %960 = vmatpush1.msra.mxu1 %v498_v3  ;;  %v494_v7 = vld [vmem:[#allocation2 + $0x5c0] sm:$0xff]  ;;  %890 = vmatprep.subr.mxu0 %v367_v4 }
  0xf0   :  { %v363_v8 = vld [vmem:[#allocation2 + $0x1a8] sm:$0xff]  ;;  %961 = vmatprep.subr.mxu1 %v495_v5  ;;  %v362_v10 = vld [vmem:[#allocation2 + $0x1a0] sm:$0xff]  ;;  %891 = vmatpush1.msra.mxu0 %v366_v6 }
  0xf1   :  { %v491_v9 = vld [vmem:[#allocation2 + $0x5a8] sm:$0xff]  ;;  %v490_v11 = vld [vmem:[#allocation2 + $0x5a0] sm:$0xff]  ;;  %962 = vmatpush1.msra.mxu1 %v494_v7  ;;  %892 = vmatprep.subr.mxu0 %v363_v8 }
  0xf2   :  { %v359_v12 = vld [vmem:[#allocation2 + $0x188] sm:$0xff]  ;;  %963 = vmatprep.subr.mxu1 %v491_v9  ;;  %v358_v14 = vld [vmem:[#allocation2 + $0x180] sm:$0xff]  ;;  %893 = vmatpush1.msra.mxu0 %v362_v10 }
  0xf3   :  { %v487_v13 = vld [vmem:[#allocation2 + $0x588] sm:$0xff]  ;;  %v486_v15 = vld [vmem:[#allocation2 + $0x580] sm:$0xff]  ;;  %964 = vmatpush1.msra.mxu1 %v490_v11  ;;  %894 = vmatprep.subr.mxu0 %v359_v12 }
  0xf4   :  { %v355_v16 = vld [vmem:[#allocation2 + $0x168] sm:$0xff]  ;;  %965 = vmatprep.subr.mxu1 %v487_v13  ;;  %v354_v18 = vld [vmem:[#allocation2 + $0x160] sm:$0xff]  ;;  %895 = vmatpush1.msra.mxu0 %v358_v14 }
  0xf5   :  { %v483_v17 = vld [vmem:[#allocation2 + $0x568] sm:$0xff]  ;;  %v482_v19 = vld [vmem:[#allocation2 + $0x560] sm:$0xff]  ;;  %966 = vmatpush1.msra.mxu1 %v486_v15  ;;  %896 = vmatprep.subr.mxu0 %v355_v16 }
  0xf6   :  { %v351_v20 = vld [vmem:[#allocation2 + $0x148] sm:$0xff]  ;;  %967 = vmatprep.subr.mxu1 %v483_v17  ;;  %v350_v22 = vld [vmem:[#allocation2 + $0x140] sm:$0xff]  ;;  %897 = vmatpush1.msra.mxu0 %v354_v18 }
  0xf7   :  { %v479_v21 = vld [vmem:[#allocation2 + $0x548] sm:$0xff]  ;;  %v478_v23 = vld [vmem:[#allocation2 + $0x540] sm:$0xff]  ;;  %968 = vmatpush1.msra.mxu1 %v482_v19  ;;  %898 = vmatprep.subr.mxu0 %v351_v20 }
  0xf8   :  { %v347_v24 = vld [vmem:[#allocation2 + $0x128] sm:$0xff]  ;;  %969 = vmatprep.subr.mxu1 %v479_v21  ;;  %v346_v26 = vld [vmem:[#allocation2 + $0x120] sm:$0xff]  ;;  %899 = vmatpush1.msra.mxu0 %v350_v22 }
  0xf9   :  { %v475_v25 = vld [vmem:[#allocation2 + $0x528] sm:$0xff]  ;;  %v474_v27 = vld [vmem:[#allocation2 + $0x520] sm:$0xff]  ;;  %970 = vmatpush1.msra.mxu1 %v478_v23  ;;  %900 = vmatprep.subr.mxu0 %v347_v24 }
  0xfa   :  { %v343_v28 = vld [vmem:[#allocation2 + $0x108] sm:$0xff]  ;;  %971 = vmatprep.subr.mxu1 %v475_v25  ;;  %v342_v30 = vld [vmem:[#allocation2 + $0x100] sm:$0xff]  ;;  %901 = vmatpush1.msra.mxu0 %v346_v26 }
  0xfb   :  { %v471_v29 = vld [vmem:[#allocation2 + $0x508] sm:$0xff]  ;;  %v470_v31 = vld [vmem:[#allocation2 + $0x500] sm:$0xff]  ;;  %972 = vmatpush1.msra.mxu1 %v474_v27  ;;  %902 = vmatprep.subr.mxu0 %v343_v28 }
  0xfc   :  { %v339_v32 = vld [vmem:[#allocation2 + $0xe8] sm:$0xff]  ;;  %973 = vmatprep.subr.mxu1 %v471_v29  ;;  %v338_v34 = vld [vmem:[#allocation2 + $0xe0] sm:$0xff]  ;;  %903 = vmatpush1.msra.mxu0 %v342_v30  ;;  %v824_v30 = vlaneseq }
  0xfd   :  { %v467_v33 = vld [vmem:[#allocation2 + $0x4e8] sm:$0xff]  ;;  %v466_v35 = vld [vmem:[#allocation2 + $0x4e0] sm:$0xff]  ;;  %974 = vmatpush1.msra.mxu1 %v470_v31  ;;  %904 = vmatprep.subr.mxu0 %v339_v32  ;;  %v7106_v31 = vmov 1983009808  }
  0xfe   :  { %v335_v36 = vld [vmem:[#allocation2 + $0xc8] sm:$0xff]  ;;  %975 = vmatprep.subr.mxu1 %v467_v33  ;;  %v334_v38 = vld [vmem:[#allocation2 + $0xc0] sm:$0xff]  ;;  %905 = vmatpush1.msra.mxu0 %v338_v34  ;;  %v848_v32 = vunpack.c.l.s4 %v7106_v31 }
  0xff   :  { %v463_v37 = vld [vmem:[#allocation2 + $0x4c8] sm:$0xff]  ;;  %v462_v39 = vld [vmem:[#allocation2 + $0x4c0] sm:$0xff]  ;;  %976 = vmatpush1.msra.mxu1 %v466_v35  ;;  %906 = vmatprep.subr.mxu0 %v335_v36 }
 0x100   :  { %v331_v40 = vld [vmem:[#allocation2 + $0xa8] sm:$0xff]  ;;  %977 = vmatprep.subr.mxu1 %v463_v37  ;;  %v330_v42 = vld [vmem:[#allocation2 + $0xa0] sm:$0xff]  ;;  %907 = vmatpush1.msra.mxu0 %v334_v38 }
 0x101   :  { %v459_v41 = vld [vmem:[#allocation2 + $0x4a8] sm:$0xff]  ;;  %v458_v43 = vld [vmem:[#allocation2 + $0x4a0] sm:$0xff]  ;;  %978 = vmatpush1.msra.mxu1 %v462_v39  ;;  %908 = vmatprep.subr.mxu0 %v331_v40 }
 0x102   :  { %v327_v44 = vld [vmem:[#allocation2 + $0x88] sm:$0xff]  ;;  %979 = vmatprep.subr.mxu1 %v459_v41  ;;  %v326_v46 = vld [vmem:[#allocation2 + $0x80] sm:$0xff]  ;;  %909 = vmatpush1.msra.mxu0 %v330_v42  ;;  %v7287_v41 = vshrl.u32 %v824_v30, 7  ;;  %v849_v42 = vunpack.c.0.s8 %v848_v32 }
 0x103   :  { %v455_v45 = vld [vmem:[#allocation2 + $0x488] sm:$0xff]  ;;  %v454_v47 = vld [vmem:[#allocation2 + $0x480] sm:$0xff]  ;;  %980 = vmatpush1.msra.mxu1 %v458_v43  ;;  %910 = vmatprep.subr.mxu0 %v327_v44 }
 0x104   :  { %v323_v48 = vld [vmem:[#allocation2 + $0x68] sm:$0xff]  ;;  %981 = vmatprep.subr.mxu1 %v455_v45  ;;  %v322_v50 = vld [vmem:[#allocation2 + $0x60] sm:$0xff]  ;;  %911 = vmatpush1.msra.mxu0 %v326_v46 }
 0x105   :  { %v451_v49 = vld [vmem:[#allocation2 + $0x468] sm:$0xff]  ;;  %v450_v51 = vld [vmem:[#allocation2 + $0x460] sm:$0xff]  ;;  %982 = vmatpush1.msra.mxu1 %v454_v47  ;;  %912 = vmatprep.subr.mxu0 %v323_v48 }
 0x106   :  { %v319_v52 = vld [vmem:[#allocation2 + $0x48] sm:$0xff]  ;;  %983 = vmatprep.subr.mxu1 %v451_v49  ;;  %v318_v54 = vld [vmem:[#allocation2 + $0x40] sm:$0xff]  ;;  %913 = vmatpush1.msra.mxu0 %v322_v50 }
 0x107   :  { %v447_v53 = vld [vmem:[#allocation2 + $0x448] sm:$0xff]  ;;  %v446_v55 = vld [vmem:[#allocation2 + $0x440] sm:$0xff]  ;;  %984 = vmatpush1.msra.mxu1 %v450_v51  ;;  %914 = vmatprep.subr.mxu0 %v319_v52  ;;  %v7293_v52 = vsub.s32 %v849_v42, %v7287_v41 }
 0x108   :  { %v315_v56 = vld [vmem:[#allocation2 + $0x28] sm:$0xff]  ;;  %985 = vmatprep.subr.mxu1 %v447_v53  ;;  %v314_v58 = vld [vmem:[#allocation2 + $0x20] sm:$0xff]  ;;  %915 = vmatpush1.msra.mxu0 %v318_v54 }
 0x109   :  { %v443_v57 = vld [vmem:[#allocation2 + $0x428] sm:$0xff]  ;;  %v442_v59 = vld [vmem:[#allocation2 + $0x420] sm:$0xff]  ;;  %986 = vmatpush1.msra.mxu1 %v446_v55  ;;  %916 = vmatprep.subr.mxu0 %v315_v56 }
 0x10a   :  { %v311_v60 = vld [vmem:[#allocation2 + $0x8] sm:$0xff]  ;;  %987 = vmatprep.subr.mxu1 %v443_v57  ;;  %v310_v62 = vld [vmem:[#allocation2] sm:$0xff]  ;;  %917 = vmatpush1.msra.mxu0 %v314_v58 }
 0x10b   :  { %v439_v61 = vld [vmem:[#allocation2 + $0x408] sm:$0xff]  ;;  %v438_v63 = vld [vmem:[#allocation2 + $0x400] sm:$0xff]  ;;  %988 = vmatpush1.msra.mxu1 %v442_v59  ;;  %918 = vmatprep.subr.mxu0 %v311_v60 }
 0x10c   :  { %v435_v0 = vld [vmem:[#allocation2 + $0x3e8] sm:$0xff]  ;;  %989 = vmatprep.subr.mxu1 %v439_v61  ;;  %v434_v2 = vld [vmem:[#allocation2 + $0x3e0] sm:$0xff]  ;;  %919 = vmatpush1.msra.mxu0 %v310_v62 }
 0x10d   :  { %v563_v1 = vld [vmem:[#allocation2 + $0x7e8] sm:$0xff]  ;;  %v562_v3 = vld [vmem:[#allocation2 + $0x7e0] sm:$0xff]  ;;  %990 = vmatpush1.msra.mxu1 %v438_v63  ;;  %920 = vmatprep.subr.mxu0 %v435_v0 }
 0x10e   :  { %v431_v4 = vld [vmem:[#allocation2 + $0x3c8] sm:$0xff]  ;;  %991 = vmatprep.subr.mxu1 %v563_v1  ;;  %v430_v6 = vld [vmem:[#allocation2 + $0x3c0] sm:$0xff]  ;;  %921 = vmatpush2.msra.mxu0 %v434_v2 }
 0x10f   :  { %v559_v5 = vld [vmem:[#allocation2 + $0x7c8] sm:$0xff]  ;;  %v558_v7 = vld [vmem:[#allocation2 + $0x7c0] sm:$0xff]  ;;  %992 = vmatpush2.msra.mxu1 %v562_v3  ;;  %922 = vmatprep.subr.mxu0 %v431_v4 }
 0x110   :  { %v427_v8 = vld [vmem:[#allocation2 + $0x3a8] sm:$0xff]  ;;  %993 = vmatprep.subr.mxu1 %v559_v5  ;;  %v426_v10 = vld [vmem:[#allocation2 + $0x3a0] sm:$0xff]  ;;  %923 = vmatpush2.msra.mxu0 %v430_v6 }
 0x111   :  { %v555_v9 = vld [vmem:[#allocation2 + $0x7a8] sm:$0xff]  ;;  %v554_v11 = vld [vmem:[#allocation2 + $0x7a0] sm:$0xff]  ;;  %994 = vmatpush2.msra.mxu1 %v558_v7  ;;  %924 = vmatprep.subr.mxu0 %v427_v8 }
 0x112   :  { %v423_v12 = vld [vmem:[#allocation2 + $0x388] sm:$0xff]  ;;  %995 = vmatprep.subr.mxu1 %v555_v9  ;;  %v422_v14 = vld [vmem:[#allocation2 + $0x380] sm:$0xff]  ;;  %925 = vmatpush2.msra.mxu0 %v426_v10 }
 0x113   :  { %v551_v13 = vld [vmem:[#allocation2 + $0x788] sm:$0xff]  ;;  %v550_v15 = vld [vmem:[#allocation2 + $0x780] sm:$0xff]  ;;  %996 = vmatpush2.msra.mxu1 %v554_v11  ;;  %926 = vmatprep.subr.mxu0 %v423_v12 }
 0x114   :  { %v419_v16 = vld [vmem:[#allocation2 + $0x368] sm:$0xff]  ;;  %997 = vmatprep.subr.mxu1 %v551_v13  ;;  %v418_v18 = vld [vmem:[#allocation2 + $0x360] sm:$0xff]  ;;  %927 = vmatpush2.msra.mxu0 %v422_v14 }
 0x115   :  { %v547_v17 = vld [vmem:[#allocation2 + $0x768] sm:$0xff]  ;;  %v546_v19 = vld [vmem:[#allocation2 + $0x760] sm:$0xff]  ;;  %998 = vmatpush2.msra.mxu1 %v550_v15  ;;  %928 = vmatprep.subr.mxu0 %v419_v16 }
 0x116   :  { %v415_v20 = vld [vmem:[#allocation2 + $0x348] sm:$0xff]  ;;  %999 = vmatprep.subr.mxu1 %v547_v17  ;;  %v414_v22 = vld [vmem:[#allocation2 + $0x340] sm:$0xff]  ;;  %929 = vmatpush2.msra.mxu0 %v418_v18 }
 0x117   :  { %v543_v21 = vld [vmem:[#allocation2 + $0x748] sm:$0xff]  ;;  %v542_v23 = vld [vmem:[#allocation2 + $0x740] sm:$0xff]  ;;  %1000 = vmatpush2.msra.mxu1 %v546_v19  ;;  %930 = vmatprep.subr.mxu0 %v415_v20 }
 0x118   :  { %v411_v24 = vld [vmem:[#allocation2 + $0x328] sm:$0xff]  ;;  %1001 = vmatprep.subr.mxu1 %v543_v21  ;;  %v410_v26 = vld [vmem:[#allocation2 + $0x320] sm:$0xff]  ;;  %931 = vmatpush2.msra.mxu0 %v414_v22 }
 0x119   :  { %v539_v25 = vld [vmem:[#allocation2 + $0x728] sm:$0xff]  ;;  %v538_v27 = vld [vmem:[#allocation2 + $0x720] sm:$0xff]  ;;  %1002 = vmatpush2.msra.mxu1 %v542_v23  ;;  %932 = vmatprep.subr.mxu0 %v411_v24 }
 0x11a   :  { %v407_v28 = vld [vmem:[#allocation2 + $0x308] sm:$0xff]  ;;  %1003 = vmatprep.subr.mxu1 %v539_v25  ;;  %v406_v33 = vld [vmem:[#allocation2 + $0x300] sm:$0xff]  ;;  %933 = vmatpush2.msra.mxu0 %v410_v26 }
 0x11b   :  { %v535_v29 = vld [vmem:[#allocation2 + $0x708] sm:$0xff]  ;;  %v534_v34 = vld [vmem:[#allocation2 + $0x700] sm:$0xff]  ;;  %1004 = vmatpush2.msra.mxu1 %v538_v27  ;;  %934 = vmatprep.subr.mxu0 %v407_v28 }
 0x11c   :  { %v403_v35 = vld [vmem:[#allocation2 + $0x2e8] sm:$0xff]  ;;  %1005 = vmatprep.subr.mxu1 %v535_v29  ;;  %v402_v37 = vld [vmem:[#allocation2 + $0x2e0] sm:$0xff]  ;;  %935 = vmatpush2.msra.mxu0 %v406_v33 }
 0x11d   :  { %v531_v36 = vld [vmem:[#allocation2 + $0x6e8] sm:$0xff]  ;;  %v530_v38 = vld [vmem:[#allocation2 + $0x6e0] sm:$0xff]  ;;  %1006 = vmatpush2.msra.mxu1 %v534_v34  ;;  %936 = vmatprep.subr.mxu0 %v403_v35 }
 0x11e   :  { %v399_v39 = vld [vmem:[#allocation2 + $0x2c8] sm:$0xff]  ;;  %1007 = vmatprep.subr.mxu1 %v531_v36  ;;  %v398_v43 = vld [vmem:[#allocation2 + $0x2c0] sm:$0xff]  ;;  %937 = vmatpush2.msra.mxu0 %v402_v37 }
 0x11f   :  { %v527_v40 = vld [vmem:[#allocation2 + $0x6c8] sm:$0xff]  ;;  %v526_v44 = vld [vmem:[#allocation2 + $0x6c0] sm:$0xff]  ;;  %1008 = vmatpush2.msra.mxu1 %v530_v38  ;;  %938 = vmatprep.subr.mxu0 %v399_v39 }
 0x120   :  { %v395_v45 = vld [vmem:[#allocation2 + $0x2a8] sm:$0xff]  ;;  %1009 = vmatprep.subr.mxu1 %v527_v40  ;;  %v394_v47 = vld [vmem:[#allocation2 + $0x2a0] sm:$0xff]  ;;  %939 = vmatpush2.msra.mxu0 %v398_v43 }
 0x121   :  { %v523_v46 = vld [vmem:[#allocation2 + $0x6a8] sm:$0xff]  ;;  %v522_v48 = vld [vmem:[#allocation2 + $0x6a0] sm:$0xff]  ;;  %1010 = vmatpush2.msra.mxu1 %v526_v44  ;;  %940 = vmatprep.subr.mxu0 %v395_v45 }
 0x122   :  { %v308_v49 = vld [vmem:[%s7825_s29] sm:$0xff]  ;;  %v391_v50 = vld [vmem:[#allocation2 + $0x288] sm:$0xff]  ;;  %1011 = vmatprep.subr.mxu1 %v523_v46  ;;  %941 = vmatpush2.msra.mxu0 %v394_v47 }
 0x123   :  { %v519_v51 = vld [vmem:[#allocation2 + $0x688] sm:$0xff]  ;;  %v390_v53 = vld [vmem:[#allocation2 + $0x280] sm:$0xff]  ;;  %1012 = vmatpush2.msra.mxu1 %v522_v48  ;;  %v846_v57 = vcombine.high %v308_v49, %v308_v49  ;;  %942 = vmatprep.subr.mxu0 %v391_v50  ;;  %v7296_v62 = vrot.slane %v308_v49, %v7293_v52 }
 0x124   :  { %v518_v54 = vld [vmem:[#allocation2 + $0x680] sm:$0xff]  ;;  %v387_v55 = vld [vmem:[#allocation2 + $0x268] sm:$0xff]  ;;  %1013 = vmatprep.subr.mxu1 %v519_v51  ;;  %943 = vmatpush2.msra.mxu0 %v390_v53 }
 0x125   :  { %v515_v56 = vld [vmem:[#allocation2 + $0x668] sm:$0xff]  ;;  %v386_v58 = vld [vmem:[#allocation2 + $0x260] sm:$0xff]  ;;  %1014 = vmatpush2.msra.mxu1 %v518_v54  ;;  %944 = vmatprep.subr.mxu0 %v387_v55  ;;  %v7299_v3 = vrot.slane %v846_v57, %v7293_v52  ;;  %v7303_v8 = vcombine.high %v7296_v62, %v7296_v62 }
 0x126   :  { %v514_v59 = vld [vmem:[#allocation2 + $0x660] sm:$0xff]  ;;  %v383_v60 = vld [vmem:[#allocation2 + $0x248] sm:$0xff]  ;;  %1015 = vmatprep.subr.mxu1 %v515_v56  ;;  %945 = vmatpush2.msra.mxu0 %v386_v58 }
 0x127   :  { %v511_v61 = vld [vmem:[#allocation2 + $0x648] sm:$0xff]  ;;  %v382_v63 = vld [vmem:[#allocation2 + $0x240] sm:$0xff]  ;;  %1016 = vmatpush2.msra.mxu1 %v514_v59  ;;  %946 = vmatprep.subr.mxu0 %v383_v60  ;;  %v7307_v11 = vcombine.high %v7299_v3, %v7299_v3 }
 0x128   :  { %v510_v0 = vld [vmem:[#allocation2 + $0x640] sm:$0xff]  ;;  %v379_v1 = vld [vmem:[#allocation2 + $0x228] sm:$0xff]  ;;  %1017 = vmatprep.subr.mxu1 %v511_v61  ;;  %947 = vmatpush2.msra.mxu0 %v382_v63 }
 0x129   :  { %v507_v2 = vld [vmem:[#allocation2 + $0x628] sm:$0xff]  ;;  %v378_v4 = vld [vmem:[#allocation2 + $0x220] sm:$0xff]  ;;  %1018 = vmatpush2.msra.mxu1 %v510_v0  ;;  %948 = vmatprep.subr.mxu0 %v379_v1 }
 0x12a   :  { %v506_v5 = vld [vmem:[#allocation2 + $0x620] sm:$0xff]  ;;  %v375_v6 = vld [vmem:[#allocation2 + $0x208] sm:$0xff]  ;;  %1019 = vmatprep.subr.mxu1 %v507_v2  ;;  %949 = vmatpush2.msra.mxu0 %v378_v4 }
 0x12b   :  { %v503_v7 = vld [vmem:[#allocation2 + $0x608] sm:$0xff]  ;;  %v374_v9 = vld [vmem:[#allocation2 + $0x200] sm:$0xff]  ;;  %1020 = vmatpush2.msra.mxu1 %v506_v5  ;;  %950 = vmatprep.subr.mxu0 %v375_v6 }
 0x12c   :  { %v502_v10 = vld [vmem:[#allocation2 + $0x600] sm:$0xff]  ;;  %1021 = vmatprep.subr.mxu1 %v503_v7  ;;  %v627_v12 = vld [vmem:[#allocation2 + $0x9e8] sm:$0xff]  ;;  %951 = vmatpush2.msra.mxu0 %v374_v9 }
 0x12d   :  { %952 = vmatprep.mubr.f32.mxu0 %v7303_v8  ;;  %v755_v13 = vld [vmem:[#allocation2 + $0xde8] sm:$0xff]  ;;  %1022 = vmatpush2.msra.mxu1 %v502_v10  ;;  %v626_v14 = vld [vmem:[#allocation2 + $0x9e0] sm:$0xff] }
 0x12e   :  { %953 = vmatmul.mubr.f32.vlgmr.msra.gmra.mxu0 %v7296_v62  ;;  %v754_v15 = vld [vmem:[#allocation2 + $0xde0] sm:$0xff]  ;;  %1023 = vmatprep.mubr.f32.mxu1 %v7307_v11  ;;  %v623_v16 = vld [vmem:[#allocation2 + $0x9c8] sm:$0xff] }
 0x12f   :  { %1030 = vmatprep.subr.mxu0 %v627_v12  ;;  %v751_v17 = vld [vmem:[#allocation2 + $0xdc8] sm:$0xff]  ;;  %1101 = vmatprep.subr.mxu1 %v755_v13  ;;  %v622_v18 = vld [vmem:[#allocation2 + $0x9c0] sm:$0xff] }
 0x130   :  { %1024 = vmatmul.mubr.f32.vlgmr.msra.gmra.mxu1 %v7299_v3  ;;  %v750_v19 = vld [vmem:[#allocation2 + $0xdc0] sm:$0xff]  ;;  %1031 = vmatpush1.msra.mxu0 %v626_v14  ;;  %v619_v20 = vld [vmem:[#allocation2 + $0x9a8] sm:$0xff] }
 0x131   :  { %1102 = vmatpush1.msra.mxu1 %v754_v15  ;;  %v747_v21 = vld [vmem:[#allocation2 + $0xda8] sm:$0xff]  ;;  %1032 = vmatprep.subr.mxu0 %v623_v16  ;;  %v618_v22 = vld [vmem:[#allocation2 + $0x9a0] sm:$0xff] }
 0x132   :  { %1103 = vmatprep.subr.mxu1 %v751_v17  ;;  %v746_v23 = vld [vmem:[#allocation2 + $0xda0] sm:$0xff]  ;;  %1033 = vmatpush1.msra.mxu0 %v622_v18  ;;  %v615_v24 = vld [vmem:[#allocation2 + $0x988] sm:$0xff] }
 0x133   :  { %1104 = vmatpush1.msra.mxu1 %v750_v19  ;;  %v743_v25 = vld [vmem:[#allocation2 + $0xd88] sm:$0xff]  ;;  %1034 = vmatprep.subr.mxu0 %v619_v20  ;;  %v614_v26 = vld [vmem:[#allocation2 + $0x980] sm:$0xff] }
 0x134   :  { %1105 = vmatprep.subr.mxu1 %v747_v21  ;;  %v742_v27 = vld [vmem:[#allocation2 + $0xd80] sm:$0xff]  ;;  %1035 = vmatpush1.msra.mxu0 %v618_v22  ;;  %v611_v28 = vld [vmem:[#allocation2 + $0x968] sm:$0xff] }
 0x135   :  { %1106 = vmatpush1.msra.mxu1 %v746_v23  ;;  %v739_v29 = vld [vmem:[#allocation2 + $0xd68] sm:$0xff]  ;;  %1036 = vmatprep.subr.mxu0 %v615_v24  ;;  %v610_v31 = vld [vmem:[#allocation2 + $0x960] sm:$0xff] }
 0x136   :  { %1107 = vmatprep.subr.mxu1 %v743_v25  ;;  %v738_v32 = vld [vmem:[#allocation2 + $0xd60] sm:$0xff]  ;;  %1037 = vmatpush1.msra.mxu0 %v614_v26  ;;  %v607_v33 = vld [vmem:[#allocation2 + $0x948] sm:$0xff] }
 0x137   :  { %1108 = vmatpush1.msra.mxu1 %v742_v27  ;;  %v735_v34 = vld [vmem:[#allocation2 + $0xd48] sm:$0xff]  ;;  %1038 = vmatprep.subr.mxu0 %v611_v28  ;;  %v606_v35 = vld [vmem:[#allocation2 + $0x940] sm:$0xff] }
 0x138   :  { %1109 = vmatprep.subr.mxu1 %v739_v29  ;;  %v734_v36 = vld [vmem:[#allocation2 + $0xd40] sm:$0xff]  ;;  %1039 = vmatpush1.msra.mxu0 %v610_v31  ;;  %v603_v37 = vld [vmem:[#allocation2 + $0x928] sm:$0xff] }
 0x139   :  { %1110 = vmatpush1.msra.mxu1 %v738_v32  ;;  %v731_v38 = vld [vmem:[#allocation2 + $0xd28] sm:$0xff]  ;;  %1040 = vmatprep.subr.mxu0 %v607_v33  ;;  %v602_v39 = vld [vmem:[#allocation2 + $0x920] sm:$0xff] }
 0x13a   :  { %1111 = vmatprep.subr.mxu1 %v735_v34  ;;  %v730_v40 = vld [vmem:[#allocation2 + $0xd20] sm:$0xff]  ;;  %1041 = vmatpush1.msra.mxu0 %v606_v35  ;;  %v599_v42 = vld [vmem:[#allocation2 + $0x908] sm:$0xff] }
 0x13b   :  { %1112 = vmatpush1.msra.mxu1 %v734_v36  ;;  %v727_v43 = vld [vmem:[#allocation2 + $0xd08] sm:$0xff]  ;;  %1042 = vmatprep.subr.mxu0 %v603_v37  ;;  %v598_v44 = vld [vmem:[#allocation2 + $0x900] sm:$0xff] }
 0x13c   :  { %1113 = vmatprep.subr.mxu1 %v731_v38  ;;  %v726_v45 = vld [vmem:[#allocation2 + $0xd00] sm:$0xff]  ;;  %1043 = vmatpush1.msra.mxu0 %v602_v39  ;;  %v595_v46 = vld [vmem:[#allocation2 + $0x8e8] sm:$0xff] }
 0x13d   :  { %1114 = vmatpush1.msra.mxu1 %v730_v40  ;;  %v723_v47 = vld [vmem:[#allocation2 + $0xce8] sm:$0xff]  ;;  %1044 = vmatprep.subr.mxu0 %v599_v42  ;;  %v594_v48 = vld [vmem:[#allocation2 + $0x8e0] sm:$0xff] }
 0x13e   :  { %1115 = vmatprep.subr.mxu1 %v727_v43  ;;  %v722_v49 = vld [vmem:[#allocation2 + $0xce0] sm:$0xff]  ;;  %1045 = vmatpush1.msra.mxu0 %v598_v44  ;;  %v591_v50 = vld [vmem:[#allocation2 + $0x8c8] sm:$0xff] }
 0x13f   :  { %1116 = vmatpush1.msra.mxu1 %v726_v45  ;;  %v719_v51 = vld [vmem:[#allocation2 + $0xcc8] sm:$0xff]  ;;  %1046 = vmatprep.subr.mxu0 %v595_v46  ;;  %v590_v53 = vld [vmem:[#allocation2 + $0x8c0] sm:$0xff] }
 0x140   :  { %1117 = vmatprep.subr.mxu1 %v723_v47  ;;  %v718_v54 = vld [vmem:[#allocation2 + $0xcc0] sm:$0xff]  ;;  %1047 = vmatpush1.msra.mxu0 %v594_v48  ;;  %v587_v55 = vld [vmem:[#allocation2 + $0x8a8] sm:$0xff] }
 0x141   :  { %1118 = vmatpush1.msra.mxu1 %v722_v49  ;;  %v715_v56 = vld [vmem:[#allocation2 + $0xca8] sm:$0xff]  ;;  %1048 = vmatprep.subr.mxu0 %v591_v50  ;;  %v586_v57 = vld [vmem:[#allocation2 + $0x8a0] sm:$0xff] }
 0x142   :  { %1119 = vmatprep.subr.mxu1 %v719_v51  ;;  %v714_v58 = vld [vmem:[#allocation2 + $0xca0] sm:$0xff]  ;;  %1049 = vmatpush1.msra.mxu0 %v590_v53  ;;  %v583_v59 = vld [vmem:[#allocation2 + $0x888] sm:$0xff] }
 0x143   :  { %1120 = vmatpush1.msra.mxu1 %v718_v54  ;;  %v711_v60 = vld [vmem:[#allocation2 + $0xc88] sm:$0xff]  ;;  %1050 = vmatprep.subr.mxu0 %v587_v55  ;;  %v582_v61 = vld [vmem:[#allocation2 + $0x880] sm:$0xff] }
 0x144   :  { %1121 = vmatprep.subr.mxu1 %v715_v56  ;;  %v710_v63 = vld [vmem:[#allocation2 + $0xc80] sm:$0xff]  ;;  %1051 = vmatpush1.msra.mxu0 %v586_v57  ;;  %v579_v0 = vld [vmem:[#allocation2 + $0x868] sm:$0xff] }
 0x145   :  { %1122 = vmatpush1.msra.mxu1 %v714_v58  ;;  %v707_v1 = vld [vmem:[#allocation2 + $0xc68] sm:$0xff]  ;;  %1052 = vmatprep.subr.mxu0 %v583_v59  ;;  %v578_v2 = vld [vmem:[#allocation2 + $0x860] sm:$0xff] }
 0x146   :  { %1123 = vmatprep.subr.mxu1 %v711_v60  ;;  %v706_v4 = vld [vmem:[#allocation2 + $0xc60] sm:$0xff]  ;;  %1053 = vmatpush1.msra.mxu0 %v582_v61  ;;  %v575_v5 = vld [vmem:[#allocation2 + $0x848] sm:$0xff] }
 0x147   :  { %1124 = vmatpush1.msra.mxu1 %v710_v63  ;;  %v703_v6 = vld [vmem:[#allocation2 + $0xc48] sm:$0xff]  ;;  %1054 = vmatprep.subr.mxu0 %v579_v0  ;;  %v574_v7 = vld [vmem:[#allocation2 + $0x840] sm:$0xff] }
 0x148   :  { %1125 = vmatprep.subr.mxu1 %v707_v1  ;;  %v702_v9 = vld [vmem:[#allocation2 + $0xc40] sm:$0xff]  ;;  %1055 = vmatpush1.msra.mxu0 %v578_v2  ;;  %v571_v10 = vld [vmem:[#allocation2 + $0x828] sm:$0xff] }
 0x149   :  { %1126 = vmatpush1.msra.mxu1 %v706_v4  ;;  %v699_v12 = vld [vmem:[#allocation2 + $0xc28] sm:$0xff]  ;;  %1056 = vmatprep.subr.mxu0 %v575_v5  ;;  %v570_v13 = vld [vmem:[#allocation2 + $0x820] sm:$0xff] }
 0x14a   :  { %1127 = vmatprep.subr.mxu1 %v703_v6  ;;  %v698_v14 = vld [vmem:[#allocation2 + $0xc20] sm:$0xff]  ;;  %1057 = vmatpush1.msra.mxu0 %v574_v7  ;;  %v567_v15 = vld [vmem:[#allocation2 + $0x808] sm:$0xff] }
 0x14b   :  { %1128 = vmatpush1.msra.mxu1 %v702_v9  ;;  %v695_v16 = vld [vmem:[#allocation2 + $0xc08] sm:$0xff]  ;;  %1058 = vmatprep.subr.mxu0 %v571_v10  ;;  %v566_v17 = vld [vmem:[#allocation2 + $0x800] sm:$0xff] }
 0x14c   :  { %1129 = vmatprep.subr.mxu1 %v699_v12  ;;  %v694_v18 = vld [vmem:[#allocation2 + $0xc00] sm:$0xff]  ;;  %1059 = vmatpush1.msra.mxu0 %v570_v13  ;;  %v691_v19 = vld [vmem:[#allocation2 + $0xbe8] sm:$0xff] }
 0x14d   :  { %1130 = vmatpush1.msra.mxu1 %v698_v14  ;;  %v819_v20 = vld [vmem:[#allocation2 + $0xfe8] sm:$0xff]  ;;  %1060 = vmatprep.subr.mxu0 %v567_v15  ;;  %v690_v21 = vld [vmem:[#allocation2 + $0xbe0] sm:$0xff] }
 0x14e   :  { %1131 = vmatprep.subr.mxu1 %v695_v16  ;;  %v818_v22 = vld [vmem:[#allocation2 + $0xfe0] sm:$0xff]  ;;  %1061 = vmatpush1.msra.mxu0 %v566_v17  ;;  %v687_v23 = vld [vmem:[#allocation2 + $0xbc8] sm:$0xff] }
 0x14f   :  { %1132 = vmatpush1.msra.mxu1 %v694_v18  ;;  %v815_v24 = vld [vmem:[#allocation2 + $0xfc8] sm:$0xff]  ;;  %1062 = vmatprep.subr.mxu0 %v691_v19  ;;  %v686_v25 = vld [vmem:[#allocation2 + $0xbc0] sm:$0xff] }
 0x150   :  { %1133 = vmatprep.subr.mxu1 %v819_v20  ;;  %v814_v26 = vld [vmem:[#allocation2 + $0xfc0] sm:$0xff]  ;;  %1063 = vmatpush2.msra.mxu0 %v690_v21  ;;  %v683_v27 = vld [vmem:[#allocation2 + $0xba8] sm:$0xff] }
 0x151   :  { %1134 = vmatpush2.msra.mxu1 %v818_v22  ;;  %v811_v28 = vld [vmem:[#allocation2 + $0xfa8] sm:$0xff]  ;;  %1064 = vmatprep.subr.mxu0 %v687_v23  ;;  %v682_v29 = vld [vmem:[#allocation2 + $0xba0] sm:$0xff] }
 0x152   :  { %1135 = vmatprep.subr.mxu1 %v815_v24  ;;  %v810_v31 = vld [vmem:[#allocation2 + $0xfa0] sm:$0xff]  ;;  %1065 = vmatpush2.msra.mxu0 %v686_v25  ;;  %v679_v32 = vld [vmem:[#allocation2 + $0xb88] sm:$0xff] }
 0x153   :  { %1136 = vmatpush2.msra.mxu1 %v814_v26  ;;  %v807_v33 = vld [vmem:[#allocation2 + $0xf88] sm:$0xff]  ;;  %1066 = vmatprep.subr.mxu0 %v683_v27  ;;  %v678_v34 = vld [vmem:[#allocation2 + $0xb80] sm:$0xff] }
 0x154   :  { %1137 = vmatprep.subr.mxu1 %v811_v28  ;;  %v806_v35 = vld [vmem:[#allocation2 + $0xf80] sm:$0xff]  ;;  %1067 = vmatpush2.msra.mxu0 %v682_v29  ;;  %v675_v36 = vld [vmem:[#allocation2 + $0xb68] sm:$0xff] }
 0x155   :  { %1138 = vmatpush2.msra.mxu1 %v810_v31  ;;  %v803_v37 = vld [vmem:[#allocation2 + $0xf68] sm:$0xff]  ;;  %1068 = vmatprep.subr.mxu0 %v679_v32  ;;  %v674_v38 = vld [vmem:[#allocation2 + $0xb60] sm:$0xff] }
 0x156   :  { %1139 = vmatprep.subr.mxu1 %v807_v33  ;;  %v802_v39 = vld [vmem:[#allocation2 + $0xf60] sm:$0xff]  ;;  %1069 = vmatpush2.msra.mxu0 %v678_v34  ;;  %v671_v40 = vld [vmem:[#allocation2 + $0xb48] sm:$0xff]  ;;  %v373_v33 = vld [vmem:[#allocation2 + $0x1f8] sm:$0xff] }
 0x157   :  { %1140 = vmatpush2.msra.mxu1 %v806_v35  ;;  %v799_v42 = vld [vmem:[#allocation2 + $0xf48] sm:$0xff]  ;;  %1070 = vmatprep.subr.mxu0 %v675_v36  ;;  %v670_v43 = vld [vmem:[#allocation2 + $0xb40] sm:$0xff]  ;;  %v501_v34 = vld [vmem:[#allocation2 + $0x5f8] sm:$0xff] }
 0x158   :  { %1141 = vmatprep.subr.mxu1 %v803_v37  ;;  %v798_v44 = vld [vmem:[#allocation2 + $0xf40] sm:$0xff]  ;;  %1071 = vmatpush2.msra.mxu0 %v674_v38  ;;  %v667_v45 = vld [vmem:[#allocation2 + $0xb28] sm:$0xff]  ;;  %v372_v35 = vld [vmem:[#allocation2 + $0x1f0] sm:$0xff] }
 0x159   :  { %1142 = vmatpush2.msra.mxu1 %v802_v39  ;;  %v795_v46 = vld [vmem:[#allocation2 + $0xf28] sm:$0xff]  ;;  %1072 = vmatprep.subr.mxu0 %v671_v40  ;;  %v666_v47 = vld [vmem:[#allocation2 + $0xb20] sm:$0xff]  ;;  %v500_v36 = vld [vmem:[#allocation2 + $0x5f0] sm:$0xff] }
 0x15a   :  { %1143 = vmatprep.subr.mxu1 %v799_v42  ;;  %v794_v48 = vld [vmem:[#allocation2 + $0xf20] sm:$0xff]  ;;  %1073 = vmatpush2.msra.mxu0 %v670_v43  ;;  %v663_v49 = vld [vmem:[#allocation2 + $0xb08] sm:$0xff]  ;;  %v369_v37 = vld [vmem:[#allocation2 + $0x1d8] sm:$0xff] }
 0x15b   :  { %1144 = vmatpush2.msra.mxu1 %v798_v44  ;;  %v791_v50 = vld [vmem:[#allocation2 + $0xf08] sm:$0xff]  ;;  %1074 = vmatprep.subr.mxu0 %v667_v45  ;;  %v662_v51 = vld [vmem:[#allocation2 + $0xb00] sm:$0xff]  ;;  %v497_v38 = vld [vmem:[#allocation2 + $0x5d8] sm:$0xff] }
 0x15c   :  { %1145 = vmatprep.subr.mxu1 %v795_v46  ;;  %v790_v53 = vld [vmem:[#allocation2 + $0xf00] sm:$0xff]  ;;  %1075 = vmatpush2.msra.mxu0 %v666_v47  ;;  %v659_v54 = vld [vmem:[#allocation2 + $0xae8] sm:$0xff]  ;;  %v368_v39 = vld [vmem:[#allocation2 + $0x1d0] sm:$0xff] }
 0x15d   :  { %1146 = vmatpush2.msra.mxu1 %v794_v48  ;;  %v787_v55 = vld [vmem:[#allocation2 + $0xee8] sm:$0xff]  ;;  %1076 = vmatprep.subr.mxu0 %v663_v49  ;;  %v658_v56 = vld [vmem:[#allocation2 + $0xae0] sm:$0xff]  ;;  %v496_v40 = vld [vmem:[#allocation2 + $0x5d0] sm:$0xff] }
 0x15e   :  { %1147 = vmatprep.subr.mxu1 %v791_v50  ;;  %v786_v57 = vld [vmem:[#allocation2 + $0xee0] sm:$0xff]  ;;  %1077 = vmatpush2.msra.mxu0 %v662_v51  ;;  %v655_v58 = vld [vmem:[#allocation2 + $0xac8] sm:$0xff]  ;;  %v365_v42 = vld [vmem:[#allocation2 + $0x1b8] sm:$0xff] }
 0x15f   :  { %1148 = vmatpush2.msra.mxu1 %v790_v53  ;;  %v783_v59 = vld [vmem:[#allocation2 + $0xec8] sm:$0xff]  ;;  %1078 = vmatprep.subr.mxu0 %v659_v54  ;;  %v654_v60 = vld [vmem:[#allocation2 + $0xac0] sm:$0xff]  ;;  %v493_v43 = vld [vmem:[#allocation2 + $0x5b8] sm:$0xff] }
 0x160   :  { %1149 = vmatprep.subr.mxu1 %v787_v55  ;;  %v782_v61 = vld [vmem:[#allocation2 + $0xec0] sm:$0xff]  ;;  %1079 = vmatpush2.msra.mxu0 %v658_v56  ;;  %v651_v63 = vld [vmem:[#allocation2 + $0xaa8] sm:$0xff]  ;;  %v364_v44 = vld [vmem:[#allocation2 + $0x1b0] sm:$0xff] }
 0x161   :  { %1150 = vmatpush2.msra.mxu1 %v786_v57  ;;  %v779_v0 = vld [vmem:[#allocation2 + $0xea8] sm:$0xff]  ;;  %1080 = vmatprep.subr.mxu0 %v655_v58  ;;  %v650_v1 = vld [vmem:[#allocation2 + $0xaa0] sm:$0xff]  ;;  %v492_v45 = vld [vmem:[#allocation2 + $0x5b0] sm:$0xff] }
 0x162   :  { %1151 = vmatprep.subr.mxu1 %v783_v59  ;;  %v778_v2 = vld [vmem:[#allocation2 + $0xea0] sm:$0xff]  ;;  %v309_v4 = vld [vmem:[%s7825_s29 + $0x8] sm:$0xff]  ;;  %1081 = vmatpush2.msra.mxu0 %v654_v60  ;;  %v361_v46 = vld [vmem:[#allocation2 + $0x198] sm:$0xff] }
 0x163   :  { %1152 = vmatpush2.msra.mxu1 %v782_v61  ;;  %v647_v5 = vld [vmem:[#allocation2 + $0xa88] sm:$0xff]  ;;  %1082 = vmatprep.subr.mxu0 %v651_v63  ;;  %v646_v7 = vld [vmem:[#allocation2 + $0xa80] sm:$0xff]  ;;  %v863_v13 = vcombine.high %v309_v4, %v309_v4  ;;  %v7317_v18 = vrot.slane %v309_v4, %v7293_v52  ;;  %v489_v47 = vld [vmem:[#allocation2 + $0x598] sm:$0xff] }
 0x164   :  { %v775_v6 = vld [vmem:[#allocation2 + $0xe88] sm:$0xff]  ;;  %1153 = vmatprep.subr.mxu1 %v779_v0  ;;  %v774_v9 = vld [vmem:[#allocation2 + $0xe80] sm:$0xff]  ;;  %1083 = vmatpush2.msra.mxu0 %v650_v1  ;;  %v360_v48 = vld [vmem:[#allocation2 + $0x190] sm:$0xff] }
 0x165   :  { %1154 = vmatpush2.msra.mxu1 %v778_v2  ;;  %v643_v10 = vld [vmem:[#allocation2 + $0xa68] sm:$0xff]  ;;  %1084 = vmatprep.subr.mxu0 %v647_v5  ;;  %v642_v14 = vld [vmem:[#allocation2 + $0xa60] sm:$0xff]  ;;  %v7320_v23 = vrot.slane %v863_v13, %v7293_v52  ;;  %v7324_v28 = vcombine.high %v7317_v18, %v7317_v18  ;;  %v488_v49 = vld [vmem:[#allocation2 + $0x590] sm:$0xff] }
 0x166   :  { %v771_v12 = vld [vmem:[#allocation2 + $0xe68] sm:$0xff]  ;;  %1155 = vmatprep.subr.mxu1 %v775_v6  ;;  %v770_v15 = vld [vmem:[#allocation2 + $0xe60] sm:$0xff]  ;;  %1085 = vmatpush2.msra.mxu0 %v646_v7  ;;  %v357_v50 = vld [vmem:[#allocation2 + $0x178] sm:$0xff] }
 0x167   :  { %1156 = vmatpush2.msra.mxu1 %v774_v9  ;;  %v639_v16 = vld [vmem:[#allocation2 + $0xa48] sm:$0xff]  ;;  %1086 = vmatprep.subr.mxu0 %v643_v10  ;;  %v638_v19 = vld [vmem:[#allocation2 + $0xa40] sm:$0xff]  ;;  %v7328_v32 = vcombine.high %v7320_v23, %v7320_v23  ;;  %v485_v51 = vld [vmem:[#allocation2 + $0x578] sm:$0xff] }
 0x168   :  { %v767_v17 = vld [vmem:[#allocation2 + $0xe48] sm:$0xff]  ;;  %1157 = vmatprep.subr.mxu1 %v771_v12  ;;  %v766_v20 = vld [vmem:[#allocation2 + $0xe40] sm:$0xff]  ;;  %1087 = vmatpush2.msra.mxu0 %v642_v14  ;;  %v356_v53 = vld [vmem:[#allocation2 + $0x170] sm:$0xff] }
 0x169   :  { %1158 = vmatpush2.msra.mxu1 %v770_v15  ;;  %v635_v21 = vld [vmem:[#allocation2 + $0xa28] sm:$0xff]  ;;  %1088 = vmatprep.subr.mxu0 %v639_v16  ;;  %v634_v24 = vld [vmem:[#allocation2 + $0xa20] sm:$0xff]  ;;  %v484_v54 = vld [vmem:[#allocation2 + $0x570] sm:$0xff] }
 0x16a   :  { %v763_v22 = vld [vmem:[#allocation2 + $0xe28] sm:$0xff]  ;;  %1159 = vmatprep.subr.mxu1 %v767_v17  ;;  %v762_v25 = vld [vmem:[#allocation2 + $0xe20] sm:$0xff]  ;;  %1089 = vmatpush2.msra.mxu0 %v638_v19  ;;  %v353_v55 = vld [vmem:[#allocation2 + $0x158] sm:$0xff] }
 0x16b   :  { %1160 = vmatpush2.msra.mxu1 %v766_v20  ;;  %v631_v26 = vld [vmem:[#allocation2 + $0xa08] sm:$0xff]  ;;  %1090 = vmatprep.subr.mxu0 %v635_v21  ;;  %v630_v29 = vld [vmem:[#allocation2 + $0xa00] sm:$0xff]  ;;  %v481_v56 = vld [vmem:[#allocation2 + $0x558] sm:$0xff] }
 0x16c   :  { %v759_v27 = vld [vmem:[#allocation2 + $0xe08] sm:$0xff]  ;;  %1161 = vmatprep.subr.mxu1 %v763_v22  ;;  %1091 = vmatpush2.msra.mxu0 %v634_v24  ;;  %v758_v31 = vld [vmem:[#allocation2 + $0xe00] sm:$0xff]  ;;  %v352_v57 = vld [vmem:[#allocation2 + $0x150] sm:$0xff] }
 0x16d   :  { %1162 = vmatpush2.msra.mxu1 %v762_v25  ;;  %1092 = vmatprep.subr.mxu0 %v631_v26  ;;  %v480_v58 = vld [vmem:[#allocation2 + $0x550] sm:$0xff]  ;;  %v349_v59 = vld [vmem:[#allocation2 + $0x138] sm:$0xff] }
 0x16e   :  { %1163 = vmatprep.subr.mxu1 %v759_v27  ;;  %1093 = vmatpush2.msra.mxu0 %v630_v29  ;;  %v477_v60 = vld [vmem:[#allocation2 + $0x538] sm:$0xff]  ;;  %v348_v61 = vld [vmem:[#allocation2 + $0x130] sm:$0xff] }
 0x16f   :  { %1094 = vmatprep.mubr.f32.mxu0 %v7324_v28  ;;  %1164 = vmatpush2.msra.mxu1 %v758_v31  ;;  %v476_v63 = vld [vmem:[#allocation2 + $0x530] sm:$0xff]  ;;  %v345_v0 = vld [vmem:[#allocation2 + $0x118] sm:$0xff] }
 0x170   :  { %1095 = vmatmul.mubr.f32.vlgmr.msra.gmra.mxu0 %v7317_v18  ;;  %1165 = vmatprep.mubr.f32.mxu1 %v7328_v32  ;;  %v473_v1 = vld [vmem:[#allocation2 + $0x518] sm:$0xff]  ;;  %v344_v2 = vld [vmem:[#allocation2 + $0x110] sm:$0xff] }
 0x171   :  { %1172 = vmatprep.subr.mxu0 %v373_v33  ;;  %1243 = vmatprep.subr.mxu1 %v501_v34  ;;  %v472_v4 = vld [vmem:[#allocation2 + $0x510] sm:$0xff]  ;;  %v341_v5 = vld [vmem:[#allocation2 + $0xf8] sm:$0xff] }
 0x172   :  { %1166 = vmatmul.mubr.f32.vlgmr.msra.gmra.mxu1 %v7320_v23  ;;  %1173 = vmatpush1.msra.mxu0 %v372_v35  ;;  %v469_v6 = vld [vmem:[#allocation2 + $0x4f8] sm:$0xff]  ;;  %v340_v7 = vld [vmem:[#allocation2 + $0xf0] sm:$0xff] }
 0x173   :  { %1244 = vmatpush1.msra.mxu1 %v500_v36  ;;  %1174 = vmatprep.subr.mxu0 %v369_v37  ;;  %v468_v9 = vld [vmem:[#allocation2 + $0x4f0] sm:$0xff]  ;;  %v337_v10 = vld [vmem:[#allocation2 + $0xd8] sm:$0xff] }
 0x174   :  { %1245 = vmatprep.subr.mxu1 %v497_v38  ;;  %1175 = vmatpush1.msra.mxu0 %v368_v39  ;;  %v465_v12 = vld [vmem:[#allocation2 + $0x4d8] sm:$0xff]  ;;  %v336_v13 = vld [vmem:[#allocation2 + $0xd0] sm:$0xff] }
 0x175   :  { %1246 = vmatpush1.msra.mxu1 %v496_v40  ;;  %1176 = vmatprep.subr.mxu0 %v365_v42  ;;  %v464_v14 = vld [vmem:[#allocation2 + $0x4d0] sm:$0xff]  ;;  %v333_v15 = vld [vmem:[#allocation2 + $0xb8] sm:$0xff] }
 0x176   :  { %1247 = vmatprep.subr.mxu1 %v493_v43  ;;  %1177 = vmatpush1.msra.mxu0 %v364_v44  ;;  %v461_v16 = vld [vmem:[#allocation2 + $0x4b8] sm:$0xff]  ;;  %v332_v17 = vld [vmem:[#allocation2 + $0xb0] sm:$0xff] }
 0x177   :  { %1248 = vmatpush1.msra.mxu1 %v492_v45  ;;  %1178 = vmatprep.subr.mxu0 %v361_v46  ;;  %v460_v19 = vld [vmem:[#allocation2 + $0x4b0] sm:$0xff]  ;;  %v329_v20 = vld [vmem:[#allocation2 + $0x98] sm:$0xff] }
 0x178   :  { %1249 = vmatprep.subr.mxu1 %v489_v47  ;;  %1179 = vmatpush1.msra.mxu0 %v360_v48  ;;  %v457_v21 = vld [vmem:[#allocation2 + $0x498] sm:$0xff]  ;;  %v328_v22 = vld [vmem:[#allocation2 + $0x90] sm:$0xff] }
 0x179   :  { %1250 = vmatpush1.msra.mxu1 %v488_v49  ;;  %1180 = vmatprep.subr.mxu0 %v357_v50  ;;  %v456_v24 = vld [vmem:[#allocation2 + $0x490] sm:$0xff]  ;;  %v325_v25 = vld [vmem:[#allocation2 + $0x78] sm:$0xff] }
 0x17a   :  { %1251 = vmatprep.subr.mxu1 %v485_v51  ;;  %1181 = vmatpush1.msra.mxu0 %v356_v53  ;;  %v453_v26 = vld [vmem:[#allocation2 + $0x478] sm:$0xff]  ;;  %v324_v27 = vld [vmem:[#allocation2 + $0x70] sm:$0xff] }
 0x17b   :  { %1252 = vmatpush1.msra.mxu1 %v484_v54  ;;  %1182 = vmatprep.subr.mxu0 %v353_v55  ;;  %v452_v29 = vld [vmem:[#allocation2 + $0x470] sm:$0xff]  ;;  %v321_v31 = vld [vmem:[#allocation2 + $0x58] sm:$0xff] }
 0x17c   :  { %1253 = vmatprep.subr.mxu1 %v481_v56  ;;  %1183 = vmatpush1.msra.mxu0 %v352_v57  ;;  %v449_v33 = vld [vmem:[#allocation2 + $0x458] sm:$0xff]  ;;  %v320_v34 = vld [vmem:[#allocation2 + $0x50] sm:$0xff] }
 0x17d   :  { %1254 = vmatpush1.msra.mxu1 %v480_v58  ;;  %1184 = vmatprep.subr.mxu0 %v349_v59  ;;  %v448_v35 = vld [vmem:[#allocation2 + $0x450] sm:$0xff]  ;;  %v317_v36 = vld [vmem:[#allocation2 + $0x38] sm:$0xff] }
 0x17e   :  { %1255 = vmatprep.subr.mxu1 %v477_v60  ;;  %1185 = vmatpush1.msra.mxu0 %v348_v61  ;;  %v445_v37 = vld [vmem:[#allocation2 + $0x438] sm:$0xff]  ;;  %v316_v38 = vld [vmem:[#allocation2 + $0x30] sm:$0xff] }
 0x17f   :  { %1256 = vmatpush1.msra.mxu1 %v476_v63  ;;  %1186 = vmatprep.subr.mxu0 %v345_v0  ;;  %v444_v39 = vld [vmem:[#allocation2 + $0x430] sm:$0xff]  ;;  %v313_v40 = vld [vmem:[#allocation2 + $0x18] sm:$0xff] }
 0x180   :  { %1257 = vmatprep.subr.mxu1 %v473_v1  ;;  %1187 = vmatpush1.msra.mxu0 %v344_v2  ;;  %v441_v42 = vld [vmem:[#allocation2 + $0x418] sm:$0xff]  ;;  %v312_v43 = vld [vmem:[#allocation2 + $0x10] sm:$0xff] }
 0x181   :  { %1258 = vmatpush1.msra.mxu1 %v472_v4  ;;  %1188 = vmatprep.subr.mxu0 %v341_v5  ;;  %v440_v44 = vld [vmem:[#allocation2 + $0x410] sm:$0xff]  ;;  %v437_v45 = vld [vmem:[#allocation2 + $0x3f8] sm:$0xff] }
 0x182   :  { %1259 = vmatprep.subr.mxu1 %v469_v6  ;;  %1189 = vmatpush1.msra.mxu0 %v340_v7  ;;  %v565_v46 = vld [vmem:[#allocation2 + $0x7f8] sm:$0xff]  ;;  %v436_v47 = vld [vmem:[#allocation2 + $0x3f0] sm:$0xff] }
 0x183   :  { %1260 = vmatpush1.msra.mxu1 %v468_v9  ;;  %1190 = vmatprep.subr.mxu0 %v337_v10  ;;  %v564_v48 = vld [vmem:[#allocation2 + $0x7f0] sm:$0xff]  ;;  %v433_v49 = vld [vmem:[#allocation2 + $0x3d8] sm:$0xff] }
 0x184   :  { %1261 = vmatprep.subr.mxu1 %v465_v12  ;;  %1191 = vmatpush1.msra.mxu0 %v336_v13  ;;  %v561_v50 = vld [vmem:[#allocation2 + $0x7d8] sm:$0xff]  ;;  %v432_v51 = vld [vmem:[#allocation2 + $0x3d0] sm:$0xff] }
 0x185   :  { %1262 = vmatpush1.msra.mxu1 %v464_v14  ;;  %1192 = vmatprep.subr.mxu0 %v333_v15  ;;  %v560_v53 = vld [vmem:[#allocation2 + $0x7d0] sm:$0xff]  ;;  %v429_v54 = vld [vmem:[#allocation2 + $0x3b8] sm:$0xff] }
 0x186   :  { %1263 = vmatprep.subr.mxu1 %v461_v16  ;;  %1193 = vmatpush1.msra.mxu0 %v332_v17  ;;  %v557_v55 = vld [vmem:[#allocation2 + $0x7b8] sm:$0xff]  ;;  %v428_v56 = vld [vmem:[#allocation2 + $0x3b0] sm:$0xff] }
 0x187   :  { %1264 = vmatpush1.msra.mxu1 %v460_v19  ;;  %1194 = vmatprep.subr.mxu0 %v329_v20  ;;  %v556_v57 = vld [vmem:[#allocation2 + $0x7b0] sm:$0xff]  ;;  %v425_v58 = vld [vmem:[#allocation2 + $0x398] sm:$0xff] }
 0x188   :  { %1265 = vmatprep.subr.mxu1 %v457_v21  ;;  %1195 = vmatpush1.msra.mxu0 %v328_v22  ;;  %v553_v59 = vld [vmem:[#allocation2 + $0x798] sm:$0xff]  ;;  %v424_v60 = vld [vmem:[#allocation2 + $0x390] sm:$0xff] }
 0x189   :  { %1266 = vmatpush1.msra.mxu1 %v456_v24  ;;  %1196 = vmatprep.subr.mxu0 %v325_v25  ;;  %v552_v61 = vld [vmem:[#allocation2 + $0x790] sm:$0xff]  ;;  %v421_v63 = vld [vmem:[#allocation2 + $0x378] sm:$0xff] }
 0x18a   :  { %1267 = vmatprep.subr.mxu1 %v453_v26  ;;  %1197 = vmatpush1.msra.mxu0 %v324_v27  ;;  %v549_v0 = vld [vmem:[#allocation2 + $0x778] sm:$0xff]  ;;  %v420_v1 = vld [vmem:[#allocation2 + $0x370] sm:$0xff] }
 0x18b   :  { %1268 = vmatpush1.msra.mxu1 %v452_v29  ;;  %1198 = vmatprep.subr.mxu0 %v321_v31  ;;  %v548_v2 = vld [vmem:[#allocation2 + $0x770] sm:$0xff]  ;;  %v417_v4 = vld [vmem:[#allocation2 + $0x358] sm:$0xff] }
 0x18c   :  { %1269 = vmatprep.subr.mxu1 %v449_v33  ;;  %1199 = vmatpush1.msra.mxu0 %v320_v34  ;;  %v545_v5 = vld [vmem:[#allocation2 + $0x758] sm:$0xff]  ;;  %v416_v6 = vld [vmem:[#allocation2 + $0x350] sm:$0xff] }
 0x18d   :  { %1270 = vmatpush1.msra.mxu1 %v448_v35  ;;  %1200 = vmatprep.subr.mxu0 %v317_v36  ;;  %v544_v7 = vld [vmem:[#allocation2 + $0x750] sm:$0xff]  ;;  %v413_v9 = vld [vmem:[#allocation2 + $0x338] sm:$0xff] }
 0x18e   :  { %1271 = vmatprep.subr.mxu1 %v445_v37  ;;  %1201 = vmatpush1.msra.mxu0 %v316_v38  ;;  %v541_v10 = vld [vmem:[#allocation2 + $0x738] sm:$0xff]  ;;  %v412_v12 = vld [vmem:[#allocation2 + $0x330] sm:$0xff] }
 0x18f   :  { %1272 = vmatpush1.msra.mxu1 %v444_v39  ;;  %1202 = vmatprep.subr.mxu0 %v313_v40  ;;  %v540_v13 = vld [vmem:[#allocation2 + $0x730] sm:$0xff]  ;;  %v409_v14 = vld [vmem:[#allocation2 + $0x318] sm:$0xff] }
 0x190   :  { %1273 = vmatprep.subr.mxu1 %v441_v42  ;;  %1203 = vmatpush1.msra.mxu0 %v312_v43  ;;  %v537_v15 = vld [vmem:[#allocation2 + $0x718] sm:$0xff]  ;;  %v408_v16 = vld [vmem:[#allocation2 + $0x310] sm:$0xff] }
 0x191   :  { %1274 = vmatpush1.msra.mxu1 %v440_v44  ;;  %1204 = vmatprep.subr.mxu0 %v437_v45  ;;  %v536_v17 = vld [vmem:[#allocation2 + $0x710] sm:$0xff]  ;;  %v405_v19 = vld [vmem:[#allocation2 + $0x2f8] sm:$0xff] }
 0x192   :  { %1275 = vmatprep.subr.mxu1 %v565_v46  ;;  %1205 = vmatpush2.msra.mxu0 %v436_v47  ;;  %v533_v20 = vld [vmem:[#allocation2 + $0x6f8] sm:$0xff]  ;;  %v404_v21 = vld [vmem:[#allocation2 + $0x2f0] sm:$0xff] }
 0x193   :  { %1276 = vmatpush2.msra.mxu1 %v564_v48  ;;  %1206 = vmatprep.subr.mxu0 %v433_v49  ;;  %v532_v22 = vld [vmem:[#allocation2 + $0x6f0] sm:$0xff]  ;;  %v401_v24 = vld [vmem:[#allocation2 + $0x2d8] sm:$0xff] }
 0x194   :  { %1277 = vmatprep.subr.mxu1 %v561_v50  ;;  %1207 = vmatpush2.msra.mxu0 %v432_v51  ;;  %v529_v25 = vld [vmem:[#allocation2 + $0x6d8] sm:$0xff]  ;;  %v400_v26 = vld [vmem:[#allocation2 + $0x2d0] sm:$0xff] }
 0x195   :  { %1278 = vmatpush2.msra.mxu1 %v560_v53  ;;  %1208 = vmatprep.subr.mxu0 %v429_v54  ;;  %v528_v27 = vld [vmem:[#allocation2 + $0x6d0] sm:$0xff]  ;;  %v397_v29 = vld [vmem:[#allocation2 + $0x2b8] sm:$0xff] }
 0x196   :  { %1279 = vmatprep.subr.mxu1 %v557_v55  ;;  %1209 = vmatpush2.msra.mxu0 %v428_v56  ;;  %v525_v31 = vld [vmem:[#allocation2 + $0x6b8] sm:$0xff]  ;;  %v396_v33 = vld [vmem:[#allocation2 + $0x2b0] sm:$0xff] }
 0x197   :  { %1280 = vmatpush2.msra.mxu1 %v556_v57  ;;  %1210 = vmatprep.subr.mxu0 %v425_v58  ;;  %v524_v34 = vld [vmem:[#allocation2 + $0x6b0] sm:$0xff]  ;;  %v393_v35 = vld [vmem:[#allocation2 + $0x298] sm:$0xff] }
 0x198   :  { %1281 = vmatprep.subr.mxu1 %v553_v59  ;;  %1211 = vmatpush2.msra.mxu0 %v424_v60  ;;  %v521_v36 = vld [vmem:[#allocation2 + $0x698] sm:$0xff]  ;;  %v392_v37 = vld [vmem:[#allocation2 + $0x290] sm:$0xff] }
 0x199   :  { %1282 = vmatpush2.msra.mxu1 %v552_v61  ;;  %1212 = vmatprep.subr.mxu0 %v421_v63  ;;  %v520_v38 = vld [vmem:[#allocation2 + $0x690] sm:$0xff]  ;;  %v389_v39 = vld [vmem:[#allocation2 + $0x278] sm:$0xff] }
 0x19a   :  { %1283 = vmatprep.subr.mxu1 %v549_v0  ;;  %1213 = vmatpush2.msra.mxu0 %v420_v1  ;;  %v517_v40 = vld [vmem:[#allocation2 + $0x678] sm:$0xff]  ;;  %v388_v42 = vld [vmem:[#allocation2 + $0x270] sm:$0xff] }
 0x19b   :  { %1284 = vmatpush2.msra.mxu1 %v548_v2  ;;  %1214 = vmatprep.subr.mxu0 %v417_v4  ;;  %v516_v43 = vld [vmem:[#allocation2 + $0x670] sm:$0xff]  ;;  %v385_v44 = vld [vmem:[#allocation2 + $0x258] sm:$0xff] }
 0x19c   :  { %1285 = vmatprep.subr.mxu1 %v545_v5  ;;  %1215 = vmatpush2.msra.mxu0 %v416_v6  ;;  %v513_v45 = vld [vmem:[#allocation2 + $0x658] sm:$0xff]  ;;  %v384_v46 = vld [vmem:[#allocation2 + $0x250] sm:$0xff] }
 0x19d   :  { %1286 = vmatpush2.msra.mxu1 %v544_v7  ;;  %1216 = vmatprep.subr.mxu0 %v413_v9  ;;  %v512_v47 = vld [vmem:[#allocation2 + $0x650] sm:$0xff]  ;;  %v381_v48 = vld [vmem:[#allocation2 + $0x238] sm:$0xff] }
 0x19e   :  { %1287 = vmatprep.subr.mxu1 %v541_v10  ;;  %1217 = vmatpush2.msra.mxu0 %v412_v12  ;;  %v509_v49 = vld [vmem:[#allocation2 + $0x638] sm:$0xff]  ;;  %v380_v50 = vld [vmem:[#allocation2 + $0x230] sm:$0xff] }
 0x19f   :  { %1288 = vmatpush2.msra.mxu1 %v540_v13  ;;  %1218 = vmatprep.subr.mxu0 %v409_v14  ;;  %v508_v51 = vld [vmem:[#allocation2 + $0x630] sm:$0xff]  ;;  %v377_v53 = vld [vmem:[#allocation2 + $0x218] sm:$0xff] }
 0x1a0   :  { %1289 = vmatprep.subr.mxu1 %v537_v15  ;;  %1219 = vmatpush2.msra.mxu0 %v408_v16  ;;  %v505_v54 = vld [vmem:[#allocation2 + $0x618] sm:$0xff]  ;;  %v376_v55 = vld [vmem:[#allocation2 + $0x210] sm:$0xff] }
 0x1a1   :  { %1290 = vmatpush2.msra.mxu1 %v536_v17  ;;  %1220 = vmatprep.subr.mxu0 %v405_v19  ;;  %v504_v56 = vld [vmem:[#allocation2 + $0x610] sm:$0xff]  ;;  %v629_v57 = vld [vmem:[#allocation2 + $0x9f8] sm:$0xff] }
 0x1a2   :  { %1291 = vmatprep.subr.mxu1 %v533_v20  ;;  %1221 = vmatpush2.msra.mxu0 %v404_v21  ;;  %v757_v58 = vld [vmem:[#allocation2 + $0xdf8] sm:$0xff]  ;;  %v628_v59 = vld [vmem:[#allocation2 + $0x9f0] sm:$0xff] }
 0x1a3   :  { %1292 = vmatpush2.msra.mxu1 %v532_v22  ;;  %1222 = vmatprep.subr.mxu0 %v401_v24  ;;  %v756_v60 = vld [vmem:[#allocation2 + $0xdf0] sm:$0xff]  ;;  %v625_v61 = vld [vmem:[#allocation2 + $0x9d8] sm:$0xff] }
 0x1a4   :  { %1293 = vmatprep.subr.mxu1 %v529_v25  ;;  %1223 = vmatpush2.msra.mxu0 %v400_v26  ;;  %v753_v63 = vld [vmem:[#allocation2 + $0xdd8] sm:$0xff]  ;;  %v624_v0 = vld [vmem:[#allocation2 + $0x9d0] sm:$0xff] }
 0x1a5   :  { %1294 = vmatpush2.msra.mxu1 %v528_v27  ;;  %1224 = vmatprep.subr.mxu0 %v397_v29  ;;  %v752_v1 = vld [vmem:[#allocation2 + $0xdd0] sm:$0xff]  ;;  %v621_v2 = vld [vmem:[#allocation2 + $0x9b8] sm:$0xff] }
 0x1a6   :  { %1295 = vmatprep.subr.mxu1 %v525_v31  ;;  %1225 = vmatpush2.msra.mxu0 %v396_v33  ;;  %v620_v4 = vld [vmem:[#allocation2 + $0x9b0] sm:$0xff]  ;;  %v617_v5 = vld [vmem:[#allocation2 + $0x998] sm:$0xff] }
 0x1a7   :  { %1296 = vmatpush2.msra.mxu1 %v524_v34  ;;  %1226 = vmatprep.subr.mxu0 %v393_v35  ;;  %v616_v6 = vld [vmem:[#allocation2 + $0x990] sm:$0xff]  ;;  %v741_v9 = vld [vmem:[#allocation2 + $0xd78] sm:$0xff] }
 0x1a8   :  { %1297 = vmatprep.subr.mxu1 %v521_v36  ;;  %1227 = vmatpush2.msra.mxu0 %v392_v37  ;;  %v744_v7 = vld [vmem:[#allocation2 + $0xd90] sm:$0xff]  ;;  %v609_v13 = vld [vmem:[#allocation2 + $0x958] sm:$0xff] }
 0x1a9   :  { %1298 = vmatpush2.msra.mxu1 %v520_v38  ;;  %1228 = vmatprep.subr.mxu0 %v389_v39  ;;  %v612_v10 = vld [vmem:[#allocation2 + $0x970] sm:$0xff]  ;;  %v737_v14 = vld [vmem:[#allocation2 + $0xd58] sm:$0xff] }
 0x1aa   :  { %1299 = vmatprep.subr.mxu1 %v517_v40  ;;  %1229 = vmatpush2.msra.mxu0 %v388_v42  ;;  %v740_v12 = vld [vmem:[#allocation2 + $0xd70] sm:$0xff]  ;;  %v605_v17 = vld [vmem:[#allocation2 + $0x938] sm:$0xff] }
 0x1ab   :  { %1300 = vmatpush2.msra.mxu1 %v516_v43  ;;  %1230 = vmatprep.subr.mxu0 %v385_v44  ;;  %v608_v15 = vld [vmem:[#allocation2 + $0x950] sm:$0xff]  ;;  %v733_v19 = vld [vmem:[#allocation2 + $0xd38] sm:$0xff] }
 0x1ac   :  { %1301 = vmatprep.subr.mxu1 %v513_v45  ;;  %1231 = vmatpush2.msra.mxu0 %v384_v46  ;;  %v736_v16 = vld [vmem:[#allocation2 + $0xd50] sm:$0xff]  ;;  %v601_v22 = vld [vmem:[#allocation2 + $0x918] sm:$0xff] }
 0x1ad   :  { %1302 = vmatpush2.msra.mxu1 %v512_v47  ;;  %1232 = vmatprep.subr.mxu0 %v381_v48  ;;  %v604_v20 = vld [vmem:[#allocation2 + $0x930] sm:$0xff]  ;;  %v729_v24 = vld [vmem:[#allocation2 + $0xd18] sm:$0xff] }
 0x1ae   :  { %1303 = vmatprep.subr.mxu1 %v509_v49  ;;  %1233 = vmatpush2.msra.mxu0 %v380_v50  ;;  %v732_v21 = vld [vmem:[#allocation2 + $0xd30] sm:$0xff]  ;;  %v597_v27 = vld [vmem:[#allocation2 + $0x8f8] sm:$0xff] }
 0x1af   :  { %1304 = vmatpush2.msra.mxu1 %v508_v51  ;;  %1234 = vmatprep.subr.mxu0 %v377_v53  ;;  %v600_v25 = vld [vmem:[#allocation2 + $0x910] sm:$0xff]  ;;  %v725_v29 = vld [vmem:[#allocation2 + $0xcf8] sm:$0xff] }
 0x1b0   :  { %1305 = vmatprep.subr.mxu1 %v505_v54  ;;  %1235 = vmatpush2.msra.mxu0 %v376_v55  ;;  %v728_v26 = vld [vmem:[#allocation2 + $0xd10] sm:$0xff]  ;;  %v593_v34 = vld [vmem:[#allocation2 + $0x8d8] sm:$0xff] }
 0x1b1   :  { %1236 = vmatprep.mubr.f32.mxu0 %v7303_v8  ;;  %1306 = vmatpush2.msra.mxu1 %v504_v56  ;;  %v749_v8 = vld [vmem:[#allocation2 + $0xdb8] sm:$0xff]  ;;  %v596_v31 = vld [vmem:[#allocation2 + $0x8f0] sm:$0xff] }
 0x1b2   :  { %1237 = vmatmul.mubr.f32.vlgmr.msra.gmra.mxu0 %v7296_v62  ;;  %1307 = vmatprep.mubr.f32.mxu1 %v7307_v11  ;;  %v748_v62 = vld [vmem:[#allocation2 + $0xdb0] sm:$0xff]  ;;  %v745_v11 = vld [vmem:[#allocation2 + $0xd98] sm:$0xff] }
 0x1b3   :  { %1314 = vmatprep.subr.mxu0 %v629_v57  ;;  %1385 = vmatprep.subr.mxu1 %v757_v58  ;;  %v724_v33 = vld [vmem:[#allocation2 + $0xcf0] sm:$0xff]  ;;  %v721_v35 = vld [vmem:[#allocation2 + $0xcd8] sm:$0xff] }
 0x1b4   :  { %1308 = vmatmul.mubr.f32.vlgmr.msra.gmra.mxu1 %v7299_v3  ;;  %1315 = vmatpush1.msra.mxu0 %v628_v59  ;;  %v613_v3 = vld [vmem:[#allocation2 + $0x978] sm:$0xff]  ;;  %v592_v36 = vld [vmem:[#allocation2 + $0x8d0] sm:$0xff] }
 0x1b5   :  { %1386 = vmatpush1.msra.mxu1 %v756_v60  ;;  %1316 = vmatprep.subr.mxu0 %v625_v61  ;;  %v720_v37 = vld [vmem:[#allocation2 + $0xcd0] sm:$0xff]  ;;  %v589_v38 = vld [vmem:[#allocation2 + $0x8b8] sm:$0xff] }
 0x1b6   :  { %1387 = vmatprep.subr.mxu1 %v753_v63  ;;  %1317 = vmatpush1.msra.mxu0 %v624_v0  ;;  %v717_v39 = vld [vmem:[#allocation2 + $0xcb8] sm:$0xff]  ;;  %v588_v40 = vld [vmem:[#allocation2 + $0x8b0] sm:$0xff] }
 0x1b7   :  { %1388 = vmatpush1.msra.mxu1 %v752_v1  ;;  %1318 = vmatprep.subr.mxu0 %v621_v2  ;;  %v716_v42 = vld [vmem:[#allocation2 + $0xcb0] sm:$0xff]  ;;  %v585_v43 = vld [vmem:[#allocation2 + $0x898] sm:$0xff] }
 0x1b8   :  { %1389 = vmatprep.subr.mxu1 %v749_v8  ;;  %1319 = vmatpush1.msra.mxu0 %v620_v4  ;;  %v713_v44 = vld [vmem:[#allocation2 + $0xc98] sm:$0xff]  ;;  %v584_v45 = vld [vmem:[#allocation2 + $0x890] sm:$0xff] }
 0x1b9   :  { %1390 = vmatpush1.msra.mxu1 %v748_v62  ;;  %1320 = vmatprep.subr.mxu0 %v617_v5  ;;  %v712_v46 = vld [vmem:[#allocation2 + $0xc90] sm:$0xff]  ;;  %v581_v47 = vld [vmem:[#allocation2 + $0x878] sm:$0xff] }
 0x1ba   :  { %1391 = vmatprep.subr.mxu1 %v745_v11  ;;  %1321 = vmatpush1.msra.mxu0 %v616_v6  ;;  %v709_v48 = vld [vmem:[#allocation2 + $0xc78] sm:$0xff]  ;;  %v580_v49 = vld [vmem:[#allocation2 + $0x870] sm:$0xff] }
 0x1bb   :  { %1392 = vmatpush1.msra.mxu1 %v744_v7  ;;  %1322 = vmatprep.subr.mxu0 %v613_v3  ;;  %v708_v50 = vld [vmem:[#allocation2 + $0xc70] sm:$0xff]  ;;  %v577_v51 = vld [vmem:[#allocation2 + $0x858] sm:$0xff] }
 0x1bc   :  { %1393 = vmatprep.subr.mxu1 %v741_v9  ;;  %1323 = vmatpush1.msra.mxu0 %v612_v10  ;;  %v705_v53 = vld [vmem:[#allocation2 + $0xc58] sm:$0xff]  ;;  %v576_v54 = vld [vmem:[#allocation2 + $0x850] sm:$0xff] }
 0x1bd   :  { %1394 = vmatpush1.msra.mxu1 %v740_v12  ;;  %1324 = vmatprep.subr.mxu0 %v609_v13  ;;  %v704_v55 = vld [vmem:[#allocation2 + $0xc50] sm:$0xff]  ;;  %v573_v56 = vld [vmem:[#allocation2 + $0x838] sm:$0xff] }
 0x1be   :  { %1395 = vmatprep.subr.mxu1 %v737_v14  ;;  %1325 = vmatpush1.msra.mxu0 %v608_v15  ;;  %v701_v57 = vld [vmem:[#allocation2 + $0xc38] sm:$0xff]  ;;  %v572_v58 = vld [vmem:[#allocation2 + $0x830] sm:$0xff] }
 0x1bf   :  { %1396 = vmatpush1.msra.mxu1 %v736_v16  ;;  %1326 = vmatprep.subr.mxu0 %v605_v17  ;;  %v700_v59 = vld [vmem:[#allocation2 + $0xc30] sm:$0xff]  ;;  %v569_v60 = vld [vmem:[#allocation2 + $0x818] sm:$0xff] }
 0x1c0   :  { %1397 = vmatprep.subr.mxu1 %v733_v19  ;;  %1327 = vmatpush1.msra.mxu0 %v604_v20  ;;  %v697_v61 = vld [vmem:[#allocation2 + $0xc18] sm:$0xff]  ;;  %v568_v63 = vld [vmem:[#allocation2 + $0x810] sm:$0xff] }
 0x1c1   :  { %1398 = vmatpush1.msra.mxu1 %v732_v21  ;;  %1328 = vmatprep.subr.mxu0 %v601_v22  ;;  %v696_v0 = vld [vmem:[#allocation2 + $0xc10] sm:$0xff]  ;;  %v693_v1 = vld [vmem:[#allocation2 + $0xbf8] sm:$0xff] }
 0x1c2   :  { %1399 = vmatprep.subr.mxu1 %v729_v24  ;;  %1329 = vmatpush1.msra.mxu0 %v600_v25  ;;  %v821_v2 = vld [vmem:[#allocation2 + $0xff8] sm:$0xff]  ;;  %v692_v8 = vld [vmem:[#allocation2 + $0xbf0] sm:$0xff] }
 0x1c3   :  { %1400 = vmatpush1.msra.mxu1 %v728_v26  ;;  %1330 = vmatprep.subr.mxu0 %v597_v27  ;;  %v820_v4 = vld [vmem:[#allocation2 + $0xff0] sm:$0xff]  ;;  %v689_v62 = vld [vmem:[#allocation2 + $0xbd8] sm:$0xff] }
 0x1c4   :  { %1401 = vmatprep.subr.mxu1 %v725_v29  ;;  %1331 = vmatpush1.msra.mxu0 %v596_v31  ;;  %v817_v5 = vld [vmem:[#allocation2 + $0xfd8] sm:$0xff]  ;;  %v688_v11 = vld [vmem:[#allocation2 + $0xbd0] sm:$0xff] }
 0x1c5   :  { %1402 = vmatpush1.msra.mxu1 %v724_v33  ;;  %1332 = vmatprep.subr.mxu0 %v593_v34  ;;  %v816_v6 = vld [vmem:[#allocation2 + $0xfd0] sm:$0xff]  ;;  %v685_v7 = vld [vmem:[#allocation2 + $0xbb8] sm:$0xff] }
 0x1c6   :  { %1403 = vmatprep.subr.mxu1 %v721_v35  ;;  %1333 = vmatpush1.msra.mxu0 %v592_v36  ;;  %v813_v3 = vld [vmem:[#allocation2 + $0xfb8] sm:$0xff]  ;;  %v684_v9 = vld [vmem:[#allocation2 + $0xbb0] sm:$0xff] }
 0x1c7   :  { %1404 = vmatpush1.msra.mxu1 %v720_v37  ;;  %1334 = vmatprep.subr.mxu0 %v589_v38  ;;  %v812_v10 = vld [vmem:[#allocation2 + $0xfb0] sm:$0xff]  ;;  %v681_v12 = vld [vmem:[#allocation2 + $0xb98] sm:$0xff] }
 0x1c8   :  { %1405 = vmatprep.subr.mxu1 %v717_v39  ;;  %1335 = vmatpush1.msra.mxu0 %v588_v40  ;;  %v809_v13 = vld [vmem:[#allocation2 + $0xf98] sm:$0xff]  ;;  %v680_v14 = vld [vmem:[#allocation2 + $0xb90] sm:$0xff] }
 0x1c9   :  { %1406 = vmatpush1.msra.mxu1 %v716_v42  ;;  %1336 = vmatprep.subr.mxu0 %v585_v43  ;;  %v808_v15 = vld [vmem:[#allocation2 + $0xf90] sm:$0xff]  ;;  %v677_v16 = vld [vmem:[#allocation2 + $0xb78] sm:$0xff] }
 0x1ca   :  { %1407 = vmatprep.subr.mxu1 %v713_v44  ;;  %1337 = vmatpush1.msra.mxu0 %v584_v45  ;;  %v805_v17 = vld [vmem:[#allocation2 + $0xf78] sm:$0xff]  ;;  %v676_v19 = vld [vmem:[#allocation2 + $0xb70] sm:$0xff] }
 0x1cb   :  { %1408 = vmatpush1.msra.mxu1 %v712_v46  ;;  %1338 = vmatprep.subr.mxu0 %v581_v47  ;;  %v804_v20 = vld [vmem:[#allocation2 + $0xf70] sm:$0xff]  ;;  %v673_v21 = vld [vmem:[#allocation2 + $0xb58] sm:$0xff] }
 0x1cc   :  { %1409 = vmatprep.subr.mxu1 %v709_v48  ;;  %1339 = vmatpush1.msra.mxu0 %v580_v49  ;;  %v801_v22 = vld [vmem:[#allocation2 + $0xf58] sm:$0xff]  ;;  %v672_v24 = vld [vmem:[#allocation2 + $0xb50] sm:$0xff] }
 0x1cd   :  { %1410 = vmatpush1.msra.mxu1 %v708_v50  ;;  %1340 = vmatprep.subr.mxu0 %v577_v51  ;;  %v800_v25 = vld [vmem:[#allocation2 + $0xf50] sm:$0xff]  ;;  %v669_v26 = vld [vmem:[#allocation2 + $0xb38] sm:$0xff] }
 0x1ce   :  { %1411 = vmatprep.subr.mxu1 %v705_v53  ;;  %1341 = vmatpush1.msra.mxu0 %v576_v54  ;;  %v797_v27 = vld [vmem:[#allocation2 + $0xf38] sm:$0xff]  ;;  %v668_v29 = vld [vmem:[#allocation2 + $0xb30] sm:$0xff] }
 0x1cf   :  { %1412 = vmatpush1.msra.mxu1 %v704_v55  ;;  %1342 = vmatprep.subr.mxu0 %v573_v56  ;;  %v796_v31 = vld [vmem:[#allocation2 + $0xf30] sm:$0xff]  ;;  %v665_v33 = vld [vmem:[#allocation2 + $0xb18] sm:$0xff] }
 0x1d0   :  { %1413 = vmatprep.subr.mxu1 %v701_v57  ;;  %1343 = vmatpush1.msra.mxu0 %v572_v58  ;;  %v793_v34 = vld [vmem:[#allocation2 + $0xf18] sm:$0xff]  ;;  %v664_v35 = vld [vmem:[#allocation2 + $0xb10] sm:$0xff] }
 0x1d1   :  { %1414 = vmatpush1.msra.mxu1 %v700_v59  ;;  %1344 = vmatprep.subr.mxu0 %v569_v60  ;;  %v792_v36 = vld [vmem:[#allocation2 + $0xf10] sm:$0xff]  ;;  %v661_v37 = vld [vmem:[#allocation2 + $0xaf8] sm:$0xff] }
 0x1d2   :  { %1415 = vmatprep.subr.mxu1 %v697_v61  ;;  %1345 = vmatpush1.msra.mxu0 %v568_v63  ;;  %v789_v38 = vld [vmem:[#allocation2 + $0xef8] sm:$0xff]  ;;  %v660_v39 = vld [vmem:[#allocation2 + $0xaf0] sm:$0xff] }
 0x1d3   :  { %1416 = vmatpush1.msra.mxu1 %v696_v0  ;;  %1346 = vmatprep.subr.mxu0 %v693_v1  ;;  %v788_v40 = vld [vmem:[#allocation2 + $0xef0] sm:$0xff]  ;;  %v657_v42 = vld [vmem:[#allocation2 + $0xad8] sm:$0xff] }
 0x1d4   :  { %1417 = vmatprep.subr.mxu1 %v821_v2  ;;  %1347 = vmatpush2.msra.mxu0 %v692_v8  ;;  %v785_v43 = vld [vmem:[#allocation2 + $0xed8] sm:$0xff]  ;;  %v656_v44 = vld [vmem:[#allocation2 + $0xad0] sm:$0xff] }
 0x1d5   :  { %1418 = vmatpush2.msra.mxu1 %v820_v4  ;;  %1348 = vmatprep.subr.mxu0 %v689_v62  ;;  %v784_v45 = vld [vmem:[#allocation2 + $0xed0] sm:$0xff]  ;;  %v653_v46 = vld [vmem:[#allocation2 + $0xab8] sm:$0xff] }
 0x1d6   :  { %1419 = vmatprep.subr.mxu1 %v817_v5  ;;  %1349 = vmatpush2.msra.mxu0 %v688_v11  ;;  %v781_v47 = vld [vmem:[#allocation2 + $0xeb8] sm:$0xff]  ;;  %v652_v48 = vld [vmem:[#allocation2 + $0xab0] sm:$0xff] }
 0x1d7   :  { %1420 = vmatpush2.msra.mxu1 %v816_v6  ;;  %1350 = vmatprep.subr.mxu0 %v685_v7  ;;  %v780_v49 = vld [vmem:[#allocation2 + $0xeb0] sm:$0xff]  ;;  %v649_v50 = vld [vmem:[#allocation2 + $0xa98] sm:$0xff] }
 0x1d8   :  { %1421 = vmatprep.subr.mxu1 %v813_v3  ;;  %1351 = vmatpush2.msra.mxu0 %v684_v9  ;;  %v777_v51 = vld [vmem:[#allocation2 + $0xe98] sm:$0xff]  ;;  %v648_v53 = vld [vmem:[#allocation2 + $0xa90] sm:$0xff]  ;;  %v1488_v9 = vld [vmem:[#allocation6 + $0xe0] sm:$0xff] }
 0x1d9   :  { %1422 = vmatpush2.msra.mxu1 %v812_v10  ;;  %1352 = vmatprep.subr.mxu0 %v681_v12  ;;  %v776_v54 = vld [vmem:[#allocation2 + $0xe90] sm:$0xff]  ;;  %v645_v55 = vld [vmem:[#allocation2 + $0xa78] sm:$0xff] }
 0x1da   :  { %1423 = vmatprep.subr.mxu1 %v809_v13  ;;  %1353 = vmatpush2.msra.mxu0 %v680_v14  ;;  %v773_v56 = vld [vmem:[#allocation2 + $0xe78] sm:$0xff]  ;;  %v644_v57 = vld [vmem:[#allocation2 + $0xa70] sm:$0xff] }
 0x1db   :  { %1424 = vmatpush2.msra.mxu1 %v808_v15  ;;  %1354 = vmatprep.subr.mxu0 %v677_v16  ;;  %v772_v58 = vld [vmem:[#allocation2 + $0xe70] sm:$0xff]  ;;  %v641_v59 = vld [vmem:[#allocation2 + $0xa58] sm:$0xff] }
 0x1dc   :  { %1425 = vmatprep.subr.mxu1 %v805_v17  ;;  %1355 = vmatpush2.msra.mxu0 %v676_v19  ;;  %v769_v60 = vld [vmem:[#allocation2 + $0xe58] sm:$0xff]  ;;  %v640_v61 = vld [vmem:[#allocation2 + $0xa50] sm:$0xff] }
 0x1dd   :  { %1426 = vmatpush2.msra.mxu1 %v804_v20  ;;  %1356 = vmatprep.subr.mxu0 %v673_v21  ;;  %v768_v63 = vld [vmem:[#allocation2 + $0xe50] sm:$0xff]  ;;  %v637_v0 = vld [vmem:[#allocation2 + $0xa38] sm:$0xff]  ;;  %v1548_v21 = vld [vmem:[#allocation6 + $0x2c0] sm:$0xff] }
 0x1de   :  { %1427 = vmatprep.subr.mxu1 %v801_v22  ;;  %1357 = vmatpush2.msra.mxu0 %v672_v24  ;;  %v765_v1 = vld [vmem:[#allocation2 + $0xe38] sm:$0xff]  ;;  %v636_v2 = vld [vmem:[#allocation2 + $0xa30] sm:$0xff] }
 0x1df   :  { %1428 = vmatpush2.msra.mxu1 %v800_v25  ;;  %1358 = vmatprep.subr.mxu0 %v669_v26  ;;  %v764_v8 = vld [vmem:[#allocation2 + $0xe30] sm:$0xff]  ;;  %v633_v4 = vld [vmem:[#allocation2 + $0xa18] sm:$0xff]  ;;  %v1480_v25 = vld [vmem:[#allocation6 + $0xa0] sm:$0xff] }
 0x1e0   :  { %1429 = vmatprep.subr.mxu1 %v797_v27  ;;  %1359 = vmatpush2.msra.mxu0 %v668_v29  ;;  %v761_v62 = vld [vmem:[#allocation2 + $0xe18] sm:$0xff]  ;;  %v632_v5 = vld [vmem:[#allocation2 + $0xa10] sm:$0xff] }
 0x1e1   :  { %1430 = vmatpush2.msra.mxu1 %v796_v31  ;;  %1360 = vmatprep.subr.mxu0 %v665_v33  ;;  %v760_v11 = vld [vmem:[#allocation2 + $0xe10] sm:$0xff]  ;;  %v1491_v6 = vld [vmem:[#allocation6 + $0xf8] sm:$0xff]  ;;  %v1544_v33 = vld [vmem:[#allocation6 + $0x2a0] sm:$0xff] }
 0x1e2   :  { %1431 = vmatprep.subr.mxu1 %v793_v34  ;;  %1361 = vmatpush2.msra.mxu0 %v664_v35  ;;  %v1490_v7 = vld [vmem:[#allocation6 + $0xf0] sm:$0xff]  ;;  %v1489_v3 = vld [vmem:[#allocation6 + $0xe8] sm:$0xff]  ;;  %v1487_v10 = vld [vmem:[#allocation6 + $0xd8] sm:$0xff] }
 0x1e3   :  { %1432 = vmatpush2.msra.mxu1 %v792_v36  ;;  %1362 = vmatprep.subr.mxu0 %v661_v37  ;;  %v1555_v12 = vld [vmem:[#allocation6 + $0x2f8] sm:$0xff]  ;;  %v1554_v13 = vld [vmem:[#allocation6 + $0x2f0] sm:$0xff]  ;;  %v1553_v14 = vld [vmem:[#allocation6 + $0x2e8] sm:$0xff] }
 0x1e4   :  { %1433 = vmatprep.subr.mxu1 %v789_v38  ;;  %1363 = vmatpush2.msra.mxu0 %v660_v39  ;;  %v1486_v15 = vld [vmem:[#allocation6 + $0xd0] sm:$0xff]  ;;  %v1485_v16 = vld [vmem:[#allocation6 + $0xc8] sm:$0xff]  ;;  %v1483_v17 = vld [vmem:[#allocation6 + $0xb8] sm:$0xff] }
 0x1e5   :  { %1434 = vmatpush2.msra.mxu1 %v788_v40  ;;  %1364 = vmatprep.subr.mxu0 %v657_v42  ;;  %v1549_v19 = vld [vmem:[#allocation6 + $0x2c8] sm:$0xff]  ;;  %v1482_v20 = vld [vmem:[#allocation6 + $0xb0] sm:$0xff]  ;;  %v1547_v24 = vld [vmem:[#allocation6 + $0x2b8] sm:$0xff] }
 0x1e6   :  { %1435 = vmatprep.subr.mxu1 %v785_v43  ;;  %1365 = vmatpush2.msra.mxu0 %v656_v44  ;;  %v1481_v22 = vld [vmem:[#allocation6 + $0xa8] sm:$0xff]  ;;  %v1546_v26 = vld [vmem:[#allocation6 + $0x2b0] sm:$0xff]  ;;  %v1479_v27 = vld [vmem:[#allocation6 + $0x98] sm:$0xff] }
 0x1e7   :  { %1436 = vmatpush2.msra.mxu1 %v784_v45  ;;  %1366 = vmatprep.subr.mxu0 %v653_v46  ;;  %v1545_v29 = vld [vmem:[#allocation6 + $0x2a8] sm:$0xff]  ;;  %v1478_v31 = vld [vmem:[#allocation6 + $0x90] sm:$0xff]  ;;  %v1543_v35 = vld [vmem:[#allocation6 + $0x298] sm:$0xff] }
 0x1e8   :  { %1437 = vmatprep.subr.mxu1 %v781_v47  ;;  %1367 = vmatpush2.msra.mxu0 %v652_v48  ;;  %v1477_v34 = vld [vmem:[#allocation6 + $0x88] sm:$0xff]  ;;  %v1476_v36 = vld [vmem:[#allocation6 + $0x80] sm:$0xff]  ;;  %v1542_v37 = vld [vmem:[#allocation6 + $0x290] sm:$0xff] }
 0x1e9   :  { %1438 = vmatpush2.msra.mxu1 %v780_v49  ;;  %1368 = vmatprep.subr.mxu0 %v649_v50  ;;  %v1475_v38 = vld [vmem:[#allocation6 + $0x78] sm:$0xff]  ;;  %v1541_v39 = vld [vmem:[#allocation6 + $0x288] sm:$0xff]  ;;  %v1474_v40 = vld [vmem:[#allocation6 + $0x70] sm:$0xff] }
 0x1ea   :  { %1439 = vmatprep.subr.mxu1 %v777_v51  ;;  %1369 = vmatpush2.msra.mxu0 %v648_v53  ;;  %v1540_v42 = vld [vmem:[#allocation6 + $0x280] sm:$0xff]  ;;  %v1473_v43 = vld [vmem:[#allocation6 + $0x68] sm:$0xff]  ;;  %v1539_v44 = vld [vmem:[#allocation6 + $0x278] sm:$0xff] }
 0x1eb   :  { %1440 = vmatpush2.msra.mxu1 %v776_v54  ;;  %1370 = vmatprep.subr.mxu0 %v645_v55  ;;  %v1472_v45 = vld [vmem:[#allocation6 + $0x60] sm:$0xff]  ;;  %v1538_v46 = vld [vmem:[#allocation6 + $0x270] sm:$0xff]  ;;  %v1471_v47 = vld [vmem:[#allocation6 + $0x58] sm:$0xff] }
 0x1ec   :  { %1441 = vmatprep.subr.mxu1 %v773_v56  ;;  %1371 = vmatpush2.msra.mxu0 %v644_v57  ;;  %v1537_v48 = vld [vmem:[#allocation6 + $0x268] sm:$0xff]  ;;  %v1470_v49 = vld [vmem:[#allocation6 + $0x50] sm:$0xff]  ;;  %v1536_v50 = vld [vmem:[#allocation6 + $0x260] sm:$0xff] }
 0x1ed   :  { %1442 = vmatpush2.msra.mxu1 %v772_v58  ;;  %1372 = vmatprep.subr.mxu0 %v641_v59  ;;  %v1469_v51 = vld [vmem:[#allocation6 + $0x48] sm:$0xff]  ;;  %v1535_v53 = vld [vmem:[#allocation6 + $0x258] sm:$0xff]  ;;  %v1468_v54 = vld [vmem:[#allocation6 + $0x40] sm:$0xff] }
 0x1ee   :  { %1443 = vmatprep.subr.mxu1 %v769_v60  ;;  %1373 = vmatpush2.msra.mxu0 %v640_v61  ;;  %v1534_v55 = vld [vmem:[#allocation6 + $0x250] sm:$0xff]  ;;  %v1467_v56 = vld [vmem:[#allocation6 + $0x38] sm:$0xff]  ;;  %v1533_v57 = vld [vmem:[#allocation6 + $0x248] sm:$0xff] }
 0x1ef   :  { %1444 = vmatpush2.msra.mxu1 %v768_v63  ;;  %1374 = vmatprep.subr.mxu0 %v637_v0  ;;  %v1466_v58 = vld [vmem:[#allocation6 + $0x30] sm:$0xff]  ;;  %v1532_v59 = vld [vmem:[#allocation6 + $0x240] sm:$0xff]  ;;  %v1465_v60 = vld [vmem:[#allocation6 + $0x28] sm:$0xff] }
 0x1f0   :  { %1445 = vmatprep.subr.mxu1 %v765_v1  ;;  %1375 = vmatpush2.msra.mxu0 %v636_v2  ;;  %v1531_v61 = vld [vmem:[#allocation6 + $0x238] sm:$0xff]  ;;  %v1464_v63 = vld [vmem:[#allocation6 + $0x20] sm:$0xff]  ;;  %v1530_v0 = vld [vmem:[#allocation6 + $0x230] sm:$0xff] }
 0x1f1   :  { %1446 = vmatpush2.msra.mxu1 %v764_v8  ;;  %1376 = vmatprep.subr.mxu0 %v633_v4  ;;  %v1463_v1 = vld [vmem:[#allocation6 + $0x18] sm:$0xff]  ;;  %v1529_v2 = vld [vmem:[#allocation6 + $0x228] sm:$0xff]  ;;  %v1462_v8 = vld [vmem:[#allocation6 + $0x10] sm:$0xff] }
 0x1f2   :  { %1447 = vmatprep.subr.mxu1 %v761_v62  ;;  %1377 = vmatpush2.msra.mxu0 %v632_v5  ;;  %v1528_v4 = vld [vmem:[#allocation6 + $0x220] sm:$0xff]  ;;  %v1461_v62 = vld [vmem:[#allocation6 + $0x8] sm:$0xff]  ;;  %v1527_v5 = vld [vmem:[#allocation6 + $0x218] sm:$0xff] }
 0x1f3   :  { %1378 = vmatprep.mubr.f32.mxu0 %v7324_v28  ;;  %1448 = vmatpush2.msra.mxu1 %v760_v11  ;;  %v1552_v28 = vld [vmem:[#allocation6 + $0x2e0] sm:$0xff] }
 0x1f4   :  { %1449 = vmatprep.mubr.f32.mxu1 %v7328_v32  ;;  %1379 = vmatmul.mubr.f32.vlgmr.msra.gmra.mxu0 %v7317_v18  ;;  %v1551_v32 = vld [vmem:[#allocation6 + $0x2d8] sm:$0xff]  ;;  %v1484_v18 = vld [vmem:[#allocation6 + $0xc0] sm:$0xff] }
 0x1f5   :  { %1450 = vmatmul.mubr.f32.vlgmr.msra.gmra.mxu1 %v7320_v23  ;;  %1600 = vmatprep.subr.mxu0 %v1491_v6  ;;  %v1550_v23 = vld [vmem:[#allocation6 + $0x2d0] sm:$0xff]  ;;  %v1460_v11 = vld [vmem:[#allocation6] sm:$0xff] }
 0x1f6   :  { %1601 = vmatpush1.msra.mxu0 %v1490_v7  ;;  %1671 = vmatprep.subr.mxu1 %v1555_v12  ;;  %v1526_v6 = vld [vmem:[#allocation6 + $0x210] sm:$0xff]  ;;  %v1523_v7 = vld [vmem:[#allocation6 + $0x1f8] sm:$0xff]  ;;  %v1521_v12 = vld [vmem:[#allocation6 + $0x1e8] sm:$0xff] }
 0x1f7   :  { %1602 = vmatprep.subr.mxu0 %v1489_v3  ;;  %1672 = vmatpush1.msra.mxu1 %v1554_v13  ;;  %v1525_v3 = vld [vmem:[#allocation6 + $0x208] sm:$0xff]  ;;  %v1587_v13 = vld [vmem:[#allocation6 + $0x3f8] sm:$0xff] }
 0x1f8   :  { %1603 = vmatpush1.msra.mxu0 %v1488_v9  ;;  %1673 = vmatprep.subr.mxu1 %v1553_v14  ;;  %v1522_v9 = vld [vmem:[#allocation6 + $0x1f0] sm:$0xff]  ;;  %v1520_v14 = vld [vmem:[#allocation6 + $0x1e0] sm:$0xff] }
 0x1f9   :  { %1604 = vmatprep.subr.mxu0 %v1487_v10  ;;  %1674 = vmatpush1.msra.mxu1 %v1552_v28  ;;  %v1524_v10 = vld [vmem:[#allocation6 + $0x200] sm:$0xff]  ;;  %v1519_v28 = vld [vmem:[#allocation6 + $0x1d8] sm:$0xff] }
 0x1fa   :  { %1605 = vmatpush1.msra.mxu0 %v1486_v15  ;;  %1675 = vmatprep.subr.mxu1 %v1551_v32  ;;  %v1586_v15 = vld [vmem:[#allocation6 + $0x3f0] sm:$0xff] }
 0x1fb   :  { %1606 = vmatprep.subr.mxu0 %v1485_v16  ;;  %1676 = vmatpush1.msra.mxu1 %v1550_v23  ;;  %v1585_v16 = vld [vmem:[#allocation6 + $0x3e8] sm:$0xff]  ;;  %v1518_v32 = vld [vmem:[#allocation6 + $0x1d0] sm:$0xff] }
 0x1fc   :  { %1607 = vmatpush1.msra.mxu0 %v1484_v18  ;;  %1677 = vmatprep.subr.mxu1 %v1549_v19  ;;  %v1584_v18 = vld [vmem:[#allocation6 + $0x3e0] sm:$0xff]  ;;  %v1517_v23 = vld [vmem:[#allocation6 + $0x1c8] sm:$0xff] }
 0x1fd   :  { %1608 = vmatprep.subr.mxu0 %v1483_v17  ;;  %1678 = vmatpush1.msra.mxu1 %v1548_v21  ;;  %v1583_v17 = vld [vmem:[#allocation6 + $0x3d8] sm:$0xff]  ;;  %v1516_v19 = vld [vmem:[#allocation6 + $0x1c0] sm:$0xff] }
 0x1fe   :  { %1609 = vmatpush1.msra.mxu0 %v1482_v20  ;;  %1679 = vmatprep.subr.mxu1 %v1547_v24  ;;  %v1582_v20 = vld [vmem:[#allocation6 + $0x3d0] sm:$0xff]  ;;  %v1515_v21 = vld [vmem:[#allocation6 + $0x1b8] sm:$0xff] }
 0x1ff   :  { %1610 = vmatprep.subr.mxu0 %v1481_v22  ;;  %1680 = vmatpush1.msra.mxu1 %v1546_v26  ;;  %v1581_v22 = vld [vmem:[#allocation6 + $0x3c8] sm:$0xff]  ;;  %v1514_v24 = vld [vmem:[#allocation6 + $0x1b0] sm:$0xff] }
 0x200   :  { %1611 = vmatpush1.msra.mxu0 %v1480_v25  ;;  %1681 = vmatprep.subr.mxu1 %v1545_v29  ;;  %v1580_v25 = vld [vmem:[#allocation6 + $0x3c0] sm:$0xff]  ;;  %v1513_v26 = vld [vmem:[#allocation6 + $0x1a8] sm:$0xff] }
 0x201   :  { %1612 = vmatprep.subr.mxu0 %v1479_v27  ;;  %1682 = vmatpush1.msra.mxu1 %v1544_v33  ;;  %v1579_v27 = vld [vmem:[#allocation6 + $0x3b8] sm:$0xff]  ;;  %v1512_v29 = vld [vmem:[#allocation6 + $0x1a0] sm:$0xff] }
 0x202   :  { %1613 = vmatpush1.msra.mxu0 %v1478_v31  ;;  %1683 = vmatprep.subr.mxu1 %v1543_v35  ;;  %v1578_v31 = vld [vmem:[#allocation6 + $0x3b0] sm:$0xff]  ;;  %v1511_v33 = vld [vmem:[#allocation6 + $0x198] sm:$0xff] }
 0x203   :  { %1614 = vmatprep.subr.mxu0 %v1477_v34  ;;  %1684 = vmatpush1.msra.mxu1 %v1542_v37  ;;  %v1577_v34 = vld [vmem:[#allocation6 + $0x3a8] sm:$0xff]  ;;  %v1510_v35 = vld [vmem:[#allocation6 + $0x190] sm:$0xff] }
 0x204   :  { %1615 = vmatpush1.msra.mxu0 %v1476_v36  ;;  %1685 = vmatprep.subr.mxu1 %v1541_v39  ;;  %v1576_v36 = vld [vmem:[#allocation6 + $0x3a0] sm:$0xff]  ;;  %v1509_v37 = vld [vmem:[#allocation6 + $0x188] sm:$0xff] }
 0x205   :  { %1616 = vmatprep.subr.mxu0 %v1475_v38  ;;  %1686 = vmatpush1.msra.mxu1 %v1540_v42  ;;  %v1575_v38 = vld [vmem:[#allocation6 + $0x398] sm:$0xff]  ;;  %v1508_v39 = vld [vmem:[#allocation6 + $0x180] sm:$0xff]  ;;  %v7343_v42 = vsub.s32 0, %v7287_v41 }
 0x206   :  { %1617 = vmatpush1.msra.mxu0 %v1474_v40  ;;  %1687 = vmatprep.subr.mxu1 %v1539_v44  ;;  %v1574_v40 = vld [vmem:[#allocation6 + $0x390] sm:$0xff]  ;;  %v1573_v44 = vld [vmem:[#allocation6 + $0x388] sm:$0xff] }
 0x207   :  { %1618 = vmatprep.subr.mxu0 %v1473_v43  ;;  %1688 = vmatpush1.msra.mxu1 %v1538_v46  ;;  %v1507_v43 = vld [vmem:[#allocation6 + $0x178] sm:$0xff]  ;;  %v1506_v46 = vld [vmem:[#allocation6 + $0x170] sm:$0xff] }
 0x208   :  { %1619 = vmatpush1.msra.mxu0 %v1472_v45  ;;  %1689 = vmatprep.subr.mxu1 %v1537_v48  ;;  %v7345_v45 = vld [vmem:[#allocation4] sm:$0xf]  ;;  %v7348_v48 = vsub.s32 1, %v7287_v41 }
 0x209   :  { %1620 = vmatprep.subr.mxu0 %v1471_v47  ;;  %1690 = vmatpush1.msra.mxu1 %v1536_v50  ;;  %v1572_v47 = vld [vmem:[#allocation6 + $0x380] sm:$0xff]  ;;  %v1571_v50 = vld [vmem:[#allocation6 + $0x378] sm:$0xff] }
 0x20a   :  { %1621 = vmatpush1.msra.mxu0 %v1470_v49  ;;  %1691 = vmatprep.subr.mxu1 %v1535_v53  ;;  %v1505_v49 = vld [vmem:[#allocation6 + $0x168] sm:$0xff]  ;;  %v1504_v53 = vld [vmem:[#allocation6 + $0x160] sm:$0xff] }
 0x20b   :  { %1622 = vmatprep.subr.mxu0 %v1469_v51  ;;  %1692 = vmatpush1.msra.mxu1 %v1534_v55  ;;  %v954_v51 = vpop.f32.mrf.mxu0  ;;  %v7352_v55 = vrot.slane %v7345_v45, %v7343_v42 }
 0x20c   :  { %1623 = vmatpush1.msra.mxu0 %v1468_v54  ;;  %1693 = vmatprep.subr.mxu1 %v1533_v57  ;;  %v1570_v54 = vld [vmem:[#allocation6 + $0x370] sm:$0xff]  ;;  %v1569_v57 = vld [vmem:[#allocation6 + $0x368] sm:$0xff] }
 0x20d   :  { %1624 = vmatprep.subr.mxu0 %v1467_v56  ;;  %1694 = vmatpush1.msra.mxu1 %v1532_v59  ;;  %v1503_v56 = vld [vmem:[#allocation6 + $0x158] sm:$0xff]  ;;  %v1568_v59 = vld [vmem:[#allocation6 + $0x360] sm:$0xff] }
 0x20e   :  { %1625 = vmatpush1.msra.mxu0 %v1466_v58  ;;  %1695 = vmatprep.subr.mxu1 %v1531_v61  ;;  %v1502_v58 = vld [vmem:[#allocation6 + $0x150] sm:$0xff]  ;;  %v1501_v61 = vld [vmem:[#allocation6 + $0x148] sm:$0xff] }
 0x20f   :  { %1626 = vmatprep.subr.mxu0 %v1465_v60  ;;  %1696 = vmatpush1.msra.mxu1 %v1530_v0  ;;  %v7356_v60 = vrot.slane %v7345_v45, %v7348_v48  ;;  %v1025_v0 = vpop.f32.mrf.mxu1 }
 0x210   :  { %1627 = vmatpush1.msra.mxu0 %v1464_v63  ;;  %1697 = vmatprep.subr.mxu1 %v1529_v2  ;;  %v1567_v63 = vld [vmem:[#allocation6 + $0x358] sm:$0xff]  ;;  %v1500_v2 = vld [vmem:[#allocation6 + $0x140] sm:$0xff] }
 0x211   :  { %1628 = vmatprep.subr.mxu0 %v1463_v1  ;;  %1698 = vmatpush1.msra.mxu1 %v1528_v4  ;;  %v956_v1 = vpop.f32.mrf.mxu0  ;;  %v955_v4 = vadd.f32 %v954_v51, %v7352_v55  ;;  %v1792_v51 = vld [vmem:[#allocation9 + $0xb0] sm:$0xff] }
 0x212   :  { %1629 = vmatpush1.msra.mxu0 %v1462_v8  ;;  %1699 = vmatprep.subr.mxu1 %v1527_v5  ;;  %v1566_v8 = vld [vmem:[#allocation6 + $0x350] sm:$0xff] }
 0x213   :  { %1630 = vmatprep.subr.mxu0 %v1461_v62  ;;  %1700 = vmatpush1.msra.mxu1 %v1526_v6  ;;  %v1499_v62 = vld [vmem:[#allocation6 + $0x138] sm:$0xff]  ;;  %v1498_v5 = vld [vmem:[#allocation6 + $0x130] sm:$0xff]  ;;  %v1497_v6 = vld [vmem:[#allocation6 + $0x128] sm:$0xff] }
 0x214   :  { %1631 = vmatpush1.msra.mxu0 %v1460_v11  ;;  %1701 = vmatprep.subr.mxu1 %v1525_v3  ;;  %v957_v11 = vadd.f32 %v956_v1, %v7356_v60  ;;  %v1496_v3 = vld [vmem:[#allocation6 + $0x120] sm:$0xff] }
 0x215   :  { %1632 = vmatprep.subr.mxu0 %v1523_v7  ;;  %1702 = vmatpush1.msra.mxu1 %v1524_v10  ;;  %v1027_v7 = vpop.f32.mrf.mxu1  ;;  %v1495_v10 = vld [vmem:[#allocation6 + $0x118] sm:$0xff]  ;;  %v1782_v1 = vld [vmem:[#allocation9 + $0x60] sm:$0xff] }
 0x216   :  { %1633 = vmatpush2.msra.mxu0 %v1522_v9  ;;  %1703 = vmatprep.subr.mxu1 %v1587_v13  ;;  %v1026_v9 = vadd.f32 %v1025_v0, %v955_v4  ;;  %v1494_v13 = vld [vmem:[#allocation6 + $0x110] sm:$0xff] }
 0x217   :  { %1634 = vmatprep.subr.mxu0 %v1521_v12  ;;  %1704 = vmatpush2.msra.mxu1 %v1586_v15  ;;  %v1783_v0 = vld [vmem:[#allocation9 + $0x68] sm:$0xff] }
 0x218   :  { %1635 = vmatpush2.msra.mxu0 %v1520_v14  ;;  %1705 = vmatprep.subr.mxu1 %v1585_v16  ;;  %v1028_v14 = vadd.f32 %v1027_v7, %v957_v11  ;;  %v1779_v4 = vld [vmem:[#allocation9 + $0x48] sm:$0xff]  ;;  %v1776_v11 = vld [vmem:[#allocation9 + $0x30] sm:$0xff]  ;;  %v1774_v7 = vld [vmem:[#allocation9 + $0x20] sm:$0xff] }
 0x219   :  { %1636 = vmatprep.subr.mxu0 %v1519_v28  ;;  %1706 = vmatpush2.msra.mxu1 %v1584_v18  ;;  %v1493_v28 = vld [vmem:[#allocation6 + $0x108] sm:$0xff]  ;;  %v1492_v18 = vld [vmem:[#allocation6 + $0x100] sm:$0xff] }
 0x21a   :  { %1637 = vmatpush2.msra.mxu0 %v1518_v32  ;;  %1707 = vmatprep.subr.mxu1 %v1583_v17 }
 0x21b   :  { %1638 = vmatprep.subr.mxu0 %v1517_v23  ;;  %1708 = vmatpush2.msra.mxu1 %v1582_v20  ;;  %v1565_v20 = vld [vmem:[#allocation6 + $0x348] sm:$0xff] }
 0x21c   :  { %1639 = vmatpush2.msra.mxu0 %v1516_v19  ;;  %1709 = vmatprep.subr.mxu1 %v1581_v22  ;;  %v1564_v22 = vld [vmem:[#allocation6 + $0x340] sm:$0xff] }
 0x21d   :  { %1640 = vmatprep.subr.mxu0 %v1515_v21  ;;  %1710 = vmatpush2.msra.mxu1 %v1580_v25 }
 0x21e   :  { %1641 = vmatpush2.msra.mxu0 %v1514_v24  ;;  %1711 = vmatprep.subr.mxu1 %v1579_v27  ;;  %v1563_v24 = vld [vmem:[#allocation6 + $0x338] sm:$0xff] }
 0x21f   :  { %1642 = vmatprep.subr.mxu0 %v1513_v26  ;;  %1712 = vmatpush2.msra.mxu1 %v1578_v31  ;;  %v1562_v26 = vld [vmem:[#allocation6 + $0x330] sm:$0xff]  ;;  %v1560_v31 = vld [vmem:[#allocation6 + $0x320] sm:$0xff] }
 0x220   :  { %1643 = vmatpush2.msra.mxu0 %v1512_v29  ;;  %1713 = vmatprep.subr.mxu1 %v1577_v34  ;;  %v1561_v29 = vld [vmem:[#allocation6 + $0x328] sm:$0xff]  ;;  %v1558_v34 = vld [vmem:[#allocation6 + $0x310] sm:$0xff] }
 0x221   :  { %1644 = vmatprep.subr.mxu0 %v1511_v33  ;;  %1714 = vmatpush2.msra.mxu1 %v1576_v36  ;;  %v1559_v33 = vld [vmem:[#allocation6 + $0x318] sm:$0xff]  ;;  %v1556_v36 = vld [vmem:[#allocation6 + $0x300] sm:$0xff] }
 0x222   :  { %1645 = vmatpush2.msra.mxu0 %v1510_v35  ;;  %1715 = vmatprep.subr.mxu1 %v1575_v38  ;;  %v1557_v35 = vld [vmem:[#allocation6 + $0x308] sm:$0xff]  ;;  %v1801_v38 = vld [vmem:[#allocation9 + $0xf8] sm:$0xff] }
 0x223   :  { %1646 = vmatprep.subr.mxu0 %v1509_v37  ;;  %1716 = vmatpush2.msra.mxu1 %v1574_v40  ;;  %v5966_v37 = vld [vmem:[#allocation2 + $0x1e8] sm:$0xff] }
 0x224   :  { %1647 = vmatpush2.msra.mxu0 %v1508_v39  ;;  %1717 = vmatprep.subr.mxu1 %v1573_v44  ;;  %v1800_v39 = vld [vmem:[#allocation9 + $0xf0] sm:$0xff]  ;;  %v1799_v40 = vld [vmem:[#allocation9 + $0xe8] sm:$0xff]  ;;  %v1797_v44 = vld [vmem:[#allocation9 + $0xd8] sm:$0xff] }
 0x225   :  { %1648 = vmatprep.subr.mxu0 %v1507_v43  ;;  %1718 = vmatpush2.msra.mxu1 %v1572_v47  ;;  %v1798_v43 = vld [vmem:[#allocation9 + $0xe0] sm:$0xff]  ;;  %v1795_v47 = vld [vmem:[#allocation9 + $0xc8] sm:$0xff] }
 0x226   :  { %1649 = vmatpush2.msra.mxu0 %v1506_v46  ;;  %1719 = vmatprep.subr.mxu1 %v1571_v50  ;;  %v1796_v46 = vld [vmem:[#allocation9 + $0xd0] sm:$0xff]  ;;  %v1793_v50 = vld [vmem:[#allocation9 + $0xb8] sm:$0xff] }
 0x227   :  { %1650 = vmatprep.subr.mxu0 %v1505_v49  ;;  %1720 = vmatpush2.msra.mxu1 %v1570_v54  ;;  %v1794_v49 = vld [vmem:[#allocation9 + $0xc0] sm:$0xff] }
 0x228   :  { %1651 = vmatpush2.msra.mxu0 %v1504_v53  ;;  %1721 = vmatprep.subr.mxu1 %v1569_v57  ;;  %v1791_v53 = vld [vmem:[#allocation9 + $0xa8] sm:$0xff]  ;;  %v1790_v54 = vld [vmem:[#allocation9 + $0xa0] sm:$0xff]  ;;  %v1788_v57 = vld [vmem:[#allocation9 + $0x90] sm:$0xff] }
 0x229   :  { %1652 = vmatprep.subr.mxu0 %v1503_v56  ;;  %1722 = vmatpush2.msra.mxu1 %v1568_v59  ;;  %v1789_v56 = vld [vmem:[#allocation9 + $0x98] sm:$0xff]  ;;  %v1786_v59 = vld [vmem:[#allocation9 + $0x80] sm:$0xff] }
 0x22a   :  { %1653 = vmatpush2.msra.mxu0 %v1502_v58  ;;  %1723 = vmatprep.subr.mxu1 %v1567_v63  ;;  %v1787_v58 = vld [vmem:[#allocation9 + $0x88] sm:$0xff]  ;;  %v1784_v63 = vld [vmem:[#allocation9 + $0x70] sm:$0xff] }
 0x22b   :  { %1654 = vmatprep.subr.mxu0 %v1501_v61  ;;  %1724 = vmatpush2.msra.mxu1 %v1566_v8  ;;  %v1785_v61 = vld [vmem:[#allocation9 + $0x78] sm:$0xff]  ;;  %v1780_v8 = vld [vmem:[#allocation9 + $0x50] sm:$0xff] }
 0x22c   :  { %1655 = vmatpush2.msra.mxu0 %v1500_v2  ;;  %1725 = vmatprep.subr.mxu1 %v1565_v20  ;;  %v1781_v2 = vld [vmem:[#allocation9 + $0x58] sm:$0xff]  ;;  %v1823_v20 = vld [vmem:[#allocation9 + $0x1a8] sm:$0xff] }
 0x22d   :  { %1656 = vmatprep.subr.mxu0 %v1499_v62  ;;  %1726 = vmatpush2.msra.mxu1 %v1564_v22  ;;  %v1778_v62 = vld [vmem:[#allocation9 + $0x40] sm:$0xff]  ;;  %v1821_v22 = vld [vmem:[#allocation9 + $0x198] sm:$0xff] }
 0x22e   :  { %1657 = vmatpush2.msra.mxu0 %v1498_v5  ;;  %1727 = vmatprep.subr.mxu1 %v1563_v24  ;;  %v1777_v5 = vld [vmem:[#allocation9 + $0x38] sm:$0xff]  ;;  %v7361_v24 = vsub.s32 2, %v7287_v41 }
 0x22f   :  { %1658 = vmatprep.subr.mxu0 %v1497_v6  ;;  %1728 = vmatpush2.msra.mxu1 %v1562_v26  ;;  %v1775_v6 = vld [vmem:[#allocation9 + $0x28] sm:$0xff] }
 0x230   :  { %v1096_v12 = vpop.f32.mrf.mxu0  ;;  %1659 = vmatpush2.msra.mxu0 %v1496_v3  ;;  %1729 = vmatprep.subr.mxu1 %v1561_v29  ;;  %v1773_v3 = vld [vmem:[#allocation9 + $0x18] sm:$0xff]  ;;  %v1819_v26 = vld [vmem:[#allocation9 + $0x188] sm:$0xff]  ;;  %v1818_v29 = vld [vmem:[#allocation9 + $0x180] sm:$0xff] }
 0x231   :  { %v1097_v15 = vadd.f32 %v1096_v12, %v1026_v9  ;;  %1660 = vmatprep.subr.mxu0 %v1495_v10  ;;  %1730 = vmatpush2.msra.mxu1 %v1560_v31  ;;  %v1772_v9 = vld [vmem:[#allocation9 + $0x10] sm:$0xff]  ;;  %v1771_v10 = vld [vmem:[#allocation9 + $0x8] sm:$0xff]  ;;  %v1770_v12 = vld [vmem:[#allocation9] sm:$0xff] }
 0x232   :  { %v1167_v16 = vpop.f32.mrf.mxu1  ;;  %v1098_v32 = vpop.f32.mrf.mxu0  ;;  %1661 = vmatpush2.msra.mxu0 %v1494_v13  ;;  %1731 = vmatprep.subr.mxu1 %v1559_v33  ;;  %v1833_v13 = vld [vmem:[#allocation9 + $0x1f8] sm:$0xff] }
 0x233   :  { %v1099_v23 = vadd.f32 %v1098_v32, %v1028_v14  ;;  %v1168_v17 = vadd.f32 %v1167_v16, %v1097_v15  ;;  %1662 = vmatprep.subr.mxu0 %v1493_v28  ;;  %1732 = vmatpush2.msra.mxu1 %v1558_v34  ;;  %v1832_v14 = vld [vmem:[#allocation9 + $0x1f0] sm:$0xff]  ;;  %v1831_v15 = vld [vmem:[#allocation9 + $0x1e8] sm:$0xff]  ;;  %v1830_v28 = vld [vmem:[#allocation9 + $0x1e0] sm:$0xff]  ;;  %v7368_v34 = vrot.slane %v7345_v45, %v7361_v24 }
 0x234   :  { %v1169_v19 = vpop.f32.mrf.mxu1  ;;  %1663 = vmatpush2.msra.mxu0 %v1492_v18  ;;  %1733 = vmatprep.subr.mxu1 %v1557_v35  ;;  %v1829_v16 = vld [vmem:[#allocation9 + $0x1d8] sm:$0xff]  ;;  %v1828_v32 = vld [vmem:[#allocation9 + $0x1d0] sm:$0xff]  ;;  %v1827_v18 = vld [vmem:[#allocation9 + $0x1c8] sm:$0xff] }
 0x235   :  { %v1170_v21 = vadd.f32 %v1169_v19, %v1099_v23  ;;  %v1456_v27 = vmax.f32 %v1168_v17, 0.0  ;;  %1734 = vmatpush2.msra.mxu1 %v1556_v36  ;;  %1846 = vmatprep.subr.mxu0 %v1801_v38  ;;  %v1826_v23 = vld [vmem:[#allocation9 + $0x1c0] sm:$0xff]  ;;  %v1825_v17 = vld [vmem:[#allocation9 + $0x1b8] sm:$0xff]  ;;  %v1824_v19 = vld [vmem:[#allocation9 + $0x1b0] sm:$0xff] }
 0x236   :  { %1992 = vmatprep.subr.mxu1 %v5966_v37  ;;  %v1817_v33 = vld [vmem:[#allocation9 + $0x178] sm:$0xff]  ;;  %v1816_v35 = vld [vmem:[#allocation9 + $0x170] sm:$0xff]  ;;  %v1815_v36 = vld [vmem:[#allocation9 + $0x168] sm:$0xff] }
 0x237   :  { %v1457_v25 = vmax.f32 %v1170_v21, 0.0  ;;  %v1822_v21 = vld [vmem:[#allocation9 + $0x1a0] sm:$0xff] }
 0x238   :  { %v1814_v38 = vld [vmem:[#allocation9 + $0x160] sm:$0xff] }
 0x239   :  { %1664 = vmatprep.mubr.f32.mxu0 %v1457_v25  ;;  %v1820_v25 = vld [vmem:[#allocation9 + $0x190] sm:$0xff] }
 0x23a   :  { %1665 = vmatmul.mubr.f32.vlgmr.msra.gmra.mxu0 %v1456_v27  ;;  %v7364_v27 = vsub.s32 3, %v7287_v41 }
 0x23b   :  { %1847 = vmatpush1.msra.mxu0 %v1800_v39 }
 0x23c   :  { %1848 = vmatprep.subr.mxu0 %v1799_v40  ;;  %v7372_v37 = vrot.slane %v7345_v45, %v7364_v27 }
 0x23d   :  { %1849 = vmatpush1.msra.mxu0 %v1798_v43  ;;  %v1813_v43 = vld [vmem:[#allocation9 + $0x158] sm:$0xff] }
 0x23e   :  { %1850 = vmatprep.subr.mxu0 %v1797_v44 }
 0x23f   :  { %1851 = vmatpush1.msra.mxu0 %v1796_v46 }
 0x240   :  { %1852 = vmatprep.subr.mxu0 %v1795_v47 }
 0x241   :  { %1853 = vmatpush1.msra.mxu0 %v1794_v49 }
 0x242   :  { %1854 = vmatprep.subr.mxu0 %v1793_v50 }
 0x243   :  { %1855 = vmatpush1.msra.mxu0 %v1792_v51 }
 0x244   :  { %1856 = vmatprep.subr.mxu0 %v1791_v53 }
 0x245   :  { %1857 = vmatpush1.msra.mxu0 %v1790_v54 }
 0x246   :  { %1858 = vmatprep.subr.mxu0 %v1789_v56 }
 0x247   :  { %1859 = vmatpush1.msra.mxu0 %v1788_v57 }
 0x248   :  { %1860 = vmatprep.subr.mxu0 %v1787_v58 }
 0x249   :  { %1861 = vmatpush1.msra.mxu0 %v1786_v59 }
 0x24a   :  { %1862 = vmatprep.subr.mxu0 %v1785_v61 }
 0x24b   :  { %1863 = vmatpush1.msra.mxu0 %v1784_v63 }
 0x24c   :  { %1864 = vmatprep.subr.mxu0 %v1783_v0  ;;  %v5967_v0 = vld [vmem:[#allocation2 + $0x1e0] sm:$0xff] }
 0x24d   :  { %1865 = vmatpush1.msra.mxu0 %v1782_v1  ;;  %v5968_v1 = vld [vmem:[#allocation2 + $0x1c8] sm:$0xff] }
 0x24e   :  { %1866 = vmatprep.subr.mxu0 %v1781_v2  ;;  %v5969_v2 = vld [vmem:[#allocation2 + $0x1c0] sm:$0xff] }
 0x24f   :  { %1867 = vmatpush1.msra.mxu0 %v1780_v8  ;;  %v5970_v8 = vld [vmem:[#allocation2 + $0x1a8] sm:$0xff] }
 0x250   :  { %1868 = vmatprep.subr.mxu0 %v1779_v4  ;;  %v5971_v4 = vld [vmem:[#allocation2 + $0x1a0] sm:$0xff] }
 0x251   :  { %1869 = vmatpush1.msra.mxu0 %v1778_v62  ;;  %v5972_v62 = vld [vmem:[#allocation2 + $0x188] sm:$0xff] }
 0x252   :  { %1870 = vmatprep.subr.mxu0 %v1777_v5  ;;  %v5973_v5 = vld [vmem:[#allocation2 + $0x180] sm:$0xff] }
 0x253   :  { %1871 = vmatpush1.msra.mxu0 %v1776_v11  ;;  %v5974_v11 = vld [vmem:[#allocation2 + $0x168] sm:$0xff] }
 0x254   :  { %1872 = vmatprep.subr.mxu0 %v1775_v6  ;;  %v5975_v6 = vld [vmem:[#allocation2 + $0x160] sm:$0xff] }
 0x255   :  { %1873 = vmatpush1.msra.mxu0 %v1774_v7  ;;  %v5976_v7 = vld [vmem:[#allocation2 + $0x148] sm:$0xff] }
 0x256   :  { %1874 = vmatprep.subr.mxu0 %v1773_v3  ;;  %v5977_v3 = vld [vmem:[#allocation2 + $0x140] sm:$0xff] }
 0x257   :  { %1875 = vmatpush1.msra.mxu0 %v1772_v9  ;;  %v5978_v9 = vld [vmem:[#allocation2 + $0x128] sm:$0xff] }
 0x258   :  { %1876 = vmatprep.subr.mxu0 %v1771_v10  ;;  %v5979_v10 = vld [vmem:[#allocation2 + $0x120] sm:$0xff] }
 0x259   :  { %1877 = vmatpush1.msra.mxu0 %v1770_v12  ;;  %v5980_v12 = vld [vmem:[#allocation2 + $0x108] sm:$0xff] }
 0x25a   :  { %1878 = vmatprep.subr.mxu0 %v1833_v13  ;;  %v5981_v13 = vld [vmem:[#allocation2 + $0x100] sm:$0xff] }
 0x25b   :  { %1879 = vmatpush2.msra.mxu0 %v1832_v14  ;;  %v5982_v14 = vld [vmem:[#allocation2 + $0xe8] sm:$0xff] }
 0x25c   :  { %1880 = vmatprep.subr.mxu0 %v1831_v15  ;;  %v5983_v15 = vld [vmem:[#allocation2 + $0xe0] sm:$0xff] }
 0x25d   :  { %1881 = vmatpush2.msra.mxu0 %v1830_v28  ;;  %v5984_v28 = vld [vmem:[#allocation2 + $0xc8] sm:$0xff] }
 0x25e   :  { %1882 = vmatprep.subr.mxu0 %v1829_v16  ;;  %v5985_v16 = vld [vmem:[#allocation2 + $0xc0] sm:$0xff] }
 0x25f   :  { %1883 = vmatpush2.msra.mxu0 %v1828_v32  ;;  %v5986_v32 = vld [vmem:[#allocation2 + $0xa8] sm:$0xff] }
 0x260   :  { %1884 = vmatprep.subr.mxu0 %v1827_v18  ;;  %v5987_v18 = vld [vmem:[#allocation2 + $0xa0] sm:$0xff] }
 0x261   :  { %1885 = vmatpush2.msra.mxu0 %v1826_v23  ;;  %v5988_v23 = vld [vmem:[#allocation2 + $0x88] sm:$0xff] }
 0x262   :  { %1886 = vmatprep.subr.mxu0 %v1825_v17  ;;  %v5989_v17 = vld [vmem:[#allocation2 + $0x80] sm:$0xff] }
 0x263   :  { %1887 = vmatpush2.msra.mxu0 %v1824_v19  ;;  %v5990_v19 = vld [vmem:[#allocation2 + $0x68] sm:$0xff] }
 0x264   :  { %1888 = vmatprep.subr.mxu0 %v1823_v20  ;;  %v5991_v20 = vld [vmem:[#allocation2 + $0x60] sm:$0xff] }
 0x265   :  { %1889 = vmatpush2.msra.mxu0 %v1822_v21  ;;  %v5992_v21 = vld [vmem:[#allocation2 + $0x48] sm:$0xff] }
 0x266   :  { %1890 = vmatprep.subr.mxu0 %v1821_v22  ;;  %v5993_v22 = vld [vmem:[#allocation2 + $0x40] sm:$0xff] }
 0x267   :  { %1891 = vmatpush2.msra.mxu0 %v1820_v25  ;;  %v5994_v25 = vld [vmem:[#allocation2 + $0x28] sm:$0xff] }
 0x268   :  { %1892 = vmatprep.subr.mxu0 %v1819_v26  ;;  %v5995_v26 = vld [vmem:[#allocation2 + $0x20] sm:$0xff] }
 0x269   :  { %1893 = vmatpush2.msra.mxu0 %v1818_v29  ;;  %v5996_v29 = vld [vmem:[#allocation2 + $0x8] sm:$0xff] }
 0x26a   :  { %1894 = vmatprep.subr.mxu0 %v1817_v33  ;;  %v5998_v33 = vld [vmem:[#allocation2 + $0x3e8] sm:$0xff] }
 0x26b   :  { %1895 = vmatpush2.msra.mxu0 %v1816_v35  ;;  %v5999_v35 = vld [vmem:[#allocation2 + $0x3e0] sm:$0xff] }
 0x26c   :  { %1896 = vmatprep.subr.mxu0 %v1815_v36  ;;  %v6000_v36 = vld [vmem:[#allocation2 + $0x3c8] sm:$0xff] }
 0x26d   :  { %1897 = vmatpush2.msra.mxu0 %v1814_v38  ;;  %v6001_v38 = vld [vmem:[#allocation2 + $0x3c0] sm:$0xff] }
 0x26e   :  { %1898 = vmatprep.subr.mxu0 %v1813_v43  ;;  %v6004_v43 = vld [vmem:[#allocation2 + $0x388] sm:$0xff] }
 0x272   :  { %v1238_v31 = vpop.f32.mrf.mxu0 }
 0x273   :  { %v1239_v44 = vadd.f32 %v1238_v31, %v7368_v34  ;;  %v5997_v31 = vld [vmem:[#allocation2] sm:$0xff] }
 0x274   :  { %v1309_v39 = vpop.f32.mrf.mxu1  ;;  %v1240_v40 = vpop.f32.mrf.mxu0 }
 0x275   :  { %v1241_v46 = vadd.f32 %v1240_v40, %v7372_v37  ;;  %v1310_v49 = vadd.f32 %v1309_v39, %v1239_v44  ;;  %v6002_v39 = vld [vmem:[#allocation2 + $0x3a8] sm:$0xff]  ;;  %v6003_v40 = vld [vmem:[#allocation2 + $0x3a0] sm:$0xff] }
 0x276   :  { %v1311_v47 = vpop.f32.mrf.mxu1  ;;  %v6005_v44 = vld [vmem:[#allocation2 + $0x380] sm:$0xff] }
 0x277   :  { %v1312_v53 = vadd.f32 %v1311_v47, %v1241_v46  ;;  %v6006_v46 = vld [vmem:[#allocation2 + $0x368] sm:$0xff]  ;;  %v6007_v47 = vld [vmem:[#allocation2 + $0x360] sm:$0xff] }
 0x2b4   :  { %v1380_v50 = vpop.f32.mrf.mxu0 }
 0x2b5   :  { %v1451_v51 = vpop.f32.mrf.mxu1  ;;  %v1381_v45 = vadd.f32 %v1380_v50, %v1310_v49  ;;  %v6008_v49 = vld [vmem:[#allocation2 + $0x348] sm:$0xff]  ;;  %v6009_v50 = vld [vmem:[#allocation2 + $0x340] sm:$0xff] }
 0x2b6   :  { %v1382_v54 = vpop.f32.mrf.mxu0 }
 0x2b7   :  { %v1383_v56 = vadd.f32 %v1382_v54, %v1312_v53  ;;  %v1452_v57 = vadd.f32 %v1451_v51, %v1381_v45  ;;  %v1453_v58 = vpop.f32.mrf.mxu1  ;;  %v6010_v51 = vld [vmem:[#allocation2 + $0x328] sm:$0xff]  ;;  %v6011_v53 = vld [vmem:[#allocation2 + $0x320] sm:$0xff] }
 0x2b8   :  { %v6012_v45 = vld [vmem:[#allocation2 + $0x308] sm:$0xff]  ;;  %v6013_v54 = vld [vmem:[#allocation2 + $0x300] sm:$0xff] }
 0x2b9   :  { %v1454_v59 = vadd.f32 %v1453_v58, %v1383_v56  ;;  %v1458_v63 = vmax.f32 %v1452_v57, 0.0  ;;  %v6014_v56 = vld [vmem:[#allocation2 + $0x2e8] sm:$0xff]  ;;  %v6015_v57 = vld [vmem:[#allocation2 + $0x2e0] sm:$0xff] }
 0x2ba   :  { %v6016_v58 = vld [vmem:[#allocation2 + $0x2c8] sm:$0xff] }
 0x2bb   :  { %v1459_v61 = vmax.f32 %v1454_v59, 0.0  ;;  %v6017_v59 = vld [vmem:[#allocation2 + $0x2c0] sm:$0xff] }
 0x2bd   :  { %1735 = vmatprep.mubr.f32.mxu1 %v1459_v61  ;;  %v6018_v61 = vld [vmem:[#allocation2 + $0x2a8] sm:$0xff] }
 0x2be   :  { %1736 = vmatmul.mubr.f32.vlgmr.msra.gmra.mxu1 %v1458_v63  ;;  %v6019_v63 = vld [vmem:[#allocation2 + $0x2a0] sm:$0xff] }
 0x2bf   :  { %1993 = vmatpush1.msra.mxu1 %v5967_v0  ;;  %v6020_v0 = vld [vmem:[#allocation2 + $0x288] sm:$0xff] }
 0x2c0   :  { %1994 = vmatprep.subr.mxu1 %v5968_v1  ;;  %v6021_v1 = vld [vmem:[#allocation2 + $0x280] sm:$0xff] }
 0x2c1   :  { %1995 = vmatpush1.msra.mxu1 %v5969_v2  ;;  %v6022_v2 = vld [vmem:[#allocation2 + $0x268] sm:$0xff] }
 0x2c2   :  { %1996 = vmatprep.subr.mxu1 %v5970_v8  ;;  %v6023_v8 = vld [vmem:[#allocation2 + $0x260] sm:$0xff] }
 0x2c3   :  { %1997 = vmatpush1.msra.mxu1 %v5971_v4  ;;  %v6024_v4 = vld [vmem:[#allocation2 + $0x248] sm:$0xff] }
 0x2c4   :  { %1998 = vmatprep.subr.mxu1 %v5972_v62  ;;  %v6025_v62 = vld [vmem:[#allocation2 + $0x240] sm:$0xff] }
 0x2c5   :  { %1999 = vmatpush1.msra.mxu1 %v5973_v5  ;;  %v6026_v5 = vld [vmem:[#allocation2 + $0x228] sm:$0xff] }
 0x2c6   :  { %2000 = vmatprep.subr.mxu1 %v5974_v11  ;;  %v6027_v11 = vld [vmem:[#allocation2 + $0x220] sm:$0xff] }
 0x2c7   :  { %2001 = vmatpush1.msra.mxu1 %v5975_v6  ;;  %v6028_v6 = vld [vmem:[#allocation2 + $0x208] sm:$0xff] }
 0x2c8   :  { %2002 = vmatprep.subr.mxu1 %v5976_v7  ;;  %v1812_v7 = vld [vmem:[#allocation9 + $0x150] sm:$0xff] }
 0x2c9   :  { %2003 = vmatpush1.msra.mxu1 %v5977_v3  ;;  %v6029_v3 = vld [vmem:[#allocation2 + $0x200] sm:$0xff]  ;;  %1899 = vmatpush2.msra.mxu0 %v1812_v7 }
 0x2ca   :  { %2004 = vmatprep.subr.mxu1 %v5978_v9  ;;  %v1811_v9 = vld [vmem:[#allocation9 + $0x148] sm:$0xff]  ;;  %v6068_v7 = vld [vmem:[#allocation2 + $0xba0] sm:$0xff] }
 0x2cb   :  { %2005 = vmatpush1.msra.mxu1 %v5979_v10  ;;  %v6030_v10 = vld [vmem:[#allocation2 + $0x9e8] sm:$0xff]  ;;  %1900 = vmatprep.subr.mxu0 %v1811_v9  ;;  %v6070_v9 = vld [vmem:[#allocation2 + $0xb80] sm:$0xff] }
 0x2cc   :  { %2006 = vmatprep.subr.mxu1 %v5980_v12  ;;  %v1810_v12 = vld [vmem:[#allocation9 + $0x140] sm:$0xff] }
 0x2cd   :  { %2007 = vmatpush1.msra.mxu1 %v5981_v13  ;;  %1901 = vmatpush2.msra.mxu0 %v1810_v12  ;;  %v1809_v13 = vld [vmem:[#allocation9 + $0x138] sm:$0xff] }
 0x2ce   :  { %2008 = vmatprep.subr.mxu1 %v5982_v14  ;;  %1902 = vmatprep.subr.mxu0 %v1809_v13  ;;  %v1808_v14 = vld [vmem:[#allocation9 + $0x130] sm:$0xff]  ;;  %v6072_v12 = vld [vmem:[#allocation2 + $0xb60] sm:$0xff]  ;;  %v6073_v13 = vld [vmem:[#allocation2 + $0xb48] sm:$0xff] }
 0x2cf   :  { %2009 = vmatpush1.msra.mxu1 %v5983_v15  ;;  %1903 = vmatpush2.msra.mxu0 %v1808_v14  ;;  %v1807_v15 = vld [vmem:[#allocation9 + $0x128] sm:$0xff]  ;;  %v6074_v14 = vld [vmem:[#allocation2 + $0xb40] sm:$0xff] }
 0x2d0   :  { %2010 = vmatprep.subr.mxu1 %v5984_v28  ;;  %1904 = vmatprep.subr.mxu0 %v1807_v15  ;;  %v1806_v28 = vld [vmem:[#allocation9 + $0x120] sm:$0xff] }
 0x2d1   :  { %2011 = vmatpush1.msra.mxu1 %v5985_v16  ;;  %1905 = vmatpush2.msra.mxu0 %v1806_v28  ;;  %v1805_v16 = vld [vmem:[#allocation9 + $0x118] sm:$0xff]  ;;  %v6075_v15 = vld [vmem:[#allocation2 + $0xb28] sm:$0xff] }
 0x2d2   :  { %2012 = vmatprep.subr.mxu1 %v5986_v32  ;;  %1906 = vmatprep.subr.mxu0 %v1805_v16  ;;  %v1804_v32 = vld [vmem:[#allocation9 + $0x110] sm:$0xff]  ;;  %v6076_v28 = vld [vmem:[#allocation2 + $0xb20] sm:$0xff]  ;;  %v6077_v16 = vld [vmem:[#allocation2 + $0xb08] sm:$0xff] }
 0x2d3   :  { %2013 = vmatpush1.msra.mxu1 %v5987_v18  ;;  %v1803_v18 = vld [vmem:[#allocation9 + $0x108] sm:$0xff]  ;;  %1907 = vmatpush2.msra.mxu0 %v1804_v32  ;;  %v6078_v32 = vld [vmem:[#allocation2 + $0xb00] sm:$0xff] }
 0x2d4   :  { %2014 = vmatprep.subr.mxu1 %v5988_v23  ;;  %v1802_v23 = vld [vmem:[#allocation9 + $0x100] sm:$0xff]  ;;  %1908 = vmatprep.subr.mxu0 %v1803_v18 }
 0x2d5   :  { %2015 = vmatpush1.msra.mxu1 %v5989_v17  ;;  %v7379_v17 = vld [vmem:[%s7825_s29 + $0x10] sm:$0xff]  ;;  %1909 = vmatpush2.msra.mxu0 %v1802_v23  ;;  %v6079_v18 = vld [vmem:[#allocation2 + $0xae8] sm:$0xff]  ;;  %v6080_v23 = vld [vmem:[#allocation2 + $0xae0] sm:$0xff] }
 0x2d6   :  { %2016 = vmatprep.subr.mxu1 %v5990_v19  ;;  %v7383_v19 = vrot.slane %v7379_v17, %v7293_v52 }
 0x2d7   :  { %2017 = vmatpush1.msra.mxu1 %v5991_v20  ;;  %v6031_v20 = vld [vmem:[#allocation2 + $0x5e8] sm:$0xff] }
 0x2d8   :  { %2018 = vmatprep.subr.mxu1 %v5992_v21  ;;  %2063 = vmatprep.subr.mxu0 %v6031_v20  ;;  %v7387_v21 = vcombine.high %v7383_v19, %v7383_v19  ;;  %v6081_v20 = vld [vmem:[#allocation2 + $0xac8] sm:$0xff] }
 0x2d9   :  { %2019 = vmatpush1.msra.mxu1 %v5993_v22  ;;  %v6032_v22 = vld [vmem:[#allocation2 + $0x9e0] sm:$0xff] }
 0x2da   :  { %2020 = vmatprep.subr.mxu1 %v5994_v25  ;;  %2056 = vmatprep.mubr.f32.mxu1 %v7387_v21  ;;  %v6033_v25 = vld [vmem:[#allocation2 + $0x9c8] sm:$0xff] }
 0x2db   :  { %2021 = vmatpush1.msra.mxu1 %v5995_v26  ;;  %v6034_v26 = vld [vmem:[#allocation2 + $0x9c0] sm:$0xff] }
 0x2dc   :  { %2022 = vmatprep.subr.mxu1 %v5996_v29  ;;  %v6035_v29 = vld [vmem:[#allocation2 + $0x9a8] sm:$0xff] }
 0x2dd   :  { %2023 = vmatpush1.msra.mxu1 %v5997_v31  ;;  %v6036_v31 = vld [vmem:[#allocation2 + $0x9a0] sm:$0xff] }
 0x2de   :  { %2024 = vmatprep.subr.mxu1 %v5998_v33  ;;  %v6037_v33 = vld [vmem:[#allocation2 + $0x988] sm:$0xff] }
 0x2df   :  { %2025 = vmatpush2.msra.mxu1 %v5999_v35  ;;  %v6038_v35 = vld [vmem:[#allocation2 + $0x980] sm:$0xff] }
 0x2e0   :  { %2026 = vmatprep.subr.mxu1 %v6000_v36  ;;  %v6039_v36 = vld [vmem:[#allocation2 + $0x968] sm:$0xff] }
 0x2e1   :  { %2027 = vmatpush2.msra.mxu1 %v6001_v38  ;;  %v6040_v38 = vld [vmem:[#allocation2 + $0x960] sm:$0xff] }
 0x2e2   :  { %2028 = vmatprep.subr.mxu1 %v6002_v39  ;;  %v6041_v39 = vld [vmem:[#allocation2 + $0x948] sm:$0xff] }
 0x2e3   :  { %2029 = vmatpush2.msra.mxu1 %v6003_v40  ;;  %v6042_v40 = vld [vmem:[#allocation2 + $0x940] sm:$0xff] }
 0x2e4   :  { %2030 = vmatprep.subr.mxu1 %v6004_v43  ;;  %v6043_v43 = vld [vmem:[#allocation2 + $0x928] sm:$0xff] }
 0x2e5   :  { %2031 = vmatpush2.msra.mxu1 %v6005_v44  ;;  %v6044_v44 = vld [vmem:[#allocation2 + $0x920] sm:$0xff] }
 0x2e6   :  { %2032 = vmatprep.subr.mxu1 %v6006_v46  ;;  %v6045_v46 = vld [vmem:[#allocation2 + $0x908] sm:$0xff] }
 0x2e7   :  { %2033 = vmatpush2.msra.mxu1 %v6007_v47  ;;  %v6046_v47 = vld [vmem:[#allocation2 + $0x900] sm:$0xff] }
 0x2e8   :  { %2034 = vmatprep.subr.mxu1 %v6008_v49  ;;  %v6047_v49 = vld [vmem:[#allocation2 + $0x8e8] sm:$0xff] }
 0x2e9   :  { %2035 = vmatpush2.msra.mxu1 %v6009_v50  ;;  %v6048_v50 = vld [vmem:[#allocation2 + $0x8e0] sm:$0xff] }
 0x2ea   :  { %2036 = vmatprep.subr.mxu1 %v6010_v51  ;;  %v6049_v51 = vld [vmem:[#allocation2 + $0x8c8] sm:$0xff] }
 0x2eb   :  { %2037 = vmatpush2.msra.mxu1 %v6011_v53  ;;  %v6050_v53 = vld [vmem:[#allocation2 + $0x8c0] sm:$0xff] }
 0x2ec   :  { %2038 = vmatprep.subr.mxu1 %v6012_v45  ;;  %v6051_v45 = vld [vmem:[#allocation2 + $0x8a8] sm:$0xff] }
 0x2ed   :  { %2039 = vmatpush2.msra.mxu1 %v6013_v54  ;;  %v6052_v54 = vld [vmem:[#allocation2 + $0x8a0] sm:$0xff] }
 0x2ee   :  { %2040 = vmatprep.subr.mxu1 %v6014_v56  ;;  %v6053_v56 = vld [vmem:[#allocation2 + $0x888] sm:$0xff] }
 0x2ef   :  { %2041 = vmatpush2.msra.mxu1 %v6015_v57  ;;  %v6054_v57 = vld [vmem:[#allocation2 + $0x880] sm:$0xff] }
 0x2f0   :  { %2042 = vmatprep.subr.mxu1 %v6016_v58  ;;  %v6055_v58 = vld [vmem:[#allocation2 + $0x868] sm:$0xff] }
 0x2f1   :  { %2043 = vmatpush2.msra.mxu1 %v6017_v59  ;;  %v6056_v59 = vld [vmem:[#allocation2 + $0x860] sm:$0xff] }
 0x2f2   :  { %2044 = vmatprep.subr.mxu1 %v6018_v61  ;;  %v6057_v61 = vld [vmem:[#allocation2 + $0x848] sm:$0xff] }
 0x2f3   :  { %2045 = vmatpush2.msra.mxu1 %v6019_v63  ;;  %v6058_v63 = vld [vmem:[#allocation2 + $0x840] sm:$0xff] }
 0x2f4   :  { %2046 = vmatprep.subr.mxu1 %v6020_v0  ;;  %v6059_v0 = vld [vmem:[#allocation2 + $0x828] sm:$0xff] }
 0x2f5   :  { %2047 = vmatpush2.msra.mxu1 %v6021_v1  ;;  %v6060_v1 = vld [vmem:[#allocation2 + $0x820] sm:$0xff] }
 0x2f6   :  { %2048 = vmatprep.subr.mxu1 %v6022_v2  ;;  %v6061_v2 = vld [vmem:[#allocation2 + $0x808] sm:$0xff] }
 0x2f7   :  { %2049 = vmatpush2.msra.mxu1 %v6023_v8  ;;  %v6062_v8 = vld [vmem:[#allocation2 + $0x800] sm:$0xff] }
 0x2f8   :  { %2050 = vmatprep.subr.mxu1 %v6024_v4  ;;  %v6063_v4 = vld [vmem:[#allocation2 + $0xbe8] sm:$0xff] }
 0x2f9   :  { %2051 = vmatpush2.msra.mxu1 %v6025_v62  ;;  %v6064_v62 = vld [vmem:[#allocation2 + $0xbe0] sm:$0xff] }
 0x2fa   :  { %2052 = vmatprep.subr.mxu1 %v6026_v5  ;;  %v6065_v5 = vld [vmem:[#allocation2 + $0xbc8] sm:$0xff] }
 0x2fb   :  { %2053 = vmatpush2.msra.mxu1 %v6027_v11  ;;  %v6066_v11 = vld [vmem:[#allocation2 + $0xbc0] sm:$0xff] }
 0x2fc   :  { %2054 = vmatprep.subr.mxu1 %v6028_v6  ;;  %v6067_v6 = vld [vmem:[#allocation2 + $0xba8] sm:$0xff] }
 0x2fd   :  { %2055 = vmatpush2.msra.mxu1 %v6029_v3  ;;  %v6069_v3 = vld [vmem:[#allocation2 + $0xb88] sm:$0xff] }
 0x2fe   :  { %2134 = vmatprep.subr.mxu1 %v6030_v10  ;;  %2057 = vmatmul.mubr.f32.vlgmr.msra.gmra.mxu1 %v7383_v19  ;;  %v6071_v10 = vld [vmem:[#allocation2 + $0xb68] sm:$0xff] }
 0x2ff   :  { %2135 = vmatpush1.msra.mxu1 %v6032_v22  ;;  %v6082_v22 = vld [vmem:[#allocation2 + $0xac0] sm:$0xff] }
 0x300   :  { %2136 = vmatprep.subr.mxu1 %v6033_v25  ;;  %v6083_v25 = vld [vmem:[#allocation2 + $0xaa8] sm:$0xff] }
 0x301   :  { %2137 = vmatpush1.msra.mxu1 %v6034_v26  ;;  %v6084_v26 = vld [vmem:[#allocation2 + $0xaa0] sm:$0xff] }
 0x302   :  { %2138 = vmatprep.subr.mxu1 %v6035_v29  ;;  %v6085_v29 = vld [vmem:[#allocation2 + $0xa88] sm:$0xff] }
 0x303   :  { %2139 = vmatpush1.msra.mxu1 %v6036_v31  ;;  %v6086_v31 = vld [vmem:[#allocation2 + $0xa80] sm:$0xff] }
 0x304   :  { %2140 = vmatprep.subr.mxu1 %v6037_v33  ;;  %v6087_v33 = vld [vmem:[#allocation2 + $0xa68] sm:$0xff] }
 0x305   :  { %2141 = vmatpush1.msra.mxu1 %v6038_v35  ;;  %v6088_v35 = vld [vmem:[#allocation2 + $0xa60] sm:$0xff] }
 0x306   :  { %2142 = vmatprep.subr.mxu1 %v6039_v36  ;;  %v7394_v36 = vld [vmem:[%s7825_s29 + $0x18] sm:$0xff] }
 0x307   :  { %2143 = vmatpush1.msra.mxu1 %v6040_v38  ;;  %v6089_v38 = vld [vmem:[#allocation2 + $0xa48] sm:$0xff] }
 0x308   :  { %2144 = vmatprep.subr.mxu1 %v6041_v39  ;;  %v7398_v39 = vrot.slane %v7394_v36, %v7293_v52 }
 0x309   :  { %2145 = vmatpush1.msra.mxu1 %v6042_v40  ;;  %v6090_v40 = vld [vmem:[#allocation2 + $0xa40] sm:$0xff] }
 0x30a   :  { %2146 = vmatprep.subr.mxu1 %v6043_v43  ;;  %v6091_v43 = vld [vmem:[#allocation2 + $0xa28] sm:$0xff] }
 0x30b   :  { %2147 = vmatpush1.msra.mxu1 %v6044_v44  ;;  %v7402_v44 = vcombine.high %v7398_v39, %v7398_v39 }
 0x30c   :  { %2148 = vmatprep.subr.mxu1 %v6045_v46  ;;  %v6092_v46 = vld [vmem:[#allocation2 + $0xa20] sm:$0xff] }
 0x30d   :  { %2149 = vmatpush1.msra.mxu1 %v6046_v47  ;;  %v6093_v47 = vld [vmem:[#allocation2 + $0xa08] sm:$0xff]  ;;  %2198 = vmatprep.mubr.f32.mxu1 %v7402_v44 }
 0x30e   :  { %2150 = vmatprep.subr.mxu1 %v6047_v49  ;;  %v6094_v49 = vld [vmem:[#allocation2 + $0xa00] sm:$0xff] }
 0x30f   :  { %2151 = vmatpush1.msra.mxu1 %v6048_v50  ;;  %v6095_v50 = vld [vmem:[#allocation2 + $0x1f8] sm:$0xff] }
 0x310   :  { %2152 = vmatprep.subr.mxu1 %v6049_v51  ;;  %v6096_v51 = vld [vmem:[#allocation2 + $0x1f0] sm:$0xff] }
 0x311   :  { %2153 = vmatpush1.msra.mxu1 %v6050_v53  ;;  %v6097_v53 = vld [vmem:[#allocation2 + $0x1d8] sm:$0xff] }
 0x312   :  { %2154 = vmatprep.subr.mxu1 %v6051_v45  ;;  %v6098_v45 = vld [vmem:[#allocation2 + $0x1d0] sm:$0xff] }
 0x313   :  { %2155 = vmatpush1.msra.mxu1 %v6052_v54  ;;  %v6099_v54 = vld [vmem:[#allocation2 + $0x1b8] sm:$0xff] }
 0x314   :  { %2156 = vmatprep.subr.mxu1 %v6053_v56  ;;  %v6100_v56 = vld [vmem:[#allocation2 + $0x1b0] sm:$0xff] }
 0x315   :  { %2157 = vmatpush1.msra.mxu1 %v6054_v57  ;;  %v6101_v57 = vld [vmem:[#allocation2 + $0x198] sm:$0xff] }
 0x316   :  { %2158 = vmatprep.subr.mxu1 %v6055_v58  ;;  %v6102_v58 = vld [vmem:[#allocation2 + $0x190] sm:$0xff] }
 0x317   :  { %2159 = vmatpush1.msra.mxu1 %v6056_v59  ;;  %v6103_v59 = vld [vmem:[#allocation2 + $0x178] sm:$0xff] }
 0x318   :  { %2160 = vmatprep.subr.mxu1 %v6057_v61  ;;  %v6104_v61 = vld [vmem:[#allocation2 + $0x170] sm:$0xff] }
 0x319   :  { %2161 = vmatpush1.msra.mxu1 %v6058_v63  ;;  %v6105_v63 = vld [vmem:[#allocation2 + $0x158] sm:$0xff] }
 0x31a   :  { %2162 = vmatprep.subr.mxu1 %v6059_v0  ;;  %v6106_v0 = vld [vmem:[#allocation2 + $0x150] sm:$0xff] }
 0x31b   :  { %2163 = vmatpush1.msra.mxu1 %v6060_v1  ;;  %v6108_v1 = vld [vmem:[#allocation2 + $0x130] sm:$0xff] }
 0x31c   :  { %2164 = vmatprep.subr.mxu1 %v6061_v2  ;;  %v6109_v2 = vld [vmem:[#allocation2 + $0x118] sm:$0xff] }
 0x31d   :  { %2165 = vmatpush1.msra.mxu1 %v6062_v8  ;;  %v6110_v8 = vld [vmem:[#allocation2 + $0x110] sm:$0xff] }
 0x31e   :  { %2166 = vmatprep.subr.mxu1 %v6063_v4  ;;  %v6111_v4 = vld [vmem:[#allocation2 + $0xf8] sm:$0xff] }
 0x31f   :  { %2167 = vmatpush2.msra.mxu1 %v6064_v62  ;;  %v6112_v62 = vld [vmem:[#allocation2 + $0xf0] sm:$0xff] }
 0x320   :  { %2168 = vmatprep.subr.mxu1 %v6065_v5  ;;  %v6113_v5 = vld [vmem:[#allocation2 + $0xd8] sm:$0xff] }
 0x321   :  { %2169 = vmatpush2.msra.mxu1 %v6066_v11  ;;  %v6114_v11 = vld [vmem:[#allocation2 + $0xd0] sm:$0xff] }
 0x322   :  { %2170 = vmatprep.subr.mxu1 %v6067_v6  ;;  %v6115_v6 = vld [vmem:[#allocation2 + $0xb8] sm:$0xff] }
 0x323   :  { %2171 = vmatpush2.msra.mxu1 %v6068_v7  ;;  %v6116_v7 = vld [vmem:[#allocation2 + $0xb0] sm:$0xff] }
 0x324   :  { %2172 = vmatprep.subr.mxu1 %v6069_v3  ;;  %v6117_v3 = vld [vmem:[#allocation2 + $0x98] sm:$0xff] }
 0x325   :  { %2173 = vmatpush2.msra.mxu1 %v6070_v9  ;;  %v6118_v9 = vld [vmem:[#allocation2 + $0x90] sm:$0xff] }
 0x326   :  { %2174 = vmatprep.subr.mxu1 %v6071_v10  ;;  %v6119_v10 = vld [vmem:[#allocation2 + $0x78] sm:$0xff] }
 0x327   :  { %2175 = vmatpush2.msra.mxu1 %v6072_v12  ;;  %v6120_v12 = vld [vmem:[#allocation2 + $0x70] sm:$0xff] }
 0x328   :  { %2176 = vmatprep.subr.mxu1 %v6073_v13  ;;  %v6121_v13 = vld [vmem:[#allocation2 + $0x58] sm:$0xff] }
 0x329   :  { %2177 = vmatpush2.msra.mxu1 %v6074_v14  ;;  %v6122_v14 = vld [vmem:[#allocation2 + $0x50] sm:$0xff] }
 0x32a   :  { %2178 = vmatprep.subr.mxu1 %v6075_v15  ;;  %v6123_v15 = vld [vmem:[#allocation2 + $0x38] sm:$0xff] }
 0x32b   :  { %2179 = vmatpush2.msra.mxu1 %v6076_v28  ;;  %v6124_v28 = vld [vmem:[#allocation2 + $0x30] sm:$0xff] }
 0x32c   :  { %2180 = vmatprep.subr.mxu1 %v6077_v16  ;;  %v6125_v16 = vld [vmem:[#allocation2 + $0x18] sm:$0xff] }
 0x32d   :  { %2181 = vmatpush2.msra.mxu1 %v6078_v32  ;;  %v6126_v32 = vld [vmem:[#allocation2 + $0x10] sm:$0xff] }
 0x32e   :  { %2182 = vmatprep.subr.mxu1 %v6079_v18  ;;  %v6127_v18 = vld [vmem:[#allocation2 + $0x3f8] sm:$0xff] }
 0x32f   :  { %2183 = vmatpush2.msra.mxu1 %v6080_v23  ;;  %v6128_v23 = vld [vmem:[#allocation2 + $0x3f0] sm:$0xff] }
 0x330   :  { %2184 = vmatprep.subr.mxu1 %v6081_v20  ;;  %v6129_v20 = vld [vmem:[#allocation2 + $0x3d8] sm:$0xff] }
 0x331   :  { %2185 = vmatpush2.msra.mxu1 %v6082_v22  ;;  %v6130_v22 = vld [vmem:[#allocation2 + $0x3d0] sm:$0xff] }
 0x332   :  { %2186 = vmatprep.subr.mxu1 %v6083_v25  ;;  %v6131_v25 = vld [vmem:[#allocation2 + $0x3b8] sm:$0xff] }
 0x333   :  { %2187 = vmatpush2.msra.mxu1 %v6084_v26  ;;  %v6132_v26 = vld [vmem:[#allocation2 + $0x3b0] sm:$0xff] }
 0x334   :  { %2188 = vmatprep.subr.mxu1 %v6085_v29  ;;  %v6133_v29 = vld [vmem:[#allocation2 + $0x398] sm:$0xff] }
 0x335   :  { %2189 = vmatpush2.msra.mxu1 %v6086_v31  ;;  %v6134_v31 = vld [vmem:[#allocation2 + $0x390] sm:$0xff] }
 0x336   :  { %2190 = vmatprep.subr.mxu1 %v6087_v33  ;;  %v6135_v33 = vld [vmem:[#allocation2 + $0x378] sm:$0xff] }
 0x337   :  { %2191 = vmatpush2.msra.mxu1 %v6088_v35  ;;  %v1588_v35 = vld [vmem:[#allocation7] sm:$0x3] }
 0x338   :  { %2192 = vmatprep.subr.mxu1 %v6089_v38  ;;  %v6136_v38 = vld [vmem:[#allocation2 + $0x370] sm:$0xff] }
 0x339   :  { %2193 = vmatpush2.msra.mxu1 %v6090_v40  ;;  %v6137_v40 = vld [vmem:[#allocation2 + $0x358] sm:$0xff] }
 0x33a   :  { %2194 = vmatprep.subr.mxu1 %v6091_v43  ;;  %v1666_v43 = vpop.f32.mrf.mxu0 }
 0x33b   :  { %2195 = vmatpush2.msra.mxu1 %v6092_v46  ;;  %v6138_v46 = vld [vmem:[#allocation2 + $0x350] sm:$0xff] }
 0x33c   :  { %2196 = vmatprep.subr.mxu1 %v6093_v47  ;;  %v7408_v47 = vrot.slane %v1588_v35, %v7343_v42 }
 0x33d   :  { %2197 = vmatpush2.msra.mxu1 %v6094_v49  ;;  %v6139_v49 = vld [vmem:[#allocation2 + $0x338] sm:$0xff] }
 0x33e   :  { %2199 = vmatmul.mubr.f32.vlgmr.msra.gmra.mxu1 %v7398_v39  ;;  %2276 = vmatprep.subr.mxu1 %v6095_v50  ;;  %v6140_v50 = vld [vmem:[#allocation2 + $0x330] sm:$0xff] }
 0x33f   :  { %2277 = vmatpush1.msra.mxu1 %v6096_v51  ;;  %2340 = vmatprep.mubr.f32.mxu1 %v7387_v21  ;;  %v6107_v21 = vld [vmem:[#allocation2 + $0x138] sm:$0xff]  ;;  %v7411_v51 = vrot.slane %v1588_v35, %v7348_v48 }
 0x340   :  { %2278 = vmatprep.subr.mxu1 %v6097_v53  ;;  %v6141_v53 = vld [vmem:[#allocation2 + $0x318] sm:$0xff] }
 0x341   :  { %2279 = vmatpush1.msra.mxu1 %v6098_v45  ;;  %v1668_v45 = vpop.f32.mrf.mxu0  ;;  %v6159_v35 = vld [vmem:[#allocation2 + $0x218] sm:$0xff] }
 0x342   :  { %2280 = vmatprep.subr.mxu1 %v6099_v54  ;;  %v6142_v54 = vld [vmem:[#allocation2 + $0x310] sm:$0xff] }
 0x343   :  { %2281 = vmatpush1.msra.mxu1 %v6100_v56  ;;  %v1667_v56 = vadd.f32 %v1666_v43, %v7408_v47  ;;  %v6162_v43 = vld [vmem:[#allocation2 + $0x5a8] sm:$0xff] }
 0x344   :  { %2282 = vmatprep.subr.mxu1 %v6101_v57  ;;  %v304_v57 = vld [vmem:[#allocation12] sm:$0x3] }
 0x345   :  { %2283 = vmatpush1.msra.mxu1 %v6102_v58  ;;  %v6143_v58 = vld [vmem:[#allocation2 + $0x2f8] sm:$0xff] }
 0x346   :  { %2284 = vmatprep.subr.mxu1 %v6103_v59 }
 0x347   :  { %2285 = vmatpush1.msra.mxu1 %v6104_v61  ;;  %v6144_v61 = vld [vmem:[#allocation2 + $0x2f0] sm:$0xff] }
 0x348   :  { %2286 = vmatprep.subr.mxu1 %v6105_v63  ;;  %v1669_v63 = vadd.f32 %v1668_v45, %v7411_v51  ;;  %v6167_v45 = vld [vmem:[#allocation2 + $0x580] sm:$0xff] }
 0x349   :  { %2287 = vmatpush1.msra.mxu1 %v6106_v0 }
 0x34a   :  { %2288 = vmatprep.subr.mxu1 %v6107_v21  ;;  %v1950_v21 = vcombine.high %v7379_v17, %v7379_v17 }
 0x34b   :  { %2289 = vmatpush1.msra.mxu1 %v6108_v1  ;;  %v6145_v1 = vld [vmem:[#allocation2 + $0x2d8] sm:$0xff] }
 0x34c   :  { %2290 = vmatprep.subr.mxu1 %v6109_v2  ;;  %v7418_v2 = vrot.slane %v304_v57, %v7343_v42 }
 0x34d   :  { %2291 = vmatpush1.msra.mxu1 %v6110_v8 }
 0x34e   :  { %2292 = vmatprep.subr.mxu1 %v6111_v4  ;;  %v6146_v4 = vld [vmem:[#allocation2 + $0x2d0] sm:$0xff] }
 0x34f   :  { %2293 = vmatpush1.msra.mxu1 %v6112_v62  ;;  %v305_v62 = vld [vmem:[#allocation13] sm:$0x3] }
 0x350   :  { %2294 = vmatprep.subr.mxu1 %v6113_v5  ;;  %v7424_v17 = vrot.slane %v305_v62, %v7348_v48 }
 0x351   :  { %2295 = vmatpush1.msra.mxu1 %v6114_v11 }
 0x352   :  { %2296 = vmatprep.subr.mxu1 %v6115_v6  ;;  %v7421_v6 = vrot.slane %v304_v57, %v7348_v48  ;;  %v6170_v57 = vld [vmem:[#allocation2 + $0x9d0] sm:$0xff] }
 0x353   :  { %2297 = vmatpush1.msra.mxu1 %v6116_v7  ;;  %v6147_v7 = vld [vmem:[#allocation2 + $0x2b8] sm:$0xff] }
 0x354   :  { %2298 = vmatprep.subr.mxu1 %v6117_v3  ;;  %v6148_v3 = vld [vmem:[#allocation2 + $0x2b0] sm:$0xff] }
 0x355   :  { %2299 = vmatpush1.msra.mxu1 %v6118_v9 }
 0x356   :  { %2300 = vmatprep.subr.mxu1 %v6119_v10  ;;  %v7427_v10 = vrot.slane %v1950_v21, %v7293_v52  ;;  %v6177_v21 = vld [vmem:[#allocation2 + $0x528] sm:$0xff] }
 0x357   :  { %2301 = vmatpush1.msra.mxu1 %v6120_v12  ;;  %v6149_v12 = vld [vmem:[#allocation2 + $0x298] sm:$0xff] }
 0x358   :  { %2302 = vmatprep.subr.mxu1 %v6121_v13 }
 0x359   :  { %2303 = vmatpush1.msra.mxu1 %v6122_v14  ;;  %v7431_v14 = vrot.slane %v305_v62, %v7343_v42  ;;  %v6181_v62 = vld [vmem:[#allocation2 + $0x508] sm:$0xff] }
 0x35a   :  { %2304 = vmatprep.subr.mxu1 %v6123_v15  ;;  %v6150_v15 = vld [vmem:[#allocation2 + $0x290] sm:$0xff] }
 0x35b   :  { %2305 = vmatpush1.msra.mxu1 %v6124_v28 }
 0x35c   :  { %2306 = vmatprep.subr.mxu1 %v6125_v16  ;;  %v6151_v16 = vld [vmem:[#allocation2 + $0x278] sm:$0xff] }
 0x35d   :  { %2307 = vmatpush1.msra.mxu1 %v6126_v32  ;;  %v6152_v32 = vld [vmem:[#allocation2 + $0x270] sm:$0xff] }
 0x35e   :  { %2308 = vmatprep.subr.mxu1 %v6127_v18 }
 0x35f   :  { %2309 = vmatpush2.msra.mxu1 %v6128_v23  ;;  %v7437_v23 = vcombine.high %v7427_v10, %v7427_v10 }
 0x360   :  { %2310 = vmatprep.subr.mxu1 %v6129_v20  ;;  %v6153_v20 = vld [vmem:[#allocation2 + $0x258] sm:$0xff] }
 0x361   :  { %2311 = vmatpush2.msra.mxu1 %v6130_v22 }
 0x362   :  { %2312 = vmatprep.subr.mxu1 %v6131_v25  ;;  %v6154_v25 = vld [vmem:[#allocation2 + $0x250] sm:$0xff] }
 0x363   :  { %2313 = vmatpush2.msra.mxu1 %v6132_v26  ;;  %v6155_v26 = vld [vmem:[#allocation2 + $0x238] sm:$0xff] }
 0x364   :  { %2314 = vmatprep.subr.mxu1 %v6133_v29  ;;  %v6156_v29 = vld [vmem:[#allocation2 + $0x230] sm:$0xff] }
 0x365   :  { %2315 = vmatpush2.msra.mxu1 %v6134_v31  ;;  %v6157_v31 = vld [vmem:[#allocation2 + $0x5e0] sm:$0xff] }
 0x366   :  { %2316 = vmatprep.subr.mxu1 %v6135_v33  ;;  %v6158_v33 = vld [vmem:[#allocation2 + $0x5c8] sm:$0xff] }
 0x367   :  { %2317 = vmatpush2.msra.mxu1 %v6136_v38  ;;  %v6160_v38 = vld [vmem:[#allocation2 + $0x5c0] sm:$0xff] }
 0x368   :  { %2318 = vmatprep.subr.mxu1 %v6137_v40  ;;  %v6161_v40 = vld [vmem:[#allocation2 + $0x210] sm:$0xff] }
 0x369   :  { %2319 = vmatpush2.msra.mxu1 %v6138_v46  ;;  %v6163_v46 = vld [vmem:[#allocation2 + $0x9f8] sm:$0xff] }
 0x36a   :  { %2320 = vmatprep.subr.mxu1 %v6139_v49  ;;  %v6164_v49 = vld [vmem:[#allocation2 + $0x5a0] sm:$0xff] }
 0x36b   :  { %2321 = vmatpush2.msra.mxu1 %v6140_v50  ;;  %v6165_v50 = vld [vmem:[#allocation2 + $0x588] sm:$0xff] }
 0x36c   :  { %2322 = vmatprep.subr.mxu1 %v6141_v53  ;;  %v6166_v53 = vld [vmem:[#allocation2 + $0x9f0] sm:$0xff] }
 0x36d   :  { %2323 = vmatpush2.msra.mxu1 %v6142_v54  ;;  %v6168_v54 = vld [vmem:[#allocation2 + $0x9d8] sm:$0xff] }
 0x36e   :  { %2324 = vmatprep.subr.mxu1 %v6143_v58  ;;  %v6171_v58 = vld [vmem:[#allocation2 + $0x560] sm:$0xff] }
 0x36f   :  { %2325 = vmatpush2.msra.mxu1 %v6144_v61  ;;  %v6173_v61 = vld [vmem:[#allocation2 + $0x548] sm:$0xff] }
 0x370   :  { %2326 = vmatprep.subr.mxu1 %v6145_v1  ;;  %v6178_v1 = vld [vmem:[#allocation2 + $0x990] sm:$0xff] }
 0x371   :  { %2327 = vmatpush2.msra.mxu1 %v6146_v4  ;;  %v6180_v4 = vld [vmem:[#allocation2 + $0x978] sm:$0xff] }
 0x372   :  { %2328 = vmatprep.subr.mxu1 %v6147_v7  ;;  %v6184_v7 = vld [vmem:[#allocation2 + $0x958] sm:$0xff] }
 0x373   :  { %2329 = vmatpush2.msra.mxu1 %v6148_v3  ;;  %v6185_v3 = vld [vmem:[#allocation2 + $0x4e8] sm:$0xff] }
 0x374   :  { %2330 = vmatprep.subr.mxu1 %v6149_v12  ;;  %v6187_v12 = vld [vmem:[#allocation2 + $0x4e0] sm:$0xff] }
 0x375   :  { %2331 = vmatpush2.msra.mxu1 %v6150_v15  ;;  %v6189_v15 = vld [vmem:[#allocation2 + $0x4c8] sm:$0xff] }
 0x376   :  { %2332 = vmatprep.subr.mxu1 %v6151_v16  ;;  %v6191_v16 = vld [vmem:[#allocation2 + $0x4c0] sm:$0xff] }
 0x377   :  { %2333 = vmatpush2.msra.mxu1 %v6152_v32  ;;  %v6192_v32 = vld [vmem:[#allocation2 + $0x918] sm:$0xff] }
 0x378   :  { %2334 = vmatprep.subr.mxu1 %v6153_v20  ;;  %v6194_v20 = vld [vmem:[#allocation2 + $0x910] sm:$0xff] }
 0x379   :  { %2335 = vmatpush2.msra.mxu1 %v6154_v25  ;;  %v6196_v25 = vld [vmem:[#allocation2 + $0x8f8] sm:$0xff] }
 0x37a   :  { %2336 = vmatprep.subr.mxu1 %v6155_v26  ;;  %v6197_v26 = vld [vmem:[#allocation2 + $0x488] sm:$0xff] }
 0x37b   :  { %2337 = vmatpush2.msra.mxu1 %v6156_v29  ;;  %v6198_v29 = vld [vmem:[#allocation2 + $0x8f0] sm:$0xff] }
 0x37c   :  { %2338 = vmatprep.subr.mxu1 %v6159_v35  ;;  %v6201_v35 = vld [vmem:[#allocation2 + $0x468] sm:$0xff] }
 0x37d   :  { %2339 = vmatpush2.msra.mxu1 %v6161_v40  ;;  %v6203_v40 = vld [vmem:[#allocation2 + $0x460] sm:$0xff] }
 0x37e   :  { %v1737_v59 = vpop.f32.mrf.mxu1  ;;  %2418 = vmatprep.subr.mxu1 %v6163_v46  ;;  %2341 = vmatmul.mubr.f32.vlgmr.msra.gmra.mxu1 %v7383_v19  ;;  %v6175_v19 = vld [vmem:[#allocation2 + $0x540] sm:$0xff]  ;;  %v6205_v46 = vld [vmem:[#allocation2 + $0x448] sm:$0xff] }
 0x37f   :  { %v1738_v0 = vadd.f32 %v1737_v59, %v1667_v56  ;;  %2419 = vmatpush1.msra.mxu1 %v6166_v53  ;;  %v6169_v56 = vld [vmem:[#allocation2 + $0x568] sm:$0xff]  ;;  %v6172_v59 = vld [vmem:[#allocation2 + $0x9b8] sm:$0xff]  ;;  %2482 = vmatprep.mubr.f32.mxu1 %v7402_v44  ;;  %v6303_v44 = vld [vmem:[#allocation2 + $0xd20] sm:$0xff] }
 0x380   :  { %v1739_v8 = vpop.f32.mrf.mxu1  ;;  %2420 = vmatprep.subr.mxu1 %v6168_v54  ;;  %v6208_v53 = vld [vmem:[#allocation2 + $0x898] sm:$0xff]  ;;  %v6210_v54 = vld [vmem:[#allocation2 + $0x890] sm:$0xff] }
 0x381   :  { %v1742_v5 = vmax.f32 %v1738_v0, 0.0  ;;  %v1740_v11 = vadd.f32 %v1739_v8, %v1669_v63  ;;  %2421 = vmatpush1.msra.mxu1 %v6170_v57  ;;  %v6174_v63 = vld [vmem:[#allocation2 + $0x9b0] sm:$0xff]  ;;  %v6176_v0 = vld [vmem:[#allocation2 + $0x998] sm:$0xff]  ;;  %v6179_v8 = vld [vmem:[#allocation2 + $0x520] sm:$0xff] }
 0x382   :  { %2422 = vmatprep.subr.mxu1 %v6172_v59  ;;  %v6212_v57 = vld [vmem:[#allocation2 + $0x878] sm:$0xff]  ;;  %v6214_v59 = vld [vmem:[#allocation2 + $0x870] sm:$0xff] }
 0x383   :  { %v1743_v9 = vmax.f32 %v1740_v11, 0.0  ;;  %v1755_v13 = vmul.f32 %v7418_v2, %v1742_v5  ;;  %2423 = vmatpush1.msra.mxu1 %v6174_v63  ;;  %v6182_v5 = vld [vmem:[#allocation2 + $0x970] sm:$0xff]  ;;  %v6183_v11 = vld [vmem:[#allocation2 + $0x500] sm:$0xff]  ;;  %v6216_v63 = vld [vmem:[#allocation2 + $0x858] sm:$0xff] }
 0x384   :  { %2424 = vmatprep.subr.mxu1 %v6176_v0  ;;  %v6218_v0 = vld [vmem:[#allocation2 + $0x850] sm:$0xff] }
 0x385   :  { %v1756_v28 = vmul.f32 %v7421_v6, %v1743_v9  ;;  %v1768_v22 = vadd.f32 %v7431_v14, %v1755_v13  ;;  %2425 = vmatpush1.msra.mxu1 %v6178_v1  ;;  %v6186_v9 = vld [vmem:[#allocation2 + $0x950] sm:$0xff]  ;;  %v6188_v13 = vld [vmem:[#allocation2 + $0x938] sm:$0xff] }
 0x386   :  { %2426 = vmatprep.subr.mxu1 %v6180_v4  ;;  %v6220_v1 = vld [vmem:[#allocation2 + $0x838] sm:$0xff]  ;;  %v6222_v4 = vld [vmem:[#allocation2 + $0x830] sm:$0xff] }
 0x387   :  { %v1769_v18 = vadd.f32 %v7424_v17, %v1756_v28  ;;  %2427 = vmatpush1.msra.mxu1 %v6182_v5  ;;  %v6190_v28 = vld [vmem:[#allocation2 + $0x930] sm:$0xff]  ;;  %v6224_v5 = vld [vmem:[#allocation2 + $0x818] sm:$0xff] }
 0x388   :  { %2428 = vmatprep.subr.mxu1 %v6184_v7  ;;  %v6226_v7 = vld [vmem:[#allocation2 + $0x810] sm:$0xff] }
 0x389   :  { %1910 = vmatprep.mubr.f32.mxu0 %v1769_v18  ;;  %2429 = vmatpush1.msra.mxu1 %v6186_v9  ;;  %v6193_v18 = vld [vmem:[#allocation2 + $0x4a8] sm:$0xff]  ;;  %v6228_v9 = vld [vmem:[#allocation2 + $0xbf8] sm:$0xff] }
 0x38a   :  { %1911 = vmatmul.mubr.f32.vlgmr.msra.gmra.mxu0 %v1768_v22  ;;  %2430 = vmatprep.subr.mxu1 %v6188_v13  ;;  %v6195_v22 = vld [vmem:[#allocation2 + $0x4a0] sm:$0xff]  ;;  %v6230_v13 = vld [vmem:[#allocation2 + $0xbf0] sm:$0xff] }
 0x38b   :  { %2064 = vmatpush1.msra.mxu0 %v6157_v31  ;;  %2127 = vmatprep.mubr.f32.mxu0 %v7437_v23  ;;  %v6199_v31 = vld [vmem:[#allocation2 + $0x480] sm:$0xff] }
 0x38c   :  { %2065 = vmatprep.subr.mxu0 %v6158_v33  ;;  %2431 = vmatpush1.msra.mxu1 %v6190_v28  ;;  %v6200_v33 = vld [vmem:[#allocation2 + $0x8d8] sm:$0xff] }
 0x38d   :  { %2066 = vmatpush1.msra.mxu0 %v6160_v38  ;;  %2432 = vmatprep.subr.mxu1 %v6192_v32  ;;  %v6202_v38 = vld [vmem:[#allocation2 + $0x8d0] sm:$0xff]  ;;  %v6232_v28 = vld [vmem:[#allocation2 + $0xbd8] sm:$0xff] }
 0x38e   :  { %2067 = vmatprep.subr.mxu0 %v6162_v43  ;;  %2433 = vmatpush1.msra.mxu1 %v6194_v20  ;;  %v6204_v43 = vld [vmem:[#allocation2 + $0x8b8] sm:$0xff]  ;;  %v6234_v32 = vld [vmem:[#allocation2 + $0xbd0] sm:$0xff] }
 0x38f   :  { %2068 = vmatpush1.msra.mxu0 %v6164_v49  ;;  %2434 = vmatprep.subr.mxu1 %v6196_v25  ;;  %v6206_v49 = vld [vmem:[#allocation2 + $0x8b0] sm:$0xff]  ;;  %v6236_v20 = vld [vmem:[#allocation2 + $0xbb8] sm:$0xff] }
 0x390   :  { %2069 = vmatprep.subr.mxu0 %v6165_v50  ;;  %2435 = vmatpush1.msra.mxu1 %v6198_v29  ;;  %v6207_v50 = vld [vmem:[#allocation2 + $0x440] sm:$0xff]  ;;  %v6238_v25 = vld [vmem:[#allocation2 + $0xbb0] sm:$0xff]  ;;  %v6240_v29 = vld [vmem:[#allocation2 + $0xb98] sm:$0xff] }
 0x391   :  { %2070 = vmatpush1.msra.mxu0 %v6167_v45  ;;  %2436 = vmatprep.subr.mxu1 %v6200_v33  ;;  %v6209_v45 = vld [vmem:[#allocation2 + $0x428] sm:$0xff]  ;;  %v6242_v33 = vld [vmem:[#allocation2 + $0xb90] sm:$0xff] }
 0x392   :  { %2071 = vmatprep.subr.mxu0 %v6169_v56  ;;  %2437 = vmatpush1.msra.mxu1 %v6202_v38  ;;  %v6211_v56 = vld [vmem:[#allocation2 + $0x420] sm:$0xff]  ;;  %v6244_v38 = vld [vmem:[#allocation2 + $0xb78] sm:$0xff] }
 0x393   :  { %2072 = vmatpush1.msra.mxu0 %v6171_v58  ;;  %2438 = vmatprep.subr.mxu1 %v6204_v43  ;;  %v6213_v58 = vld [vmem:[#allocation2 + $0x408] sm:$0xff]  ;;  %v6246_v43 = vld [vmem:[#allocation2 + $0xb70] sm:$0xff] }
 0x394   :  { %2073 = vmatprep.subr.mxu0 %v6173_v61  ;;  %2439 = vmatpush1.msra.mxu1 %v6206_v49  ;;  %v6215_v61 = vld [vmem:[#allocation2 + $0x400] sm:$0xff]  ;;  %v6248_v49 = vld [vmem:[#allocation2 + $0xb58] sm:$0xff] }
 0x395   :  { %2074 = vmatpush1.msra.mxu0 %v6175_v19  ;;  %2440 = vmatprep.subr.mxu1 %v6208_v53  ;;  %v6217_v19 = vld [vmem:[#allocation2 + $0x7e8] sm:$0xff]  ;;  %v6250_v53 = vld [vmem:[#allocation2 + $0xb50] sm:$0xff] }
 0x396   :  { %2075 = vmatprep.subr.mxu0 %v6177_v21  ;;  %2441 = vmatpush1.msra.mxu1 %v6210_v54  ;;  %v6219_v21 = vld [vmem:[#allocation2 + $0x7e0] sm:$0xff]  ;;  %v6252_v54 = vld [vmem:[#allocation2 + $0xb38] sm:$0xff] }
 0x397   :  { %2076 = vmatpush1.msra.mxu0 %v6179_v8  ;;  %2442 = vmatprep.subr.mxu1 %v6212_v57  ;;  %v6221_v8 = vld [vmem:[#allocation2 + $0x7c8] sm:$0xff]  ;;  %v6254_v57 = vld [vmem:[#allocation2 + $0xb30] sm:$0xff] }
 0x398   :  { %2077 = vmatprep.subr.mxu0 %v6181_v62  ;;  %2443 = vmatpush1.msra.mxu1 %v6214_v59  ;;  %v6223_v62 = vld [vmem:[#allocation2 + $0x7c0] sm:$0xff]  ;;  %v6256_v59 = vld [vmem:[#allocation2 + $0xb18] sm:$0xff] }
 0x399   :  { %2078 = vmatpush1.msra.mxu0 %v6183_v11  ;;  %2444 = vmatprep.subr.mxu1 %v6216_v63  ;;  %v6225_v11 = vld [vmem:[#allocation2 + $0x7a8] sm:$0xff]  ;;  %v6258_v63 = vld [vmem:[#allocation2 + $0xb10] sm:$0xff] }
 0x39a   :  { %2079 = vmatprep.subr.mxu0 %v6185_v3  ;;  %2445 = vmatpush1.msra.mxu1 %v6218_v0  ;;  %v6227_v3 = vld [vmem:[#allocation2 + $0x7a0] sm:$0xff]  ;;  %v1967_v0 = vcombine.high %v7394_v36, %v7394_v36  ;;  %v6268_v36 = vld [vmem:[#allocation2 + $0xab8] sm:$0xff] }
 0x39b   :  { %2080 = vmatpush1.msra.mxu0 %v6187_v12  ;;  %2446 = vmatprep.subr.mxu1 %v6220_v1  ;;  %v6229_v12 = vld [vmem:[#allocation2 + $0x788] sm:$0xff] }
 0x39c   :  { %2081 = vmatprep.subr.mxu0 %v6189_v15  ;;  %2447 = vmatpush1.msra.mxu1 %v6222_v4  ;;  %v6231_v15 = vld [vmem:[#allocation2 + $0x780] sm:$0xff]  ;;  %v6261_v1 = vld [vmem:[#allocation2 + $0x688] sm:$0xff] }
 0x39d   :  { %2082 = vmatpush1.msra.mxu0 %v6191_v16  ;;  %2448 = vmatprep.subr.mxu1 %v6224_v5  ;;  %v6233_v16 = vld [vmem:[#allocation2 + $0x768] sm:$0xff]  ;;  %v6263_v4 = vld [vmem:[#allocation2 + $0x680] sm:$0xff] }
 0x39e   :  { %2083 = vmatprep.subr.mxu0 %v6193_v18  ;;  %2449 = vmatpush1.msra.mxu1 %v6226_v7  ;;  %v6235_v18 = vld [vmem:[#allocation2 + $0x760] sm:$0xff]  ;;  %v6265_v5 = vld [vmem:[#allocation2 + $0x668] sm:$0xff] }
 0x39f   :  { %2084 = vmatpush1.msra.mxu0 %v6195_v22  ;;  %2450 = vmatprep.subr.mxu1 %v6228_v9  ;;  %v6237_v22 = vld [vmem:[#allocation2 + $0x748] sm:$0xff]  ;;  %v6267_v7 = vld [vmem:[#allocation2 + $0x660] sm:$0xff] }
 0x3a0   :  { %2085 = vmatprep.subr.mxu0 %v6197_v26  ;;  %2451 = vmatpush2.msra.mxu1 %v6230_v13  ;;  %v6239_v26 = vld [vmem:[#allocation2 + $0x740] sm:$0xff]  ;;  %v6269_v9 = vld [vmem:[#allocation2 + $0x648] sm:$0xff] }
 0x3a1   :  { %2086 = vmatpush1.msra.mxu0 %v6199_v31  ;;  %2452 = vmatprep.subr.mxu1 %v6232_v28  ;;  %v6241_v31 = vld [vmem:[#allocation2 + $0x728] sm:$0xff]  ;;  %v6271_v13 = vld [vmem:[#allocation2 + $0x640] sm:$0xff] }
 0x3a2   :  { %2087 = vmatprep.subr.mxu0 %v6201_v35  ;;  %2453 = vmatpush2.msra.mxu1 %v6234_v32  ;;  %v6243_v35 = vld [vmem:[#allocation2 + $0x720] sm:$0xff]  ;;  %v6273_v28 = vld [vmem:[#allocation2 + $0x628] sm:$0xff] }
 0x3a3   :  { %2088 = vmatpush1.msra.mxu0 %v6203_v40  ;;  %2454 = vmatprep.subr.mxu1 %v6236_v20  ;;  %v6245_v40 = vld [vmem:[#allocation2 + $0x708] sm:$0xff]  ;;  %v6275_v32 = vld [vmem:[#allocation2 + $0x620] sm:$0xff] }
 0x3a4   :  { %2089 = vmatprep.subr.mxu0 %v6205_v46  ;;  %2455 = vmatpush2.msra.mxu1 %v6238_v25  ;;  %v6247_v46 = vld [vmem:[#allocation2 + $0x700] sm:$0xff]  ;;  %v6277_v20 = vld [vmem:[#allocation2 + $0x608] sm:$0xff] }
 0x3a5   :  { %2090 = vmatpush1.msra.mxu0 %v6207_v50  ;;  %2456 = vmatprep.subr.mxu1 %v6240_v29  ;;  %v6249_v50 = vld [vmem:[#allocation2 + $0x6e8] sm:$0xff]  ;;  %v6279_v25 = vld [vmem:[#allocation2 + $0x600] sm:$0xff] }
 0x3a6   :  { %2091 = vmatprep.subr.mxu0 %v6209_v45  ;;  %2457 = vmatpush2.msra.mxu1 %v6242_v33  ;;  %v6251_v45 = vld [vmem:[#allocation2 + $0x6e0] sm:$0xff]  ;;  %v6281_v29 = vld [vmem:[#allocation2 + $0xde8] sm:$0xff] }
 0x3a7   :  { %2092 = vmatpush1.msra.mxu0 %v6211_v56  ;;  %2458 = vmatprep.subr.mxu1 %v6244_v38  ;;  %v6253_v56 = vld [vmem:[#allocation2 + $0x6c8] sm:$0xff]  ;;  %v6285_v38 = vld [vmem:[#allocation2 + $0xdc0] sm:$0xff] }
 0x3a8   :  { %2093 = vmatprep.subr.mxu0 %v6213_v58  ;;  %2459 = vmatpush2.msra.mxu1 %v6246_v43  ;;  %v6255_v58 = vld [vmem:[#allocation2 + $0x6c0] sm:$0xff]  ;;  %v6283_v33 = vld [vmem:[#allocation2 + $0xdc8] sm:$0xff] }
 0x3a9   :  { %2094 = vmatpush1.msra.mxu0 %v6215_v61  ;;  %2460 = vmatprep.subr.mxu1 %v6248_v49  ;;  %v6257_v61 = vld [vmem:[#allocation2 + $0x6a8] sm:$0xff]  ;;  %v6289_v49 = vld [vmem:[#allocation2 + $0xda0] sm:$0xff] }
 0x3aa   :  { %2095 = vmatprep.subr.mxu0 %v6217_v19  ;;  %2461 = vmatpush2.msra.mxu1 %v6250_v53  ;;  %v6259_v19 = vld [vmem:[#allocation2 + $0x6a0] sm:$0xff]  ;;  %v6287_v43 = vld [vmem:[#allocation2 + $0xda8] sm:$0xff] }
 0x3ab   :  { %2096 = vmatpush2.msra.mxu0 %v6219_v21  ;;  %2462 = vmatprep.subr.mxu1 %v6252_v54  ;;  %v6260_v21 = vld [vmem:[#allocation2 + $0xaf8] sm:$0xff]  ;;  %v6291_v53 = vld [vmem:[#allocation2 + $0xd88] sm:$0xff]  ;;  %v6293_v54 = vld [vmem:[#allocation2 + $0xd80] sm:$0xff] }
 0x3ac   :  { %2097 = vmatprep.subr.mxu0 %v6221_v8  ;;  %2463 = vmatpush2.msra.mxu1 %v6254_v57  ;;  %v6262_v8 = vld [vmem:[#allocation2 + $0xaf0] sm:$0xff]  ;;  %v6295_v57 = vld [vmem:[#allocation2 + $0xd60] sm:$0xff] }
 0x3ad   :  { %2098 = vmatpush2.msra.mxu0 %v6223_v62  ;;  %2464 = vmatprep.subr.mxu1 %v6256_v59  ;;  %v6264_v62 = vld [vmem:[#allocation2 + $0xad8] sm:$0xff]  ;;  %v6297_v59 = vld [vmem:[#allocation2 + $0xd48] sm:$0xff] }
 0x3ae   :  { %2099 = vmatprep.subr.mxu0 %v6225_v11  ;;  %2465 = vmatpush2.msra.mxu1 %v6258_v63  ;;  %v6266_v11 = vld [vmem:[#allocation2 + $0xad0] sm:$0xff]  ;;  %v6299_v63 = vld [vmem:[#allocation2 + $0xd40] sm:$0xff] }
 0x3af   :  { %2100 = vmatpush2.msra.mxu0 %v6227_v3  ;;  %2466 = vmatprep.subr.mxu1 %v6260_v21  ;;  %v7445_v3 = vrot.slane %v1967_v0, %v7293_v52  ;;  %v6301_v0 = vld [vmem:[#allocation2 + $0xd28] sm:$0xff] }
 0x3b0   :  { %2101 = vmatprep.subr.mxu0 %v6229_v12  ;;  %2467 = vmatpush2.msra.mxu1 %v6262_v8  ;;  %v6270_v12 = vld [vmem:[#allocation2 + $0xab0] sm:$0xff]  ;;  %v6302_v21 = vld [vmem:[#allocation6 + $0xe0] sm:$0xff] }
 0x3b1   :  { %2102 = vmatpush2.msra.mxu0 %v6231_v15  ;;  %2468 = vmatprep.subr.mxu1 %v6264_v62  ;;  %v6272_v15 = vld [vmem:[#allocation2 + $0xa98] sm:$0xff]  ;;  %v7449_v52 = vcombine.high %v7445_v3, %v7445_v3  ;;  %v6308_v62 = vld [vmem:[#allocation6 + $0xc8] sm:$0xff] }
 0x3b2   :  { %2103 = vmatprep.subr.mxu0 %v6233_v16  ;;  %2469 = vmatpush2.msra.mxu1 %v6266_v11  ;;  %v6274_v16 = vld [vmem:[#allocation2 + $0xa90] sm:$0xff]  ;;  %v6310_v11 = vld [vmem:[#allocation6 + $0xc0] sm:$0xff] }
 0x3b3   :  { %2104 = vmatpush2.msra.mxu0 %v6235_v18  ;;  %2470 = vmatprep.subr.mxu1 %v6268_v36  ;;  %v6276_v18 = vld [vmem:[#allocation2 + $0xa78] sm:$0xff] }
 0x3b4   :  { %2105 = vmatprep.subr.mxu0 %v6237_v22  ;;  %2471 = vmatpush2.msra.mxu1 %v6270_v12  ;;  %v6278_v22 = vld [vmem:[#allocation2 + $0xa70] sm:$0xff]  ;;  %v6312_v36 = vld [vmem:[#allocation6 + $0xb8] sm:$0xff] }
 0x3b5   :  { %2106 = vmatpush2.msra.mxu0 %v6239_v26  ;;  %2472 = vmatprep.subr.mxu1 %v6272_v15  ;;  %v6280_v26 = vld [vmem:[#allocation2 + $0xa58] sm:$0xff]  ;;  %v6316_v15 = vld [vmem:[#allocation6 + $0xa8] sm:$0xff] }
 0x3b6   :  { %2107 = vmatprep.subr.mxu0 %v6241_v31  ;;  %2473 = vmatpush2.msra.mxu1 %v6274_v16  ;;  %v6282_v31 = vld [vmem:[#allocation2 + $0xde0] sm:$0xff]  ;;  %v6306_v8 = vld [vmem:[#allocation6 + $0xd0] sm:$0xff] }
 0x3b7   :  { %2108 = vmatpush2.msra.mxu0 %v6243_v35  ;;  %2474 = vmatprep.subr.mxu1 %v6276_v18  ;;  %v6284_v35 = vld [vmem:[#allocation2 + $0xa50] sm:$0xff]  ;;  %v6318_v16 = vld [vmem:[#allocation6 + $0xa0] sm:$0xff]  ;;  %v6320_v18 = vld [vmem:[#allocation6 + $0x98] sm:$0xff] }
 0x3b8   :  { %2109 = vmatprep.subr.mxu0 %v6245_v40  ;;  %2475 = vmatpush2.msra.mxu1 %v6278_v22  ;;  %v6286_v40 = vld [vmem:[#allocation2 + $0xa38] sm:$0xff] }
 0x3b9   :  { %2110 = vmatpush2.msra.mxu0 %v6247_v46  ;;  %2476 = vmatprep.subr.mxu1 %v6280_v26  ;;  %v6288_v46 = vld [vmem:[#allocation2 + $0xa30] sm:$0xff] }
 0x3ba   :  { %2111 = vmatprep.subr.mxu0 %v6249_v50  ;;  %2477 = vmatpush2.msra.mxu1 %v6284_v35  ;;  %v6290_v50 = vld [vmem:[#allocation2 + $0xa18] sm:$0xff]  ;;  %v6324_v26 = vld [vmem:[#allocation6 + $0x88] sm:$0xff] }
 0x3bb   :  { %2112 = vmatpush2.msra.mxu0 %v6251_v45  ;;  %2478 = vmatprep.subr.mxu1 %v6286_v40  ;;  %v6292_v45 = vld [vmem:[#allocation2 + $0xa10] sm:$0xff]  ;;  %v6328_v35 = vld [vmem:[#allocation6 + $0x78] sm:$0xff] }
 0x3bc   :  { %2113 = vmatprep.subr.mxu0 %v6253_v56  ;;  %2479 = vmatpush2.msra.mxu1 %v6288_v46  ;;  %v6294_v56 = vld [vmem:[#allocation2 + $0xd68] sm:$0xff]  ;;  %v6314_v12 = vld [vmem:[#allocation6 + $0xb0] sm:$0xff] }
 0x3bd   :  { %2114 = vmatpush2.msra.mxu0 %v6255_v58  ;;  %2480 = vmatprep.subr.mxu1 %v6290_v50  ;;  %v6296_v58 = vld [vmem:[#allocation6 + $0xf8] sm:$0xff]  ;;  %v6322_v22 = vld [vmem:[#allocation6 + $0x90] sm:$0xff]  ;;  %v6332_v46 = vld [vmem:[#allocation6 + $0x68] sm:$0xff] }
 0x3be   :  { %2115 = vmatprep.subr.mxu0 %v6257_v61  ;;  %2481 = vmatpush2.msra.mxu1 %v6292_v45  ;;  %v6298_v61 = vld [vmem:[#allocation6 + $0xf0] sm:$0xff]  ;;  %v6334_v50 = vld [vmem:[#allocation6 + $0x60] sm:$0xff]  ;;  %v6336_v45 = vld [vmem:[#allocation6 + $0x58] sm:$0xff] }
 0x3bf   :  { %2116 = vmatpush2.msra.mxu0 %v6259_v19  ;;  %2483 = vmatmul.mubr.f32.vlgmr.msra.gmra.mxu1 %v7398_v39  ;;  %v6300_v19 = vld [vmem:[#allocation6 + $0xe8] sm:$0xff]  ;;  %v6330_v40 = vld [vmem:[#allocation6 + $0x70] sm:$0xff] }
 0x3c0   :  { %2117 = vmatprep.subr.mxu0 %v6261_v1  ;;  %2564 = vmatprep.subr.mxu1 %v6296_v58  ;;  %v6304_v1 = vld [vmem:[#allocation6 + $0xd8] sm:$0xff]  ;;  %v6305_v39 = vld [vmem:[#allocation2 + $0xd08] sm:$0xff] }
 0x3c1   :  { %2118 = vmatpush2.msra.mxu0 %v6263_v4  ;;  %2565 = vmatpush1.msra.mxu1 %v6298_v61  ;;  %v6307_v4 = vld [vmem:[#allocation2 + $0xd00] sm:$0xff]  ;;  %v6340_v58 = vld [vmem:[#allocation6 + $0x48] sm:$0xff] }
 0x3c2   :  { %2119 = vmatprep.subr.mxu0 %v6265_v5  ;;  %2566 = vmatprep.subr.mxu1 %v6300_v19  ;;  %v6309_v5 = vld [vmem:[#allocation2 + $0xce8] sm:$0xff]  ;;  %v6344_v19 = vld [vmem:[#allocation6 + $0x38] sm:$0xff] }
 0x3c3   :  { %2120 = vmatpush2.msra.mxu0 %v6267_v7  ;;  %2567 = vmatpush1.msra.mxu1 %v6302_v21  ;;  %v6311_v7 = vld [vmem:[#allocation2 + $0xce0] sm:$0xff]  ;;  %v6346_v21 = vld [vmem:[#allocation6 + $0x30] sm:$0xff] }
 0x3c4   :  { %2121 = vmatprep.subr.mxu0 %v6269_v9  ;;  %2568 = vmatprep.subr.mxu1 %v6304_v1  ;;  %v6313_v9 = vld [vmem:[#allocation2 + $0xcc8] sm:$0xff] }
 0x3c5   :  { %2122 = vmatpush2.msra.mxu0 %v6271_v13  ;;  %2569 = vmatpush1.msra.mxu1 %v6306_v8  ;;  %v6315_v13 = vld [vmem:[#allocation2 + $0xcc0] sm:$0xff]  ;;  %v6348_v1 = vld [vmem:[#allocation6 + $0x28] sm:$0xff] }
 0x3c6   :  { %2123 = vmatprep.subr.mxu0 %v6273_v28  ;;  %2570 = vmatprep.subr.mxu1 %v6308_v62  ;;  %v6317_v28 = vld [vmem:[#allocation2 + $0xca8] sm:$0xff]  ;;  %v6352_v62 = vld [vmem:[#allocation6 + $0x18] sm:$0xff] }
 0x3c7   :  { %2124 = vmatpush2.msra.mxu0 %v6275_v32  ;;  %2571 = vmatpush1.msra.mxu1 %v6310_v11  ;;  %v6319_v32 = vld [vmem:[#allocation2 + $0xca0] sm:$0xff]  ;;  %v6354_v11 = vld [vmem:[#allocation6 + $0x10] sm:$0xff] }
 0x3c8   :  { %2125 = vmatprep.subr.mxu0 %v6277_v20  ;;  %2572 = vmatprep.subr.mxu1 %v6312_v36  ;;  %v6321_v20 = vld [vmem:[#allocation2 + $0xc88] sm:$0xff] }
 0x3c9   :  { %2126 = vmatpush2.msra.mxu0 %v6279_v25  ;;  %2573 = vmatpush1.msra.mxu1 %v6314_v12  ;;  %v6323_v25 = vld [vmem:[#allocation2 + $0xc80] sm:$0xff]  ;;  %v6356_v36 = vld [vmem:[#allocation6 + $0x8] sm:$0xff] }
 0x3ca   :  { %2128 = vmatmul.mubr.f32.vlgmr.msra.gmra.mxu0 %v7427_v10  ;;  %2205 = vmatprep.subr.mxu0 %v6281_v29  ;;  %v6325_v29 = vld [vmem:[#allocation2 + $0xc68] sm:$0xff] }
 0x3cb   :  { %2206 = vmatpush1.msra.mxu0 %v6282_v31  ;;  %2269 = vmatprep.mubr.f32.mxu0 %v7449_v52  ;;  %v6326_v31 = vld [vmem:[#allocation6 + $0x80] sm:$0xff] }
 0x3cc   :  { %2207 = vmatprep.subr.mxu0 %v6283_v33  ;;  %2574 = vmatprep.subr.mxu1 %v6316_v15  ;;  %v6327_v33 = vld [vmem:[#allocation2 + $0xc60] sm:$0xff] }
 0x3cd   :  { %2208 = vmatpush1.msra.mxu0 %v6285_v38  ;;  %2575 = vmatpush1.msra.mxu1 %v6318_v16  ;;  %v6329_v38 = vld [vmem:[#allocation2 + $0xc48] sm:$0xff]  ;;  %v6360_v15 = vld [vmem:[#allocation6 + $0x1f8] sm:$0xff]  ;;  %v6362_v16 = vld [vmem:[#allocation6 + $0x1f0] sm:$0xff] }
 0x3ce   :  { %2209 = vmatprep.subr.mxu0 %v6287_v43  ;;  %2576 = vmatprep.subr.mxu1 %v6320_v18  ;;  %v6331_v43 = vld [vmem:[#allocation2 + $0xc40] sm:$0xff]  ;;  %v6364_v18 = vld [vmem:[#allocation6 + $0x1e8] sm:$0xff] }
 0x3cf   :  { %2210 = vmatpush1.msra.mxu0 %v6289_v49  ;;  %2577 = vmatpush1.msra.mxu1 %v6322_v22  ;;  %v6333_v49 = vld [vmem:[#allocation2 + $0xc28] sm:$0xff] }
 0x3d0   :  { %2211 = vmatprep.subr.mxu0 %v6291_v53  ;;  %2578 = vmatprep.subr.mxu1 %v6324_v26  ;;  %v6335_v53 = vld [vmem:[#allocation2 + $0xc20] sm:$0xff] }
 0x3d1   :  { %2212 = vmatpush1.msra.mxu0 %v6293_v54  ;;  %2579 = vmatpush1.msra.mxu1 %v6326_v31  ;;  %v6337_v54 = vld [vmem:[#allocation2 + $0xc08] sm:$0xff]  ;;  %v6368_v26 = vld [vmem:[#allocation6 + $0x1d8] sm:$0xff]  ;;  %v6370_v31 = vld [vmem:[#allocation6 + $0x1d0] sm:$0xff] }
 0x3d2   :  { %2213 = vmatprep.subr.mxu0 %v6294_v56  ;;  %2580 = vmatprep.subr.mxu1 %v6328_v35  ;;  %v6338_v56 = vld [vmem:[#allocation6 + $0x50] sm:$0xff]  ;;  %v6342_v61 = vld [vmem:[#allocation6 + $0x40] sm:$0xff]  ;;  %v6372_v35 = vld [vmem:[#allocation6 + $0x1c8] sm:$0xff] }
 0x3d3   :  { %2214 = vmatpush1.msra.mxu0 %v6295_v57  ;;  %2581 = vmatpush1.msra.mxu1 %v6330_v40  ;;  %v6339_v57 = vld [vmem:[#allocation2 + $0xc00] sm:$0xff] }
 0x3d4   :  { %2215 = vmatprep.subr.mxu0 %v6297_v59  ;;  %2582 = vmatprep.subr.mxu1 %v6332_v46  ;;  %v6341_v59 = vld [vmem:[#allocation2 + $0xfe8] sm:$0xff]  ;;  %v6376_v46 = vld [vmem:[#allocation6 + $0x1b8] sm:$0xff] }
 0x3d5   :  { %2216 = vmatpush1.msra.mxu0 %v6299_v63  ;;  %2583 = vmatpush1.msra.mxu1 %v6334_v50  ;;  %v6343_v63 = vld [vmem:[#allocation2 + $0xfe0] sm:$0xff]  ;;  %v6378_v50 = vld [vmem:[#allocation6 + $0x1b0] sm:$0xff] }
 0x3d6   :  { %2217 = vmatprep.subr.mxu0 %v6301_v0  ;;  %2584 = vmatprep.subr.mxu1 %v6336_v45  ;;  %v6345_v0 = vld [vmem:[#allocation2 + $0xfc8] sm:$0xff] }
 0x3d7   :  { %2218 = vmatpush1.msra.mxu0 %v6303_v44  ;;  %2585 = vmatpush1.msra.mxu1 %v6338_v56  ;;  %v6347_v44 = vld [vmem:[#allocation2 + $0xfc0] sm:$0xff]  ;;  %v6380_v45 = vld [vmem:[#allocation6 + $0x1a8] sm:$0xff] }
 0x3d8   :  { %2219 = vmatprep.subr.mxu0 %v6305_v39  ;;  %2586 = vmatprep.subr.mxu1 %v6340_v58  ;;  %v6349_v39 = vld [vmem:[#allocation2 + $0xfa8] sm:$0xff]  ;;  %v6384_v58 = vld [vmem:[#allocation6 + $0x198] sm:$0xff] }
 0x3d9   :  { %2220 = vmatpush1.msra.mxu0 %v6307_v4  ;;  %2587 = vmatpush1.msra.mxu1 %v6342_v61  ;;  %v6350_v8 = vld [vmem:[#allocation6 + $0x20] sm:$0xff]  ;;  %v6386_v61 = vld [vmem:[#allocation6 + $0x190] sm:$0xff] }
 0x3da   :  { %2221 = vmatprep.subr.mxu0 %v6309_v5  ;;  %2588 = vmatprep.subr.mxu1 %v6344_v19  ;;  %v6351_v4 = vld [vmem:[#allocation2 + $0xfa0] sm:$0xff]  ;;  %v6353_v5 = vld [vmem:[#allocation2 + $0xf88] sm:$0xff] }
 0x3db   :  { %2222 = vmatpush1.msra.mxu0 %v6311_v7  ;;  %2589 = vmatpush1.msra.mxu1 %v6346_v21  ;;  %v6355_v7 = vld [vmem:[#allocation2 + $0xf80] sm:$0xff]  ;;  %v6388_v19 = vld [vmem:[#allocation6 + $0x188] sm:$0xff] }
 0x3dc   :  { %2223 = vmatprep.subr.mxu0 %v6313_v9  ;;  %2590 = vmatprep.subr.mxu1 %v6348_v1  ;;  %v6357_v9 = vld [vmem:[#allocation2 + $0xf68] sm:$0xff]  ;;  %v6392_v1 = vld [vmem:[#allocation6 + $0x178] sm:$0xff] }
 0x3dd   :  { %2224 = vmatpush1.msra.mxu0 %v6315_v13  ;;  %2591 = vmatpush1.msra.mxu1 %v6350_v8  ;;  %v6358_v12 = vld [vmem:[#allocation6] sm:$0xff]  ;;  %v6394_v8 = vld [vmem:[#allocation6 + $0x170] sm:$0xff] }
 0x3de   :  { %2225 = vmatprep.subr.mxu0 %v6317_v28  ;;  %2592 = vmatprep.subr.mxu1 %v6352_v62  ;;  %v6359_v13 = vld [vmem:[#allocation2 + $0xf60] sm:$0xff]  ;;  %v6361_v28 = vld [vmem:[#allocation2 + $0xf48] sm:$0xff] }
 0x3df   :  { %2226 = vmatpush1.msra.mxu0 %v6319_v32  ;;  %2593 = vmatpush1.msra.mxu1 %v6354_v11  ;;  %v6363_v32 = vld [vmem:[#allocation2 + $0xf40] sm:$0xff]  ;;  %v6396_v62 = vld [vmem:[#allocation6 + $0x168] sm:$0xff] }
 0x3e0   :  { %2227 = vmatprep.subr.mxu0 %v6321_v20  ;;  %2594 = vmatprep.subr.mxu1 %v6356_v36  ;;  %v6365_v20 = vld [vmem:[#allocation2 + $0xf28] sm:$0xff]  ;;  %v6400_v36 = vld [vmem:[#allocation6 + $0x158] sm:$0xff] }
 0x3e1   :  { %2228 = vmatpush1.msra.mxu0 %v6323_v25  ;;  %2595 = vmatpush1.msra.mxu1 %v6358_v12  ;;  %v6366_v22 = vld [vmem:[#allocation6 + $0x1e0] sm:$0xff]  ;;  %v6402_v12 = vld [vmem:[#allocation6 + $0x150] sm:$0xff] }
 0x3e2   :  { %2229 = vmatprep.subr.mxu0 %v6325_v29  ;;  %2596 = vmatprep.subr.mxu1 %v6360_v15  ;;  %v6367_v25 = vld [vmem:[#allocation2 + $0xf20] sm:$0xff]  ;;  %v6369_v29 = vld [vmem:[#allocation2 + $0xf08] sm:$0xff] }
 0x3e3   :  { %2230 = vmatpush1.msra.mxu0 %v6327_v33  ;;  %2597 = vmatpush2.msra.mxu1 %v6362_v16  ;;  %v6371_v33 = vld [vmem:[#allocation2 + $0xf00] sm:$0xff]  ;;  %v6404_v15 = vld [vmem:[#allocation6 + $0x148] sm:$0xff] }
 0x3e4   :  { %2231 = vmatprep.subr.mxu0 %v6329_v38  ;;  %2598 = vmatprep.subr.mxu1 %v6364_v18  ;;  %v6373_v38 = vld [vmem:[#allocation2 + $0xee8] sm:$0xff]  ;;  %v6406_v16 = vld [vmem:[#allocation2 + $0x5f0] sm:$0xff] }
 0x3e5   :  { %2232 = vmatpush1.msra.mxu0 %v6331_v43  ;;  %2599 = vmatpush2.msra.mxu1 %v6366_v22  ;;  %v6374_v40 = vld [vmem:[#allocation6 + $0x1c0] sm:$0xff]  ;;  %v6410_v22 = vld [vmem:[#allocation6 + $0x138] sm:$0xff] }
 0x3e6   :  { %2233 = vmatprep.subr.mxu0 %v6333_v49  ;;  %2600 = vmatprep.subr.mxu1 %v6368_v26  ;;  %v6375_v43 = vld [vmem:[#allocation2 + $0xee0] sm:$0xff]  ;;  %v6377_v49 = vld [vmem:[#allocation2 + $0xec8] sm:$0xff]  ;;  %v6412_v26 = vld [vmem:[#allocation6 + $0x130] sm:$0xff] }
 0x3e7   :  { %2234 = vmatpush1.msra.mxu0 %v6335_v53  ;;  %2601 = vmatpush2.msra.mxu1 %v6370_v31  ;;  %v6379_v53 = vld [vmem:[#allocation2 + $0xec0] sm:$0xff]  ;;  %v6414_v31 = vld [vmem:[#allocation6 + $0x128] sm:$0xff] }
 0x3e8   :  { %2235 = vmatprep.subr.mxu0 %v6337_v54  ;;  %2602 = vmatprep.subr.mxu1 %v6372_v35  ;;  %v6381_v54 = vld [vmem:[#allocation2 + $0xea8] sm:$0xff] }
 0x3e9   :  { %2236 = vmatpush1.msra.mxu0 %v6339_v57  ;;  %2603 = vmatpush2.msra.mxu1 %v6374_v40  ;;  %v6382_v56 = vld [vmem:[#allocation6 + $0x1a0] sm:$0xff]  ;;  %v6419_v40 = vld [vmem:[#allocation2 + $0x578] sm:$0xff] }
 0x3ea   :  { %2237 = vmatprep.subr.mxu0 %v6341_v59  ;;  %2604 = vmatprep.subr.mxu1 %v6376_v46  ;;  %v6383_v57 = vld [vmem:[#allocation2 + $0xea0] sm:$0xff]  ;;  %v6385_v59 = vld [vmem:[#allocation2 + $0xe88] sm:$0xff]  ;;  %v6421_v46 = vld [vmem:[#allocation2 + $0x570] sm:$0xff] }
 0x3eb   :  { %2238 = vmatpush2.msra.mxu0 %v6343_v63  ;;  %2605 = vmatpush2.msra.mxu1 %v6378_v50  ;;  %v6387_v63 = vld [vmem:[#allocation2 + $0xe80] sm:$0xff]  ;;  %v6423_v50 = vld [vmem:[#allocation2 + $0x558] sm:$0xff] }
 0x3ec   :  { %2239 = vmatprep.subr.mxu0 %v6345_v0  ;;  %2606 = vmatprep.subr.mxu1 %v6380_v45  ;;  %v6389_v0 = vld [vmem:[#allocation2 + $0xe68] sm:$0xff]  ;;  %v6425_v45 = vld [vmem:[#allocation2 + $0x550] sm:$0xff] }
 0x3ed   :  { %2240 = vmatpush2.msra.mxu0 %v6347_v44  ;;  %2607 = vmatpush2.msra.mxu1 %v6382_v56  ;;  %v6390_v21 = vld [vmem:[#allocation6 + $0x180] sm:$0xff]  ;;  %v6427_v56 = vld [vmem:[#allocation2 + $0x538] sm:$0xff] }
 0x3ee   :  { %2241 = vmatprep.subr.mxu0 %v6349_v39  ;;  %2608 = vmatprep.subr.mxu1 %v6384_v58  ;;  %v6391_v44 = vld [vmem:[#allocation2 + $0xe60] sm:$0xff]  ;;  %v6393_v39 = vld [vmem:[#allocation2 + $0xe48] sm:$0xff]  ;;  %v6429_v58 = vld [vmem:[#allocation2 + $0x518] sm:$0xff] }
 0x3ef   :  { %2242 = vmatpush2.msra.mxu0 %v6351_v4  ;;  %2609 = vmatpush2.msra.mxu1 %v6386_v61  ;;  %v6395_v4 = vld [vmem:[#allocation2 + $0xe40] sm:$0xff]  ;;  %v6431_v61 = vld [vmem:[#allocation2 + $0x4f8] sm:$0xff] }
 0x3f0   :  { %2243 = vmatprep.subr.mxu0 %v6353_v5  ;;  %2610 = vmatprep.subr.mxu1 %v6388_v19  ;;  %v6397_v5 = vld [vmem:[#allocation2 + $0xe28] sm:$0xff]  ;;  %v6433_v19 = vld [vmem:[#allocation2 + $0x4d8] sm:$0xff] }
 0x3f1   :  { %2244 = vmatpush2.msra.mxu0 %v6355_v7  ;;  %2611 = vmatpush2.msra.mxu1 %v6390_v21  ;;  %v6398_v11 = vld [vmem:[#allocation6 + $0x160] sm:$0xff]  ;;  %v6435_v21 = vld [vmem:[#allocation2 + $0x4b8] sm:$0xff] }
 0x3f2   :  { %2245 = vmatprep.subr.mxu0 %v6357_v9  ;;  %2612 = vmatprep.subr.mxu1 %v6392_v1  ;;  %v6399_v7 = vld [vmem:[#allocation2 + $0xe20] sm:$0xff]  ;;  %v6401_v9 = vld [vmem:[#allocation2 + $0xe08] sm:$0xff]  ;;  %v6437_v1 = vld [vmem:[#allocation2 + $0x498] sm:$0xff] }
 0x3f3   :  { %2246 = vmatpush2.msra.mxu0 %v6359_v13  ;;  %2613 = vmatpush2.msra.mxu1 %v6394_v8  ;;  %v6403_v13 = vld [vmem:[#allocation2 + $0xe00] sm:$0xff]  ;;  %v6439_v8 = vld [vmem:[#allocation2 + $0x478] sm:$0xff] }
 0x3f4   :  { %2247 = vmatprep.subr.mxu0 %v6361_v28  ;;  %2614 = vmatprep.subr.mxu1 %v6396_v62  ;;  %v6405_v28 = vld [vmem:[#allocation2 + $0x5f8] sm:$0xff]  ;;  %v6408_v18 = vld [vmem:[#allocation6 + $0x140] sm:$0xff] }
 0x3f5   :  { %2248 = vmatpush2.msra.mxu0 %v6363_v32  ;;  %2615 = vmatpush2.msra.mxu1 %v6398_v11  ;;  %v6407_v32 = vld [vmem:[#allocation2 + $0x5d8] sm:$0xff]  ;;  %v6416_v35 = vld [vmem:[#allocation6 + $0x120] sm:$0xff] }
 0x3f6   :  { %2249 = vmatprep.subr.mxu0 %v6365_v20  ;;  %2616 = vmatprep.subr.mxu1 %v6400_v36  ;;  %v6409_v20 = vld [vmem:[#allocation2 + $0x5d0] sm:$0xff]  ;;  %v6441_v62 = vld [vmem:[#allocation2 + $0x458] sm:$0xff] }
 0x3f7   :  { %2250 = vmatpush2.msra.mxu0 %v6367_v25  ;;  %2617 = vmatpush2.msra.mxu1 %v6402_v12  ;;  %v6411_v25 = vld [vmem:[#allocation2 + $0x5b8] sm:$0xff] }
 0x3f8   :  { %2251 = vmatprep.subr.mxu0 %v6369_v29  ;;  %2618 = vmatprep.subr.mxu1 %v6404_v15  ;;  %v6413_v29 = vld [vmem:[#allocation2 + $0x5b0] sm:$0xff]  ;;  %v6443_v11 = vld [vmem:[#allocation2 + $0x438] sm:$0xff] }
 0x3f9   :  { %2252 = vmatpush2.msra.mxu0 %v6371_v33  ;;  %2619 = vmatpush2.msra.mxu1 %v6408_v18  ;;  %v6415_v33 = vld [vmem:[#allocation2 + $0x598] sm:$0xff] }
 0x3fa   :  { %2253 = vmatprep.subr.mxu0 %v6373_v38  ;;  %2620 = vmatprep.subr.mxu1 %v6410_v22  ;;  %v6418_v38 = vld [vmem:[#allocation6 + $0x118] sm:$0xff] }
 0x3fb   :  { %2254 = vmatpush2.msra.mxu0 %v6375_v43  ;;  %2621 = vmatpush2.msra.mxu1 %v6412_v26  ;;  %v6420_v43 = vld [vmem:[#allocation6 + $0x110] sm:$0xff] }
 0x3fc   :  { %2255 = vmatprep.subr.mxu0 %v6377_v49  ;;  %2622 = vmatprep.subr.mxu1 %v6414_v31  ;;  %v6422_v49 = vld [vmem:[#allocation6 + $0x108] sm:$0xff]  ;;  %v6445_v36 = vld [vmem:[#allocation2 + $0x418] sm:$0xff] }
 0x3fd   :  { %2256 = vmatpush2.msra.mxu0 %v6379_v53  ;;  %2623 = vmatpush2.msra.mxu1 %v6416_v35  ;;  %v6424_v53 = vld [vmem:[#allocation6 + $0x100] sm:$0xff]  ;;  %v6447_v12 = vld [vmem:[#allocation2 + $0x7f8] sm:$0xff] }
 0x3fe   :  { %2257 = vmatprep.subr.mxu0 %v6381_v54  ;;  %2624 = vmatprep.subr.mxu1 %v6418_v38  ;;  %v6426_v54 = vld [vmem:[#allocation9 + $0xf8] sm:$0xff] }
 0x3ff   :  { %2258 = vmatpush2.msra.mxu0 %v6383_v57  ;;  %2625 = vmatpush2.msra.mxu1 %v6420_v43  ;;  %v6428_v57 = vld [vmem:[#allocation2 + $0x530] sm:$0xff]  ;;  %v6449_v15 = vld [vmem:[#allocation2 + $0x7d8] sm:$0xff] }
 0x400   :  { %2259 = vmatprep.subr.mxu0 %v6385_v59  ;;  %2626 = vmatprep.subr.mxu1 %v6422_v49  ;;  %v6430_v59 = vld [vmem:[#allocation2 + $0x510] sm:$0xff]  ;;  %v6453_v18 = vld [vmem:[#allocation2 + $0x798] sm:$0xff] }
 0x401   :  { %2260 = vmatpush2.msra.mxu0 %v6387_v63  ;;  %2627 = vmatpush2.msra.mxu1 %v6424_v53  ;;  %v6432_v63 = vld [vmem:[#allocation2 + $0x4f0] sm:$0xff]  ;;  %v6455_v22 = vld [vmem:[#allocation2 + $0x778] sm:$0xff] }
 0x402   :  { %2261 = vmatprep.subr.mxu0 %v6389_v0  ;;  %2712 = vmatprep.subr.mxu1 %v6426_v54  ;;  %v6434_v0 = vld [vmem:[#allocation2 + $0x4d0] sm:$0xff]  ;;  %v6457_v26 = vld [vmem:[#allocation2 + $0x758] sm:$0xff] }
 0x403   :  { %2262 = vmatpush2.msra.mxu0 %v6391_v44  ;;  %v6436_v44 = vld [vmem:[#allocation2 + $0x4b0] sm:$0xff]  ;;  %v6459_v31 = vld [vmem:[#allocation2 + $0x738] sm:$0xff] }
 0x404   :  { %2263 = vmatprep.subr.mxu0 %v6393_v39  ;;  %v6438_v39 = vld [vmem:[#allocation2 + $0x490] sm:$0xff]  ;;  %v6461_v35 = vld [vmem:[#allocation2 + $0x718] sm:$0xff] }
 0x405   :  { %2264 = vmatpush2.msra.mxu0 %v6395_v4  ;;  %v6440_v4 = vld [vmem:[#allocation2 + $0x470] sm:$0xff]  ;;  %v6463_v38 = vld [vmem:[#allocation2 + $0x6f8] sm:$0xff] }
 0x406   :  { %2265 = vmatprep.subr.mxu0 %v6397_v5  ;;  %v6442_v5 = vld [vmem:[#allocation2 + $0x450] sm:$0xff]  ;;  %v6465_v43 = vld [vmem:[#allocation2 + $0x6d8] sm:$0xff] }
 0x407   :  { %2266 = vmatpush2.msra.mxu0 %v6399_v7  ;;  %v6444_v7 = vld [vmem:[#allocation2 + $0x430] sm:$0xff]  ;;  %v6467_v49 = vld [vmem:[#allocation2 + $0x6b8] sm:$0xff] }
 0x408   :  { %2267 = vmatprep.subr.mxu0 %v6401_v9  ;;  %v6446_v9 = vld [vmem:[#allocation2 + $0x410] sm:$0xff]  ;;  %v6469_v53 = vld [vmem:[#allocation2 + $0x698] sm:$0xff] }
 0x409   :  { %2268 = vmatpush2.msra.mxu0 %v6403_v13  ;;  %v6448_v13 = vld [vmem:[#allocation2 + $0x7f0] sm:$0xff]  ;;  %v6471_v54 = vld [vmem:[#allocation2 + $0x678] sm:$0xff] }
 0x40a   :  { %2270 = vmatmul.mubr.f32.vlgmr.msra.gmra.mxu0 %v7445_v3  ;;  %2347 = vmatprep.subr.mxu0 %v6405_v28  ;;  %v6450_v28 = vld [vmem:[#allocation2 + $0x7d0] sm:$0xff] }
 0x40b   :  { %2348 = vmatpush1.msra.mxu0 %v6406_v16  ;;  %2411 = vmatprep.mubr.f32.mxu0 %v7437_v23  ;;  %v6417_v23 = vld [vmem:[#allocation2 + $0x590] sm:$0xff]  ;;  %v6451_v16 = vld [vmem:[#allocation2 + $0x7b8] sm:$0xff] }
 0x40c   :  { %2349 = vmatprep.subr.mxu0 %v6407_v32  ;;  %v6452_v32 = vld [vmem:[#allocation2 + $0x7b0] sm:$0xff] }
 0x40d   :  { %2350 = vmatpush1.msra.mxu0 %v6409_v20  ;;  %v6454_v20 = vld [vmem:[#allocation2 + $0x790] sm:$0xff] }
 0x40e   :  { %2351 = vmatprep.subr.mxu0 %v6411_v25  ;;  %v6456_v25 = vld [vmem:[#allocation2 + $0x770] sm:$0xff] }
 0x40f   :  { %2352 = vmatpush1.msra.mxu0 %v6413_v29  ;;  %v6458_v29 = vld [vmem:[#allocation2 + $0x750] sm:$0xff] }
 0x410   :  { %2353 = vmatprep.subr.mxu0 %v6415_v33  ;;  %v6460_v33 = vld [vmem:[#allocation2 + $0x730] sm:$0xff] }
 0x411   :  { %2354 = vmatpush1.msra.mxu0 %v6417_v23  ;;  %v6462_v23 = vld [vmem:[#allocation2 + $0x710] sm:$0xff] }
 0x412   :  { %2355 = vmatprep.subr.mxu0 %v6419_v40  ;;  %v6464_v40 = vld [vmem:[#allocation2 + $0x6f0] sm:$0xff] }
 0x413   :  { %2356 = vmatpush1.msra.mxu0 %v6421_v46  ;;  %v6466_v46 = vld [vmem:[#allocation2 + $0x6d0] sm:$0xff] }
 0x414   :  { %2357 = vmatprep.subr.mxu0 %v6423_v50  ;;  %v6468_v50 = vld [vmem:[#allocation2 + $0x6b0] sm:$0xff] }
 0x415   :  { %2358 = vmatpush1.msra.mxu0 %v6425_v45  ;;  %v6470_v45 = vld [vmem:[#allocation2 + $0x690] sm:$0xff] }
 0x416   :  { %2359 = vmatprep.subr.mxu0 %v6427_v56  ;;  %v6472_v56 = vld [vmem:[#allocation2 + $0x670] sm:$0xff] }
 0x417   :  { %2360 = vmatpush1.msra.mxu0 %v6428_v57  ;;  %v6473_v57 = vld [vmem:[#allocation2 + $0x658] sm:$0xff] }
 0x418   :  { %2361 = vmatprep.subr.mxu0 %v6429_v58  ;;  %v6474_v58 = vld [vmem:[#allocation2 + $0x650] sm:$0xff] }
 0x419   :  { %2362 = vmatpush1.msra.mxu0 %v6430_v59  ;;  %v6475_v59 = vld [vmem:[#allocation2 + $0x638] sm:$0xff] }
 0x41a   :  { %2363 = vmatprep.subr.mxu0 %v6431_v61  ;;  %v6476_v61 = vld [vmem:[#allocation2 + $0x630] sm:$0xff] }
 0x41b   :  { %2364 = vmatpush1.msra.mxu0 %v6432_v63  ;;  %v6477_v63 = vld [vmem:[#allocation2 + $0x618] sm:$0xff] }
 0x41c   :  { %2365 = vmatprep.subr.mxu0 %v6433_v19  ;;  %v6478_v19 = vld [vmem:[#allocation2 + $0x610] sm:$0xff] }
 0x41d   :  { %2366 = vmatpush1.msra.mxu0 %v6434_v0  ;;  %v6479_v0 = vld [vmem:[#allocation2 + $0xdf8] sm:$0xff] }
 0x41e   :  { %2367 = vmatprep.subr.mxu0 %v6435_v21  ;;  %v6480_v21 = vld [vmem:[#allocation2 + $0xdf0] sm:$0xff] }
 0x41f   :  { %2368 = vmatpush1.msra.mxu0 %v6436_v44  ;;  %v6481_v44 = vld [vmem:[#allocation2 + $0xdd8] sm:$0xff] }
 0x420   :  { %2369 = vmatprep.subr.mxu0 %v6437_v1  ;;  %v6482_v1 = vld [vmem:[#allocation2 + $0xdd0] sm:$0xff] }
 0x421   :  { %2370 = vmatpush1.msra.mxu0 %v6438_v39  ;;  %v6483_v39 = vld [vmem:[#allocation2 + $0xdb8] sm:$0xff] }
 0x422   :  { %2371 = vmatprep.subr.mxu0 %v6439_v8  ;;  %v6484_v8 = vld [vmem:[#allocation2 + $0xdb0] sm:$0xff] }
 0x423   :  { %2372 = vmatpush1.msra.mxu0 %v6440_v4  ;;  %v6485_v4 = vld [vmem:[#allocation2 + $0xd98] sm:$0xff] }
 0x424   :  { %2373 = vmatprep.subr.mxu0 %v6441_v62  ;;  %v6486_v62 = vld [vmem:[#allocation2 + $0xd90] sm:$0xff] }
 0x425   :  { %2374 = vmatpush1.msra.mxu0 %v6442_v5  ;;  %v6487_v5 = vld [vmem:[#allocation2 + $0xd78] sm:$0xff] }
 0x426   :  { %2375 = vmatprep.subr.mxu0 %v6443_v11  ;;  %v6489_v11 = vld [vmem:[#allocation2 + $0xd58] sm:$0xff] }
 0x427   :  { %2376 = vmatpush1.msra.mxu0 %v6444_v7  ;;  %v6490_v7 = vld [vmem:[#allocation2 + $0xd50] sm:$0xff] }
 0x428   :  { %2377 = vmatprep.subr.mxu0 %v6445_v36  ;;  %v6492_v36 = vld [vmem:[#allocation2 + $0xd30] sm:$0xff] }
 0x429   :  { %2378 = vmatpush1.msra.mxu0 %v6446_v9  ;;  %v6493_v9 = vld [vmem:[#allocation2 + $0xd18] sm:$0xff] }
 0x42a   :  { %2379 = vmatprep.subr.mxu0 %v6447_v12  ;;  %v6494_v12 = vld [vmem:[#allocation2 + $0xd10] sm:$0xff] }
 0x42b   :  { %2380 = vmatpush2.msra.mxu0 %v6448_v13  ;;  %v6495_v13 = vld [vmem:[#allocation2 + $0xcf8] sm:$0xff] }
 0x42c   :  { %2381 = vmatprep.subr.mxu0 %v6449_v15  ;;  %v6496_v15 = vld [vmem:[#allocation2 + $0xcf0] sm:$0xff] }
 0x42d   :  { %2382 = vmatpush2.msra.mxu0 %v6450_v28  ;;  %v6497_v28 = vld [vmem:[#allocation2 + $0xcd8] sm:$0xff] }
 0x42e   :  { %2383 = vmatprep.subr.mxu0 %v6451_v16  ;;  %v6498_v16 = vld [vmem:[#allocation2 + $0xcd0] sm:$0xff] }
 0x42f   :  { %2384 = vmatpush2.msra.mxu0 %v6452_v32  ;;  %v6499_v32 = vld [vmem:[#allocation2 + $0xcb8] sm:$0xff] }
 0x430   :  { %2385 = vmatprep.subr.mxu0 %v6453_v18  ;;  %v6500_v18 = vld [vmem:[#allocation2 + $0xcb0] sm:$0xff] }
 0x431   :  { %2386 = vmatpush2.msra.mxu0 %v6454_v20  ;;  %v6501_v20 = vld [vmem:[#allocation2 + $0xc98] sm:$0xff] }
 0x432   :  { %2387 = vmatprep.subr.mxu0 %v6455_v22  ;;  %v6502_v22 = vld [vmem:[#allocation2 + $0xc90] sm:$0xff] }
 0x433   :  { %2388 = vmatpush2.msra.mxu0 %v6456_v25  ;;  %v6503_v25 = vld [vmem:[#allocation2 + $0xc78] sm:$0xff] }
 0x434   :  { %2389 = vmatprep.subr.mxu0 %v6457_v26  ;;  %v6504_v26 = vld [vmem:[#allocation2 + $0xc70] sm:$0xff] }
 0x435   :  { %2390 = vmatpush2.msra.mxu0 %v6458_v29  ;;  %v6505_v29 = vld [vmem:[#allocation2 + $0xc58] sm:$0xff] }
 0x436   :  { %2391 = vmatprep.subr.mxu0 %v6459_v31  ;;  %v6506_v31 = vld [vmem:[#allocation2 + $0xc50] sm:$0xff] }
 0x437   :  { %2392 = vmatpush2.msra.mxu0 %v6460_v33  ;;  %v6507_v33 = vld [vmem:[#allocation2 + $0xc38] sm:$0xff] }
 0x438   :  { %2393 = vmatprep.subr.mxu0 %v6461_v35  ;;  %v6508_v35 = vld [vmem:[#allocation2 + $0xc30] sm:$0xff] }
 0x439   :  { %2394 = vmatpush2.msra.mxu0 %v6462_v23  ;;  %v6509_v23 = vld [vmem:[#allocation2 + $0xc18] sm:$0xff] }
 0x43a   :  { %2395 = vmatprep.subr.mxu0 %v6463_v38  ;;  %v6510_v38 = vld [vmem:[#allocation2 + $0xc10] sm:$0xff] }
 0x43b   :  { %2396 = vmatpush2.msra.mxu0 %v6464_v40  ;;  %v6511_v40 = vld [vmem:[#allocation2 + $0xff8] sm:$0xff] }
 0x43c   :  { %2397 = vmatprep.subr.mxu0 %v6465_v43  ;;  %v6512_v43 = vld [vmem:[#allocation2 + $0xff0] sm:$0xff] }
 0x43d   :  { %2398 = vmatpush2.msra.mxu0 %v6466_v46  ;;  %v6513_v46 = vld [vmem:[#allocation2 + $0xfd8] sm:$0xff] }
 0x43e   :  { %2399 = vmatprep.subr.mxu0 %v6467_v49  ;;  %v6514_v49 = vld [vmem:[#allocation2 + $0xfd0] sm:$0xff] }
 0x43f   :  { %2400 = vmatpush2.msra.mxu0 %v6468_v50  ;;  %v6515_v50 = vld [vmem:[#allocation2 + $0xfb8] sm:$0xff] }
 0x440   :  { %2401 = vmatprep.subr.mxu0 %v6469_v53  ;;  %v6516_v53 = vld [vmem:[#allocation2 + $0xfb0] sm:$0xff] }
 0x441   :  { %2402 = vmatpush2.msra.mxu0 %v6470_v45  ;;  %v6517_v45 = vld [vmem:[#allocation2 + $0xf98] sm:$0xff] }
 0x442   :  { %2403 = vmatprep.subr.mxu0 %v6471_v54  ;;  %v6518_v54 = vld [vmem:[#allocation2 + $0xf90] sm:$0xff] }
 0x443   :  { %2404 = vmatpush2.msra.mxu0 %v6472_v56  ;;  %v6519_v56 = vld [vmem:[#allocation2 + $0xf78] sm:$0xff] }
 0x444   :  { %2405 = vmatprep.subr.mxu0 %v6473_v57  ;;  %v6520_v57 = vld [vmem:[#allocation2 + $0xf70] sm:$0xff] }
 0x445   :  { %2406 = vmatpush2.msra.mxu0 %v6474_v58  ;;  %v6521_v58 = vld [vmem:[#allocation2 + $0xf58] sm:$0xff] }
 0x446   :  { %2407 = vmatprep.subr.mxu0 %v6475_v59  ;;  %v6522_v59 = vld [vmem:[#allocation2 + $0xf50] sm:$0xff] }
 0x447   :  { %2408 = vmatpush2.msra.mxu0 %v6476_v61  ;;  %v6523_v61 = vld [vmem:[#allocation2 + $0xf38] sm:$0xff] }
 0x448   :  { %2409 = vmatprep.subr.mxu0 %v6477_v63  ;;  %v6524_v63 = vld [vmem:[#allocation2 + $0xf30] sm:$0xff] }
 0x449   :  { %2410 = vmatpush2.msra.mxu0 %v6478_v19  ;;  %v6525_v19 = vld [vmem:[#allocation2 + $0xf18] sm:$0xff] }
 0x44a   :  { %2412 = vmatmul.mubr.f32.vlgmr.msra.gmra.mxu0 %v7427_v10  ;;  %2489 = vmatprep.subr.mxu0 %v6479_v0  ;;  %v6488_v10 = vld [vmem:[#allocation2 + $0xd70] sm:$0xff] }
 0x44b   :  { %2490 = vmatpush1.msra.mxu0 %v6480_v21  ;;  %2553 = vmatprep.mubr.f32.mxu0 %v7449_v52  ;;  %v6491_v52 = vld [vmem:[#allocation2 + $0xd38] sm:$0xff]  ;;  %v6526_v0 = vld [vmem:[#allocation2 + $0xf10] sm:$0xff] }
 0x44c   :  { %2491 = vmatprep.subr.mxu0 %v6481_v44  ;;  %v6527_v21 = vld [vmem:[#allocation2 + $0xef8] sm:$0xff]  ;;  %v6528_v44 = vld [vmem:[#allocation2 + $0xef0] sm:$0xff] }
 0x44d   :  { %2492 = vmatpush1.msra.mxu0 %v6482_v1  ;;  %v6529_v1 = vld [vmem:[#allocation2 + $0xed8] sm:$0xff] }
 0x44e   :  { %2493 = vmatprep.subr.mxu0 %v6483_v39  ;;  %v6530_v39 = vld [vmem:[#allocation2 + $0xed0] sm:$0xff] }
 0x44f   :  { %2494 = vmatpush1.msra.mxu0 %v6484_v8  ;;  %v6531_v8 = vld [vmem:[#allocation2 + $0xeb8] sm:$0xff] }
 0x450   :  { %2495 = vmatprep.subr.mxu0 %v6485_v4  ;;  %v6532_v4 = vld [vmem:[#allocation2 + $0xeb0] sm:$0xff] }
 0x451   :  { %2496 = vmatpush1.msra.mxu0 %v6486_v62  ;;  %v6533_v62 = vld [vmem:[#allocation2 + $0xe98] sm:$0xff] }
 0x452   :  { %2497 = vmatprep.subr.mxu0 %v6487_v5  ;;  %v6534_v5 = vld [vmem:[#allocation2 + $0xe90] sm:$0xff] }
 0x453   :  { %2498 = vmatpush1.msra.mxu0 %v6488_v10  ;;  %v6535_v10 = vld [vmem:[#allocation2 + $0xe78] sm:$0xff] }
 0x454   :  { %2499 = vmatprep.subr.mxu0 %v6489_v11  ;;  %v6536_v11 = vld [vmem:[#allocation2 + $0xe70] sm:$0xff] }
 0x455   :  { %2500 = vmatpush1.msra.mxu0 %v6490_v7  ;;  %v6537_v7 = vld [vmem:[#allocation2 + $0xe58] sm:$0xff] }
 0x456   :  { %2501 = vmatprep.subr.mxu0 %v6491_v52  ;;  %v6538_v52 = vld [vmem:[#allocation2 + $0xe50] sm:$0xff] }
 0x457   :  { %2502 = vmatpush1.msra.mxu0 %v6492_v36  ;;  %v6539_v36 = vld [vmem:[#allocation2 + $0xe38] sm:$0xff] }
 0x458   :  { %2503 = vmatprep.subr.mxu0 %v6493_v9  ;;  %v6540_v9 = vld [vmem:[#allocation2 + $0xe30] sm:$0xff] }
 0x459   :  { %2504 = vmatpush1.msra.mxu0 %v6494_v12  ;;  %v6541_v12 = vld [vmem:[#allocation2 + $0xe18] sm:$0xff] }
 0x45a   :  { %2505 = vmatprep.subr.mxu0 %v6495_v13  ;;  %v6542_v13 = vld [vmem:[#allocation2 + $0xe10] sm:$0xff] }
 0x45b   :  { %2506 = vmatpush1.msra.mxu0 %v6496_v15  ;;  %v6543_v15 = vld [vmem:[#allocation6 + $0x2f8] sm:$0xff] }
 0x45c   :  { %2507 = vmatprep.subr.mxu0 %v6497_v28  ;;  %v6544_v28 = vld [vmem:[#allocation6 + $0x2f0] sm:$0xff] }
 0x45d   :  { %2508 = vmatpush1.msra.mxu0 %v6498_v16  ;;  %v6545_v16 = vld [vmem:[#allocation6 + $0x2e8] sm:$0xff] }
 0x45e   :  { %2509 = vmatprep.subr.mxu0 %v6499_v32  ;;  %v6546_v32 = vld [vmem:[#allocation6 + $0x2e0] sm:$0xff] }
 0x45f   :  { %2510 = vmatpush1.msra.mxu0 %v6500_v18  ;;  %v6547_v18 = vld [vmem:[#allocation6 + $0x2d8] sm:$0xff] }
 0x460   :  { %2511 = vmatprep.subr.mxu0 %v6501_v20  ;;  %v6548_v20 = vld [vmem:[#allocation6 + $0x2d0] sm:$0xff] }
 0x461   :  { %2512 = vmatpush1.msra.mxu0 %v6502_v22  ;;  %v6549_v22 = vld [vmem:[#allocation6 + $0x2c8] sm:$0xff] }
 0x462   :  { %2513 = vmatprep.subr.mxu0 %v6503_v25  ;;  %v6550_v25 = vld [vmem:[#allocation6 + $0x2c0] sm:$0xff] }
 0x463   :  { %2514 = vmatpush1.msra.mxu0 %v6504_v26  ;;  %v6551_v26 = vld [vmem:[#allocation6 + $0x2b8] sm:$0xff] }
 0x464   :  { %2515 = vmatprep.subr.mxu0 %v6505_v29  ;;  %v6552_v29 = vld [vmem:[#allocation6 + $0x2b0] sm:$0xff] }
 0x465   :  { %2516 = vmatpush1.msra.mxu0 %v6506_v31  ;;  %v6554_v31 = vld [vmem:[#allocation6 + $0x2a0] sm:$0xff] }
 0x466   :  { %2517 = vmatprep.subr.mxu0 %v6507_v33  ;;  %v6555_v33 = vld [vmem:[#allocation6 + $0x298] sm:$0xff] }
 0x467   :  { %2518 = vmatpush1.msra.mxu0 %v6508_v35  ;;  %v6556_v35 = vld [vmem:[#allocation6 + $0x290] sm:$0xff] }
 0x468   :  { %2519 = vmatprep.subr.mxu0 %v6509_v23  ;;  %v6557_v23 = vld [vmem:[#allocation6 + $0x288] sm:$0xff] }
 0x469   :  { %2520 = vmatpush1.msra.mxu0 %v6510_v38  ;;  %v6558_v38 = vld [vmem:[#allocation6 + $0x280] sm:$0xff] }
 0x46a   :  { %2521 = vmatprep.subr.mxu0 %v6511_v40  ;;  %v6559_v40 = vld [vmem:[#allocation6 + $0x278] sm:$0xff] }
 0x46b   :  { %2522 = vmatpush2.msra.mxu0 %v6512_v43  ;;  %v6560_v43 = vld [vmem:[#allocation6 + $0x270] sm:$0xff] }
 0x46c   :  { %2523 = vmatprep.subr.mxu0 %v6513_v46  ;;  %v6561_v46 = vld [vmem:[#allocation6 + $0x268] sm:$0xff] }
 0x46d   :  { %2524 = vmatpush2.msra.mxu0 %v6514_v49  ;;  %v6562_v49 = vld [vmem:[#allocation6 + $0x260] sm:$0xff] }
 0x46e   :  { %2525 = vmatprep.subr.mxu0 %v6515_v50  ;;  %v6563_v50 = vld [vmem:[#allocation6 + $0x258] sm:$0xff] }
 0x46f   :  { %2526 = vmatpush2.msra.mxu0 %v6516_v53  ;;  %v6564_v53 = vld [vmem:[#allocation6 + $0x250] sm:$0xff] }
 0x470   :  { %2527 = vmatprep.subr.mxu0 %v6517_v45  ;;  %v6565_v45 = vld [vmem:[#allocation6 + $0x248] sm:$0xff] }
 0x471   :  { %2528 = vmatpush2.msra.mxu0 %v6518_v54  ;;  %v6566_v54 = vld [vmem:[#allocation6 + $0x240] sm:$0xff] }
 0x472   :  { %2529 = vmatprep.subr.mxu0 %v6519_v56  ;;  %v6567_v56 = vld [vmem:[#allocation6 + $0x238] sm:$0xff] }
 0x473   :  { %2530 = vmatpush2.msra.mxu0 %v6520_v57  ;;  %v6568_v57 = vld [vmem:[#allocation6 + $0x230] sm:$0xff] }
 0x474   :  { %2531 = vmatprep.subr.mxu0 %v6521_v58  ;;  %v6569_v58 = vld [vmem:[#allocation6 + $0x228] sm:$0xff] }
 0x475   :  { %2532 = vmatpush2.msra.mxu0 %v6522_v59  ;;  %v6570_v59 = vld [vmem:[#allocation6 + $0x220] sm:$0xff] }
 0x476   :  { %2533 = vmatprep.subr.mxu0 %v6523_v61  ;;  %v6571_v61 = vld [vmem:[#allocation6 + $0x218] sm:$0xff] }
 0x477   :  { %2534 = vmatpush2.msra.mxu0 %v6524_v63  ;;  %v6572_v63 = vld [vmem:[#allocation6 + $0x210] sm:$0xff] }
 0x478   :  { %2535 = vmatprep.subr.mxu0 %v6525_v19  ;;  %v6573_v19 = vld [vmem:[#allocation6 + $0x208] sm:$0xff] }
 0x479   :  { %2536 = vmatpush2.msra.mxu0 %v6526_v0  ;;  %v6574_v0 = vld [vmem:[#allocation6 + $0x200] sm:$0xff] }
 0x47a   :  { %2537 = vmatprep.subr.mxu0 %v6527_v21  ;;  %v6575_v21 = vld [vmem:[#allocation6 + $0x3f8] sm:$0xff] }
 0x47b   :  { %2538 = vmatpush2.msra.mxu0 %v6528_v44  ;;  %v6576_v44 = vld [vmem:[#allocation6 + $0x3f0] sm:$0xff] }
 0x47c   :  { %2539 = vmatprep.subr.mxu0 %v6529_v1  ;;  %v6577_v1 = vld [vmem:[#allocation6 + $0x3e8] sm:$0xff] }
 0x47d   :  { %2540 = vmatpush2.msra.mxu0 %v6530_v39  ;;  %v6578_v39 = vld [vmem:[#allocation6 + $0x3e0] sm:$0xff] }
 0x47e   :  { %2541 = vmatprep.subr.mxu0 %v6531_v8  ;;  %v6579_v8 = vld [vmem:[#allocation6 + $0x3d8] sm:$0xff] }
 0x47f   :  { %2542 = vmatpush2.msra.mxu0 %v6532_v4  ;;  %v6580_v4 = vld [vmem:[#allocation6 + $0x3d0] sm:$0xff] }
 0x480   :  { %2543 = vmatprep.subr.mxu0 %v6533_v62  ;;  %v6581_v62 = vld [vmem:[#allocation6 + $0x3c8] sm:$0xff] }
 0x481   :  { %2544 = vmatpush2.msra.mxu0 %v6534_v5  ;;  %v6582_v5 = vld [vmem:[#allocation6 + $0x3c0] sm:$0xff] }
 0x482   :  { %2545 = vmatprep.subr.mxu0 %v6535_v10  ;;  %v6583_v10 = vld [vmem:[#allocation6 + $0x3b8] sm:$0xff] }
 0x483   :  { %2546 = vmatpush2.msra.mxu0 %v6536_v11  ;;  %v6584_v11 = vld [vmem:[#allocation6 + $0x3b0] sm:$0xff] }
 0x484   :  { %2547 = vmatprep.subr.mxu0 %v6537_v7  ;;  %v6585_v7 = vld [vmem:[#allocation6 + $0x3a8] sm:$0xff] }
 0x485   :  { %2548 = vmatpush2.msra.mxu0 %v6538_v52  ;;  %v6586_v52 = vld [vmem:[#allocation6 + $0x3a0] sm:$0xff] }
 0x486   :  { %2549 = vmatprep.subr.mxu0 %v6539_v36  ;;  %v6587_v36 = vld [vmem:[#allocation6 + $0x398] sm:$0xff] }
 0x487   :  { %2550 = vmatpush2.msra.mxu0 %v6540_v9  ;;  %v6588_v9 = vld [vmem:[#allocation6 + $0x390] sm:$0xff] }
 0x488   :  { %2551 = vmatprep.subr.mxu0 %v6541_v12  ;;  %v6589_v12 = vld [vmem:[#allocation6 + $0x388] sm:$0xff] }
 0x489   :  { %2552 = vmatpush2.msra.mxu0 %v6542_v13  ;;  %v6590_v13 = vld [vmem:[#allocation6 + $0x380] sm:$0xff] }
 0x48a   :  { %2554 = vmatmul.mubr.f32.vlgmr.msra.gmra.mxu0 %v7445_v3  ;;  %2635 = vmatprep.subr.mxu0 %v6543_v15  ;;  %v6553_v3 = vld [vmem:[#allocation6 + $0x2a8] sm:$0xff]  ;;  %v7460_v15 = vpop.f32.mrf.mxu0 }
 0x48b   :  { %2636 = vmatpush1.msra.mxu0 %v6544_v28  ;;  %v6591_v28 = vld [vmem:[#allocation6 + $0x378] sm:$0xff] }
 0x48c   :  { %2637 = vmatprep.subr.mxu0 %v6545_v16  ;;  %v6592_v16 = vld [vmem:[#allocation6 + $0x370] sm:$0xff] }
 0x48d   :  { %2638 = vmatpush1.msra.mxu0 %v6546_v32  ;;  %v2058_v32 = vpop.f32.mrf.mxu1 }
 0x48e   :  { %2639 = vmatprep.subr.mxu0 %v6547_v18  ;;  %v6593_v18 = vld [vmem:[#allocation6 + $0x368] sm:$0xff] }
 0x48f   :  { %2640 = vmatpush1.msra.mxu0 %v6548_v20  ;;  %v6594_v20 = vld [vmem:[#allocation6 + $0x360] sm:$0xff] }
 0x490   :  { %2641 = vmatprep.subr.mxu0 %v6549_v22  ;;  %v7462_v22 = vpop.f32.mrf.mxu0 }
 0x491   :  { %2642 = vmatpush1.msra.mxu0 %v6550_v25  ;;  %v6595_v25 = vld [vmem:[#allocation6 + $0x358] sm:$0xff] }
 0x492   :  { %2643 = vmatprep.subr.mxu0 %v6551_v26  ;;  %v6596_v26 = vld [vmem:[#allocation6 + $0x350] sm:$0xff] }
 0x493   :  { %2644 = vmatpush1.msra.mxu0 %v6552_v29  ;;  %v2060_v29 = vpop.f32.mrf.mxu1 }
 0x494   :  { %2645 = vmatprep.subr.mxu0 %v6553_v3  ;;  %v2129_v3 = vpop.f32.mrf.mxu0 }
 0x495   :  { %2646 = vmatpush1.msra.mxu0 %v6554_v31  ;;  %v6597_v31 = vld [vmem:[#allocation6 + $0x348] sm:$0xff] }
 0x496   :  { %2647 = vmatprep.subr.mxu0 %v6555_v33  ;;  %v6598_v33 = vld [vmem:[#allocation6 + $0x340] sm:$0xff] }
 0x497   :  { %2648 = vmatpush1.msra.mxu0 %v6556_v35  ;;  %v2059_v35 = vadd.f32 %v2058_v32, %v7352_v55  ;;  %v6605_v55 = vld [vmem:[#allocation6 + $0x308] sm:$0xff]  ;;  %v6622_v32 = vld [vmem:[#allocation9 + $0x78] sm:$0xff] }
 0x498   :  { %2649 = vmatprep.subr.mxu0 %v6557_v23  ;;  %v6599_v23 = vld [vmem:[#allocation6 + $0x338] sm:$0xff] }
 0x499   :  { %2650 = vmatpush1.msra.mxu0 %v6558_v38  ;;  %v2061_v38 = vadd.f32 %v2060_v29, %v7356_v60  ;;  %v6627_v29 = vld [vmem:[#allocation9 + $0x50] sm:$0xff] }
 0x49a   :  { %2651 = vmatprep.subr.mxu0 %v6559_v40  ;;  %v6600_v40 = vld [vmem:[#allocation6 + $0x330] sm:$0xff] }
 0x49b   :  { %2652 = vmatpush1.msra.mxu0 %v6560_v43  ;;  %v2131_v43 = vpop.f32.mrf.mxu0 }
 0x49c   :  { %2653 = vmatprep.subr.mxu0 %v6561_v46  ;;  %v2200_v46 = vpop.f32.mrf.mxu1 }
 0x49d   :  { %2654 = vmatpush1.msra.mxu0 %v6562_v49  ;;  %v6601_v49 = vld [vmem:[#allocation6 + $0x328] sm:$0xff] }
 0x49e   :  { %2655 = vmatprep.subr.mxu0 %v6563_v50  ;;  %v6602_v50 = vld [vmem:[#allocation6 + $0x320] sm:$0xff] }
 0x49f   :  { %2656 = vmatpush1.msra.mxu0 %v6564_v53  ;;  %v2130_v53 = vadd.f32 %v2129_v3, %v2059_v35  ;;  %v6628_v3 = vld [vmem:[#allocation9 + $0x48] sm:$0xff]  ;;  %v6631_v35 = vld [vmem:[#allocation9 + $0x30] sm:$0xff] }
 0x4a0   :  { %2657 = vmatprep.subr.mxu0 %v6565_v45  ;;  %v6603_v45 = vld [vmem:[#allocation6 + $0x318] sm:$0xff] }
 0x4a1   :  { %2658 = vmatpush1.msra.mxu0 %v6566_v54  ;;  %v2132_v54 = vadd.f32 %v2131_v43, %v2061_v38  ;;  %v2201_v60 = vadd.f32 %v2200_v46, %v2130_v53  ;;  %v6633_v38 = vld [vmem:[#allocation9 + $0x20] sm:$0xff]  ;;  %v6635_v43 = vld [vmem:[#allocation9 + $0x10] sm:$0xff]  ;;  %v6636_v46 = vld [vmem:[#allocation9 + $0x8] sm:$0xff] }
 0x4a2   :  { %2659 = vmatprep.subr.mxu0 %v6567_v56  ;;  %v6604_v56 = vld [vmem:[#allocation6 + $0x310] sm:$0xff] }
 0x4a3   :  { %2660 = vmatpush1.msra.mxu0 %v6568_v57  ;;  %v2202_v57 = vpop.f32.mrf.mxu1  ;;  %v6639_v53 = vld [vmem:[#allocation9 + $0x1f0] sm:$0xff] }
 0x4a4   :  { %2661 = vmatprep.subr.mxu0 %v6569_v58  ;;  %v6606_v58 = vld [vmem:[#allocation6 + $0x300] sm:$0xff] }
 0x4a5   :  { %2662 = vmatpush1.msra.mxu0 %v6570_v59 }
 0x4a6   :  { %2663 = vmatprep.subr.mxu0 %v6571_v61  ;;  %v2203_v61 = vadd.f32 %v2202_v57, %v2132_v54  ;;  %v6641_v54 = vld [vmem:[#allocation9 + $0x1e0] sm:$0xff]  ;;  %v6643_v57 = vld [vmem:[#allocation9 + $0x1d0] sm:$0xff] }
 0x4a7   :  { %2664 = vmatpush1.msra.mxu0 %v6572_v63 }
 0x4a8   :  { %2665 = vmatprep.subr.mxu0 %v6573_v19 }
 0x4a9   :  { %2666 = vmatpush1.msra.mxu0 %v6574_v0 }
 0x4aa   :  { %2667 = vmatprep.subr.mxu0 %v6575_v21 }
 0x4ab   :  { %2668 = vmatpush2.msra.mxu0 %v6576_v44 }
 0x4ac   :  { %2669 = vmatprep.subr.mxu0 %v6577_v1  ;;  %v2912_v1 = vld [vmem:[#allocation21 + $0x3c8] sm:$0xff] }
 0x4ad   :  { %2670 = vmatpush2.msra.mxu0 %v6578_v39  ;;  %v6607_v39 = vld [vmem:[#allocation9 + $0xf0] sm:$0xff] }
 0x4ae   :  { %2671 = vmatprep.subr.mxu0 %v6579_v8  ;;  %v6608_v8 = vld [vmem:[#allocation9 + $0xe8] sm:$0xff] }
 0x4af   :  { %2672 = vmatpush2.msra.mxu0 %v6580_v4  ;;  %v6609_v4 = vld [vmem:[#allocation9 + $0xe0] sm:$0xff] }
 0x4b0   :  { %2673 = vmatprep.subr.mxu0 %v6581_v62  ;;  %v6610_v62 = vld [vmem:[#allocation9 + $0xd8] sm:$0xff] }
 0x4b1   :  { %2674 = vmatpush2.msra.mxu0 %v6582_v5  ;;  %v6611_v5 = vld [vmem:[#allocation9 + $0xd0] sm:$0xff] }
 0x4b2   :  { %2675 = vmatprep.subr.mxu0 %v6583_v10  ;;  %v6612_v10 = vld [vmem:[#allocation9 + $0xc8] sm:$0xff] }
 0x4b3   :  { %2676 = vmatpush2.msra.mxu0 %v6584_v11  ;;  %v6613_v11 = vld [vmem:[#allocation9 + $0xc0] sm:$0xff] }
 0x4b4   :  { %2677 = vmatprep.subr.mxu0 %v6585_v7  ;;  %v6614_v7 = vld [vmem:[#allocation9 + $0xb8] sm:$0xff] }
 0x4b5   :  { %2678 = vmatpush2.msra.mxu0 %v6586_v52  ;;  %v6615_v52 = vld [vmem:[#allocation9 + $0xb0] sm:$0xff] }
 0x4b6   :  { %2679 = vmatprep.subr.mxu0 %v6587_v36  ;;  %v6616_v36 = vld [vmem:[#allocation9 + $0xa8] sm:$0xff] }
 0x4b7   :  { %2680 = vmatpush2.msra.mxu0 %v6588_v9  ;;  %v6617_v9 = vld [vmem:[#allocation9 + $0xa0] sm:$0xff] }
 0x4b8   :  { %2681 = vmatprep.subr.mxu0 %v6589_v12  ;;  %v6618_v12 = vld [vmem:[#allocation9 + $0x98] sm:$0xff] }
 0x4b9   :  { %2682 = vmatpush2.msra.mxu0 %v6590_v13  ;;  %v6619_v13 = vld [vmem:[#allocation9 + $0x90] sm:$0xff] }
 0x4ba   :  { %2683 = vmatprep.subr.mxu0 %v6591_v28  ;;  %v6620_v28 = vld [vmem:[#allocation9 + $0x88] sm:$0xff] }
 0x4bb   :  { %2684 = vmatpush2.msra.mxu0 %v6592_v16  ;;  %v6621_v16 = vld [vmem:[#allocation9 + $0x80] sm:$0xff] }
 0x4bc   :  { %2685 = vmatprep.subr.mxu0 %v6593_v18  ;;  %v6623_v18 = vld [vmem:[#allocation9 + $0x70] sm:$0xff] }
 0x4bd   :  { %2686 = vmatpush2.msra.mxu0 %v6594_v20  ;;  %v6624_v20 = vld [vmem:[#allocation9 + $0x68] sm:$0xff] }
 0x4be   :  { %2687 = vmatprep.subr.mxu0 %v6595_v25  ;;  %v6625_v25 = vld [vmem:[#allocation9 + $0x60] sm:$0xff] }
 0x4bf   :  { %2688 = vmatpush2.msra.mxu0 %v6596_v26  ;;  %v6626_v26 = vld [vmem:[#allocation9 + $0x58] sm:$0xff] }
 0x4c0   :  { %2689 = vmatprep.subr.mxu0 %v6597_v31  ;;  %v6629_v31 = vld [vmem:[#allocation9 + $0x40] sm:$0xff] }
 0x4c1   :  { %2690 = vmatpush2.msra.mxu0 %v6598_v33  ;;  %v6630_v33 = vld [vmem:[#allocation9 + $0x38] sm:$0xff] }
 0x4c2   :  { %2691 = vmatprep.subr.mxu0 %v6599_v23  ;;  %v6632_v23 = vld [vmem:[#allocation9 + $0x28] sm:$0xff] }
 0x4c3   :  { %2692 = vmatpush2.msra.mxu0 %v6600_v40  ;;  %v6634_v40 = vld [vmem:[#allocation9 + $0x18] sm:$0xff] }
 0x4c4   :  { %2693 = vmatprep.subr.mxu0 %v6601_v49  ;;  %v6637_v49 = vld [vmem:[#allocation9] sm:$0xff] }
 0x4c5   :  { %2694 = vmatpush2.msra.mxu0 %v6602_v50  ;;  %v6638_v50 = vld [vmem:[#allocation9 + $0x1f8] sm:$0xff] }
 0x4c6   :  { %2695 = vmatprep.subr.mxu0 %v6603_v45  ;;  %v6640_v45 = vld [vmem:[#allocation9 + $0x1e8] sm:$0xff] }
 0x4c7   :  { %2696 = vmatpush2.msra.mxu0 %v6604_v56  ;;  %v6642_v56 = vld [vmem:[#allocation9 + $0x1d8] sm:$0xff] }
 0x4c8   :  { %2697 = vmatprep.subr.mxu0 %v6605_v55  ;;  %v6644_v55 = vld [vmem:[#allocation9 + $0x1c8] sm:$0xff] }
 0x4c9   :  { %2698 = vmatpush2.msra.mxu0 %v6606_v58  ;;  %v6645_v58 = vld [vmem:[#allocation9 + $0x1c0] sm:$0xff] }
 0x4ca   :  { %v2271_v59 = vpop.f32.mrf.mxu0  ;;  %3089 = vmatprep.subr.mxu0 %v2912_v1  ;;  %v6654_v1 = vld [vmem:[#allocation9 + $0x178] sm:$0xff] }
 0x4cb   :  { %v2272_v63 = vadd.f32 %v2271_v59, %v2201_v60  ;;  %v6646_v60 = vld [vmem:[#allocation9 + $0x1b8] sm:$0xff]  ;;  %v6647_v59 = vld [vmem:[#allocation9 + $0x1b0] sm:$0xff] }
 0x4cc   :  { %v2273_v19 = vpop.f32.mrf.mxu0 }
 0x4cd   :  { %v2274_v0 = vadd.f32 %v2273_v19, %v2203_v61  ;;  %v2560_v44 = vmax.f32 %v2272_v63, 0.0  ;;  %v6648_v61 = vld [vmem:[#allocation9 + $0x1a8] sm:$0xff]  ;;  %v6649_v63 = vld [vmem:[#allocation9 + $0x1a0] sm:$0xff]  ;;  %v6650_v19 = vld [vmem:[#allocation9 + $0x198] sm:$0xff] }
 0x4cf   :  { %v2561_v21 = vmax.f32 %v2274_v0, 0.0  ;;  %v6651_v0 = vld [vmem:[#allocation9 + $0x190] sm:$0xff] }
 0x4d1   :  { %2628 = vmatprep.mubr.f32.mxu1 %v2561_v21  ;;  %v6652_v21 = vld [vmem:[#allocation9 + $0x188] sm:$0xff] }
 0x4d2   :  { %2629 = vmatmul.mubr.f32.vlgmr.msra.gmra.mxu1 %v2560_v44  ;;  %v6653_v44 = vld [vmem:[#allocation9 + $0x180] sm:$0xff] }
 0x4d3   :  { %2713 = vmatpush1.msra.mxu1 %v6607_v39  ;;  %v6655_v39 = vld [vmem:[#allocation9 + $0x170] sm:$0xff] }
 0x4d4   :  { %2714 = vmatprep.subr.mxu1 %v6608_v8  ;;  %v6656_v8 = vld [vmem:[#allocation9 + $0x168] sm:$0xff] }
 0x4d5   :  { %2715 = vmatpush1.msra.mxu1 %v6609_v4  ;;  %v6657_v4 = vld [vmem:[#allocation9 + $0x160] sm:$0xff] }
 0x4d6   :  { %2716 = vmatprep.subr.mxu1 %v6610_v62  ;;  %v6658_v62 = vld [vmem:[#allocation9 + $0x158] sm:$0xff] }
 0x4d7   :  { %2717 = vmatpush1.msra.mxu1 %v6611_v5  ;;  %v6659_v5 = vld [vmem:[#allocation9 + $0x150] sm:$0xff] }
 0x4d8   :  { %2718 = vmatprep.subr.mxu1 %v6612_v10  ;;  %v6660_v10 = vld [vmem:[#allocation9 + $0x148] sm:$0xff] }
 0x4d9   :  { %2719 = vmatpush1.msra.mxu1 %v6613_v11  ;;  %v6661_v11 = vld [vmem:[#allocation9 + $0x140] sm:$0xff] }
 0x4da   :  { %2720 = vmatprep.subr.mxu1 %v6614_v7  ;;  %v6662_v7 = vld [vmem:[#allocation9 + $0x138] sm:$0xff] }
 0x4db   :  { %2721 = vmatpush1.msra.mxu1 %v6615_v52  ;;  %v6663_v52 = vld [vmem:[#allocation9 + $0x130] sm:$0xff] }
 0x4dc   :  { %2722 = vmatprep.subr.mxu1 %v6616_v36  ;;  %v6664_v36 = vld [vmem:[#allocation9 + $0x128] sm:$0xff] }
 0x4dd   :  { %2723 = vmatpush1.msra.mxu1 %v6617_v9  ;;  %v6665_v9 = vld [vmem:[#allocation9 + $0x120] sm:$0xff] }
 0x4de   :  { %2724 = vmatprep.subr.mxu1 %v6618_v12  ;;  %v6666_v12 = vld [vmem:[#allocation9 + $0x118] sm:$0xff] }
 0x4df   :  { %2725 = vmatpush1.msra.mxu1 %v6619_v13  ;;  %v6667_v13 = vld [vmem:[#allocation9 + $0x110] sm:$0xff] }
 0x4e0   :  { %2726 = vmatprep.subr.mxu1 %v6620_v28  ;;  %v6668_v28 = vld [vmem:[#allocation9 + $0x108] sm:$0xff] }
 0x4e1   :  { %2727 = vmatpush1.msra.mxu1 %v6621_v16  ;;  %v6669_v16 = vld [vmem:[#allocation9 + $0x100] sm:$0xff] }
 0x4e2   :  { %2728 = vmatprep.subr.mxu1 %v6622_v32  ;;  %v2342_v32 = vpop.f32.mrf.mxu1 }
 0x4e3   :  { %2729 = vmatpush1.msra.mxu1 %v6623_v18  ;;  %v7466_v18 = vld [vmem:[#allocation10] sm:$0x3] }
 0x4e4   :  { %2730 = vmatprep.subr.mxu1 %v6624_v20  ;;  %v2344_v20 = vpop.f32.mrf.mxu1 }
 0x4e5   :  { %2731 = vmatpush1.msra.mxu1 %v6625_v25 }
 0x4e6   :  { %2732 = vmatprep.subr.mxu1 %v6626_v26  ;;  %v7470_v26 = vrot.slane %v7466_v18, %v7348_v48 }
 0x4e7   :  { %2733 = vmatpush1.msra.mxu1 %v6627_v29  ;;  %v2343_v29 = vadd.f32 %v2342_v32, %v7368_v34  ;;  %v2816_v32 = vld [vmem:[#allocation21 + $0xc8] sm:$0xff] }
 0x4e8   :  { %2734 = vmatprep.subr.mxu1 %v6628_v3  ;;  %v2345_v3 = vadd.f32 %v2344_v20, %v7372_v37  ;;  %v2815_v20 = vld [vmem:[#allocation21 + $0xc0] sm:$0xff] }
 0x4e9   :  { %2735 = vmatpush1.msra.mxu1 %v6629_v31 }
 0x4ea   :  { %2736 = vmatprep.subr.mxu1 %v6630_v33  ;;  %v2484_v33 = vpop.f32.mrf.mxu1 }
 0x4eb   :  { %2737 = vmatpush1.msra.mxu1 %v6631_v35  ;;  %v1915_v35 = vadd.f32 %v7462_v22, %v7470_v26 }
 0x4ec   :  { %2738 = vmatprep.subr.mxu1 %v6632_v23 }
 0x4ed   :  { %2739 = vmatpush1.msra.mxu1 %v6633_v38 }
 0x4ee   :  { %2740 = vmatprep.subr.mxu1 %v6634_v40  ;;  %v7476_v40 = vld [vmem:[#allocation15] sm:$0x3] }
 0x4ef   :  { %2741 = vmatpush1.msra.mxu1 %v6635_v43  ;;  %v2486_v43 = vpop.f32.mrf.mxu1 }
 0x4f0   :  { %2742 = vmatprep.subr.mxu1 %v6636_v46  ;;  %v1918_v46 = vmax.f32 %v1915_v35, 0.0  ;;  %v2791_v35 = vld [vmem:[#allocation21] sm:$0xff] }
 0x4f1   :  { %2743 = vmatpush1.msra.mxu1 %v6637_v49  ;;  %v7480_v49 = vrot.slane %v7476_v40, %v7348_v48 }
 0x4f2   :  { %2744 = vmatprep.subr.mxu1 %v6638_v50 }
 0x4f3   :  { %2745 = vmatpush2.msra.mxu1 %v6639_v53 }
 0x4f4   :  { %2746 = vmatprep.subr.mxu1 %v6640_v45  ;;  %v7482_v45 = vld [vmem:[#allocation16] sm:$0x3] }
 0x4f5   :  { %2747 = vmatpush2.msra.mxu1 %v6641_v54  ;;  %v7487_v22 = vrot.slane %v7482_v45, %v7348_v48 }
 0x4f6   :  { %2748 = vmatprep.subr.mxu1 %v6642_v56  ;;  %v1931_v56 = vmul.f32 %v7480_v49, %v1918_v46  ;;  %v3031_v46 = vld [vmem:[#allocation21 + $0x780] sm:$0xff] }
 0x4f7   :  { %2749 = vmatpush2.msra.mxu1 %v6643_v57 }
 0x4f8   :  { %2750 = vmatprep.subr.mxu1 %v6644_v55 }
 0x4f9   :  { %2751 = vmatpush2.msra.mxu1 %v6645_v58 }
 0x4fa   :  { %2752 = vmatprep.subr.mxu1 %v6646_v60  ;;  %v2911_v60 = vld [vmem:[#allocation21 + $0x3c0] sm:$0xff] }
 0x4fb   :  { %2753 = vmatpush2.msra.mxu1 %v6647_v59  ;;  %v7490_v59 = vadd.f32 %v7487_v22, %v1931_v56  ;;  %v3007_v56 = vld [vmem:[#allocation21 + $0x6c0] sm:$0xff] }
 0x4fc   :  { %2754 = vmatprep.subr.mxu1 %v6648_v61  ;;  %v2904_v61 = vld [vmem:[#allocation21 + $0x388] sm:$0xff] }
 0x4fd   :  { %2755 = vmatpush2.msra.mxu1 %v6649_v63  ;;  %v2903_v63 = vld [vmem:[#allocation21 + $0x380] sm:$0xff] }
 0x4fe   :  { %2756 = vmatprep.subr.mxu1 %v6650_v19  ;;  %v2896_v19 = vld [vmem:[#allocation21 + $0x348] sm:$0xff] }
 0x4ff   :  { %2757 = vmatpush2.msra.mxu1 %v6651_v0  ;;  %v2895_v0 = vld [vmem:[#allocation21 + $0x340] sm:$0xff] }
 0x500   :  { %2758 = vmatprep.subr.mxu1 %v6652_v21  ;;  %v2888_v21 = vld [vmem:[#allocation21 + $0x308] sm:$0xff] }
 0x501   :  { %2759 = vmatpush2.msra.mxu1 %v6653_v44  ;;  %v2887_v44 = vld [vmem:[#allocation21 + $0x300] sm:$0xff] }
 0x502   :  { %2760 = vmatprep.subr.mxu1 %v6654_v1  ;;  %v2880_v1 = vld [vmem:[#allocation21 + $0x2c8] sm:$0xff] }
 0x503   :  { %2761 = vmatpush2.msra.mxu1 %v6655_v39  ;;  %v2879_v39 = vld [vmem:[#allocation21 + $0x2c0] sm:$0xff] }
 0x504   :  { %2762 = vmatprep.subr.mxu1 %v6656_v8  ;;  %v2872_v8 = vld [vmem:[#allocation21 + $0x288] sm:$0xff] }
 0x505   :  { %2763 = vmatpush2.msra.mxu1 %v6657_v4  ;;  %v2871_v4 = vld [vmem:[#allocation21 + $0x280] sm:$0xff] }
 0x506   :  { %2764 = vmatprep.subr.mxu1 %v6658_v62  ;;  %v2864_v62 = vld [vmem:[#allocation21 + $0x248] sm:$0xff] }
 0x507   :  { %2765 = vmatpush2.msra.mxu1 %v6659_v5  ;;  %v2863_v5 = vld [vmem:[#allocation21 + $0x240] sm:$0xff] }
 0x508   :  { %2766 = vmatprep.subr.mxu1 %v6660_v10  ;;  %v2856_v10 = vld [vmem:[#allocation21 + $0x208] sm:$0xff] }
 0x509   :  { %2767 = vmatpush2.msra.mxu1 %v6661_v11  ;;  %v2855_v11 = vld [vmem:[#allocation21 + $0x200] sm:$0xff] }
 0x50a   :  { %2768 = vmatprep.subr.mxu1 %v6662_v7  ;;  %v2413_v25 = vpop.f32.mrf.mxu0  ;;  %v2848_v7 = vld [vmem:[#allocation21 + $0x1c8] sm:$0xff] }
 0x50b   :  { %2769 = vmatpush2.msra.mxu1 %v6663_v52  ;;  %v2414_v23 = vadd.f32 %v2413_v25, %v2343_v29  ;;  %v2847_v52 = vld [vmem:[#allocation21 + $0x1c0] sm:$0xff]  ;;  %v2808_v25 = vld [vmem:[#allocation21 + $0x88] sm:$0xff] }
 0x50c   :  { %2770 = vmatprep.subr.mxu1 %v6664_v36  ;;  %v2415_v31 = vpop.f32.mrf.mxu0  ;;  %v2840_v36 = vld [vmem:[#allocation21 + $0x188] sm:$0xff]  ;;  %v2807_v29 = vld [vmem:[#allocation21 + $0x80] sm:$0xff] }
 0x50d   :  { %2771 = vmatpush2.msra.mxu1 %v6665_v9  ;;  %v2416_v38 = vadd.f32 %v2415_v31, %v2345_v3  ;;  %v2485_v50 = vadd.f32 %v2484_v33, %v2414_v23  ;;  %v2839_v9 = vld [vmem:[#allocation21 + $0x180] sm:$0xff]  ;;  %v2800_v3 = vld [vmem:[#allocation21 + $0x48] sm:$0xff] }
 0x50e   :  { %2772 = vmatprep.subr.mxu1 %v6666_v12  ;;  %v2832_v12 = vld [vmem:[#allocation21 + $0x148] sm:$0xff]  ;;  %v2799_v31 = vld [vmem:[#allocation21 + $0x40] sm:$0xff] }
 0x50f   :  { %2773 = vmatpush2.msra.mxu1 %v6667_v13  ;;  %v2487_v34 = vadd.f32 %v2486_v43, %v2416_v38  ;;  %v2831_v13 = vld [vmem:[#allocation21 + $0x140] sm:$0xff]  ;;  %v2792_v33 = vld [vmem:[#allocation21 + $0x8] sm:$0xff] }
 0x510   :  { %2774 = vmatprep.subr.mxu1 %v6668_v28  ;;  %v2824_v28 = vld [vmem:[#allocation21 + $0x108] sm:$0xff]  ;;  %v3039_v38 = vld [vmem:[#allocation21 + $0x7c0] sm:$0xff] }
 0x511   :  { %2775 = vmatpush2.msra.mxu1 %v6669_v16  ;;  %v2823_v16 = vld [vmem:[#allocation21 + $0x100] sm:$0xff]  ;;  %v3040_v23 = vld [vmem:[#allocation21 + $0x7c8] sm:$0xff] }
 0x512   :  { %v3032_v43 = vld [vmem:[#allocation21 + $0x788] sm:$0xff] }
 0x54a   :  { %v2555_v53 = vpop.f32.mrf.mxu0 }
 0x54b   :  { %v2556_v37 = vadd.f32 %v2555_v53, %v2485_v50  ;;  %v3024_v50 = vld [vmem:[#allocation21 + $0x748] sm:$0xff]  ;;  %v3023_v53 = vld [vmem:[#allocation21 + $0x740] sm:$0xff] }
 0x54c   :  { %v2557_v54 = vpop.f32.mrf.mxu0 }
 0x54d   :  { %v2558_v57 = vadd.f32 %v2557_v54, %v2487_v34  ;;  %v2562_v58 = vmax.f32 %v2556_v37, 0.0  ;;  %v3016_v34 = vld [vmem:[#allocation21 + $0x708] sm:$0xff]  ;;  %v3015_v37 = vld [vmem:[#allocation21 + $0x700] sm:$0xff] }
 0x54e   :  { %v3008_v54 = vld [vmem:[#allocation21 + $0x6c8] sm:$0xff] }
 0x54f   :  { %v2563_v55 = vmax.f32 %v2558_v57, 0.0  ;;  %v3000_v57 = vld [vmem:[#allocation21 + $0x688] sm:$0xff] }
 0x551   :  { %2699 = vmatprep.mubr.f32.mxu0 %v2563_v55  ;;  %v2999_v55 = vld [vmem:[#allocation21 + $0x680] sm:$0xff] }
 0x552   :  { %2700 = vmatmul.mubr.f32.vlgmr.msra.gmra.mxu0 %v2562_v58  ;;  %v2992_v58 = vld [vmem:[#allocation21 + $0x648] sm:$0xff] }
 0x553   :  { %3090 = vmatpush1.msra.mxu0 %v2911_v60  ;;  %3153 = vmatprep.mubr.f32.mxu0 %v7490_v59  ;;  %v2991_v60 = vld [vmem:[#allocation21 + $0x640] sm:$0xff] }
 0x554   :  { %3091 = vmatprep.subr.mxu0 %v2904_v61  ;;  %v2984_v61 = vld [vmem:[#allocation21 + $0x608] sm:$0xff] }
 0x555   :  { %3092 = vmatpush1.msra.mxu0 %v2903_v63  ;;  %v2983_v63 = vld [vmem:[#allocation21 + $0x600] sm:$0xff] }
 0x556   :  { %3093 = vmatprep.subr.mxu0 %v2896_v19  ;;  %v2976_v19 = vld [vmem:[#allocation21 + $0x5c8] sm:$0xff] }
 0x557   :  { %3094 = vmatpush1.msra.mxu0 %v2895_v0  ;;  %v7495_v0 = vrot.slane %v7466_v18, %v7343_v42  ;;  %v2944_v18 = vld [vmem:[#allocation21 + $0x4c8] sm:$0xff] }
 0x558   :  { %3095 = vmatprep.subr.mxu0 %v2888_v21  ;;  %v2975_v21 = vld [vmem:[#allocation21 + $0x5c0] sm:$0xff] }
 0x559   :  { %3096 = vmatpush1.msra.mxu0 %v2887_v44  ;;  %v2968_v44 = vld [vmem:[#allocation21 + $0x588] sm:$0xff] }
 0x55a   :  { %3097 = vmatprep.subr.mxu0 %v2880_v1  ;;  %v2967_v1 = vld [vmem:[#allocation21 + $0x580] sm:$0xff] }
 0x55b   :  { %3098 = vmatpush1.msra.mxu0 %v2879_v39  ;;  %v2960_v39 = vld [vmem:[#allocation21 + $0x548] sm:$0xff] }
 0x55c   :  { %3099 = vmatprep.subr.mxu0 %v2872_v8  ;;  %v1913_v8 = vadd.f32 %v7460_v15, %v7495_v0  ;;  %v2928_v15 = vld [vmem:[#allocation21 + $0x448] sm:$0xff] }
 0x55d   :  { %3100 = vmatpush1.msra.mxu0 %v2871_v4  ;;  %v2959_v4 = vld [vmem:[#allocation21 + $0x540] sm:$0xff] }
 0x55e   :  { %3101 = vmatprep.subr.mxu0 %v2864_v62  ;;  %v2952_v62 = vld [vmem:[#allocation21 + $0x508] sm:$0xff] }
 0x55f   :  { %3102 = vmatpush1.msra.mxu0 %v2863_v5  ;;  %v2951_v5 = vld [vmem:[#allocation21 + $0x500] sm:$0xff] }
 0x560   :  { %3103 = vmatprep.subr.mxu0 %v2856_v10  ;;  %v1917_v10 = vmax.f32 %v1913_v8, 0.0  ;;  %v2803_v8 = vld [vmem:[#allocation21 + $0x60] sm:$0xff] }
 0x561   :  { %3104 = vmatpush1.msra.mxu0 %v2855_v11  ;;  %v7501_v11 = vrot.slane %v7476_v40, %v7343_v42  ;;  %v2919_v40 = vld [vmem:[#allocation21 + $0x400] sm:$0xff] }
 0x562   :  { %3105 = vmatprep.subr.mxu0 %v2848_v7  ;;  %v2943_v7 = vld [vmem:[#allocation21 + $0x4c0] sm:$0xff] }
 0x563   :  { %3106 = vmatpush1.msra.mxu0 %v2847_v52  ;;  %v2936_v52 = vld [vmem:[#allocation21 + $0x488] sm:$0xff] }
 0x564   :  { %3107 = vmatprep.subr.mxu0 %v2840_v36  ;;  %v2935_v36 = vld [vmem:[#allocation21 + $0x480] sm:$0xff] }
 0x565   :  { %3108 = vmatpush1.msra.mxu0 %v2839_v9  ;;  %v1930_v9 = vmul.f32 %v7501_v11, %v1917_v10  ;;  %v3036_v10 = vld [vmem:[#allocation21 + $0x7a8] sm:$0xff] }
 0x566   :  { %3109 = vmatprep.subr.mxu0 %v2832_v12  ;;  %v7506_v12 = vrot.slane %v7482_v45, %v7343_v42  ;;  %v2907_v45 = vld [vmem:[#allocation21 + $0x3a0] sm:$0xff] }
 0x567   :  { %3110 = vmatpush1.msra.mxu0 %v2831_v13  ;;  %v2927_v13 = vld [vmem:[#allocation21 + $0x440] sm:$0xff] }
 0x568   :  { %3111 = vmatprep.subr.mxu0 %v2824_v28  ;;  %v2920_v28 = vld [vmem:[#allocation21 + $0x408] sm:$0xff] }
 0x569   :  { %3112 = vmatpush1.msra.mxu0 %v2823_v16  ;;  %v2916_v16 = vld [vmem:[#allocation21 + $0x3e8] sm:$0xff] }
 0x56a   :  { %3113 = vmatprep.subr.mxu0 %v2816_v32  ;;  %v7509_v32 = vadd.f32 %v7506_v12, %v1930_v9  ;;  %v3019_v9 = vld [vmem:[#allocation21 + $0x720] sm:$0xff] }
 0x56b   :  { %3114 = vmatpush1.msra.mxu0 %v2815_v20  ;;  %v2915_v20 = vld [vmem:[#allocation21 + $0x3e0] sm:$0xff] }
 0x56c   :  { %3115 = vmatprep.subr.mxu0 %v2808_v25  ;;  %v2908_v25 = vld [vmem:[#allocation21 + $0x3a8] sm:$0xff] }
 0x56d   :  { %3116 = vmatpush1.msra.mxu0 %v2807_v29  ;;  %v2900_v29 = vld [vmem:[#allocation21 + $0x368] sm:$0xff] }
 0x56e   :  { %3117 = vmatprep.subr.mxu0 %v2800_v3  ;;  %v2899_v3 = vld [vmem:[#allocation21 + $0x360] sm:$0xff] }
 0x56f   :  { %3118 = vmatpush1.msra.mxu0 %v2799_v31  ;;  %v2892_v31 = vld [vmem:[#allocation21 + $0x328] sm:$0xff] }
 0x570   :  { %3119 = vmatprep.subr.mxu0 %v2792_v33  ;;  %v2891_v33 = vld [vmem:[#allocation21 + $0x320] sm:$0xff] }
 0x571   :  { %3120 = vmatpush1.msra.mxu0 %v2791_v35  ;;  %v2884_v35 = vld [vmem:[#allocation21 + $0x2e8] sm:$0xff] }
 0x572   :  { %3121 = vmatprep.subr.mxu0 %v3040_v23  ;;  %v2883_v23 = vld [vmem:[#allocation21 + $0x2e0] sm:$0xff] }
 0x573   :  { %3122 = vmatpush2.msra.mxu0 %v3039_v38  ;;  %v2876_v38 = vld [vmem:[#allocation21 + $0x2a8] sm:$0xff] }
 0x574   :  { %3123 = vmatprep.subr.mxu0 %v3032_v43  ;;  %v2875_v43 = vld [vmem:[#allocation21 + $0x2a0] sm:$0xff] }
 0x575   :  { %3124 = vmatpush2.msra.mxu0 %v3031_v46  ;;  %v2868_v46 = vld [vmem:[#allocation21 + $0x268] sm:$0xff] }
 0x576   :  { %3125 = vmatprep.subr.mxu0 %v3024_v50  ;;  %v2867_v50 = vld [vmem:[#allocation21 + $0x260] sm:$0xff] }
 0x577   :  { %3126 = vmatpush2.msra.mxu0 %v3023_v53  ;;  %v2860_v53 = vld [vmem:[#allocation21 + $0x228] sm:$0xff] }
 0x578   :  { %3127 = vmatprep.subr.mxu0 %v3016_v34  ;;  %v2914_v34 = vld [vmem:[#allocation21 + $0x3d8] sm:$0xff] }
 0x579   :  { %3128 = vmatpush2.msra.mxu0 %v3015_v37  ;;  %v2859_v37 = vld [vmem:[#allocation21 + $0x220] sm:$0xff]  ;;  %3160 = vmatprep.subr.mxu1 %v2914_v34  ;;  %v2940_v34 = vld [vmem:[#allocation21 + $0x4a8] sm:$0xff] }
 0x57a   :  { %3129 = vmatprep.subr.mxu0 %v3008_v54  ;;  %v2852_v54 = vld [vmem:[#allocation21 + $0x1e8] sm:$0xff] }
 0x57b   :  { %3130 = vmatpush2.msra.mxu0 %v3007_v56  ;;  %v2851_v56 = vld [vmem:[#allocation21 + $0x1e0] sm:$0xff] }
 0x57c   :  { %3131 = vmatprep.subr.mxu0 %v3000_v57  ;;  %v2844_v57 = vld [vmem:[#allocation21 + $0x1a8] sm:$0xff] }
 0x57d   :  { %3132 = vmatpush2.msra.mxu0 %v2999_v55  ;;  %v2843_v55 = vld [vmem:[#allocation21 + $0x1a0] sm:$0xff] }
 0x57e   :  { %3133 = vmatprep.subr.mxu0 %v2992_v58  ;;  %v2836_v58 = vld [vmem:[#allocation21 + $0x168] sm:$0xff] }
 0x57f   :  { %3134 = vmatpush2.msra.mxu0 %v2991_v60  ;;  %v2835_v60 = vld [vmem:[#allocation21 + $0x160] sm:$0xff] }
 0x580   :  { %3135 = vmatprep.subr.mxu0 %v2984_v61  ;;  %v2828_v61 = vld [vmem:[#allocation21 + $0x128] sm:$0xff] }
 0x581   :  { %3136 = vmatpush2.msra.mxu0 %v2983_v63  ;;  %v2827_v63 = vld [vmem:[#allocation21 + $0x120] sm:$0xff] }
 0x582   :  { %3137 = vmatprep.subr.mxu0 %v2976_v19  ;;  %v2820_v19 = vld [vmem:[#allocation21 + $0xe8] sm:$0xff] }
 0x583   :  { %3138 = vmatpush2.msra.mxu0 %v2975_v21  ;;  %v2819_v21 = vld [vmem:[#allocation21 + $0xe0] sm:$0xff] }
 0x584   :  { %3139 = vmatprep.subr.mxu0 %v2968_v44  ;;  %v2812_v44 = vld [vmem:[#allocation21 + $0xa8] sm:$0xff] }
 0x585   :  { %3140 = vmatpush2.msra.mxu0 %v2967_v1  ;;  %v2811_v1 = vld [vmem:[#allocation21 + $0xa0] sm:$0xff] }
 0x586   :  { %3141 = vmatprep.subr.mxu0 %v2960_v39  ;;  %v2804_v39 = vld [vmem:[#allocation21 + $0x68] sm:$0xff] }
 0x587   :  { %3142 = vmatpush2.msra.mxu0 %v2959_v4  ;;  %v2796_v4 = vld [vmem:[#allocation21 + $0x28] sm:$0xff] }
 0x588   :  { %3143 = vmatprep.subr.mxu0 %v2952_v62  ;;  %v2795_v62 = vld [vmem:[#allocation21 + $0x20] sm:$0xff] }
 0x589   :  { %3144 = vmatpush2.msra.mxu0 %v2951_v5  ;;  %v3044_v5 = vld [vmem:[#allocation21 + $0x7e8] sm:$0xff] }
 0x58a   :  { %3145 = vmatprep.subr.mxu0 %v2944_v18  ;;  %v3043_v18 = vld [vmem:[#allocation21 + $0x7e0] sm:$0xff] }
 0x58b   :  { %3146 = vmatpush2.msra.mxu0 %v2943_v7  ;;  %v3035_v7 = vld [vmem:[#allocation21 + $0x7a0] sm:$0xff] }
 0x58c   :  { %3147 = vmatprep.subr.mxu0 %v2936_v52  ;;  %v3028_v52 = vld [vmem:[#allocation21 + $0x768] sm:$0xff] }
 0x58d   :  { %3148 = vmatpush2.msra.mxu0 %v2935_v36  ;;  %v3027_v36 = vld [vmem:[#allocation21 + $0x760] sm:$0xff] }
 0x58e   :  { %3149 = vmatprep.subr.mxu0 %v2928_v15  ;;  %v3020_v15 = vld [vmem:[#allocation21 + $0x728] sm:$0xff] }
 0x58f   :  { %3150 = vmatpush2.msra.mxu0 %v2927_v13  ;;  %v3012_v13 = vld [vmem:[#allocation21 + $0x6e8] sm:$0xff] }
 0x590   :  { %3151 = vmatprep.subr.mxu0 %v2920_v28  ;;  %v3011_v28 = vld [vmem:[#allocation21 + $0x6e0] sm:$0xff] }
 0x591   :  { %3152 = vmatpush2.msra.mxu0 %v2919_v40  ;;  %v3004_v40 = vld [vmem:[#allocation21 + $0x6a8] sm:$0xff] }
 0x592   :  { %3154 = vmatmul.mubr.f32.vlgmr.msra.gmra.mxu0 %v7509_v32  ;;  %3231 = vmatprep.subr.mxu0 %v2916_v16  ;;  %v3003_v16 = vld [vmem:[#allocation21 + $0x6a0] sm:$0xff] }
 0x593   :  { %3232 = vmatpush1.msra.mxu0 %v2915_v20  ;;  %3295 = vmatprep.mubr.f32.mxu0 %v7490_v59  ;;  %v2996_v20 = vld [vmem:[#allocation21 + $0x668] sm:$0xff] }
 0x594   :  { %3233 = vmatprep.subr.mxu0 %v2908_v25  ;;  %v2995_v25 = vld [vmem:[#allocation21 + $0x660] sm:$0xff] }
 0x595   :  { %3234 = vmatpush1.msra.mxu0 %v2907_v45  ;;  %v2988_v45 = vld [vmem:[#allocation21 + $0x628] sm:$0xff] }
 0x596   :  { %3235 = vmatprep.subr.mxu0 %v2900_v29  ;;  %v2987_v29 = vld [vmem:[#allocation21 + $0x620] sm:$0xff] }
 0x597   :  { %3236 = vmatpush1.msra.mxu0 %v2899_v3  ;;  %v2980_v3 = vld [vmem:[#allocation21 + $0x5e8] sm:$0xff] }
 0x598   :  { %3237 = vmatprep.subr.mxu0 %v2892_v31  ;;  %v2979_v31 = vld [vmem:[#allocation21 + $0x5e0] sm:$0xff] }
 0x599   :  { %3238 = vmatpush1.msra.mxu0 %v2891_v33  ;;  %v2972_v33 = vld [vmem:[#allocation21 + $0x5a8] sm:$0xff] }
 0x59a   :  { %3239 = vmatprep.subr.mxu0 %v2884_v35  ;;  %v2971_v35 = vld [vmem:[#allocation21 + $0x5a0] sm:$0xff] }
 0x59b   :  { %3240 = vmatpush1.msra.mxu0 %v2883_v23  ;;  %v2964_v23 = vld [vmem:[#allocation21 + $0x568] sm:$0xff] }
 0x59c   :  { %3241 = vmatprep.subr.mxu0 %v2876_v38  ;;  %v2963_v38 = vld [vmem:[#allocation21 + $0x560] sm:$0xff] }
 0x59d   :  { %3242 = vmatpush1.msra.mxu0 %v2875_v43  ;;  %v2956_v43 = vld [vmem:[#allocation21 + $0x528] sm:$0xff] }
 0x59e   :  { %3243 = vmatprep.subr.mxu0 %v2868_v46  ;;  %v2955_v46 = vld [vmem:[#allocation21 + $0x520] sm:$0xff] }
 0x59f   :  { %3244 = vmatpush1.msra.mxu0 %v2867_v50  ;;  %v2948_v50 = vld [vmem:[#allocation21 + $0x4e8] sm:$0xff] }
 0x5a0   :  { %3245 = vmatprep.subr.mxu0 %v2860_v53  ;;  %v2947_v53 = vld [vmem:[#allocation21 + $0x4e0] sm:$0xff] }
 0x5a1   :  { %3246 = vmatpush1.msra.mxu0 %v2859_v37  ;;  %v2939_v37 = vld [vmem:[#allocation21 + $0x4a0] sm:$0xff] }
 0x5a2   :  { %3247 = vmatprep.subr.mxu0 %v2852_v54  ;;  %v2932_v54 = vld [vmem:[#allocation21 + $0x468] sm:$0xff] }
 0x5a3   :  { %3248 = vmatpush1.msra.mxu0 %v2851_v56  ;;  %v2931_v56 = vld [vmem:[#allocation21 + $0x460] sm:$0xff] }
 0x5a4   :  { %3249 = vmatprep.subr.mxu0 %v2844_v57  ;;  %v2924_v57 = vld [vmem:[#allocation21 + $0x428] sm:$0xff] }
 0x5a5   :  { %3250 = vmatpush1.msra.mxu0 %v2843_v55  ;;  %v2923_v55 = vld [vmem:[#allocation21 + $0x420] sm:$0xff] }
 0x5a6   :  { %3251 = vmatprep.subr.mxu0 %v2836_v58  ;;  %v2630_v58 = vpop.f32.mrf.mxu1 }
 0x5a7   :  { %3252 = vmatpush1.msra.mxu0 %v2835_v60 }
 0x5a8   :  { %3253 = vmatprep.subr.mxu0 %v2828_v61  ;;  %v2632_v60 = vpop.f32.mrf.mxu1  ;;  %v2631_v61 = vadd.f32 %v2630_v58, %v7408_v47  ;;  %v2905_v47 = vld [vmem:[#allocation21 + $0x390] sm:$0xff]  ;;  %v3544_v58 = vld [vmem:[#allocation21 + $0xa00] sm:$0xff] }
 0x5a9   :  { %3254 = vmatpush1.msra.mxu0 %v2827_v63 }
 0x5aa   :  { %3255 = vmatprep.subr.mxu0 %v2820_v19  ;;  %v2633_v19 = vadd.f32 %v2632_v60, %v7411_v51  ;;  %v3600_v51 = vld [vmem:[#allocation21 + $0xbc0] sm:$0xff]  ;;  %v2842_v60 = vld [vmem:[#allocation21 + $0x198] sm:$0xff] }
 0x5ab   :  { %3256 = vmatpush1.msra.mxu0 %v2819_v21 }
 0x5ac   :  { %3257 = vmatprep.subr.mxu0 %v2812_v44 }
 0x5ad   :  { %3258 = vmatpush1.msra.mxu0 %v2811_v1 }
 0x5ae   :  { %3259 = vmatprep.subr.mxu0 %v2804_v39 }
 0x5af   :  { %3260 = vmatpush1.msra.mxu0 %v2803_v8 }
 0x5b0   :  { %3261 = vmatprep.subr.mxu0 %v2796_v4 }
 0x5b1   :  { %3262 = vmatpush1.msra.mxu0 %v2795_v62 }
 0x5b2   :  { %3263 = vmatprep.subr.mxu0 %v3044_v5 }
 0x5b3   :  { %3264 = vmatpush2.msra.mxu0 %v3043_v18 }
 0x5b4   :  { %3265 = vmatprep.subr.mxu0 %v3036_v10  ;;  %v2913_v10 = vld [vmem:[#allocation21 + $0x3d0] sm:$0xff] }
 0x5b5   :  { %3266 = vmatpush2.msra.mxu0 %v3035_v7  ;;  %v2906_v7 = vld [vmem:[#allocation21 + $0x398] sm:$0xff] }
 0x5b6   :  { %3267 = vmatprep.subr.mxu0 %v3028_v52  ;;  %v3601_v52 = vld [vmem:[#allocation21 + $0xbc8] sm:$0xff] }
 0x5b7   :  { %3268 = vmatpush2.msra.mxu0 %v3027_v36  ;;  %v2898_v36 = vld [vmem:[#allocation21 + $0x358] sm:$0xff] }
 0x5b8   :  { %3269 = vmatprep.subr.mxu0 %v3020_v15  ;;  %v3593_v15 = vld [vmem:[#allocation21 + $0xb88] sm:$0xff] }
 0x5b9   :  { %3270 = vmatpush2.msra.mxu0 %v3019_v9  ;;  %v2897_v9 = vld [vmem:[#allocation21 + $0x350] sm:$0xff] }
 0x5ba   :  { %3271 = vmatprep.subr.mxu0 %v3012_v13  ;;  %v3592_v13 = vld [vmem:[#allocation21 + $0xb80] sm:$0xff] }
 0x5bb   :  { %3272 = vmatpush2.msra.mxu0 %v3011_v28  ;;  %v2890_v28 = vld [vmem:[#allocation21 + $0x318] sm:$0xff] }
 0x5bc   :  { %3273 = vmatprep.subr.mxu0 %v3004_v40  ;;  %v3585_v40 = vld [vmem:[#allocation21 + $0xb48] sm:$0xff] }
 0x5bd   :  { %3274 = vmatpush2.msra.mxu0 %v3003_v16  ;;  %v2889_v16 = vld [vmem:[#allocation21 + $0x310] sm:$0xff] }
 0x5be   :  { %3275 = vmatprep.subr.mxu0 %v2996_v20  ;;  %v3584_v20 = vld [vmem:[#allocation21 + $0xb40] sm:$0xff] }
 0x5bf   :  { %3276 = vmatpush2.msra.mxu0 %v2995_v25  ;;  %v2882_v25 = vld [vmem:[#allocation21 + $0x2d8] sm:$0xff] }
 0x5c0   :  { %3277 = vmatprep.subr.mxu0 %v2988_v45  ;;  %v3577_v45 = vld [vmem:[#allocation21 + $0xb08] sm:$0xff] }
 0x5c1   :  { %3278 = vmatpush2.msra.mxu0 %v2987_v29  ;;  %v2881_v29 = vld [vmem:[#allocation21 + $0x2d0] sm:$0xff] }
 0x5c2   :  { %3279 = vmatprep.subr.mxu0 %v2980_v3  ;;  %v3576_v3 = vld [vmem:[#allocation21 + $0xb00] sm:$0xff] }
 0x5c3   :  { %3280 = vmatpush2.msra.mxu0 %v2979_v31  ;;  %v2874_v31 = vld [vmem:[#allocation21 + $0x298] sm:$0xff] }
 0x5c4   :  { %3281 = vmatprep.subr.mxu0 %v2972_v33  ;;  %v3569_v33 = vld [vmem:[#allocation21 + $0xac8] sm:$0xff] }
 0x5c5   :  { %3282 = vmatpush2.msra.mxu0 %v2971_v35  ;;  %v2873_v35 = vld [vmem:[#allocation21 + $0x290] sm:$0xff] }
 0x5c6   :  { %3283 = vmatprep.subr.mxu0 %v2964_v23  ;;  %v3568_v23 = vld [vmem:[#allocation21 + $0xac0] sm:$0xff] }
 0x5c7   :  { %3284 = vmatpush2.msra.mxu0 %v2963_v38  ;;  %v2866_v38 = vld [vmem:[#allocation21 + $0x258] sm:$0xff] }
 0x5c8   :  { %3285 = vmatprep.subr.mxu0 %v2956_v43  ;;  %v3561_v43 = vld [vmem:[#allocation21 + $0xa88] sm:$0xff] }
 0x5c9   :  { %3286 = vmatpush2.msra.mxu0 %v2955_v46  ;;  %v2865_v46 = vld [vmem:[#allocation21 + $0x250] sm:$0xff] }
 0x5ca   :  { %3287 = vmatprep.subr.mxu0 %v2948_v50  ;;  %v3560_v50 = vld [vmem:[#allocation21 + $0xa80] sm:$0xff] }
 0x5cb   :  { %3288 = vmatpush2.msra.mxu0 %v2947_v53  ;;  %v2858_v53 = vld [vmem:[#allocation21 + $0x218] sm:$0xff] }
 0x5cc   :  { %3289 = vmatprep.subr.mxu0 %v2940_v34  ;;  %v3553_v34 = vld [vmem:[#allocation21 + $0xa48] sm:$0xff] }
 0x5cd   :  { %3290 = vmatpush2.msra.mxu0 %v2939_v37  ;;  %v2857_v37 = vld [vmem:[#allocation21 + $0x210] sm:$0xff] }
 0x5ce   :  { %3291 = vmatprep.subr.mxu0 %v2932_v54  ;;  %v3552_v54 = vld [vmem:[#allocation21 + $0xa40] sm:$0xff] }
 0x5cf   :  { %3292 = vmatpush2.msra.mxu0 %v2931_v56  ;;  %v2850_v56 = vld [vmem:[#allocation21 + $0x1d8] sm:$0xff] }
 0x5d0   :  { %3293 = vmatprep.subr.mxu0 %v2924_v57  ;;  %v3545_v57 = vld [vmem:[#allocation21 + $0xa08] sm:$0xff] }
 0x5d1   :  { %3294 = vmatpush2.msra.mxu0 %v2923_v55  ;;  %v2849_v55 = vld [vmem:[#allocation21 + $0x1d0] sm:$0xff] }
 0x5d2   :  { %3296 = vmatmul.mubr.f32.vlgmr.msra.gmra.mxu0 %v7509_v32  ;;  %3779 = vmatprep.subr.mxu0 %v3601_v52  ;;  %v2810_v52 = vld [vmem:[#allocation21 + $0x98] sm:$0xff] }
 0x5d3   :  { %3780 = vmatpush1.msra.mxu0 %v3600_v51  ;;  %v3505_v51 = vld [vmem:[#allocation21 + $0x8c8] sm:$0xff] }
 0x5d4   :  { %3781 = vmatprep.subr.mxu0 %v3593_v15  ;;  %v3504_v15 = vld [vmem:[#allocation21 + $0x8c0] sm:$0xff] }
 0x5d5   :  { %3782 = vmatpush1.msra.mxu0 %v3592_v13  ;;  %v3497_v13 = vld [vmem:[#allocation21 + $0x888] sm:$0xff] }
 0x5d6   :  { %3783 = vmatprep.subr.mxu0 %v3585_v40  ;;  %v3496_v40 = vld [vmem:[#allocation21 + $0x880] sm:$0xff] }
 0x5d7   :  { %3784 = vmatpush1.msra.mxu0 %v3584_v20  ;;  %v3489_v20 = vld [vmem:[#allocation21 + $0x848] sm:$0xff] }
 0x5d8   :  { %3785 = vmatprep.subr.mxu0 %v3577_v45  ;;  %v3488_v45 = vld [vmem:[#allocation21 + $0x840] sm:$0xff] }
 0x5d9   :  { %3786 = vmatpush1.msra.mxu0 %v3576_v3  ;;  %v3481_v3 = vld [vmem:[#allocation21 + $0x808] sm:$0xff] }
 0x5da   :  { %3787 = vmatprep.subr.mxu0 %v3569_v33  ;;  %v3480_v33 = vld [vmem:[#allocation21 + $0x800] sm:$0xff] }
 0x5db   :  { %3788 = vmatpush1.msra.mxu0 %v3568_v23  ;;  %v3729_v23 = vld [vmem:[#allocation21 + $0xfc8] sm:$0xff] }
 0x5dc   :  { %3789 = vmatprep.subr.mxu0 %v3561_v43  ;;  %v3728_v43 = vld [vmem:[#allocation21 + $0xfc0] sm:$0xff] }
 0x5dd   :  { %3790 = vmatpush1.msra.mxu0 %v3560_v50  ;;  %v3721_v50 = vld [vmem:[#allocation21 + $0xf88] sm:$0xff] }
 0x5de   :  { %3791 = vmatprep.subr.mxu0 %v3553_v34  ;;  %v3720_v34 = vld [vmem:[#allocation21 + $0xf80] sm:$0xff] }
 0x5df   :  { %3792 = vmatpush1.msra.mxu0 %v3552_v54  ;;  %v3713_v54 = vld [vmem:[#allocation21 + $0xf48] sm:$0xff] }
 0x5e0   :  { %3793 = vmatprep.subr.mxu0 %v3545_v57  ;;  %v3712_v57 = vld [vmem:[#allocation21 + $0xf40] sm:$0xff] }
 0x5e1   :  { %3794 = vmatpush1.msra.mxu0 %v3544_v58  ;;  %v3705_v58 = vld [vmem:[#allocation21 + $0xf08] sm:$0xff] }
 0x612   :  { %v2701_v63 = vpop.f32.mrf.mxu0 }
 0x613   :  { %v2702_v21 = vadd.f32 %v2701_v63, %v2631_v61  ;;  %v3537_v61 = vld [vmem:[#allocation21 + $0x9c8] sm:$0xff]  ;;  %v2841_v63 = vld [vmem:[#allocation21 + $0x190] sm:$0xff] }
 0x614   :  { %v2703_v44 = vpop.f32.mrf.mxu0  ;;  %3795 = vmatprep.subr.mxu0 %v3537_v61  ;;  %v3704_v61 = vld [vmem:[#allocation21 + $0xf00] sm:$0xff] }
 0x615   :  { %v2706_v1 = vmax.f32 %v2702_v21, 0.0  ;;  %v2704_v39 = vadd.f32 %v2703_v44, %v2633_v19  ;;  %v3536_v19 = vld [vmem:[#allocation21 + $0x9c0] sm:$0xff]  ;;  %v2834_v21 = vld [vmem:[#allocation21 + $0x158] sm:$0xff]  ;;  %v3529_v44 = vld [vmem:[#allocation21 + $0x988] sm:$0xff] }
 0x616   :  { %3796 = vmatpush1.msra.mxu0 %v3536_v19  ;;  %v3697_v19 = vld [vmem:[#allocation21 + $0xec8] sm:$0xff] }
 0x617   :  { %v2707_v8 = vmax.f32 %v2704_v39, 0.0  ;;  %v2708_v4 = vmul.f32 %v2706_v1, %v7418_v2  ;;  %v2833_v1 = vld [vmem:[#allocation21 + $0x150] sm:$0xff]  ;;  %v3528_v39 = vld [vmem:[#allocation21 + $0x980] sm:$0xff]  ;;  %3797 = vmatprep.subr.mxu0 %v3529_v44 }
 0x618   :  { %3798 = vmatpush1.msra.mxu0 %v3528_v39  ;;  %v3696_v44 = vld [vmem:[#allocation21 + $0xec0] sm:$0xff]  ;;  %v3689_v39 = vld [vmem:[#allocation21 + $0xe88] sm:$0xff] }
 0x619   :  { %v2709_v62 = vmul.f32 %v2707_v8, %v7421_v6  ;;  %v2710_v18 = vadd.f32 %v2708_v4, %v7431_v14  ;;  %v2826_v8 = vld [vmem:[#allocation21 + $0x118] sm:$0xff]  ;;  %v3521_v4 = vld [vmem:[#allocation21 + $0x948] sm:$0xff] }
 0x61a   :  { %3799 = vmatprep.subr.mxu0 %v3521_v4  ;;  %v3688_v4 = vld [vmem:[#allocation21 + $0xe80] sm:$0xff] }
 0x61b   :  { %v2711_v5 = vadd.f32 %v2709_v62, %v7424_v17  ;;  %v2825_v62 = vld [vmem:[#allocation21 + $0x110] sm:$0xff] }
 0x61d   :  { %2776 = vmatprep.mubr.f32.mxu1 %v2711_v5  ;;  %v3520_v5 = vld [vmem:[#allocation21 + $0x940] sm:$0xff] }
 0x61e   :  { %2777 = vmatmul.mubr.f32.vlgmr.msra.gmra.mxu1 %v2710_v18  ;;  %v2818_v18 = vld [vmem:[#allocation21 + $0xd8] sm:$0xff]  ;;  %3800 = vmatpush1.msra.mxu0 %v3520_v5  ;;  %v3681_v5 = vld [vmem:[#allocation21 + $0xe48] sm:$0xff] }
 0x61f   :  { %3161 = vmatpush1.msra.mxu1 %v2913_v10  ;;  %3224 = vmatprep.mubr.f32.mxu1 %v7490_v59  ;;  %v3513_v10 = vld [vmem:[#allocation21 + $0x908] sm:$0xff] }
 0x620   :  { %3162 = vmatprep.subr.mxu1 %v2906_v7  ;;  %v2817_v7 = vld [vmem:[#allocation21 + $0xd0] sm:$0xff]  ;;  %3801 = vmatprep.subr.mxu0 %v3513_v10  ;;  %v3680_v10 = vld [vmem:[#allocation21 + $0xe40] sm:$0xff] }
 0x621   :  { %3163 = vmatpush1.msra.mxu1 %v2905_v47  ;;  %v3512_v47 = vld [vmem:[#allocation21 + $0x900] sm:$0xff] }
 0x622   :  { %3164 = vmatprep.subr.mxu1 %v2898_v36  ;;  %v2809_v36 = vld [vmem:[#allocation21 + $0x90] sm:$0xff]  ;;  %3802 = vmatpush1.msra.mxu0 %v3512_v47  ;;  %v3673_v47 = vld [vmem:[#allocation21 + $0xe08] sm:$0xff] }
 0x623   :  { %3165 = vmatpush1.msra.mxu1 %v2897_v9  ;;  %v2802_v9 = vld [vmem:[#allocation21 + $0x58] sm:$0xff]  ;;  %3803 = vmatprep.subr.mxu0 %v3505_v51  ;;  %v3672_v51 = vld [vmem:[#allocation21 + $0xe00] sm:$0xff] }
 0x624   :  { %3166 = vmatprep.subr.mxu1 %v2890_v28  ;;  %v2801_v28 = vld [vmem:[#allocation21 + $0x50] sm:$0xff]  ;;  %3804 = vmatpush1.msra.mxu0 %v3504_v15  ;;  %v3665_v15 = vld [vmem:[#allocation21 + $0xdc8] sm:$0xff] }
 0x625   :  { %3167 = vmatpush1.msra.mxu1 %v2889_v16  ;;  %v2794_v16 = vld [vmem:[#allocation21 + $0x18] sm:$0xff]  ;;  %3805 = vmatprep.subr.mxu0 %v3497_v13  ;;  %v3664_v13 = vld [vmem:[#allocation21 + $0xdc0] sm:$0xff] }
 0x626   :  { %3168 = vmatprep.subr.mxu1 %v2882_v25  ;;  %v2793_v25 = vld [vmem:[#allocation21 + $0x10] sm:$0xff]  ;;  %3806 = vmatpush1.msra.mxu0 %v3496_v40  ;;  %v3657_v40 = vld [vmem:[#allocation21 + $0xd88] sm:$0xff] }
 0x627   :  { %3169 = vmatpush1.msra.mxu1 %v2881_v29  ;;  %v3042_v29 = vld [vmem:[#allocation21 + $0x7d8] sm:$0xff]  ;;  %3807 = vmatprep.subr.mxu0 %v3489_v20  ;;  %v3656_v20 = vld [vmem:[#allocation21 + $0xd80] sm:$0xff] }
 0x628   :  { %3170 = vmatprep.subr.mxu1 %v2874_v31  ;;  %v3041_v31 = vld [vmem:[#allocation21 + $0x7d0] sm:$0xff]  ;;  %3808 = vmatpush1.msra.mxu0 %v3488_v45  ;;  %v3649_v45 = vld [vmem:[#allocation21 + $0xd48] sm:$0xff] }
 0x629   :  { %3171 = vmatpush1.msra.mxu1 %v2873_v35  ;;  %v3034_v35 = vld [vmem:[#allocation21 + $0x798] sm:$0xff]  ;;  %3809 = vmatprep.subr.mxu0 %v3481_v3 }
 0x62a   :  { %3172 = vmatprep.subr.mxu1 %v2866_v38  ;;  %v3033_v38 = vld [vmem:[#allocation21 + $0x790] sm:$0xff]  ;;  %3810 = vmatpush1.msra.mxu0 %v3480_v33  ;;  %v2946_v3 = vld [vmem:[#allocation21 + $0x4d8] sm:$0xff] }
 0x62b   :  { %3173 = vmatpush1.msra.mxu1 %v2865_v46  ;;  %v3026_v46 = vld [vmem:[#allocation21 + $0x758] sm:$0xff]  ;;  %3811 = vmatprep.subr.mxu0 %v3729_v23 }
 0x62c   :  { %3174 = vmatprep.subr.mxu1 %v2858_v53  ;;  %v3025_v53 = vld [vmem:[#allocation21 + $0x750] sm:$0xff]  ;;  %3812 = vmatpush2.msra.mxu0 %v3728_v43  ;;  %v2938_v33 = vld [vmem:[#allocation21 + $0x498] sm:$0xff] }
 0x62d   :  { %3175 = vmatpush1.msra.mxu1 %v2857_v37  ;;  %v3018_v37 = vld [vmem:[#allocation21 + $0x718] sm:$0xff]  ;;  %3813 = vmatprep.subr.mxu0 %v3721_v50 }
 0x62e   :  { %3176 = vmatprep.subr.mxu1 %v2850_v56  ;;  %v3017_v56 = vld [vmem:[#allocation21 + $0x710] sm:$0xff]  ;;  %3814 = vmatpush2.msra.mxu0 %v3720_v34  ;;  %v2930_v23 = vld [vmem:[#allocation21 + $0x458] sm:$0xff] }
 0x62f   :  { %3177 = vmatpush1.msra.mxu1 %v2849_v55  ;;  %v3010_v55 = vld [vmem:[#allocation21 + $0x6d8] sm:$0xff]  ;;  %3815 = vmatprep.subr.mxu0 %v3713_v54  ;;  %v3648_v54 = vld [vmem:[#allocation21 + $0xd40] sm:$0xff] }
 0x630   :  { %3178 = vmatprep.subr.mxu1 %v2842_v60  ;;  %v3009_v60 = vld [vmem:[#allocation21 + $0x6d0] sm:$0xff]  ;;  %3816 = vmatpush2.msra.mxu0 %v3712_v57  ;;  %v2922_v43 = vld [vmem:[#allocation21 + $0x418] sm:$0xff]  ;;  %v3641_v57 = vld [vmem:[#allocation21 + $0xd08] sm:$0xff] }
 0x631   :  { %3179 = vmatpush1.msra.mxu1 %v2841_v63  ;;  %v3002_v63 = vld [vmem:[#allocation21 + $0x698] sm:$0xff]  ;;  %3817 = vmatprep.subr.mxu0 %v3705_v58  ;;  %v3640_v58 = vld [vmem:[#allocation21 + $0xd00] sm:$0xff] }
 0x632   :  { %3180 = vmatprep.subr.mxu1 %v2834_v21  ;;  %v3001_v21 = vld [vmem:[#allocation21 + $0x690] sm:$0xff]  ;;  %3818 = vmatpush2.msra.mxu0 %v3704_v61  ;;  %v2918_v50 = vld [vmem:[#allocation21 + $0x3f8] sm:$0xff]  ;;  %v3633_v61 = vld [vmem:[#allocation21 + $0xcc8] sm:$0xff] }
 0x633   :  { %3181 = vmatpush1.msra.mxu1 %v2833_v1  ;;  %v2994_v1 = vld [vmem:[#allocation21 + $0x658] sm:$0xff]  ;;  %3819 = vmatprep.subr.mxu0 %v3697_v19  ;;  %v3632_v19 = vld [vmem:[#allocation21 + $0xcc0] sm:$0xff] }
 0x634   :  { %3182 = vmatprep.subr.mxu1 %v2826_v8  ;;  %v2993_v8 = vld [vmem:[#allocation21 + $0x650] sm:$0xff]  ;;  %3820 = vmatpush2.msra.mxu0 %v3696_v44  ;;  %v2910_v34 = vld [vmem:[#allocation21 + $0x3b8] sm:$0xff]  ;;  %v3625_v44 = vld [vmem:[#allocation21 + $0xc88] sm:$0xff] }
 0x635   :  { %3183 = vmatpush1.msra.mxu1 %v2825_v62  ;;  %v2986_v62 = vld [vmem:[#allocation21 + $0x618] sm:$0xff]  ;;  %3821 = vmatprep.subr.mxu0 %v3689_v39 }
 0x636   :  { %3184 = vmatprep.subr.mxu1 %v2818_v18  ;;  %v2985_v18 = vld [vmem:[#allocation21 + $0x610] sm:$0xff]  ;;  %3822 = vmatpush2.msra.mxu0 %v3688_v4  ;;  %v2878_v39 = vld [vmem:[#allocation21 + $0x2b8] sm:$0xff] }
 0x637   :  { %3185 = vmatpush1.msra.mxu1 %v2817_v7  ;;  %v2978_v7 = vld [vmem:[#allocation21 + $0x5d8] sm:$0xff]  ;;  %3823 = vmatprep.subr.mxu0 %v3681_v5  ;;  %v2877_v4 = vld [vmem:[#allocation21 + $0x2b0] sm:$0xff] }
 0x638   :  { %3186 = vmatprep.subr.mxu1 %v2810_v52  ;;  %v2977_v52 = vld [vmem:[#allocation21 + $0x5d0] sm:$0xff]  ;;  %3824 = vmatpush2.msra.mxu0 %v3680_v10  ;;  %v2870_v5 = vld [vmem:[#allocation21 + $0x278] sm:$0xff]  ;;  %v3608_v10 = vld [vmem:[#allocation21 + $0xc00] sm:$0xff] }
 0x639   :  { %3187 = vmatpush1.msra.mxu1 %v2809_v36  ;;  %v2970_v36 = vld [vmem:[#allocation21 + $0x598] sm:$0xff]  ;;  %3825 = vmatprep.subr.mxu0 %v3673_v47 }
 0x63a   :  { %3188 = vmatprep.subr.mxu1 %v2802_v9  ;;  %v2969_v9 = vld [vmem:[#allocation21 + $0x590] sm:$0xff]  ;;  %3826 = vmatpush2.msra.mxu0 %v3672_v51  ;;  %v2862_v47 = vld [vmem:[#allocation21 + $0x238] sm:$0xff] }
 0x63b   :  { %3189 = vmatpush1.msra.mxu1 %v2801_v28  ;;  %v2962_v28 = vld [vmem:[#allocation21 + $0x558] sm:$0xff]  ;;  %3827 = vmatprep.subr.mxu0 %v3665_v15  ;;  %v2861_v51 = vld [vmem:[#allocation21 + $0x230] sm:$0xff] }
 0x63c   :  { %3190 = vmatprep.subr.mxu1 %v2794_v16  ;;  %v2961_v16 = vld [vmem:[#allocation21 + $0x550] sm:$0xff]  ;;  %3828 = vmatpush2.msra.mxu0 %v3664_v13 }
 0x63d   :  { %3191 = vmatpush1.msra.mxu1 %v2793_v25  ;;  %v2954_v25 = vld [vmem:[#allocation21 + $0x518] sm:$0xff]  ;;  %3829 = vmatprep.subr.mxu0 %v3657_v40  ;;  %v2853_v15 = vld [vmem:[#allocation21 + $0x1f0] sm:$0xff] }
 0x63e   :  { %3192 = vmatprep.subr.mxu1 %v3042_v29  ;;  %v2953_v29 = vld [vmem:[#allocation21 + $0x510] sm:$0xff]  ;;  %3830 = vmatpush2.msra.mxu0 %v3656_v20 }
 0x63f   :  { %3193 = vmatpush2.msra.mxu1 %v3041_v31  ;;  %v2945_v31 = vld [vmem:[#allocation21 + $0x4d0] sm:$0xff]  ;;  %3831 = vmatprep.subr.mxu0 %v3649_v45 }
 0x640   :  { %3194 = vmatprep.subr.mxu1 %v3034_v35  ;;  %v2937_v35 = vld [vmem:[#allocation21 + $0x490] sm:$0xff]  ;;  %3832 = vmatpush2.msra.mxu0 %v3648_v54 }
 0x641   :  { %3195 = vmatpush2.msra.mxu1 %v3033_v38  ;;  %v2929_v38 = vld [vmem:[#allocation21 + $0x450] sm:$0xff]  ;;  %3833 = vmatprep.subr.mxu0 %v3641_v57 }
 0x642   :  { %3196 = vmatprep.subr.mxu1 %v3026_v46  ;;  %v2921_v46 = vld [vmem:[#allocation21 + $0x410] sm:$0xff]  ;;  %3834 = vmatpush2.msra.mxu0 %v3640_v58 }
 0x643   :  { %3197 = vmatpush2.msra.mxu1 %v3025_v53  ;;  %v2917_v53 = vld [vmem:[#allocation21 + $0x3f0] sm:$0xff]  ;;  %3835 = vmatprep.subr.mxu0 %v3633_v61 }
 0x644   :  { %3198 = vmatprep.subr.mxu1 %v3018_v37  ;;  %v2909_v37 = vld [vmem:[#allocation21 + $0x3b0] sm:$0xff]  ;;  %3836 = vmatpush2.msra.mxu0 %v3632_v19 }
 0x645   :  { %3199 = vmatpush2.msra.mxu1 %v3017_v56  ;;  %v2902_v56 = vld [vmem:[#allocation21 + $0x378] sm:$0xff]  ;;  %3837 = vmatprep.subr.mxu0 %v3625_v44  ;;  %v2845_v13 = vld [vmem:[#allocation21 + $0x1b0] sm:$0xff] }
 0x646   :  { %3200 = vmatprep.subr.mxu1 %v3010_v55  ;;  %v2901_v55 = vld [vmem:[#allocation21 + $0x370] sm:$0xff] }
 0x647   :  { %3201 = vmatpush2.msra.mxu1 %v3009_v60  ;;  %v2894_v60 = vld [vmem:[#allocation21 + $0x338] sm:$0xff]  ;;  %v2837_v40 = vld [vmem:[#allocation21 + $0x170] sm:$0xff] }
 0x648   :  { %3202 = vmatprep.subr.mxu1 %v3002_v63  ;;  %v2893_v63 = vld [vmem:[#allocation21 + $0x330] sm:$0xff] }
 0x649   :  { %3203 = vmatpush2.msra.mxu1 %v3001_v21  ;;  %v2886_v21 = vld [vmem:[#allocation21 + $0x2f8] sm:$0xff]  ;;  %v2829_v20 = vld [vmem:[#allocation21 + $0x130] sm:$0xff] }
 0x64a   :  { %3204 = vmatprep.subr.mxu1 %v2994_v1  ;;  %v3624_v1 = vld [vmem:[#allocation21 + $0xc80] sm:$0xff]  ;;  %v2821_v45 = vld [vmem:[#allocation21 + $0xf0] sm:$0xff] }
 0x64b   :  { %3205 = vmatpush2.msra.mxu1 %v2993_v8  ;;  %v3617_v8 = vld [vmem:[#allocation21 + $0xc48] sm:$0xff]  ;;  %3838 = vmatpush2.msra.mxu0 %v3624_v1  ;;  %v3021_v54 = vld [vmem:[#allocation21 + $0x730] sm:$0xff] }
 0x64c   :  { %3206 = vmatprep.subr.mxu1 %v2986_v62  ;;  %v3616_v62 = vld [vmem:[#allocation21 + $0xc40] sm:$0xff]  ;;  %3839 = vmatprep.subr.mxu0 %v3617_v8  ;;  %v3013_v57 = vld [vmem:[#allocation21 + $0x6f0] sm:$0xff] }
 0x64d   :  { %3207 = vmatpush2.msra.mxu1 %v2985_v18  ;;  %v3609_v18 = vld [vmem:[#allocation21 + $0xc08] sm:$0xff]  ;;  %3840 = vmatpush2.msra.mxu0 %v3616_v62  ;;  %v3005_v58 = vld [vmem:[#allocation21 + $0x6b0] sm:$0xff] }
 0x64e   :  { %3208 = vmatprep.subr.mxu1 %v2978_v7  ;;  %v2869_v7 = vld [vmem:[#allocation21 + $0x270] sm:$0xff]  ;;  %3841 = vmatprep.subr.mxu0 %v3609_v18 }
 0x64f   :  { %3209 = vmatpush2.msra.mxu1 %v2977_v52  ;;  %v3605_v52 = vld [vmem:[#allocation21 + $0xbe8] sm:$0xff]  ;;  %3842 = vmatpush2.msra.mxu0 %v3608_v10  ;;  %v2997_v61 = vld [vmem:[#allocation21 + $0x670] sm:$0xff]  ;;  %v2942_v10 = vld [vmem:[#allocation21 + $0x4b8] sm:$0xff] }
 0x650   :  { %3210 = vmatprep.subr.mxu1 %v2970_v36  ;;  %v2854_v36 = vld [vmem:[#allocation21 + $0x1f8] sm:$0xff]  ;;  %3921 = vmatprep.subr.mxu0 %v3605_v52  ;;  %v2989_v19 = vld [vmem:[#allocation21 + $0x630] sm:$0xff] }
 0x651   :  { %3211 = vmatpush2.msra.mxu1 %v2969_v9  ;;  %v2846_v9 = vld [vmem:[#allocation21 + $0x1b8] sm:$0xff]  ;;  %v2981_v44 = vld [vmem:[#allocation21 + $0x5f0] sm:$0xff] }
 0x652   :  { %3212 = vmatprep.subr.mxu1 %v2962_v28  ;;  %v2838_v28 = vld [vmem:[#allocation21 + $0x178] sm:$0xff]  ;;  %v2973_v1 = vld [vmem:[#allocation21 + $0x5b0] sm:$0xff] }
 0x653   :  { %3213 = vmatpush2.msra.mxu1 %v2961_v16  ;;  %v2830_v16 = vld [vmem:[#allocation21 + $0x138] sm:$0xff]  ;;  %v2965_v8 = vld [vmem:[#allocation21 + $0x570] sm:$0xff] }
 0x654   :  { %3214 = vmatprep.subr.mxu1 %v2954_v25  ;;  %v2822_v25 = vld [vmem:[#allocation21 + $0xf8] sm:$0xff]  ;;  %v2957_v62 = vld [vmem:[#allocation21 + $0x530] sm:$0xff] }
 0x655   :  { %3215 = vmatpush2.msra.mxu1 %v2953_v29  ;;  %v2814_v29 = vld [vmem:[#allocation21 + $0xb8] sm:$0xff]  ;;  %v2949_v18 = vld [vmem:[#allocation21 + $0x4f0] sm:$0xff] }
 0x656   :  { %3216 = vmatprep.subr.mxu1 %v2946_v3  ;;  %v2813_v3 = vld [vmem:[#allocation21 + $0xb0] sm:$0xff] }
 0x657   :  { %3217 = vmatpush2.msra.mxu1 %v2945_v31  ;;  %v2806_v31 = vld [vmem:[#allocation21 + $0x78] sm:$0xff]  ;;  %v2933_v52 = vld [vmem:[#allocation21 + $0x470] sm:$0xff] }
 0x658   :  { %3218 = vmatprep.subr.mxu1 %v2938_v33  ;;  %v2805_v33 = vld [vmem:[#allocation21 + $0x70] sm:$0xff] }
 0x659   :  { %3219 = vmatpush2.msra.mxu1 %v2937_v35  ;;  %v2798_v35 = vld [vmem:[#allocation21 + $0x38] sm:$0xff] }
 0x65a   :  { %3220 = vmatprep.subr.mxu1 %v2930_v23  ;;  %v2797_v23 = vld [vmem:[#allocation21 + $0x30] sm:$0xff] }
 0x65b   :  { %3221 = vmatpush2.msra.mxu1 %v2929_v38  ;;  %v3046_v38 = vld [vmem:[#allocation21 + $0x7f8] sm:$0xff] }
 0x65c   :  { %3222 = vmatprep.subr.mxu1 %v2922_v43  ;;  %v3045_v43 = vld [vmem:[#allocation21 + $0x7f0] sm:$0xff] }
 0x65d   :  { %3223 = vmatpush2.msra.mxu1 %v2921_v46  ;;  %v3038_v46 = vld [vmem:[#allocation21 + $0x7b8] sm:$0xff] }
 0x65e   :  { %3225 = vmatmul.mubr.f32.vlgmr.msra.gmra.mxu1 %v7509_v32  ;;  %3302 = vmatprep.subr.mxu1 %v2918_v50  ;;  %v3037_v50 = vld [vmem:[#allocation21 + $0x7b0] sm:$0xff] }
 0x65f   :  { %3303 = vmatpush1.msra.mxu1 %v2917_v53  ;;  %3366 = vmatprep.mubr.f32.mxu1 %v7490_v59  ;;  %v2885_v59 = vld [vmem:[#allocation21 + $0x2f0] sm:$0xff]  ;;  %v3030_v53 = vld [vmem:[#allocation21 + $0x778] sm:$0xff] }
 0x660   :  { %3304 = vmatprep.subr.mxu1 %v2910_v34  ;;  %v3029_v34 = vld [vmem:[#allocation21 + $0x770] sm:$0xff] }
 0x661   :  { %3305 = vmatpush1.msra.mxu1 %v2909_v37  ;;  %v3022_v37 = vld [vmem:[#allocation21 + $0x738] sm:$0xff] }
 0x662   :  { %3306 = vmatprep.subr.mxu1 %v2902_v56  ;;  %v3014_v56 = vld [vmem:[#allocation21 + $0x6f8] sm:$0xff] }
 0x663   :  { %3307 = vmatpush1.msra.mxu1 %v2901_v55  ;;  %v3006_v55 = vld [vmem:[#allocation21 + $0x6b8] sm:$0xff] }
 0x664   :  { %3308 = vmatprep.subr.mxu1 %v2894_v60  ;;  %v2998_v60 = vld [vmem:[#allocation21 + $0x678] sm:$0xff] }
 0x665   :  { %3309 = vmatpush1.msra.mxu1 %v2893_v63  ;;  %v2990_v63 = vld [vmem:[#allocation21 + $0x638] sm:$0xff] }
 0x666   :  { %3310 = vmatprep.subr.mxu1 %v2886_v21  ;;  %v2982_v21 = vld [vmem:[#allocation21 + $0x5f8] sm:$0xff] }
 0x667   :  { %3311 = vmatpush1.msra.mxu1 %v2885_v59  ;;  %v2974_v59 = vld [vmem:[#allocation21 + $0x5b8] sm:$0xff] }
 0x668   :  { %3312 = vmatprep.subr.mxu1 %v2878_v39  ;;  %v2966_v39 = vld [vmem:[#allocation21 + $0x578] sm:$0xff] }
 0x669   :  { %3313 = vmatpush1.msra.mxu1 %v2877_v4  ;;  %v2958_v4 = vld [vmem:[#allocation21 + $0x538] sm:$0xff] }
 0x66a   :  { %3314 = vmatprep.subr.mxu1 %v2870_v5  ;;  %v2950_v5 = vld [vmem:[#allocation21 + $0x4f8] sm:$0xff] }
 0x66b   :  { %3315 = vmatpush1.msra.mxu1 %v2869_v7  ;;  %v2941_v7 = vld [vmem:[#allocation21 + $0x4b0] sm:$0xff] }
 0x66c   :  { %3316 = vmatprep.subr.mxu1 %v2862_v47  ;;  %v2934_v47 = vld [vmem:[#allocation21 + $0x478] sm:$0xff] }
 0x66d   :  { %3317 = vmatpush1.msra.mxu1 %v2861_v51  ;;  %v2926_v51 = vld [vmem:[#allocation21 + $0x438] sm:$0xff] }
 0x66e   :  { %3318 = vmatprep.subr.mxu1 %v2854_v36  ;;  %v2925_v36 = vld [vmem:[#allocation21 + $0x430] sm:$0xff] }
 0x66f   :  { %3319 = vmatpush1.msra.mxu1 %v2853_v15  ;;  %v3603_v15 = vld [vmem:[#allocation21 + $0xbd8] sm:$0xff] }
 0x670   :  { %3320 = vmatprep.subr.mxu1 %v2846_v9  ;;  %v3602_v9 = vld [vmem:[#allocation21 + $0xbd0] sm:$0xff] }
 0x671   :  { %3321 = vmatpush1.msra.mxu1 %v2845_v13  ;;  %v3595_v13 = vld [vmem:[#allocation21 + $0xb98] sm:$0xff] }
 0x672   :  { %3322 = vmatprep.subr.mxu1 %v2838_v28  ;;  %v3594_v28 = vld [vmem:[#allocation21 + $0xb90] sm:$0xff] }
 0x673   :  { %3323 = vmatpush1.msra.mxu1 %v2837_v40  ;;  %v3587_v40 = vld [vmem:[#allocation21 + $0xb58] sm:$0xff] }
 0x674   :  { %3324 = vmatprep.subr.mxu1 %v2830_v16  ;;  %v3586_v16 = vld [vmem:[#allocation21 + $0xb50] sm:$0xff] }
 0x675   :  { %3325 = vmatpush1.msra.mxu1 %v2829_v20  ;;  %v3579_v20 = vld [vmem:[#allocation21 + $0xb18] sm:$0xff] }
 0x676   :  { %3326 = vmatprep.subr.mxu1 %v2822_v25  ;;  %v3578_v25 = vld [vmem:[#allocation21 + $0xb10] sm:$0xff] }
 0x677   :  { %3327 = vmatpush1.msra.mxu1 %v2821_v45  ;;  %v3571_v45 = vld [vmem:[#allocation21 + $0xad8] sm:$0xff] }
 0x678   :  { %3328 = vmatprep.subr.mxu1 %v2814_v29  ;;  %v3570_v29 = vld [vmem:[#allocation21 + $0xad0] sm:$0xff] }
 0x679   :  { %3329 = vmatpush1.msra.mxu1 %v2813_v3  ;;  %v3563_v3 = vld [vmem:[#allocation21 + $0xa98] sm:$0xff] }
 0x67a   :  { %3330 = vmatprep.subr.mxu1 %v2806_v31  ;;  %v3562_v31 = vld [vmem:[#allocation21 + $0xa90] sm:$0xff] }
 0x67b   :  { %3331 = vmatpush1.msra.mxu1 %v2805_v33  ;;  %v3554_v33 = vld [vmem:[#allocation21 + $0xa50] sm:$0xff] }
 0x67c   :  { %3332 = vmatprep.subr.mxu1 %v2798_v35  ;;  %v3547_v35 = vld [vmem:[#allocation21 + $0xa18] sm:$0xff] }
 0x67d   :  { %3333 = vmatpush1.msra.mxu1 %v2797_v23  ;;  %v3546_v23 = vld [vmem:[#allocation21 + $0xa10] sm:$0xff] }
 0x67e   :  { %3334 = vmatprep.subr.mxu1 %v3046_v38  ;;  %v3539_v38 = vld [vmem:[#allocation21 + $0x9d8] sm:$0xff] }
 0x67f   :  { %3335 = vmatpush2.msra.mxu1 %v3045_v43  ;;  %v3538_v43 = vld [vmem:[#allocation21 + $0x9d0] sm:$0xff] }
 0x680   :  { %3336 = vmatprep.subr.mxu1 %v3038_v46  ;;  %v3531_v46 = vld [vmem:[#allocation21 + $0x998] sm:$0xff] }
 0x681   :  { %3337 = vmatpush2.msra.mxu1 %v3037_v50  ;;  %v3530_v50 = vld [vmem:[#allocation21 + $0x990] sm:$0xff] }
 0x682   :  { %3338 = vmatprep.subr.mxu1 %v3030_v53  ;;  %v3523_v53 = vld [vmem:[#allocation21 + $0x958] sm:$0xff] }
 0x683   :  { %3339 = vmatpush2.msra.mxu1 %v3029_v34  ;;  %v3522_v34 = vld [vmem:[#allocation21 + $0x950] sm:$0xff] }
 0x684   :  { %3340 = vmatprep.subr.mxu1 %v3022_v37  ;;  %v3515_v37 = vld [vmem:[#allocation21 + $0x918] sm:$0xff] }
 0x685   :  { %3341 = vmatpush2.msra.mxu1 %v3021_v54  ;;  %v3514_v54 = vld [vmem:[#allocation21 + $0x910] sm:$0xff] }
 0x686   :  { %3342 = vmatprep.subr.mxu1 %v3014_v56  ;;  %v3507_v56 = vld [vmem:[#allocation21 + $0x8d8] sm:$0xff] }
 0x687   :  { %3343 = vmatpush2.msra.mxu1 %v3013_v57  ;;  %v3506_v57 = vld [vmem:[#allocation21 + $0x8d0] sm:$0xff] }
 0x688   :  { %3344 = vmatprep.subr.mxu1 %v3006_v55  ;;  %v3499_v55 = vld [vmem:[#allocation21 + $0x898] sm:$0xff] }
 0x689   :  { %3345 = vmatpush2.msra.mxu1 %v3005_v58  ;;  %v3498_v58 = vld [vmem:[#allocation21 + $0x890] sm:$0xff] }
 0x68a   :  { %3346 = vmatprep.subr.mxu1 %v2998_v60  ;;  %v3491_v60 = vld [vmem:[#allocation21 + $0x858] sm:$0xff] }
 0x68b   :  { %3347 = vmatpush2.msra.mxu1 %v2997_v61  ;;  %v3490_v61 = vld [vmem:[#allocation21 + $0x850] sm:$0xff] }
 0x68c   :  { %3348 = vmatprep.subr.mxu1 %v2990_v63  ;;  %v3483_v63 = vld [vmem:[#allocation21 + $0x818] sm:$0xff] }
 0x68d   :  { %3349 = vmatpush2.msra.mxu1 %v2989_v19  ;;  %v3482_v19 = vld [vmem:[#allocation21 + $0x810] sm:$0xff] }
 0x68e   :  { %3350 = vmatprep.subr.mxu1 %v2982_v21  ;;  %v3731_v21 = vld [vmem:[#allocation21 + $0xfd8] sm:$0xff] }
 0x68f   :  { %3351 = vmatpush2.msra.mxu1 %v2981_v44  ;;  %v3730_v44 = vld [vmem:[#allocation21 + $0xfd0] sm:$0xff] }
 0x690   :  { %3352 = vmatprep.subr.mxu1 %v2974_v59  ;;  %v3723_v59 = vld [vmem:[#allocation21 + $0xf98] sm:$0xff] }
 0x691   :  { %3353 = vmatpush2.msra.mxu1 %v2973_v1  ;;  %v3722_v1 = vld [vmem:[#allocation21 + $0xf90] sm:$0xff] }
 0x692   :  { %3354 = vmatprep.subr.mxu1 %v2966_v39  ;;  %v3715_v39 = vld [vmem:[#allocation21 + $0xf58] sm:$0xff] }
 0x693   :  { %3355 = vmatpush2.msra.mxu1 %v2965_v8  ;;  %v3714_v8 = vld [vmem:[#allocation21 + $0xf50] sm:$0xff] }
 0x694   :  { %3356 = vmatprep.subr.mxu1 %v2958_v4  ;;  %v3707_v4 = vld [vmem:[#allocation21 + $0xf18] sm:$0xff] }
 0x695   :  { %3357 = vmatpush2.msra.mxu1 %v2957_v62  ;;  %v3706_v62 = vld [vmem:[#allocation21 + $0xf10] sm:$0xff] }
 0x696   :  { %3358 = vmatprep.subr.mxu1 %v2950_v5  ;;  %v3699_v5 = vld [vmem:[#allocation21 + $0xed8] sm:$0xff] }
 0x697   :  { %3359 = vmatpush2.msra.mxu1 %v2949_v18  ;;  %v3698_v18 = vld [vmem:[#allocation21 + $0xed0] sm:$0xff] }
 0x698   :  { %3360 = vmatprep.subr.mxu1 %v2942_v10  ;;  %v3691_v10 = vld [vmem:[#allocation21 + $0xe98] sm:$0xff] }
 0x699   :  { %3361 = vmatpush2.msra.mxu1 %v2941_v7  ;;  %v3690_v7 = vld [vmem:[#allocation21 + $0xe90] sm:$0xff] }
 0x69a   :  { %3362 = vmatprep.subr.mxu1 %v2934_v47  ;;  %v3683_v47 = vld [vmem:[#allocation21 + $0xe58] sm:$0xff] }
 0x69b   :  { %3363 = vmatpush2.msra.mxu1 %v2933_v52  ;;  %v3682_v52 = vld [vmem:[#allocation21 + $0xe50] sm:$0xff] }
 0x69c   :  { %3364 = vmatprep.subr.mxu1 %v2926_v51  ;;  %v3675_v51 = vld [vmem:[#allocation21 + $0xe18] sm:$0xff] }
 0x69d   :  { %3365 = vmatpush2.msra.mxu1 %v2925_v36  ;;  %v3674_v36 = vld [vmem:[#allocation21 + $0xe10] sm:$0xff] }
 0x69e   :  { %3367 = vmatmul.mubr.f32.vlgmr.msra.gmra.mxu1 %v7509_v32  ;;  %3850 = vmatprep.subr.mxu1 %v3603_v15  ;;  %v3555_v32 = vld [vmem:[#allocation21 + $0xa58] sm:$0xff] }
 0x69f   :  { %3851 = vmatpush1.msra.mxu1 %v3602_v9  ;;  %v3667_v15 = vld [vmem:[#allocation21 + $0xdd8] sm:$0xff]  ;;  %v3666_v9 = vld [vmem:[#allocation21 + $0xdd0] sm:$0xff] }
 0x6a0   :  { %3852 = vmatprep.subr.mxu1 %v3595_v13  ;;  %v3659_v13 = vld [vmem:[#allocation21 + $0xd98] sm:$0xff] }
 0x6a1   :  { %3853 = vmatpush1.msra.mxu1 %v3594_v28  ;;  %v3658_v28 = vld [vmem:[#allocation21 + $0xd90] sm:$0xff] }
 0x6a2   :  { %3854 = vmatprep.subr.mxu1 %v3587_v40  ;;  %v3651_v40 = vld [vmem:[#allocation21 + $0xd58] sm:$0xff] }
 0x6a3   :  { %3855 = vmatpush1.msra.mxu1 %v3586_v16  ;;  %v3650_v16 = vld [vmem:[#allocation21 + $0xd50] sm:$0xff] }
 0x6a4   :  { %3856 = vmatprep.subr.mxu1 %v3579_v20  ;;  %v3643_v20 = vld [vmem:[#allocation21 + $0xd18] sm:$0xff] }
 0x6a5   :  { %3857 = vmatpush1.msra.mxu1 %v3578_v25  ;;  %v3642_v25 = vld [vmem:[#allocation21 + $0xd10] sm:$0xff] }
 0x6a6   :  { %3858 = vmatprep.subr.mxu1 %v3571_v45  ;;  %v3635_v45 = vld [vmem:[#allocation21 + $0xcd8] sm:$0xff] }
 0x6a7   :  { %3859 = vmatpush1.msra.mxu1 %v3570_v29  ;;  %v3634_v29 = vld [vmem:[#allocation21 + $0xcd0] sm:$0xff] }
 0x6a8   :  { %3860 = vmatprep.subr.mxu1 %v3563_v3  ;;  %v3627_v3 = vld [vmem:[#allocation21 + $0xc98] sm:$0xff] }
 0x6a9   :  { %3861 = vmatpush1.msra.mxu1 %v3562_v31  ;;  %v3626_v31 = vld [vmem:[#allocation21 + $0xc90] sm:$0xff] }
 0x6aa   :  { %3862 = vmatprep.subr.mxu1 %v3555_v32  ;;  %v3619_v32 = vld [vmem:[#allocation21 + $0xc58] sm:$0xff] }
 0x6ab   :  { %3863 = vmatpush1.msra.mxu1 %v3554_v33  ;;  %v3618_v33 = vld [vmem:[#allocation21 + $0xc50] sm:$0xff] }
 0x6ac   :  { %3864 = vmatprep.subr.mxu1 %v3547_v35  ;;  %v3611_v35 = vld [vmem:[#allocation21 + $0xc18] sm:$0xff] }
 0x6ad   :  { %3865 = vmatpush1.msra.mxu1 %v3546_v23  ;;  %v3610_v23 = vld [vmem:[#allocation21 + $0xc10] sm:$0xff] }
 0x6ae   :  { %3866 = vmatprep.subr.mxu1 %v3539_v38  ;;  %v3607_v38 = vld [vmem:[#allocation21 + $0xbf8] sm:$0xff] }
 0x6af   :  { %3867 = vmatpush1.msra.mxu1 %v3538_v43 }
 0x6b0   :  { %3868 = vmatprep.subr.mxu1 %v3531_v46 }
 0x6b1   :  { %3869 = vmatpush1.msra.mxu1 %v3530_v50 }
 0x6b2   :  { %3870 = vmatprep.subr.mxu1 %v3523_v53 }
 0x6b3   :  { %3871 = vmatpush1.msra.mxu1 %v3522_v34 }
 0x6b4   :  { %3872 = vmatprep.subr.mxu1 %v3515_v37 }
 0x6b5   :  { %3873 = vmatpush1.msra.mxu1 %v3514_v54 }
 0x6b6   :  { %3874 = vmatprep.subr.mxu1 %v3507_v56 }
 0x6b7   :  { %3875 = vmatpush1.msra.mxu1 %v3506_v57 }
 0x6b8   :  { %3876 = vmatprep.subr.mxu1 %v3499_v55 }
 0x6b9   :  { %3877 = vmatpush1.msra.mxu1 %v3498_v58  ;;  %v3604_v58 = vld [vmem:[#allocation21 + $0xbe0] sm:$0xff] }
 0x6ba   :  { %3878 = vmatprep.subr.mxu1 %v3491_v60  ;;  %v3606_v60 = vld [vmem:[#allocation21 + $0xbf0] sm:$0xff] }
 0x6bb   :  { %3879 = vmatpush1.msra.mxu1 %v3490_v61  ;;  %v3597_v61 = vld [vmem:[#allocation21 + $0xba8] sm:$0xff] }
 0x6bc   :  { %3880 = vmatprep.subr.mxu1 %v3483_v63  ;;  %v3590_v63 = vld [vmem:[#allocation21 + $0xb70] sm:$0xff] }
 0x6bd   :  { %3881 = vmatpush1.msra.mxu1 %v3482_v19  ;;  %v3581_v19 = vld [vmem:[#allocation21 + $0xb28] sm:$0xff] }
 0x6be   :  { %3882 = vmatprep.subr.mxu1 %v3731_v21  ;;  %v3583_v21 = vld [vmem:[#allocation21 + $0xb38] sm:$0xff] }
 0x6bf   :  { %3883 = vmatpush2.msra.mxu1 %v3730_v44  ;;  %v3580_v44 = vld [vmem:[#allocation21 + $0xb20] sm:$0xff] }
 0x6c0   :  { %3884 = vmatprep.subr.mxu1 %v3723_v59  ;;  %v3582_v59 = vld [vmem:[#allocation21 + $0xb30] sm:$0xff] }
 0x6c1   :  { %3885 = vmatpush2.msra.mxu1 %v3722_v1  ;;  %v3573_v1 = vld [vmem:[#allocation21 + $0xae8] sm:$0xff] }
 0x6c2   :  { %3886 = vmatprep.subr.mxu1 %v3715_v39  ;;  %v3575_v39 = vld [vmem:[#allocation21 + $0xaf8] sm:$0xff] }
 0x6c3   :  { %3887 = vmatpush2.msra.mxu1 %v3714_v8  ;;  %v3572_v8 = vld [vmem:[#allocation21 + $0xae0] sm:$0xff] }
 0x6c4   :  { %3888 = vmatprep.subr.mxu1 %v3707_v4  ;;  %v3574_v4 = vld [vmem:[#allocation21 + $0xaf0] sm:$0xff] }
 0x6c5   :  { %3889 = vmatpush2.msra.mxu1 %v3706_v62  ;;  %v3565_v62 = vld [vmem:[#allocation21 + $0xaa8] sm:$0xff] }
 0x6c6   :  { %3890 = vmatprep.subr.mxu1 %v3699_v5  ;;  %v3567_v5 = vld [vmem:[#allocation21 + $0xab8] sm:$0xff] }
 0x6c7   :  { %3891 = vmatpush2.msra.mxu1 %v3698_v18  ;;  %v3564_v18 = vld [vmem:[#allocation21 + $0xaa0] sm:$0xff] }
 0x6c8   :  { %3892 = vmatprep.subr.mxu1 %v3691_v10  ;;  %v3566_v10 = vld [vmem:[#allocation21 + $0xab0] sm:$0xff] }
 0x6c9   :  { %3893 = vmatpush2.msra.mxu1 %v3690_v7  ;;  %v3557_v7 = vld [vmem:[#allocation21 + $0xa68] sm:$0xff] }
 0x6ca   :  { %3894 = vmatprep.subr.mxu1 %v3683_v47  ;;  %v3559_v47 = vld [vmem:[#allocation21 + $0xa78] sm:$0xff] }
 0x6cb   :  { %3895 = vmatpush2.msra.mxu1 %v3682_v52  ;;  %v3556_v52 = vld [vmem:[#allocation21 + $0xa60] sm:$0xff] }
 0x6cc   :  { %3896 = vmatprep.subr.mxu1 %v3675_v51  ;;  %v3558_v51 = vld [vmem:[#allocation21 + $0xa70] sm:$0xff] }
 0x6cd   :  { %3897 = vmatpush2.msra.mxu1 %v3674_v36  ;;  %v3549_v36 = vld [vmem:[#allocation21 + $0xa28] sm:$0xff] }
 0x6ce   :  { %3898 = vmatprep.subr.mxu1 %v3667_v15  ;;  %v3551_v15 = vld [vmem:[#allocation21 + $0xa38] sm:$0xff] }
 0x6cf   :  { %3899 = vmatpush2.msra.mxu1 %v3666_v9  ;;  %v3548_v9 = vld [vmem:[#allocation21 + $0xa20] sm:$0xff] }
 0x6d0   :  { %3900 = vmatprep.subr.mxu1 %v3659_v13  ;;  %v3550_v13 = vld [vmem:[#allocation21 + $0xa30] sm:$0xff] }
 0x6d1   :  { %3901 = vmatpush2.msra.mxu1 %v3658_v28  ;;  %v3541_v28 = vld [vmem:[#allocation21 + $0x9e8] sm:$0xff] }
 0x6d2   :  { %3902 = vmatprep.subr.mxu1 %v3651_v40  ;;  %v3543_v40 = vld [vmem:[#allocation21 + $0x9f8] sm:$0xff] }
 0x6d3   :  { %3903 = vmatpush2.msra.mxu1 %v3650_v16  ;;  %v3540_v16 = vld [vmem:[#allocation21 + $0x9e0] sm:$0xff] }
 0x6d4   :  { %3904 = vmatprep.subr.mxu1 %v3643_v20  ;;  %v3542_v20 = vld [vmem:[#allocation21 + $0x9f0] sm:$0xff] }
 0x6d5   :  { %3905 = vmatpush2.msra.mxu1 %v3642_v25  ;;  %v3533_v25 = vld [vmem:[#allocation21 + $0x9a8] sm:$0xff] }
 0x6d6   :  { %3906 = vmatprep.subr.mxu1 %v3635_v45  ;;  %v3535_v45 = vld [vmem:[#allocation21 + $0x9b8] sm:$0xff] }
 0x6d7   :  { %3907 = vmatpush2.msra.mxu1 %v3634_v29  ;;  %v3532_v29 = vld [vmem:[#allocation21 + $0x9a0] sm:$0xff] }
 0x6d8   :  { %3908 = vmatprep.subr.mxu1 %v3627_v3  ;;  %v3534_v3 = vld [vmem:[#allocation21 + $0x9b0] sm:$0xff] }
 0x6d9   :  { %3909 = vmatpush2.msra.mxu1 %v3626_v31  ;;  %v3525_v31 = vld [vmem:[#allocation21 + $0x968] sm:$0xff] }
 0x6da   :  { %3910 = vmatprep.subr.mxu1 %v3619_v32  ;;  %v3527_v32 = vld [vmem:[#allocation21 + $0x978] sm:$0xff] }
 0x6db   :  { %3911 = vmatpush2.msra.mxu1 %v3618_v33  ;;  %v3524_v33 = vld [vmem:[#allocation21 + $0x960] sm:$0xff] }
 0x6dc   :  { %3912 = vmatprep.subr.mxu1 %v3611_v35  ;;  %v3526_v35 = vld [vmem:[#allocation21 + $0x970] sm:$0xff] }
 0x6dd   :  { %3913 = vmatpush2.msra.mxu1 %v3610_v23  ;;  %v3517_v23 = vld [vmem:[#allocation21 + $0x928] sm:$0xff] }
 0x6de   :  { %v2778_v43 = vpop.f32.mrf.mxu1  ;;  %3992 = vmatprep.subr.mxu1 %v3607_v38  ;;  %v3519_v38 = vld [vmem:[#allocation21 + $0x938] sm:$0xff] }
 0x6df   :  { %v2779_v46 = vadd.f32 %v2778_v43, %v7495_v0  ;;  %v3596_v0 = vld [vmem:[#allocation21 + $0xba0] sm:$0xff] }
 0x6e0   :  { %v2780_v50 = vpop.f32.mrf.mxu1  ;;  %v3516_v43 = vld [vmem:[#allocation21 + $0x920] sm:$0xff] }
 0x6e1   :  { %v2783_v53 = vmax.f32 %v2779_v46, 0.0  ;;  %v2781_v34 = vadd.f32 %v2780_v50, %v7470_v26  ;;  %v3599_v26 = vld [vmem:[#allocation21 + $0xbb8] sm:$0xff]  ;;  %v3518_v46 = vld [vmem:[#allocation21 + $0x930] sm:$0xff]  ;;  %v3509_v50 = vld [vmem:[#allocation21 + $0x8e8] sm:$0xff] }
 0x6e3   :  { %v2784_v37 = vmax.f32 %v2781_v34, 0.0  ;;  %v2785_v54 = vmul.f32 %v2783_v53, %v7501_v11  ;;  %v3598_v11 = vld [vmem:[#allocation21 + $0xbb0] sm:$0xff]  ;;  %v3511_v53 = vld [vmem:[#allocation21 + $0x8f8] sm:$0xff]  ;;  %v3508_v34 = vld [vmem:[#allocation21 + $0x8e0] sm:$0xff] }
 0x6e5   :  { %v2786_v56 = vmul.f32 %v2784_v37, %v7480_v49  ;;  %v7530_v55 = vadd.f32 %v2785_v54, %v7506_v12  ;;  %v3589_v49 = vld [vmem:[#allocation21 + $0xb68] sm:$0xff]  ;;  %v3588_v12 = vld [vmem:[#allocation21 + $0xb60] sm:$0xff]  ;;  %v3510_v37 = vld [vmem:[#allocation21 + $0x8f0] sm:$0xff] }
 0x6e6   :  { %v3501_v54 = vld [vmem:[#allocation21 + $0x8a8] sm:$0xff] }
 0x6e7   :  { %v2788_v57 = vadd.f32 %v2786_v56, %v7487_v22  ;;  %v3591_v22 = vld [vmem:[#allocation21 + $0xb78] sm:$0xff] }
 0x6e8   :  { %v3503_v56 = vld [vmem:[#allocation21 + $0x8b8] sm:$0xff] }
 0x6e9   :  { %3843 = vmatprep.mubr.f32.mxu0 %v2788_v57  ;;  %3914 = vmatprep.mubr.f32.mxu1 %v2788_v57 }
 0x6ea   :  { %3844 = vmatmul.mubr.f32.vlgmr.msra.gmra.mxu0 %v7530_v55  ;;  %3915 = vmatmul.mubr.f32.vlgmr.msra.gmra.mxu1 %v7530_v55 }
 0x6eb   :  { %3922 = vmatpush1.msra.mxu0 %v3604_v58  ;;  %3993 = vmatpush1.msra.mxu1 %v3606_v60  ;;  %v3502_v58 = vld [vmem:[#allocation21 + $0x8b0] sm:$0xff]  ;;  %v3493_v60 = vld [vmem:[#allocation21 + $0x868] sm:$0xff] }
 0x6ec   :  { %3923 = vmatprep.subr.mxu0 %v3597_v61  ;;  %3985 = vmatprep.mubr.f32.mxu0 %v2788_v57  ;;  %v3495_v61 = vld [vmem:[#allocation21 + $0x878] sm:$0xff] }
 0x6ed   :  { %3994 = vmatprep.subr.mxu1 %v3599_v26  ;;  %4056 = vmatprep.mubr.f32.mxu1 %v2788_v57  ;;  %v3500_v57 = vld [vmem:[#allocation21 + $0x8a0] sm:$0xff] }
 0x6ee   :  { %3924 = vmatpush1.msra.mxu0 %v3596_v0  ;;  %3995 = vmatpush1.msra.mxu1 %v3598_v11  ;;  %v3492_v26 = vld [vmem:[#allocation21 + $0x860] sm:$0xff]  ;;  %v3494_v0 = vld [vmem:[#allocation21 + $0x870] sm:$0xff]  ;;  %v3485_v11 = vld [vmem:[#allocation21 + $0x828] sm:$0xff] }
 0x6ef   :  { %3925 = vmatprep.subr.mxu0 %v3589_v49  ;;  %3996 = vmatprep.subr.mxu1 %v3591_v22  ;;  %v3487_v49 = vld [vmem:[#allocation21 + $0x838] sm:$0xff]  ;;  %v3484_v22 = vld [vmem:[#allocation21 + $0x820] sm:$0xff] }
 0x6f0   :  { %3926 = vmatpush1.msra.mxu0 %v3588_v12  ;;  %3997 = vmatpush1.msra.mxu1 %v3590_v63  ;;  %v3486_v12 = vld [vmem:[#allocation21 + $0x830] sm:$0xff]  ;;  %v3733_v63 = vld [vmem:[#allocation21 + $0xfe8] sm:$0xff] }
 0x6f1   :  { %3927 = vmatprep.subr.mxu0 %v3581_v19  ;;  %3998 = vmatprep.subr.mxu1 %v3583_v21  ;;  %v3735_v19 = vld [vmem:[#allocation21 + $0xff8] sm:$0xff]  ;;  %v3732_v21 = vld [vmem:[#allocation21 + $0xfe0] sm:$0xff] }
 0x6f2   :  { %3928 = vmatpush1.msra.mxu0 %v3580_v44  ;;  %3999 = vmatpush1.msra.mxu1 %v3582_v59  ;;  %v3734_v44 = vld [vmem:[#allocation21 + $0xff0] sm:$0xff]  ;;  %v3725_v59 = vld [vmem:[#allocation21 + $0xfa8] sm:$0xff] }
 0x6f3   :  { %3929 = vmatprep.subr.mxu0 %v3573_v1  ;;  %4000 = vmatprep.subr.mxu1 %v3575_v39  ;;  %v3727_v1 = vld [vmem:[#allocation21 + $0xfb8] sm:$0xff]  ;;  %v3724_v39 = vld [vmem:[#allocation21 + $0xfa0] sm:$0xff] }
 0x6f4   :  { %3930 = vmatpush1.msra.mxu0 %v3572_v8  ;;  %4001 = vmatpush1.msra.mxu1 %v3574_v4  ;;  %v3726_v8 = vld [vmem:[#allocation21 + $0xfb0] sm:$0xff]  ;;  %v3717_v4 = vld [vmem:[#allocation21 + $0xf68] sm:$0xff] }
 0x6f5   :  { %3931 = vmatprep.subr.mxu0 %v3565_v62  ;;  %4002 = vmatprep.subr.mxu1 %v3567_v5  ;;  %v3719_v62 = vld [vmem:[#allocation21 + $0xf78] sm:$0xff]  ;;  %v3716_v5 = vld [vmem:[#allocation21 + $0xf60] sm:$0xff] }
 0x6f6   :  { %3932 = vmatpush1.msra.mxu0 %v3564_v18  ;;  %4003 = vmatpush1.msra.mxu1 %v3566_v10  ;;  %v3718_v18 = vld [vmem:[#allocation21 + $0xf70] sm:$0xff]  ;;  %v3709_v10 = vld [vmem:[#allocation21 + $0xf28] sm:$0xff] }
 0x6f7   :  { %3933 = vmatprep.subr.mxu0 %v3557_v7  ;;  %4004 = vmatprep.subr.mxu1 %v3559_v47  ;;  %v3711_v7 = vld [vmem:[#allocation21 + $0xf38] sm:$0xff]  ;;  %v3708_v47 = vld [vmem:[#allocation21 + $0xf20] sm:$0xff] }
 0x6f8   :  { %3934 = vmatpush1.msra.mxu0 %v3556_v52  ;;  %4005 = vmatpush1.msra.mxu1 %v3558_v51  ;;  %v3710_v52 = vld [vmem:[#allocation21 + $0xf30] sm:$0xff]  ;;  %v3701_v51 = vld [vmem:[#allocation21 + $0xee8] sm:$0xff] }
 0x6f9   :  { %3935 = vmatprep.subr.mxu0 %v3549_v36  ;;  %4006 = vmatprep.subr.mxu1 %v3551_v15  ;;  %v3703_v36 = vld [vmem:[#allocation21 + $0xef8] sm:$0xff]  ;;  %v3700_v15 = vld [vmem:[#allocation21 + $0xee0] sm:$0xff] }
 0x6fa   :  { %3936 = vmatpush1.msra.mxu0 %v3548_v9  ;;  %4007 = vmatpush1.msra.mxu1 %v3550_v13  ;;  %v3702_v9 = vld [vmem:[#allocation21 + $0xef0] sm:$0xff]  ;;  %v3693_v13 = vld [vmem:[#allocation21 + $0xea8] sm:$0xff] }
 0x6fb   :  { %3937 = vmatprep.subr.mxu0 %v3541_v28  ;;  %4008 = vmatprep.subr.mxu1 %v3543_v40  ;;  %v3695_v28 = vld [vmem:[#allocation21 + $0xeb8] sm:$0xff]  ;;  %v3692_v40 = vld [vmem:[#allocation21 + $0xea0] sm:$0xff] }
 0x6fc   :  { %3938 = vmatpush1.msra.mxu0 %v3540_v16  ;;  %4009 = vmatpush1.msra.mxu1 %v3542_v20  ;;  %v3694_v16 = vld [vmem:[#allocation21 + $0xeb0] sm:$0xff]  ;;  %v3685_v20 = vld [vmem:[#allocation21 + $0xe68] sm:$0xff] }
 0x6fd   :  { %3939 = vmatprep.subr.mxu0 %v3533_v25  ;;  %4010 = vmatprep.subr.mxu1 %v3535_v45  ;;  %v3687_v25 = vld [vmem:[#allocation21 + $0xe78] sm:$0xff]  ;;  %v3684_v45 = vld [vmem:[#allocation21 + $0xe60] sm:$0xff] }
 0x6fe   :  { %3940 = vmatpush1.msra.mxu0 %v3532_v29  ;;  %4011 = vmatpush1.msra.mxu1 %v3534_v3  ;;  %v3686_v29 = vld [vmem:[#allocation21 + $0xe70] sm:$0xff]  ;;  %v3677_v3 = vld [vmem:[#allocation21 + $0xe28] sm:$0xff] }
 0x6ff   :  { %3941 = vmatprep.subr.mxu0 %v3525_v31  ;;  %4012 = vmatprep.subr.mxu1 %v3527_v32  ;;  %v3679_v31 = vld [vmem:[#allocation21 + $0xe38] sm:$0xff]  ;;  %v7534_v32 = vpop.f32.mrf.mxu0 }
 0x700   :  { %3942 = vmatpush1.msra.mxu0 %v3524_v33  ;;  %4013 = vmatpush1.msra.mxu1 %v3526_v35  ;;  %v3676_v33 = vld [vmem:[#allocation21 + $0xe20] sm:$0xff]  ;;  %v3678_v35 = vld [vmem:[#allocation21 + $0xe30] sm:$0xff] }
 0x701   :  { %3943 = vmatprep.subr.mxu0 %v3517_v23  ;;  %4014 = vmatprep.subr.mxu1 %v3519_v38  ;;  %v3669_v23 = vld [vmem:[#allocation21 + $0xde8] sm:$0xff]  ;;  %v3671_v38 = vld [vmem:[#allocation21 + $0xdf8] sm:$0xff] }
 0x702   :  { %3944 = vmatpush1.msra.mxu0 %v3516_v43  ;;  %4015 = vmatpush1.msra.mxu1 %v3518_v46  ;;  %v7536_v43 = vld [vmem:[#allocation22] sm:$0xff] }
 0x703   :  { %3945 = vmatprep.subr.mxu0 %v3509_v50  ;;  %4016 = vmatprep.subr.mxu1 %v3511_v53  ;;  %v3668_v46 = vld [vmem:[#allocation21 + $0xde0] sm:$0xff]  ;;  %v3670_v50 = vld [vmem:[#allocation21 + $0xdf0] sm:$0xff]  ;;  %v3056_v53 = vrot.slane %v7536_v43, %v7348_v48 }
 0x704   :  { %3946 = vmatpush1.msra.mxu0 %v3508_v34  ;;  %4017 = vmatpush1.msra.mxu1 %v3510_v37  ;;  %v3661_v34 = vld [vmem:[#allocation21 + $0xda8] sm:$0xff]  ;;  %v3663_v37 = vld [vmem:[#allocation21 + $0xdb8] sm:$0xff] }
 0x705   :  { %3947 = vmatprep.subr.mxu0 %v3501_v54  ;;  %4018 = vmatprep.subr.mxu1 %v3503_v56  ;;  %v3157_v54 = vpop.f32.mrf.mxu0  ;;  %v3660_v56 = vld [vmem:[#allocation21 + $0xda0] sm:$0xff] }
 0x706   :  { %3948 = vmatpush1.msra.mxu0 %v3500_v57  ;;  %4019 = vmatpush1.msra.mxu1 %v3502_v58  ;;  %v3662_v57 = vld [vmem:[#allocation21 + $0xdb0] sm:$0xff]  ;;  %v3653_v58 = vld [vmem:[#allocation21 + $0xd68] sm:$0xff] }
 0x707   :  { %3949 = vmatprep.subr.mxu0 %v3493_v60  ;;  %4020 = vmatprep.subr.mxu1 %v3495_v61  ;;  %v3655_v60 = vld [vmem:[#allocation21 + $0xd78] sm:$0xff]  ;;  %v3652_v61 = vld [vmem:[#allocation21 + $0xd60] sm:$0xff] }
 0x708   :  { %3950 = vmatpush1.msra.mxu0 %v3492_v26  ;;  %4021 = vmatpush1.msra.mxu1 %v3494_v0  ;;  %v3654_v26 = vld [vmem:[#allocation21 + $0xd70] sm:$0xff]  ;;  %v3158_v0 = vadd.f32 %v3157_v54, %v3056_v53  ;;  %v4176_v53 = vld [vmem:[#allocation25 + $0xc8] sm:$0xff]  ;;  %v4109_v54 = vld [vmem:[#allocation24 + $0xb0] sm:$0xff] }
 0x709   :  { %3951 = vmatprep.subr.mxu0 %v3485_v11  ;;  %4022 = vmatprep.subr.mxu1 %v3487_v49  ;;  %v3645_v11 = vld [vmem:[#allocation21 + $0xd28] sm:$0xff]  ;;  %v3647_v49 = vld [vmem:[#allocation21 + $0xd38] sm:$0xff] }
 0x70a   :  { %3952 = vmatpush1.msra.mxu0 %v3484_v22  ;;  %4023 = vmatpush1.msra.mxu1 %v3486_v12  ;;  %v3644_v22 = vld [vmem:[#allocation21 + $0xd20] sm:$0xff]  ;;  %v3646_v12 = vld [vmem:[#allocation21 + $0xd30] sm:$0xff] }
 0x70b   :  { %3953 = vmatprep.subr.mxu0 %v3733_v63  ;;  %4024 = vmatprep.subr.mxu1 %v3735_v19  ;;  %v3637_v63 = vld [vmem:[#allocation21 + $0xce8] sm:$0xff]  ;;  %v3639_v19 = vld [vmem:[#allocation21 + $0xcf8] sm:$0xff] }
 0x70c   :  { %3954 = vmatpush2.msra.mxu0 %v3732_v21  ;;  %4025 = vmatpush2.msra.mxu1 %v3734_v44  ;;  %v7540_v21 = vld [vmem:[#allocation18] sm:$0xff]  ;;  %v3636_v44 = vld [vmem:[#allocation21 + $0xce0] sm:$0xff] }
 0x70d   :  { %3955 = vmatprep.subr.mxu0 %v3725_v59  ;;  %4026 = vmatprep.subr.mxu1 %v3727_v1  ;;  %v3638_v59 = vld [vmem:[#allocation21 + $0xcf0] sm:$0xff]  ;;  %v3374_v1 = vmax.f32 %v3158_v0, 0.0 }
 0x70e   :  { %3956 = vmatpush2.msra.mxu0 %v3724_v39  ;;  %4027 = vmatpush2.msra.mxu1 %v3726_v8  ;;  %v7544_v39 = vrot.slane %v7540_v21, %v7348_v48  ;;  %v3629_v8 = vld [vmem:[#allocation21 + $0xca8] sm:$0xff]  ;;  %v4171_v0 = vld [vmem:[#allocation25 + $0xa0] sm:$0xff] }
 0x70f   :  { %3957 = vmatprep.subr.mxu0 %v3717_v4  ;;  %4028 = vmatprep.subr.mxu1 %v3719_v62  ;;  %v3631_v4 = vld [vmem:[#allocation21 + $0xcb8] sm:$0xff]  ;;  %v3628_v62 = vld [vmem:[#allocation21 + $0xca0] sm:$0xff] }
 0x710   :  { %3958 = vmatpush2.msra.mxu0 %v3716_v5  ;;  %4029 = vmatpush2.msra.mxu1 %v3718_v18  ;;  %v3630_v5 = vld [vmem:[#allocation21 + $0xcb0] sm:$0xff]  ;;  %v3621_v18 = vld [vmem:[#allocation21 + $0xc68] sm:$0xff] }
 0x711   :  { %3959 = vmatprep.subr.mxu0 %v3709_v10  ;;  %4030 = vmatprep.subr.mxu1 %v3711_v7  ;;  %v3623_v10 = vld [vmem:[#allocation21 + $0xc78] sm:$0xff] }
 0x712   :  { %3960 = vmatpush2.msra.mxu0 %v3708_v47  ;;  %4031 = vmatpush2.msra.mxu1 %v3710_v52  ;;  %v7546_v7 = vld [vmem:[#allocation19] sm:$0xff]  ;;  %v3620_v47 = vld [vmem:[#allocation21 + $0xc60] sm:$0xff]  ;;  %v3622_v52 = vld [vmem:[#allocation21 + $0xc70] sm:$0xff] }
 0x713   :  { %3961 = vmatprep.subr.mxu0 %v3701_v51  ;;  %4032 = vmatprep.subr.mxu1 %v3703_v36  ;;  %v3423_v51 = vmul.f32 %v7544_v39, %v3374_v1  ;;  %v3613_v36 = vld [vmem:[#allocation21 + $0xc28] sm:$0xff]  ;;  %v4101_v1 = vld [vmem:[#allocation24 + $0x70] sm:$0xff] }
 0x714   :  { %3962 = vmatpush2.msra.mxu0 %v3700_v15  ;;  %4033 = vmatpush2.msra.mxu1 %v3702_v9  ;;  %v3615_v15 = vld [vmem:[#allocation21 + $0xc38] sm:$0xff]  ;;  %v7551_v9 = vrot.slane %v7546_v7, %v7348_v48 }
 0x715   :  { %3963 = vmatprep.subr.mxu0 %v3693_v13  ;;  %4034 = vmatprep.subr.mxu1 %v3695_v28  ;;  %v3612_v13 = vld [vmem:[#allocation21 + $0xc20] sm:$0xff]  ;;  %v3614_v28 = vld [vmem:[#allocation21 + $0xc30] sm:$0xff] }
 0x716   :  { %3964 = vmatpush2.msra.mxu0 %v3692_v40  ;;  %4035 = vmatpush2.msra.mxu1 %v3694_v16  ;;  %v4118_v40 = vld [vmem:[#allocation24 + $0xf8] sm:$0xff]  ;;  %v4117_v16 = vld [vmem:[#allocation24 + $0xf0] sm:$0xff] }
 0x717   :  { %3965 = vmatprep.subr.mxu0 %v3685_v20  ;;  %4036 = vmatprep.subr.mxu1 %v3687_v25  ;;  %v3472_v20 = vadd.f32 %v7551_v9, %v3423_v51  ;;  %v4182_v25 = vld [vmem:[#allocation25 + $0xf8] sm:$0xff] }
 0x718   :  { %3966 = vmatpush2.msra.mxu0 %v3684_v45  ;;  %4037 = vmatpush2.msra.mxu1 %v3686_v29  ;;  %v4116_v45 = vld [vmem:[#allocation24 + $0xe8] sm:$0xff]  ;;  %v4181_v29 = vld [vmem:[#allocation25 + $0xf0] sm:$0xff]  ;;  %v4162_v51 = vld [vmem:[#allocation25 + $0x58] sm:$0xff] }
 0x719   :  { %3967 = vmatprep.subr.mxu0 %v3677_v3  ;;  %4038 = vmatprep.subr.mxu1 %v3679_v31  ;;  %v4115_v3 = vld [vmem:[#allocation24 + $0xe0] sm:$0xff]  ;;  %v4180_v31 = vld [vmem:[#allocation25 + $0xe8] sm:$0xff] }
 0x71a   :  { %3968 = vmatpush2.msra.mxu0 %v3676_v33  ;;  %4039 = vmatpush2.msra.mxu1 %v3678_v35  ;;  %v4114_v33 = vld [vmem:[#allocation24 + $0xd8] sm:$0xff]  ;;  %v4179_v35 = vld [vmem:[#allocation25 + $0xe0] sm:$0xff] }
 0x71b   :  { %3969 = vmatprep.subr.mxu0 %v3669_v23  ;;  %4040 = vmatprep.subr.mxu1 %v3671_v38  ;;  %v4113_v23 = vld [vmem:[#allocation24 + $0xd0] sm:$0xff]  ;;  %v4178_v38 = vld [vmem:[#allocation25 + $0xd8] sm:$0xff] }
 0x71c   :  { %3970 = vmatpush2.msra.mxu0 %v3668_v46  ;;  %4041 = vmatpush2.msra.mxu1 %v3670_v50  ;;  %v4112_v46 = vld [vmem:[#allocation24 + $0xc8] sm:$0xff]  ;;  %v4177_v50 = vld [vmem:[#allocation25 + $0xd0] sm:$0xff] }
 0x71d   :  { %3971 = vmatprep.subr.mxu0 %v3661_v34  ;;  %4042 = vmatprep.subr.mxu1 %v3663_v37  ;;  %v4110_v34 = vld [vmem:[#allocation24 + $0xb8] sm:$0xff]  ;;  %v4175_v37 = vld [vmem:[#allocation25 + $0xc0] sm:$0xff] }
 0x71e   :  { %3972 = vmatpush2.msra.mxu0 %v3660_v56  ;;  %4043 = vmatpush2.msra.mxu1 %v3662_v57  ;;  %v4174_v56 = vld [vmem:[#allocation25 + $0xb8] sm:$0xff]  ;;  %v4108_v57 = vld [vmem:[#allocation24 + $0xa8] sm:$0xff] }
 0x71f   :  { %3973 = vmatprep.subr.mxu0 %v3653_v58  ;;  %4044 = vmatprep.subr.mxu1 %v3655_v60  ;;  %v4173_v58 = vld [vmem:[#allocation25 + $0xb0] sm:$0xff]  ;;  %v4107_v60 = vld [vmem:[#allocation24 + $0xa0] sm:$0xff] }
 0x720   :  { %3974 = vmatpush2.msra.mxu0 %v3652_v61  ;;  %4045 = vmatpush2.msra.mxu1 %v3654_v26  ;;  %v4172_v61 = vld [vmem:[#allocation25 + $0xa8] sm:$0xff]  ;;  %v4106_v26 = vld [vmem:[#allocation24 + $0x98] sm:$0xff] }
 0x721   :  { %3975 = vmatprep.subr.mxu0 %v3645_v11  ;;  %4046 = vmatprep.subr.mxu1 %v3647_v49  ;;  %v4105_v11 = vld [vmem:[#allocation24 + $0x90] sm:$0xff]  ;;  %v4170_v49 = vld [vmem:[#allocation25 + $0x98] sm:$0xff] }
 0x722   :  { %3976 = vmatpush2.msra.mxu0 %v3644_v22  ;;  %4047 = vmatpush2.msra.mxu1 %v3646_v12  ;;  %v4104_v22 = vld [vmem:[#allocation24 + $0x88] sm:$0xff]  ;;  %v4169_v12 = vld [vmem:[#allocation25 + $0x90] sm:$0xff] }
 0x723   :  { %3977 = vmatprep.subr.mxu0 %v3637_v63  ;;  %4048 = vmatprep.subr.mxu1 %v3639_v19  ;;  %v4103_v63 = vld [vmem:[#allocation24 + $0x80] sm:$0xff]  ;;  %v4168_v19 = vld [vmem:[#allocation25 + $0x88] sm:$0xff] }
 0x724   :  { %3978 = vmatpush2.msra.mxu0 %v3636_v44  ;;  %4049 = vmatpush2.msra.mxu1 %v3638_v59  ;;  %v4102_v44 = vld [vmem:[#allocation24 + $0x78] sm:$0xff]  ;;  %v4167_v59 = vld [vmem:[#allocation25 + $0x80] sm:$0xff] }
 0x725   :  { %3979 = vmatprep.subr.mxu0 %v3629_v8  ;;  %4050 = vmatprep.subr.mxu1 %v3631_v4  ;;  %v4166_v8 = vld [vmem:[#allocation25 + $0x78] sm:$0xff]  ;;  %v4100_v4 = vld [vmem:[#allocation24 + $0x68] sm:$0xff] }
 0x726   :  { %3980 = vmatpush2.msra.mxu0 %v3628_v62  ;;  %4051 = vmatpush2.msra.mxu1 %v3630_v5  ;;  %v4165_v62 = vld [vmem:[#allocation25 + $0x70] sm:$0xff]  ;;  %v4099_v5 = vld [vmem:[#allocation24 + $0x60] sm:$0xff] }
 0x727   :  { %3981 = vmatprep.subr.mxu0 %v3621_v18  ;;  %4052 = vmatprep.subr.mxu1 %v3623_v10  ;;  %v4164_v18 = vld [vmem:[#allocation25 + $0x68] sm:$0xff]  ;;  %v4098_v10 = vld [vmem:[#allocation24 + $0x58] sm:$0xff] }
 0x728   :  { %3982 = vmatpush2.msra.mxu0 %v3620_v47  ;;  %4053 = vmatpush2.msra.mxu1 %v3622_v52  ;;  %v4163_v47 = vld [vmem:[#allocation25 + $0x60] sm:$0xff]  ;;  %v4097_v52 = vld [vmem:[#allocation24 + $0x50] sm:$0xff] }
 0x729   :  { %3983 = vmatprep.subr.mxu0 %v3613_v36  ;;  %4054 = vmatprep.subr.mxu1 %v3615_v15  ;;  %v4096_v36 = vld [vmem:[#allocation24 + $0x48] sm:$0xff]  ;;  %v4161_v15 = vld [vmem:[#allocation25 + $0x50] sm:$0xff] }
 0x72a   :  { %3984 = vmatpush2.msra.mxu0 %v3612_v13  ;;  %4055 = vmatpush2.msra.mxu1 %v3614_v28  ;;  %v4095_v13 = vld [vmem:[#allocation24 + $0x40] sm:$0xff]  ;;  %v4160_v28 = vld [vmem:[#allocation25 + $0x48] sm:$0xff] }
 0x72b   :  { %3986 = vmatmul.mubr.f32.vlgmr.msra.gmra.mxu0 %v7530_v55  ;;  %4057 = vmatmul.mubr.f32.vlgmr.msra.gmra.mxu1 %v7530_v55  ;;  %v4111_v55 = vld [vmem:[#allocation24 + $0xc0] sm:$0xff] }
 0x72c   :  { %4286 = vmatprep.subr.mxu1 %v4118_v40  ;;  %4350 = vmatprep.mubr.f32.mxu1 %v3472_v20  ;;  %v4094_v40 = vld [vmem:[#allocation24 + $0x38] sm:$0xff]  ;;  %v4093_v20 = vld [vmem:[#allocation24 + $0x30] sm:$0xff] }
 0x72d   :  { %4287 = vmatpush1.msra.mxu1 %v4117_v16  ;;  %4215 = vmatprep.subr.mxu0 %v4182_v25  ;;  %v4159_v16 = vld [vmem:[#allocation25 + $0x40] sm:$0xff]  ;;  %v4158_v25 = vld [vmem:[#allocation25 + $0x38] sm:$0xff] }
 0x72e   :  { %4288 = vmatprep.subr.mxu1 %v4116_v45  ;;  %4216 = vmatpush1.msra.mxu0 %v4181_v29  ;;  %v4092_v45 = vld [vmem:[#allocation24 + $0x28] sm:$0xff]  ;;  %v4157_v29 = vld [vmem:[#allocation25 + $0x30] sm:$0xff] }
 0x72f   :  { %4289 = vmatpush1.msra.mxu1 %v4115_v3  ;;  %4217 = vmatprep.subr.mxu0 %v4180_v31  ;;  %v4091_v3 = vld [vmem:[#allocation24 + $0x20] sm:$0xff]  ;;  %v4156_v31 = vld [vmem:[#allocation25 + $0x28] sm:$0xff] }
 0x730   :  { %4290 = vmatprep.subr.mxu1 %v4114_v33  ;;  %4218 = vmatpush1.msra.mxu0 %v4179_v35  ;;  %v4090_v33 = vld [vmem:[#allocation24 + $0x18] sm:$0xff]  ;;  %v4155_v35 = vld [vmem:[#allocation25 + $0x20] sm:$0xff] }
 0x731   :  { %4291 = vmatpush1.msra.mxu1 %v4113_v23  ;;  %4219 = vmatprep.subr.mxu0 %v4178_v38  ;;  %v4089_v23 = vld [vmem:[#allocation24 + $0x10] sm:$0xff]  ;;  %v4154_v38 = vld [vmem:[#allocation25 + $0x18] sm:$0xff] }
 0x732   :  { %4292 = vmatprep.subr.mxu1 %v4112_v46  ;;  %4220 = vmatpush1.msra.mxu0 %v4177_v50  ;;  %v4088_v46 = vld [vmem:[#allocation24 + $0x8] sm:$0xff]  ;;  %v4153_v50 = vld [vmem:[#allocation25 + $0x10] sm:$0xff] }
 0x733   :  { %4293 = vmatpush1.msra.mxu1 %v4111_v55  ;;  %4221 = vmatprep.subr.mxu0 %v4176_v53  ;;  %v4087_v55 = vld [vmem:[#allocation24] sm:$0xff]  ;;  %v4152_v53 = vld [vmem:[#allocation25 + $0x8] sm:$0xff] }
 0x734   :  { %4294 = vmatprep.subr.mxu1 %v4110_v34  ;;  %4222 = vmatpush1.msra.mxu0 %v4175_v37  ;;  %v4150_v34 = vld [vmem:[#allocation24 + $0x1f8] sm:$0xff]  ;;  %v4151_v37 = vld [vmem:[#allocation25] sm:$0xff] }
 0x735   :  { %4295 = vmatpush1.msra.mxu1 %v4109_v54  ;;  %4223 = vmatprep.subr.mxu0 %v4174_v56  ;;  %v4149_v54 = vld [vmem:[#allocation24 + $0x1f0] sm:$0xff]  ;;  %v4214_v56 = vld [vmem:[#allocation25 + $0x1f8] sm:$0xff] }
 0x736   :  { %4296 = vmatprep.subr.mxu1 %v4108_v57  ;;  %4224 = vmatpush1.msra.mxu0 %v4173_v58  ;;  %v4148_v57 = vld [vmem:[#allocation24 + $0x1e8] sm:$0xff]  ;;  %v4213_v58 = vld [vmem:[#allocation25 + $0x1f0] sm:$0xff] }
 0x737   :  { %4297 = vmatpush1.msra.mxu1 %v4107_v60  ;;  %4225 = vmatprep.subr.mxu0 %v4172_v61  ;;  %v4147_v60 = vld [vmem:[#allocation24 + $0x1e0] sm:$0xff]  ;;  %v4212_v61 = vld [vmem:[#allocation25 + $0x1e8] sm:$0xff] }
 0x738   :  { %4298 = vmatprep.subr.mxu1 %v4106_v26  ;;  %4226 = vmatpush1.msra.mxu0 %v4171_v0  ;;  %v4146_v26 = vld [vmem:[#allocation24 + $0x1d8] sm:$0xff]  ;;  %v4211_v0 = vld [vmem:[#allocation25 + $0x1e0] sm:$0xff] }
 0x739   :  { %4299 = vmatpush1.msra.mxu1 %v4105_v11  ;;  %4227 = vmatprep.subr.mxu0 %v4170_v49  ;;  %v4145_v11 = vld [vmem:[#allocation24 + $0x1d0] sm:$0xff]  ;;  %v4210_v49 = vld [vmem:[#allocation25 + $0x1d8] sm:$0xff] }
 0x73a   :  { %4300 = vmatprep.subr.mxu1 %v4104_v22  ;;  %4228 = vmatpush1.msra.mxu0 %v4169_v12  ;;  %v4144_v22 = vld [vmem:[#allocation24 + $0x1c8] sm:$0xff]  ;;  %v4209_v12 = vld [vmem:[#allocation25 + $0x1d0] sm:$0xff] }
 0x73b   :  { %4301 = vmatpush1.msra.mxu1 %v4103_v63  ;;  %4229 = vmatprep.subr.mxu0 %v4168_v19  ;;  %v4143_v63 = vld [vmem:[#allocation24 + $0x1c0] sm:$0xff]  ;;  %v4208_v19 = vld [vmem:[#allocation25 + $0x1c8] sm:$0xff] }
 0x73c   :  { %4302 = vmatprep.subr.mxu1 %v4102_v44  ;;  %4230 = vmatpush1.msra.mxu0 %v4167_v59  ;;  %v4142_v44 = vld [vmem:[#allocation24 + $0x1b8] sm:$0xff]  ;;  %v4207_v59 = vld [vmem:[#allocation25 + $0x1c0] sm:$0xff] }
 0x73d   :  { %4303 = vmatpush1.msra.mxu1 %v4101_v1  ;;  %4231 = vmatprep.subr.mxu0 %v4166_v8  ;;  %v4141_v1 = vld [vmem:[#allocation24 + $0x1b0] sm:$0xff]  ;;  %v4206_v8 = vld [vmem:[#allocation25 + $0x1b8] sm:$0xff] }
 0x73e   :  { %4304 = vmatprep.subr.mxu1 %v4100_v4  ;;  %4232 = vmatpush1.msra.mxu0 %v4165_v62  ;;  %v4140_v4 = vld [vmem:[#allocation24 + $0x1a8] sm:$0xff]  ;;  %v4205_v62 = vld [vmem:[#allocation25 + $0x1b0] sm:$0xff] }
 0x73f   :  { %4305 = vmatpush1.msra.mxu1 %v4099_v5  ;;  %4233 = vmatprep.subr.mxu0 %v4164_v18  ;;  %v4139_v5 = vld [vmem:[#allocation24 + $0x1a0] sm:$0xff]  ;;  %v4204_v18 = vld [vmem:[#allocation25 + $0x1a8] sm:$0xff] }
 0x740   :  { %4306 = vmatprep.subr.mxu1 %v4098_v10  ;;  %4234 = vmatpush1.msra.mxu0 %v4163_v47  ;;  %v4138_v10 = vld [vmem:[#allocation24 + $0x198] sm:$0xff]  ;;  %v4203_v47 = vld [vmem:[#allocation25 + $0x1a0] sm:$0xff] }
 0x741   :  { %4307 = vmatpush1.msra.mxu1 %v4097_v52  ;;  %4235 = vmatprep.subr.mxu0 %v4162_v51  ;;  %v4137_v52 = vld [vmem:[#allocation24 + $0x190] sm:$0xff]  ;;  %v4202_v51 = vld [vmem:[#allocation25 + $0x198] sm:$0xff] }
 0x742   :  { %4308 = vmatprep.subr.mxu1 %v4096_v36  ;;  %4236 = vmatpush1.msra.mxu0 %v4161_v15  ;;  %v4136_v36 = vld [vmem:[#allocation24 + $0x188] sm:$0xff]  ;;  %v4201_v15 = vld [vmem:[#allocation25 + $0x190] sm:$0xff] }
 0x743   :  { %4309 = vmatpush1.msra.mxu1 %v4095_v13  ;;  %4237 = vmatprep.subr.mxu0 %v4160_v28  ;;  %v4135_v13 = vld [vmem:[#allocation24 + $0x180] sm:$0xff]  ;;  %v4200_v28 = vld [vmem:[#allocation25 + $0x188] sm:$0xff] }
 0x744   :  { %4310 = vmatprep.subr.mxu1 %v4094_v40  ;;  %4238 = vmatpush1.msra.mxu0 %v4159_v16  ;;  %v4134_v40 = vld [vmem:[#allocation24 + $0x178] sm:$0xff]  ;;  %v4199_v16 = vld [vmem:[#allocation25 + $0x180] sm:$0xff] }
 0x745   :  { %4311 = vmatpush1.msra.mxu1 %v4093_v20  ;;  %4239 = vmatprep.subr.mxu0 %v4158_v25  ;;  %v3052_v20 = vrot.slane %v7536_v43, %v7343_v42  ;;  %v4133_v25 = vld [vmem:[#allocation24 + $0x170] sm:$0xff] }
 0x746   :  { %4312 = vmatprep.subr.mxu1 %v4092_v45  ;;  %4240 = vmatpush1.msra.mxu0 %v4157_v29  ;;  %v4198_v45 = vld [vmem:[#allocation25 + $0x178] sm:$0xff]  ;;  %v4132_v29 = vld [vmem:[#allocation24 + $0x168] sm:$0xff]  ;;  %v4129_v43 = vld [vmem:[#allocation24 + $0x150] sm:$0xff] }
 0x747   :  { %4313 = vmatpush1.msra.mxu1 %v4091_v3  ;;  %4241 = vmatprep.subr.mxu0 %v4156_v31  ;;  %v4197_v3 = vld [vmem:[#allocation25 + $0x170] sm:$0xff]  ;;  %v4131_v31 = vld [vmem:[#allocation24 + $0x160] sm:$0xff] }
 0x748   :  { %4314 = vmatprep.subr.mxu1 %v4090_v33  ;;  %4242 = vmatpush1.msra.mxu0 %v4155_v35  ;;  %v4196_v33 = vld [vmem:[#allocation25 + $0x168] sm:$0xff]  ;;  %v4130_v35 = vld [vmem:[#allocation24 + $0x158] sm:$0xff] }
 0x749   :  { %4315 = vmatpush1.msra.mxu1 %v4089_v23  ;;  %4243 = vmatprep.subr.mxu0 %v4154_v38  ;;  %v4195_v23 = vld [vmem:[#allocation25 + $0x160] sm:$0xff]  ;;  %v3156_v38 = vadd.f32 %v7534_v32, %v3052_v20  ;;  %v7561_v32 = vrot.slane %v7540_v21, %v7343_v42  ;;  %v4588_v20 = vld [vmem:[#allocation25 + $0x298] sm:$0xff] }
 0x74a   :  { %4316 = vmatprep.subr.mxu1 %v4088_v46  ;;  %4244 = vmatpush1.msra.mxu0 %v4153_v50  ;;  %v4194_v46 = vld [vmem:[#allocation25 + $0x158] sm:$0xff]  ;;  %v4128_v50 = vld [vmem:[#allocation24 + $0x148] sm:$0xff] }
 0x74b   :  { %4317 = vmatpush1.msra.mxu1 %v4087_v55  ;;  %4245 = vmatprep.subr.mxu0 %v4152_v53  ;;  %v4193_v55 = vld [vmem:[#allocation25 + $0x150] sm:$0xff]  ;;  %v4127_v53 = vld [vmem:[#allocation24 + $0x140] sm:$0xff] }
 0x74c   :  { %4318 = vmatprep.subr.mxu1 %v4150_v34  ;;  %4246 = vmatpush1.msra.mxu0 %v4151_v37  ;;  %v4192_v34 = vld [vmem:[#allocation25 + $0x148] sm:$0xff]  ;;  %v4126_v37 = vld [vmem:[#allocation24 + $0x138] sm:$0xff] }
 0x74d   :  { %4319 = vmatpush2.msra.mxu1 %v4149_v54  ;;  %4247 = vmatprep.subr.mxu0 %v4214_v56  ;;  %v4191_v54 = vld [vmem:[#allocation25 + $0x140] sm:$0xff]  ;;  %v3373_v56 = vmax.f32 %v3156_v38, 0.0  ;;  %v4579_v38 = vld [vmem:[#allocation25 + $0x250] sm:$0xff] }
 0x74e   :  { %4320 = vmatprep.subr.mxu1 %v4148_v57  ;;  %4248 = vmatpush2.msra.mxu0 %v4213_v58  ;;  %v4125_v57 = vld [vmem:[#allocation24 + $0x130] sm:$0xff]  ;;  %v4190_v58 = vld [vmem:[#allocation25 + $0x138] sm:$0xff] }
 0x74f   :  { %4321 = vmatpush2.msra.mxu1 %v4147_v60  ;;  %4249 = vmatprep.subr.mxu0 %v4212_v61  ;;  %v4124_v60 = vld [vmem:[#allocation24 + $0x128] sm:$0xff]  ;;  %v4189_v61 = vld [vmem:[#allocation25 + $0x130] sm:$0xff] }
 0x750   :  { %4322 = vmatprep.subr.mxu1 %v4146_v26  ;;  %4250 = vmatpush2.msra.mxu0 %v4211_v0  ;;  %v4123_v26 = vld [vmem:[#allocation24 + $0x120] sm:$0xff]  ;;  %v4188_v0 = vld [vmem:[#allocation25 + $0x128] sm:$0xff] }
 0x751   :  { %4323 = vmatpush2.msra.mxu1 %v4145_v11  ;;  %4251 = vmatprep.subr.mxu0 %v4210_v49  ;;  %v4122_v11 = vld [vmem:[#allocation24 + $0x118] sm:$0xff]  ;;  %v4187_v49 = vld [vmem:[#allocation25 + $0x120] sm:$0xff] }
 0x752   :  { %4324 = vmatprep.subr.mxu1 %v4144_v22  ;;  %4252 = vmatpush2.msra.mxu0 %v4209_v12  ;;  %v3422_v22 = vmul.f32 %v7561_v32, %v3373_v56  ;;  %v7566_v12 = vrot.slane %v7546_v7, %v7343_v42  ;;  %v4570_v56 = vld [vmem:[#allocation25 + $0x208] sm:$0xff] }
 0x753   :  { %4325 = vmatpush2.msra.mxu1 %v4143_v63  ;;  %4253 = vmatprep.subr.mxu0 %v4208_v19  ;;  %v4121_v63 = vld [vmem:[#allocation24 + $0x110] sm:$0xff]  ;;  %v4186_v19 = vld [vmem:[#allocation25 + $0x118] sm:$0xff] }
 0x754   :  { %4326 = vmatprep.subr.mxu1 %v4142_v44  ;;  %4254 = vmatpush2.msra.mxu0 %v4207_v59  ;;  %v4120_v44 = vld [vmem:[#allocation24 + $0x108] sm:$0xff]  ;;  %v4185_v59 = vld [vmem:[#allocation25 + $0x110] sm:$0xff] }
 0x755   :  { %4327 = vmatpush2.msra.mxu1 %v4141_v1  ;;  %4255 = vmatprep.subr.mxu0 %v4206_v8  ;;  %v4119_v1 = vld [vmem:[#allocation24 + $0x100] sm:$0xff]  ;;  %v4184_v8 = vld [vmem:[#allocation25 + $0x108] sm:$0xff] }
 0x756   :  { %4328 = vmatprep.subr.mxu1 %v4140_v4  ;;  %4256 = vmatpush2.msra.mxu0 %v4205_v62  ;;  %v4600_v4 = vld [vmem:[#allocation25 + $0x2f8] sm:$0xff]  ;;  %v3471_v62 = vadd.f32 %v7566_v12, %v3422_v22  ;;  %v4625_v22 = vld [vmem:[#allocation25 + $0x3c0] sm:$0xff] }
 0x757   :  { %4329 = vmatpush2.msra.mxu1 %v4139_v5  ;;  %4257 = vmatprep.subr.mxu0 %v4204_v18  ;;  %v4599_v5 = vld [vmem:[#allocation25 + $0x2f0] sm:$0xff]  ;;  %v4183_v18 = vld [vmem:[#allocation25 + $0x100] sm:$0xff] }
 0x758   :  { %4330 = vmatprep.subr.mxu1 %v4138_v10  ;;  %4258 = vmatpush2.msra.mxu0 %v4203_v47  ;;  %v4598_v10 = vld [vmem:[#allocation25 + $0x2e8] sm:$0xff]  ;;  %v4597_v47 = vld [vmem:[#allocation25 + $0x2e0] sm:$0xff] }
 0x759   :  { %4331 = vmatpush2.msra.mxu1 %v4137_v52  ;;  %4259 = vmatprep.subr.mxu0 %v4202_v51  ;;  %v4596_v52 = vld [vmem:[#allocation25 + $0x2d8] sm:$0xff]  ;;  %v4595_v51 = vld [vmem:[#allocation25 + $0x2d0] sm:$0xff] }
 0x75a   :  { %4332 = vmatprep.subr.mxu1 %v4136_v36  ;;  %4260 = vmatpush2.msra.mxu0 %v4201_v15  ;;  %v4594_v36 = vld [vmem:[#allocation25 + $0x2c8] sm:$0xff]  ;;  %v4593_v15 = vld [vmem:[#allocation25 + $0x2c0] sm:$0xff] }
 0x75b   :  { %4333 = vmatpush2.msra.mxu1 %v4135_v13  ;;  %4261 = vmatprep.subr.mxu0 %v4200_v28  ;;  %v4592_v13 = vld [vmem:[#allocation25 + $0x2b8] sm:$0xff]  ;;  %v4591_v28 = vld [vmem:[#allocation25 + $0x2b0] sm:$0xff] }
 0x75c   :  { %4334 = vmatprep.subr.mxu1 %v4134_v40  ;;  %4262 = vmatpush2.msra.mxu0 %v4199_v16  ;;  %v4590_v40 = vld [vmem:[#allocation25 + $0x2a8] sm:$0xff]  ;;  %v4589_v16 = vld [vmem:[#allocation25 + $0x2a0] sm:$0xff] }
 0x75d   :  { %4335 = vmatpush2.msra.mxu1 %v4133_v25  ;;  %4263 = vmatprep.subr.mxu0 %v4198_v45  ;;  %v4587_v25 = vld [vmem:[#allocation25 + $0x290] sm:$0xff]  ;;  %v4586_v45 = vld [vmem:[#allocation25 + $0x288] sm:$0xff] }
 0x75e   :  { %4336 = vmatprep.subr.mxu1 %v4132_v29  ;;  %4264 = vmatpush2.msra.mxu0 %v4197_v3  ;;  %v4585_v29 = vld [vmem:[#allocation25 + $0x280] sm:$0xff]  ;;  %v4584_v3 = vld [vmem:[#allocation25 + $0x278] sm:$0xff] }
 0x75f   :  { %4337 = vmatpush2.msra.mxu1 %v4131_v31  ;;  %4265 = vmatprep.subr.mxu0 %v4196_v33  ;;  %v4583_v31 = vld [vmem:[#allocation25 + $0x270] sm:$0xff]  ;;  %v4582_v33 = vld [vmem:[#allocation25 + $0x268] sm:$0xff] }
 0x760   :  { %4338 = vmatprep.subr.mxu1 %v4130_v35  ;;  %4266 = vmatpush2.msra.mxu0 %v4195_v23  ;;  %v4581_v35 = vld [vmem:[#allocation25 + $0x260] sm:$0xff]  ;;  %v4580_v23 = vld [vmem:[#allocation25 + $0x258] sm:$0xff] }
 0x761   :  { %4339 = vmatpush2.msra.mxu1 %v4129_v43  ;;  %4267 = vmatprep.subr.mxu0 %v4194_v46  ;;  %v4578_v43 = vld [vmem:[#allocation25 + $0x248] sm:$0xff]  ;;  %v4577_v46 = vld [vmem:[#allocation25 + $0x240] sm:$0xff] }
 0x762   :  { %4340 = vmatprep.subr.mxu1 %v4128_v50  ;;  %4268 = vmatpush2.msra.mxu0 %v4193_v55  ;;  %v4576_v50 = vld [vmem:[#allocation25 + $0x238] sm:$0xff]  ;;  %v4575_v55 = vld [vmem:[#allocation25 + $0x230] sm:$0xff] }
 0x763   :  { %4341 = vmatpush2.msra.mxu1 %v4127_v53  ;;  %4269 = vmatprep.subr.mxu0 %v4192_v34  ;;  %v4574_v53 = vld [vmem:[#allocation25 + $0x228] sm:$0xff]  ;;  %v4573_v34 = vld [vmem:[#allocation25 + $0x220] sm:$0xff] }
 0x764   :  { %4342 = vmatprep.subr.mxu1 %v4126_v37  ;;  %4270 = vmatpush2.msra.mxu0 %v4191_v54  ;;  %v4572_v37 = vld [vmem:[#allocation25 + $0x218] sm:$0xff]  ;;  %v4571_v54 = vld [vmem:[#allocation25 + $0x210] sm:$0xff] }
 0x765   :  { %4343 = vmatpush2.msra.mxu1 %v4125_v57  ;;  %4271 = vmatprep.subr.mxu0 %v4190_v58  ;;  %v4569_v57 = vld [vmem:[#allocation25 + $0x200] sm:$0xff]  ;;  %v4632_v58 = vld [vmem:[#allocation25 + $0x3f8] sm:$0xff] }
 0x766   :  { %4344 = vmatprep.subr.mxu1 %v4124_v60  ;;  %4272 = vmatpush2.msra.mxu0 %v4189_v61  ;;  %v4631_v60 = vld [vmem:[#allocation25 + $0x3f0] sm:$0xff]  ;;  %v4630_v61 = vld [vmem:[#allocation25 + $0x3e8] sm:$0xff] }
 0x767   :  { %4345 = vmatpush2.msra.mxu1 %v4123_v26  ;;  %4273 = vmatprep.subr.mxu0 %v4188_v0  ;;  %v4629_v26 = vld [vmem:[#allocation25 + $0x3e0] sm:$0xff]  ;;  %v4628_v0 = vld [vmem:[#allocation25 + $0x3d8] sm:$0xff] }
 0x768   :  { %4346 = vmatprep.subr.mxu1 %v4122_v11  ;;  %4274 = vmatpush2.msra.mxu0 %v4187_v49  ;;  %v4627_v11 = vld [vmem:[#allocation25 + $0x3d0] sm:$0xff]  ;;  %v4626_v49 = vld [vmem:[#allocation25 + $0x3c8] sm:$0xff] }
 0x769   :  { %4347 = vmatpush2.msra.mxu1 %v4121_v63  ;;  %4275 = vmatprep.subr.mxu0 %v4186_v19  ;;  %v4624_v63 = vld [vmem:[#allocation25 + $0x3b8] sm:$0xff]  ;;  %v4623_v19 = vld [vmem:[#allocation25 + $0x3b0] sm:$0xff] }
 0x76a   :  { %4348 = vmatprep.subr.mxu1 %v4120_v44  ;;  %4276 = vmatpush2.msra.mxu0 %v4185_v59  ;;  %v4622_v44 = vld [vmem:[#allocation25 + $0x3a8] sm:$0xff]  ;;  %v4621_v59 = vld [vmem:[#allocation25 + $0x3a0] sm:$0xff] }
 0x76b   :  { %4349 = vmatpush2.msra.mxu1 %v4119_v1  ;;  %4277 = vmatprep.subr.mxu0 %v4184_v8  ;;  %v4620_v1 = vld [vmem:[#allocation25 + $0x398] sm:$0xff]  ;;  %v4619_v8 = vld [vmem:[#allocation25 + $0x390] sm:$0xff] }
 0x76c   :  { %4351 = vmatmul.mubr.f32.vlgmr.msra.gmra.mxu1 %v3471_v62  ;;  %4633 = vmatprep.subr.mxu1 %v4600_v4  ;;  %v4618_v4 = vld [vmem:[#allocation25 + $0x388] sm:$0xff]  ;;  %v4617_v62 = vld [vmem:[#allocation25 + $0x380] sm:$0xff] }
 0x76d   :  { %4634 = vmatpush1.msra.mxu1 %v4599_v5  ;;  %4278 = vmatpush2.msra.mxu0 %v4183_v18  ;;  %v4616_v5 = vld [vmem:[#allocation25 + $0x378] sm:$0xff]  ;;  %v4615_v18 = vld [vmem:[#allocation25 + $0x370] sm:$0xff] }
 0x76e   :  { %4635 = vmatprep.subr.mxu1 %v4598_v10  ;;  %v4614_v10 = vld [vmem:[#allocation25 + $0x368] sm:$0xff] }
 0x76f   :  { %4636 = vmatpush1.msra.mxu1 %v4597_v47  ;;  %v4613_v47 = vld [vmem:[#allocation25 + $0x360] sm:$0xff] }
 0x770   :  { %4637 = vmatprep.subr.mxu1 %v4596_v52  ;;  %v4612_v52 = vld [vmem:[#allocation25 + $0x358] sm:$0xff] }
 0x771   :  { %4638 = vmatpush1.msra.mxu1 %v4595_v51  ;;  %v7569_v51 = vpop.f32.mrf.mxu1 }
 0x772   :  { %4639 = vmatprep.subr.mxu1 %v4594_v36  ;;  %v4611_v36 = vld [vmem:[#allocation25 + $0x350] sm:$0xff] }
 0x773   :  { %4640 = vmatpush1.msra.mxu1 %v4593_v15  ;;  %v4610_v15 = vld [vmem:[#allocation25 + $0x348] sm:$0xff] }
 0x774   :  { %4641 = vmatprep.subr.mxu1 %v4592_v13  ;;  %v4609_v13 = vld [vmem:[#allocation25 + $0x340] sm:$0xff] }
 0x775   :  { %4642 = vmatpush1.msra.mxu1 %v4591_v28  ;;  %v4608_v28 = vld [vmem:[#allocation25 + $0x338] sm:$0xff] }
 0x776   :  { %4643 = vmatprep.subr.mxu1 %v4590_v40  ;;  %v7571_v40 = vpop.f32.mrf.mxu1 }
 0x777   :  { %4644 = vmatpush1.msra.mxu1 %v4589_v16  ;;  %v4607_v16 = vld [vmem:[#allocation25 + $0x330] sm:$0xff] }
 0x778   :  { %4645 = vmatprep.subr.mxu1 %v4588_v20  ;;  %v4606_v20 = vld [vmem:[#allocation25 + $0x328] sm:$0xff] }
 0x779   :  { %4646 = vmatpush1.msra.mxu1 %v4587_v25  ;;  %v7573_v25 = vpop.f32.mrf.mxu0 }
 0x77a   :  { %4647 = vmatprep.subr.mxu1 %v4586_v45  ;;  %v7575_v45 = vpop.f32.mrf.mxu1 }
 0x77b   :  { %4648 = vmatpush1.msra.mxu1 %v4585_v29  ;;  %v7577_v29 = vld [vmem:[#allocation22 + $0x8] sm:$0xff] }
 0x77c   :  { %4649 = vmatprep.subr.mxu1 %v4584_v3  ;;  %v4605_v3 = vld [vmem:[#allocation25 + $0x320] sm:$0xff] }
 0x77d   :  { %4650 = vmatpush1.msra.mxu1 %v4583_v31  ;;  %v4604_v31 = vld [vmem:[#allocation25 + $0x318] sm:$0xff] }
 0x77e   :  { %4651 = vmatprep.subr.mxu1 %v4582_v33  ;;  %v4603_v33 = vld [vmem:[#allocation25 + $0x310] sm:$0xff] }
 0x77f   :  { %4652 = vmatpush1.msra.mxu1 %v4581_v35  ;;  %v3742_v35 = vrot.slane %v7577_v29, %v7343_v42 }
 0x780   :  { %4653 = vmatprep.subr.mxu1 %v4580_v23  ;;  %v3750_v23 = vrot.slane %v7577_v29, %v7361_v24 }
 0x781   :  { %4654 = vmatpush1.msra.mxu1 %v4579_v38  ;;  %v4602_v38 = vld [vmem:[#allocation25 + $0x308] sm:$0xff] }
 0x782   :  { %4655 = vmatprep.subr.mxu1 %v4578_v43  ;;  %v7583_v43 = vpop.f32.mrf.mxu0 }
 0x783   :  { %4656 = vmatpush1.msra.mxu1 %v4577_v46  ;;  %v7585_v46 = vpop.f32.mrf.mxu1 }
 0x784   :  { %4657 = vmatprep.subr.mxu1 %v4576_v50  ;;  %v4601_v50 = vld [vmem:[#allocation25 + $0x300] sm:$0xff] }
 0x785   :  { %4658 = vmatpush1.msra.mxu1 %v4575_v55  ;;  %v3746_v55 = vrot.slane %v7577_v29, %v7348_v48 }
 0x786   :  { %4659 = vmatprep.subr.mxu1 %v4574_v53  ;;  %v3754_v53 = vrot.slane %v7577_v29, %v7364_v27 }
 0x787   :  { %4660 = vmatpush1.msra.mxu1 %v4573_v34 }
 0x788   :  { %4661 = vmatprep.subr.mxu1 %v4572_v37 }
 0x789   :  { %4662 = vmatpush1.msra.mxu1 %v4571_v54 }
 0x78a   :  { %4663 = vmatprep.subr.mxu1 %v4570_v56 }
 0x78b   :  { %4664 = vmatpush1.msra.mxu1 %v4569_v57 }
 0x78c   :  { %4665 = vmatprep.subr.mxu1 %v4632_v58 }
 0x78d   :  { %4666 = vmatpush2.msra.mxu1 %v4631_v60 }
 0x78e   :  { %4667 = vmatprep.subr.mxu1 %v4630_v61 }
 0x78f   :  { %4668 = vmatpush2.msra.mxu1 %v4629_v26 }
 0x790   :  { %4669 = vmatprep.subr.mxu1 %v4628_v0 }
 0x791   :  { %4670 = vmatpush2.msra.mxu1 %v4627_v11  ;;  %v7593_v11 = vrot.slane %v7540_v21, %v7361_v24 }
 0x792   :  { %4671 = vmatprep.subr.mxu1 %v4626_v49  ;;  %v4408_v49 = vld [vmem:[#allocation28 + $0xf8] sm:$0xff] }
 0x793   :  { %4672 = vmatpush2.msra.mxu1 %v4625_v22  ;;  %v7597_v22 = vrot.slane %v7540_v21, %v7364_v27  ;;  %5776 = vmatprep.subr.mxu0 %v4408_v49 }
 0x794   :  { %4673 = vmatprep.subr.mxu1 %v4624_v63 }
 0x795   :  { %4674 = vmatpush2.msra.mxu1 %v4623_v19 }
 0x796   :  { %4675 = vmatprep.subr.mxu1 %v4622_v44 }
 0x797   :  { %4676 = vmatpush2.msra.mxu1 %v4621_v59 }
 0x798   :  { %4677 = vmatprep.subr.mxu1 %v4620_v1 }
 0x799   :  { %4678 = vmatpush2.msra.mxu1 %v4619_v8 }
 0x79a   :  { %4679 = vmatprep.subr.mxu1 %v4618_v4  ;;  %v7605_v4 = vrot.slane %v7546_v7, %v7364_v27 }
 0x79b   :  { %4680 = vmatpush2.msra.mxu1 %v4617_v62  ;;  %v7609_v62 = vrot.slane %v7546_v7, %v7361_v24  ;;  %v4390_v7 = vld [vmem:[#allocation28 + $0x68] sm:$0xff] }
 0x79c   :  { %4681 = vmatprep.subr.mxu1 %v4616_v5 }
 0x79d   :  { %4682 = vmatpush2.msra.mxu1 %v4615_v18 }
 0x79e   :  { %4683 = vmatprep.subr.mxu1 %v4614_v10  ;;  %v4392_v10 = vld [vmem:[#allocation28 + $0x78] sm:$0xff] }
 0x79f   :  { %4684 = vmatpush2.msra.mxu1 %v4613_v47  ;;  %v4391_v47 = vld [vmem:[#allocation28 + $0x70] sm:$0xff] }
 0x7a0   :  { %4685 = vmatprep.subr.mxu1 %v4612_v52  ;;  %v4406_v52 = vld [vmem:[#allocation28 + $0xe8] sm:$0xff] }
 0x7a1   :  { %4686 = vmatpush2.msra.mxu1 %v4611_v36  ;;  %v4405_v36 = vld [vmem:[#allocation28 + $0xe0] sm:$0xff] }
 0x7a2   :  { %4687 = vmatprep.subr.mxu1 %v4610_v15  ;;  %v4404_v15 = vld [vmem:[#allocation28 + $0xd8] sm:$0xff] }
 0x7a3   :  { %4688 = vmatpush2.msra.mxu1 %v4609_v13  ;;  %v4403_v13 = vld [vmem:[#allocation28 + $0xd0] sm:$0xff] }
 0x7a4   :  { %4689 = vmatprep.subr.mxu1 %v4608_v28  ;;  %v4387_v28 = vld [vmem:[#allocation28 + $0x50] sm:$0xff] }
 0x7a5   :  { %4690 = vmatpush2.msra.mxu1 %v4607_v16  ;;  %v4402_v16 = vld [vmem:[#allocation28 + $0xc8] sm:$0xff] }
 0x7a6   :  { %4691 = vmatprep.subr.mxu1 %v4606_v20  ;;  %v4386_v20 = vld [vmem:[#allocation28 + $0x48] sm:$0xff] }
 0x7a7   :  { %4692 = vmatpush2.msra.mxu1 %v4605_v3  ;;  %v4401_v3 = vld [vmem:[#allocation28 + $0xc0] sm:$0xff] }
 0x7a8   :  { %4693 = vmatprep.subr.mxu1 %v4604_v31  ;;  %v4385_v31 = vld [vmem:[#allocation28 + $0x40] sm:$0xff] }
 0x7a9   :  { %4694 = vmatpush2.msra.mxu1 %v4603_v33  ;;  %v4400_v33 = vld [vmem:[#allocation28 + $0xb8] sm:$0xff] }
 0x7aa   :  { %v3845_v34 = vpop.f32.mrf.mxu0  ;;  %v3916_v37 = vpop.f32.mrf.mxu1  ;;  %4695 = vmatprep.subr.mxu1 %v4602_v38  ;;  %v4383_v38 = vld [vmem:[#allocation28 + $0x30] sm:$0xff] }
 0x7ab   :  { %v3846_v54 = vadd.f32 %v3845_v34, %v3742_v35  ;;  %v3917_v56 = vadd.f32 %v3916_v37, %v3750_v23  ;;  %4696 = vmatpush2.msra.mxu1 %v4601_v50  ;;  %v4384_v35 = vld [vmem:[#allocation28 + $0x38] sm:$0xff]  ;;  %v4399_v23 = vld [vmem:[#allocation28 + $0xb0] sm:$0xff]  ;;  %v4398_v50 = vld [vmem:[#allocation28 + $0xa8] sm:$0xff] }
 0x7ac   :  { %v3847_v57 = vpop.f32.mrf.mxu0  ;;  %v3918_v58 = vpop.f32.mrf.mxu1  ;;  %v4381_v34 = vld [vmem:[#allocation28 + $0x20] sm:$0xff]  ;;  %v4396_v37 = vld [vmem:[#allocation28 + $0x98] sm:$0xff] }
 0x7ad   :  { %v4063_v60 = vmax.f32 %v3846_v54, 0.0  ;;  %v4065_v61 = vmax.f32 %v3917_v56, 0.0  ;;  %v3848_v26 = vadd.f32 %v3847_v57, %v3746_v55  ;;  %v3919_v0 = vadd.f32 %v3918_v58, %v3754_v53  ;;  %v4382_v55 = vld [vmem:[#allocation28 + $0x28] sm:$0xff]  ;;  %v4397_v53 = vld [vmem:[#allocation28 + $0xa0] sm:$0xff]  ;;  %v4380_v54 = vld [vmem:[#allocation28 + $0x18] sm:$0xff] }
 0x7ae   :  { %v4395_v56 = vld [vmem:[#allocation28 + $0x90] sm:$0xff]  ;;  %v4394_v58 = vld [vmem:[#allocation28 + $0x88] sm:$0xff] }
 0x7af   :  { %v4064_v63 = vmax.f32 %v3848_v26, 0.0  ;;  %v4066_v19 = vmax.f32 %v3919_v0, 0.0  ;;  %v4071_v44 = vmul.f32 %v4063_v60, %v7561_v32  ;;  %v4073_v59 = vmul.f32 %v4065_v61, %v7593_v11  ;;  %v4379_v57 = vld [vmem:[#allocation28 + $0x10] sm:$0xff]  ;;  %v4378_v60 = vld [vmem:[#allocation28 + $0x8] sm:$0xff]  ;;  %v4393_v61 = vld [vmem:[#allocation28 + $0x80] sm:$0xff] }
 0x7b0   :  { %v4377_v26 = vld [vmem:[#allocation28] sm:$0xff]  ;;  %v4535_v0 = vld [vmem:[#allocation24 + $0x2f8] sm:$0xff] }
 0x7b1   :  { %v4072_v1 = vmul.f32 %v4064_v63, %v7544_v39  ;;  %v4074_v8 = vmul.f32 %v4066_v19, %v7597_v22  ;;  %v4079_v32 = vadd.f32 %v4071_v44, %v7566_v12  ;;  %v4081_v18 = vadd.f32 %v4073_v59, %v7609_v62  ;;  %v4407_v39 = vld [vmem:[#allocation28 + $0xf0] sm:$0xff]  ;;  %v4388_v12 = vld [vmem:[#allocation28 + $0x58] sm:$0xff]  ;;  %v7621_v59 = vld [vmem:[#allocation22] sm:$0xff] }
 0x7b2   :  { %v4357_v44 = vld [vmem:[#allocation27] sm:$0x3] }
 0x7b3   :  { %v4080_v21 = vadd.f32 %v4072_v1, %v7551_v9  ;;  %v4082_v5 = vadd.f32 %v4074_v8, %v7605_v4  ;;  %v4389_v9 = vld [vmem:[#allocation28 + $0x60] sm:$0xff]  ;;  %v3064_v1 = vrot.slane %v7621_v59, %v7364_v27 }
 0x7b5   :  { %4279 = vmatprep.mubr.f32.mxu0 %v4080_v21  ;;  %4697 = vmatprep.mubr.f32.mxu1 %v4082_v5  ;;  %v4362_v5 = vrot.slane %v4357_v44, %v7343_v42 }
 0x7b6   :  { %4280 = vmatmul.mubr.f32.vlgmr.msra.gmra.mxu0 %v4079_v32  ;;  %4698 = vmatmul.mubr.f32.vlgmr.msra.gmra.mxu1 %v4081_v18  ;;  %v3229_v18 = vadd.f32 %v7571_v40, %v3064_v1  ;;  %v4513_v1 = vld [vmem:[#allocation24 + $0x248] sm:$0xff] }
 0x7b7   :  { %5777 = vmatpush3.msra.mxu0 %v4392_v10 }
 0x7b8   :  { %5778 = vmatprep.subr.mxu0 %v4407_v39  ;;  %v4366_v39 = vrot.slane %v4357_v44, %v7348_v48  ;;  %v4514_v44 = vld [vmem:[#allocation24 + $0x250] sm:$0xff] }
 0x7b9   :  { %5779 = vmatpush3.msra.mxu0 %v4391_v47 }
 0x7ba   :  { %5780 = vmatprep.subr.mxu0 %v4406_v52 }
 0x7bb   :  { %5781 = vmatpush3.msra.mxu0 %v4390_v7 }
 0x7bc   :  { %5782 = vmatprep.subr.mxu0 %v4405_v36 }
 0x7bd   :  { %5783 = vmatpush3.msra.mxu0 %v4389_v9  ;;  %v3376_v9 = vmax.f32 %v3229_v18, 0.0  ;;  %v4509_v18 = vld [vmem:[#allocation24 + $0x228] sm:$0xff] }
 0x7be   :  { %5784 = vmatprep.subr.mxu0 %v4404_v15 }
 0x7bf   :  { %5785 = vmatpush3.msra.mxu0 %v4388_v12 }
 0x7c0   :  { %5786 = vmatprep.subr.mxu0 %v4403_v13 }
 0x7c1   :  { %5787 = vmatpush3.msra.mxu0 %v4387_v28  ;;  %v3425_v28 = vmul.f32 %v7597_v22, %v3376_v9  ;;  %v4529_v22 = vld [vmem:[#allocation24 + $0x2c8] sm:$0xff]  ;;  %v4566_v9 = vld [vmem:[#allocation24 + $0x3f0] sm:$0xff] }
 0x7c2   :  { %5788 = vmatprep.subr.mxu0 %v4402_v16 }
 0x7c3   :  { %5789 = vmatpush3.msra.mxu0 %v4386_v20 }
 0x7c4   :  { %5790 = vmatprep.subr.mxu0 %v4401_v3  ;;  %v4534_v3 = vld [vmem:[#allocation24 + $0x2f0] sm:$0xff] }
 0x7c5   :  { %5791 = vmatpush3.msra.mxu0 %v4385_v31  ;;  %v4533_v31 = vld [vmem:[#allocation24 + $0x2e8] sm:$0xff] }
 0x7c6   :  { %5792 = vmatprep.subr.mxu0 %v4400_v33  ;;  %v3474_v33 = vadd.f32 %v7605_v4, %v3425_v28  ;;  %v4523_v4 = vld [vmem:[#allocation24 + $0x298] sm:$0xff]  ;;  %v4561_v28 = vld [vmem:[#allocation24 + $0x3c8] sm:$0xff] }
 0x7c7   :  { %5793 = vmatpush3.msra.mxu0 %v4384_v35  ;;  %v4532_v35 = vld [vmem:[#allocation24 + $0x2e0] sm:$0xff] }
 0x7c8   :  { %5794 = vmatprep.subr.mxu0 %v4399_v23  ;;  %v4531_v23 = vld [vmem:[#allocation24 + $0x2d8] sm:$0xff] }
 0x7c9   :  { %5795 = vmatpush3.msra.mxu0 %v4383_v38  ;;  %v4530_v38 = vld [vmem:[#allocation24 + $0x2d0] sm:$0xff] }
 0x7ca   :  { %5796 = vmatprep.subr.mxu0 %v4398_v50  ;;  %v4528_v50 = vld [vmem:[#allocation24 + $0x2c0] sm:$0xff] }
 0x7cb   :  { %5797 = vmatpush3.msra.mxu0 %v4382_v55  ;;  %v4527_v55 = vld [vmem:[#allocation24 + $0x2b8] sm:$0xff] }
 0x7cc   :  { %5798 = vmatprep.subr.mxu0 %v4397_v53  ;;  %v4526_v53 = vld [vmem:[#allocation24 + $0x2b0] sm:$0xff] }
 0x7cd   :  { %5799 = vmatpush3.msra.mxu0 %v4381_v34  ;;  %v4525_v34 = vld [vmem:[#allocation24 + $0x2a8] sm:$0xff] }
 0x7ce   :  { %5800 = vmatprep.subr.mxu0 %v4396_v37  ;;  %v4524_v37 = vld [vmem:[#allocation24 + $0x2a0] sm:$0xff] }
 0x7cf   :  { %5801 = vmatpush3.msra.mxu0 %v4380_v54  ;;  %v4522_v54 = vld [vmem:[#allocation24 + $0x290] sm:$0xff] }
 0x7d0   :  { %5802 = vmatprep.subr.mxu0 %v4395_v56  ;;  %v4521_v56 = vld [vmem:[#allocation24 + $0x288] sm:$0xff] }
 0x7d1   :  { %5803 = vmatpush3.msra.mxu0 %v4379_v57  ;;  %v4520_v57 = vld [vmem:[#allocation24 + $0x280] sm:$0xff] }
 0x7d2   :  { %5804 = vmatprep.subr.mxu0 %v4394_v58  ;;  %v4519_v58 = vld [vmem:[#allocation24 + $0x278] sm:$0xff] }
 0x7d3   :  { %5805 = vmatpush3.msra.mxu0 %v4378_v60  ;;  %v4518_v60 = vld [vmem:[#allocation24 + $0x270] sm:$0xff] }
 0x7d4   :  { %5806 = vmatprep.subr.mxu0 %v4393_v61  ;;  %v4517_v61 = vld [vmem:[#allocation24 + $0x268] sm:$0xff] }
 0x7d5   :  { %5807 = vmatpush3.msra.mxu0 %v4377_v26  ;;  %v4516_v26 = vld [vmem:[#allocation24 + $0x260] sm:$0xff] }
 0x7d6   :  { %4704 = vmatprep.subr.mxu0 %v4535_v0  ;;  %v4515_v0 = vld [vmem:[#allocation24 + $0x258] sm:$0xff] }
 0x7eb   :  { %v7615_v49 = vpop.f32.mrf.mxu1  ;;  %v7617_v63 = vpop.f32.mrf.mxu0 }
 0x7ed   :  { %v7619_v19 = vpop.f32.mrf.mxu1  ;;  %v7625_v8 = vpop.f32.mrf.mxu0 }
 0x82c   :  { %v4352_v21 = vpop.f32.mrf.mxu1 }
 0x82e   :  { %v4354_v47 = vpop.f32.mrf.mxu1 }
 0x876   :  { %v4281_v32 = vpop.f32.mrf.mxu0 }
 0x877   :  { %v4353_v10 = vadd.f32 %v4352_v21, %v4281_v32  ;;  %v4512_v21 = vld [vmem:[#allocation24 + $0x240] sm:$0xff]  ;;  %v4510_v32 = vld [vmem:[#allocation24 + $0x230] sm:$0xff] }
 0x878   :  { %v4283_v52 = vpop.f32.mrf.mxu0 }
 0x879   :  { %v4369_v7 = vadd.f32 %v4362_v5, %v4353_v10  ;;  %v4355_v36 = vadd.f32 %v4354_v47, %v4283_v52  ;;  %v4511_v5 = vld [vmem:[#allocation24 + $0x238] sm:$0xff]  ;;  %v4508_v10 = vld [vmem:[#allocation24 + $0x220] sm:$0xff]  ;;  %v4506_v47 = vld [vmem:[#allocation24 + $0x210] sm:$0xff] }
 0x87a   :  { %v4505_v52 = vld [vmem:[#allocation24 + $0x208] sm:$0xff] }
 0x87b   :  { %v4371_v15 = vmax.f32 %v4369_v7, 0.0  ;;  %v4370_v12 = vadd.f32 %v4366_v39, %v4355_v36  ;;  %v4507_v39 = vld [vmem:[#allocation24 + $0x218] sm:$0xff]  ;;  %v4504_v7 = vld [vmem:[#allocation24 + $0x200] sm:$0xff] }
 0x87c   :  { %v4567_v36 = vld [vmem:[#allocation24 + $0x3f8] sm:$0xff] }
 0x87d   :  { %v4372_v13 = vmax.f32 %v4370_v12, 0.0  ;;  %v4373_v27 = vmul.f32 %v4371_v15, %v7418_v2  ;;  %v4565_v15 = vld [vmem:[#allocation24 + $0x3e8] sm:$0xff]  ;;  %v4564_v12 = vld [vmem:[#allocation24 + $0x3e0] sm:$0xff] }
 0x87f   :  { %v4374_v16 = vmul.f32 %v4372_v13, %v7421_v6  ;;  %v4375_v40 = vadd.f32 %v4373_v27, %v7431_v14  ;;  %v4563_v13 = vld [vmem:[#allocation24 + $0x3d8] sm:$0xff]  ;;  %v4562_v27 = vld [vmem:[#allocation24 + $0x3d0] sm:$0xff] }
 0x881   :  { %v4376_v20 = vadd.f32 %v4374_v16, %v7424_v17  ;;  %v4560_v16 = vld [vmem:[#allocation24 + $0x3c0] sm:$0xff] }
 0x883   :  { %4480 = vmatprep.mubr.f32.mxu0 %v4376_v20  ;;  %v4559_v20 = vld [vmem:[#allocation24 + $0x3b8] sm:$0xff] }
 0x884   :  { %4481 = vmatmul.mubr.f32.vlgmr.msra.gmra.mxu0 %v4375_v40  ;;  %v4558_v40 = vld [vmem:[#allocation24 + $0x3b0] sm:$0xff] }
 0x885   :  { %4705 = vmatpush1.msra.mxu0 %v4534_v3  ;;  %4768 = vmatprep.mubr.f32.mxu0 %v3474_v33  ;;  %v4557_v3 = vld [vmem:[#allocation24 + $0x3a8] sm:$0xff]  ;;  %v4555_v33 = vld [vmem:[#allocation24 + $0x398] sm:$0xff] }
 0x886   :  { %4706 = vmatprep.subr.mxu0 %v4533_v31  ;;  %v4556_v31 = vld [vmem:[#allocation24 + $0x3a0] sm:$0xff] }
 0x887   :  { %4707 = vmatpush1.msra.mxu0 %v4532_v35  ;;  %v4554_v35 = vld [vmem:[#allocation24 + $0x390] sm:$0xff] }
 0x888   :  { %4708 = vmatprep.subr.mxu0 %v4531_v23  ;;  %v4553_v23 = vld [vmem:[#allocation24 + $0x388] sm:$0xff] }
 0x889   :  { %4709 = vmatpush1.msra.mxu0 %v4530_v38  ;;  %v4552_v38 = vld [vmem:[#allocation24 + $0x380] sm:$0xff] }
 0x88a   :  { %4710 = vmatprep.subr.mxu0 %v4529_v22  ;;  %v7637_v22 = vsub.s32 5, %v7287_v41 }
 0x88b   :  { %4711 = vmatpush1.msra.mxu0 %v4528_v50  ;;  %v4551_v50 = vld [vmem:[#allocation24 + $0x378] sm:$0xff] }
 0x88c   :  { %4712 = vmatprep.subr.mxu0 %v4527_v55  ;;  %v3060_v55 = vrot.slane %v7621_v59, %v7361_v24  ;;  %v4544_v24 = vld [vmem:[#allocation24 + $0x340] sm:$0xff] }
 0x88d   :  { %4713 = vmatpush1.msra.mxu0 %v4526_v53  ;;  %v4550_v53 = vld [vmem:[#allocation24 + $0x370] sm:$0xff] }
 0x88e   :  { %4714 = vmatprep.subr.mxu0 %v4525_v34  ;;  %v3762_v34 = vrot.slane %v7577_v29, %v7637_v22 }
 0x88f   :  { %4715 = vmatpush1.msra.mxu0 %v4524_v37  ;;  %v4549_v37 = vld [vmem:[#allocation24 + $0x368] sm:$0xff] }
 0x890   :  { %4716 = vmatprep.subr.mxu0 %v4523_v4  ;;  %v4548_v4 = vld [vmem:[#allocation24 + $0x360] sm:$0xff] }
 0x891   :  { %4717 = vmatpush1.msra.mxu0 %v4522_v54  ;;  %v4547_v54 = vld [vmem:[#allocation24 + $0x358] sm:$0xff] }
 0x892   :  { %4718 = vmatprep.subr.mxu0 %v4521_v56  ;;  %v3227_v56 = vadd.f32 %v7569_v51, %v3060_v55  ;;  %v4811_v55 = vld [vmem:[#allocation28 + $0x170] sm:$0xff] }
 0x893   :  { %4719 = vmatpush1.msra.mxu0 %v4520_v57  ;;  %v4546_v57 = vld [vmem:[#allocation24 + $0x350] sm:$0xff] }
 0x894   :  { %4720 = vmatprep.subr.mxu0 %v4519_v58  ;;  %v3990_v58 = vadd.f32 %v7625_v8, %v3762_v34  ;;  %v4539_v8 = vld [vmem:[#allocation24 + $0x318] sm:$0xff]  ;;  %v4826_v34 = vld [vmem:[#allocation28 + $0x1e8] sm:$0xff] }
 0x895   :  { %4721 = vmatpush1.msra.mxu0 %v4518_v60  ;;  %v4545_v60 = vld [vmem:[#allocation24 + $0x348] sm:$0xff] }
 0x896   :  { %4722 = vmatprep.subr.mxu0 %v4517_v61  ;;  %v4543_v61 = vld [vmem:[#allocation24 + $0x338] sm:$0xff] }
 0x897   :  { %4723 = vmatpush1.msra.mxu0 %v4516_v26  ;;  %v3375_v26 = vmax.f32 %v3227_v56, 0.0  ;;  %v4825_v56 = vld [vmem:[#allocation28 + $0x1e0] sm:$0xff] }
 0x898   :  { %4724 = vmatprep.subr.mxu0 %v4515_v0  ;;  %v4542_v0 = vld [vmem:[#allocation24 + $0x330] sm:$0xff] }
 0x899   :  { %4725 = vmatpush1.msra.mxu0 %v4514_v44  ;;  %v4068_v44 = vmax.f32 %v3990_v58, 0.0  ;;  %v4809_v58 = vld [vmem:[#allocation28 + $0x160] sm:$0xff] }
 0x89a   :  { %4726 = vmatprep.subr.mxu0 %v4513_v1  ;;  %v4541_v1 = vld [vmem:[#allocation24 + $0x328] sm:$0xff] }
 0x89b   :  { %4727 = vmatpush1.msra.mxu0 %v4512_v21  ;;  %v4540_v21 = vld [vmem:[#allocation24 + $0x320] sm:$0xff] }
 0x89c   :  { %4728 = vmatprep.subr.mxu0 %v4511_v5  ;;  %v7645_v5 = vld [vmem:[#allocation18] sm:$0xff] }
 0x89d   :  { %4729 = vmatpush1.msra.mxu0 %v4510_v32  ;;  %v7649_v51 = vrot.slane %v7645_v5, %v7637_v22  ;;  %v3424_v32 = vmul.f32 %v7593_v11, %v3375_v26  ;;  %v5016_v11 = vld [vmem:[#allocation25 + $0x4f0] sm:$0xff]  ;;  %v4808_v26 = vld [vmem:[#allocation28 + $0x158] sm:$0xff] }
 0x89e   :  { %4730 = vmatprep.subr.mxu0 %v4509_v18  ;;  %v4538_v18 = vld [vmem:[#allocation24 + $0x310] sm:$0xff] }
 0x89f   :  { %4731 = vmatpush1.msra.mxu0 %v4508_v10  ;;  %v4076_v10 = vmul.f32 %v4068_v44, %v7649_v51  ;;  %v4823_v44 = vld [vmem:[#allocation28 + $0x1d0] sm:$0xff] }
 0x8a0   :  { %4732 = vmatprep.subr.mxu0 %v4507_v39  ;;  %v4537_v39 = vld [vmem:[#allocation24 + $0x308] sm:$0xff] }
 0x8a1   :  { %4733 = vmatpush1.msra.mxu0 %v4506_v47  ;;  %v4536_v47 = vld [vmem:[#allocation24 + $0x300] sm:$0xff] }
 0x8a2   :  { %4734 = vmatprep.subr.mxu0 %v4505_v52  ;;  %v5017_v52 = vld [vmem:[#allocation25 + $0x4f8] sm:$0xff] }
 0x8a3   :  { %4735 = vmatpush1.msra.mxu0 %v4504_v7  ;;  %v7653_v7 = vld [vmem:[#allocation19] sm:$0xff] }
 0x8a4   :  { %4736 = vmatprep.subr.mxu0 %v4567_v36  ;;  %v7657_v36 = vrot.slane %v7653_v7, %v7637_v22 }
 0x8a5   :  { %4737 = vmatpush2.msra.mxu0 %v4566_v9  ;;  %v3473_v9 = vadd.f32 %v7609_v62, %v3424_v32  ;;  %v5009_v62 = vld [vmem:[#allocation25 + $0x4b8] sm:$0xff]  ;;  %v4822_v32 = vld [vmem:[#allocation28 + $0x1c8] sm:$0xff] }
 0x8a6   :  { %4738 = vmatprep.subr.mxu0 %v4565_v15  ;;  %v4084_v15 = vadd.f32 %v4076_v10, %v7657_v36  ;;  %v4806_v10 = vld [vmem:[#allocation28 + $0x148] sm:$0xff] }
 0x8a7   :  { %4739 = vmatpush2.msra.mxu0 %v4564_v12  ;;  %v5015_v12 = vld [vmem:[#allocation25 + $0x4e8] sm:$0xff] }
 0x8a8   :  { %4740 = vmatprep.subr.mxu0 %v4563_v13  ;;  %v5014_v13 = vld [vmem:[#allocation25 + $0x4e0] sm:$0xff] }
 0x8a9   :  { %4741 = vmatpush2.msra.mxu0 %v4562_v27  ;;  %v5013_v27 = vld [vmem:[#allocation25 + $0x4d8] sm:$0xff] }
 0x8aa   :  { %4742 = vmatprep.subr.mxu0 %v4561_v28  ;;  %v5012_v28 = vld [vmem:[#allocation25 + $0x4d0] sm:$0xff] }
 0x8ab   :  { %4743 = vmatpush2.msra.mxu0 %v4560_v16  ;;  %v5011_v16 = vld [vmem:[#allocation25 + $0x4c8] sm:$0xff] }
 0x8ac   :  { %4744 = vmatprep.subr.mxu0 %v4559_v20  ;;  %v5010_v20 = vld [vmem:[#allocation25 + $0x4c0] sm:$0xff] }
 0x8ad   :  { %4745 = vmatpush2.msra.mxu0 %v4558_v40  ;;  %v5008_v40 = vld [vmem:[#allocation25 + $0x4b0] sm:$0xff] }
 0x8ae   :  { %4746 = vmatprep.subr.mxu0 %v4557_v3  ;;  %v5007_v3 = vld [vmem:[#allocation25 + $0x4a8] sm:$0xff] }
 0x8af   :  { %4747 = vmatpush2.msra.mxu0 %v4556_v31  ;;  %v5006_v31 = vld [vmem:[#allocation25 + $0x4a0] sm:$0xff] }
 0x8b0   :  { %4748 = vmatprep.subr.mxu0 %v4555_v33  ;;  %v5005_v33 = vld [vmem:[#allocation25 + $0x498] sm:$0xff] }
 0x8b1   :  { %4749 = vmatpush2.msra.mxu0 %v4554_v35  ;;  %v4828_v35 = vld [vmem:[#allocation28 + $0x1f8] sm:$0xff] }
 0x8b2   :  { %4750 = vmatprep.subr.mxu0 %v4553_v23  ;;  %v4812_v23 = vld [vmem:[#allocation28 + $0x178] sm:$0xff]  ;;  %5811 = vmatprep.subr.mxu1 %v4828_v35  ;;  %v5045_v35 = vld [vmem:[#allocation25 + $0x5d8] sm:$0xff] }
 0x8b3   :  { %4751 = vmatpush2.msra.mxu0 %v4552_v38  ;;  %v4827_v38 = vld [vmem:[#allocation28 + $0x1f0] sm:$0xff]  ;;  %5812 = vmatpush3.msra.mxu1 %v4812_v23  ;;  %v5044_v23 = vld [vmem:[#allocation25 + $0x5d0] sm:$0xff] }
 0x8b4   :  { %4752 = vmatprep.subr.mxu0 %v4551_v50  ;;  %v5004_v50 = vld [vmem:[#allocation25 + $0x490] sm:$0xff]  ;;  %5813 = vmatprep.subr.mxu1 %v4827_v38  ;;  %v5043_v38 = vld [vmem:[#allocation25 + $0x5c8] sm:$0xff] }
 0x8b5   :  { %4753 = vmatpush2.msra.mxu0 %v4550_v53  ;;  %v5003_v53 = vld [vmem:[#allocation25 + $0x488] sm:$0xff]  ;;  %5814 = vmatpush3.msra.mxu1 %v4811_v55  ;;  %v5041_v55 = vld [vmem:[#allocation25 + $0x5b8] sm:$0xff] }
 0x8b6   :  { %4754 = vmatprep.subr.mxu0 %v4549_v37  ;;  %v5002_v37 = vld [vmem:[#allocation25 + $0x480] sm:$0xff]  ;;  %5815 = vmatprep.subr.mxu1 %v4826_v34  ;;  %v5039_v34 = vld [vmem:[#allocation25 + $0x5a8] sm:$0xff] }
 0x8b7   :  { %4755 = vmatpush2.msra.mxu0 %v4548_v4  ;;  %v4810_v4 = vld [vmem:[#allocation28 + $0x168] sm:$0xff] }
 0x8b8   :  { %4756 = vmatprep.subr.mxu0 %v4547_v54  ;;  %v5001_v54 = vld [vmem:[#allocation25 + $0x478] sm:$0xff]  ;;  %5816 = vmatpush3.msra.mxu1 %v4810_v4 }
 0x8b9   :  { %4757 = vmatpush2.msra.mxu0 %v4546_v57  ;;  %v5000_v57 = vld [vmem:[#allocation25 + $0x470] sm:$0xff]  ;;  %5817 = vmatprep.subr.mxu1 %v4825_v56  ;;  %v5037_v4 = vld [vmem:[#allocation25 + $0x598] sm:$0xff]  ;;  %v5035_v56 = vld [vmem:[#allocation25 + $0x588] sm:$0xff] }
 0x8ba   :  { %4758 = vmatprep.subr.mxu0 %v4545_v60  ;;  %v4999_v60 = vld [vmem:[#allocation25 + $0x468] sm:$0xff]  ;;  %5818 = vmatpush3.msra.mxu1 %v4809_v58  ;;  %v5034_v58 = vld [vmem:[#allocation25 + $0x580] sm:$0xff] }
 0x8bb   :  { %4759 = vmatpush2.msra.mxu0 %v4544_v24  ;;  %v4824_v24 = vld [vmem:[#allocation28 + $0x1d8] sm:$0xff] }
 0x8bc   :  { %4760 = vmatprep.subr.mxu0 %v4543_v61  ;;  %v4998_v61 = vld [vmem:[#allocation25 + $0x460] sm:$0xff]  ;;  %5819 = vmatprep.subr.mxu1 %v4824_v24 }
 0x8bd   :  { %4761 = vmatpush2.msra.mxu0 %v4542_v0  ;;  %v4997_v0 = vld [vmem:[#allocation25 + $0x458] sm:$0xff]  ;;  %5820 = vmatpush3.msra.mxu1 %v4808_v26  ;;  %v5031_v26 = vld [vmem:[#allocation25 + $0x568] sm:$0xff] }
 0x8be   :  { %4762 = vmatprep.subr.mxu0 %v4541_v1  ;;  %v4996_v1 = vld [vmem:[#allocation25 + $0x450] sm:$0xff]  ;;  %5821 = vmatprep.subr.mxu1 %v4823_v44  ;;  %v5029_v44 = vld [vmem:[#allocation25 + $0x558] sm:$0xff] }
 0x8bf   :  { %4763 = vmatpush2.msra.mxu0 %v4540_v21  ;;  %v4807_v21 = vld [vmem:[#allocation28 + $0x150] sm:$0xff] }
 0x8c0   :  { %4764 = vmatprep.subr.mxu0 %v4539_v8  ;;  %v4995_v8 = vld [vmem:[#allocation25 + $0x448] sm:$0xff]  ;;  %5822 = vmatpush3.msra.mxu1 %v4807_v21  ;;  %v5028_v21 = vld [vmem:[#allocation25 + $0x550] sm:$0xff] }
 0x8c1   :  { %4765 = vmatpush2.msra.mxu0 %v4538_v18  ;;  %v4994_v18 = vld [vmem:[#allocation25 + $0x440] sm:$0xff]  ;;  %5823 = vmatprep.subr.mxu1 %v4822_v32 }
 0x8c2   :  { %4766 = vmatprep.subr.mxu0 %v4537_v39  ;;  %v4993_v39 = vld [vmem:[#allocation25 + $0x438] sm:$0xff]  ;;  %5824 = vmatpush3.msra.mxu1 %v4806_v10  ;;  %v5026_v32 = vld [vmem:[#allocation25 + $0x540] sm:$0xff] }
 0x8c3   :  { %4767 = vmatpush2.msra.mxu0 %v4536_v47  ;;  %v4821_v47 = vld [vmem:[#allocation28 + $0x1c0] sm:$0xff] }
 0x8c4   :  { %4769 = vmatmul.mubr.f32.vlgmr.msra.gmra.mxu0 %v3473_v9  ;;  %5050 = vmatprep.subr.mxu0 %v5017_v52  ;;  %v4992_v52 = vld [vmem:[#allocation25 + $0x430] sm:$0xff]  ;;  %v4805_v9 = vld [vmem:[#allocation28 + $0x140] sm:$0xff] }
 0x8c5   :  { %5051 = vmatpush1.msra.mxu0 %v5016_v11  ;;  %5114 = vmatprep.mubr.f32.mxu0 %v4084_v15  ;;  %v4991_v11 = vld [vmem:[#allocation25 + $0x428] sm:$0xff]  ;;  %v4820_v15 = vld [vmem:[#allocation28 + $0x1b8] sm:$0xff] }
 0x8c6   :  { %5052 = vmatprep.subr.mxu0 %v5015_v12  ;;  %v4990_v12 = vld [vmem:[#allocation25 + $0x420] sm:$0xff]  ;;  %5825 = vmatprep.subr.mxu1 %v4821_v47 }
 0x8c7   :  { %5053 = vmatpush1.msra.mxu0 %v5014_v13  ;;  %v4804_v13 = vld [vmem:[#allocation28 + $0x138] sm:$0xff]  ;;  %5826 = vmatpush3.msra.mxu1 %v4805_v9 }
 0x8c8   :  { %5054 = vmatprep.subr.mxu0 %v5013_v27  ;;  %v4989_v27 = vld [vmem:[#allocation25 + $0x418] sm:$0xff]  ;;  %5827 = vmatprep.subr.mxu1 %v4820_v15  ;;  %v5019_v15 = vld [vmem:[#allocation25 + $0x508] sm:$0xff] }
 0x8c9   :  { %5055 = vmatpush1.msra.mxu0 %v5012_v28  ;;  %v4819_v28 = vld [vmem:[#allocation28 + $0x1b0] sm:$0xff]  ;;  %5828 = vmatpush3.msra.mxu1 %v4804_v13  ;;  %v5018_v13 = vld [vmem:[#allocation25 + $0x500] sm:$0xff] }
 0x8ca   :  { %5056 = vmatprep.subr.mxu0 %v5011_v16  ;;  %v4988_v16 = vld [vmem:[#allocation25 + $0x410] sm:$0xff]  ;;  %5829 = vmatprep.subr.mxu1 %v4819_v28  ;;  %v4803_v28 = vld [vmem:[#allocation28 + $0x130] sm:$0xff] }
 0x8cb   :  { %5057 = vmatpush1.msra.mxu0 %v5010_v20  ;;  %v4987_v20 = vld [vmem:[#allocation25 + $0x408] sm:$0xff]  ;;  %5830 = vmatpush3.msra.mxu1 %v4803_v28 }
 0x8cc   :  { %5058 = vmatprep.subr.mxu0 %v5009_v62  ;;  %v4986_v62 = vld [vmem:[#allocation25 + $0x400] sm:$0xff]  ;;  %v4950_v28 = vld [vmem:[#allocation24 + $0x4e8] sm:$0xff] }
 0x8cd   :  { %5059 = vmatpush1.msra.mxu0 %v5008_v40  ;;  %v5049_v40 = vld [vmem:[#allocation25 + $0x5f8] sm:$0xff] }
 0x8ce   :  { %5060 = vmatprep.subr.mxu0 %v5007_v3  ;;  %v5048_v3 = vld [vmem:[#allocation25 + $0x5f0] sm:$0xff] }
 0x8cf   :  { %5061 = vmatpush1.msra.mxu0 %v5006_v31  ;;  %v5047_v31 = vld [vmem:[#allocation25 + $0x5e8] sm:$0xff] }
 0x8d0   :  { %5062 = vmatprep.subr.mxu0 %v5005_v33  ;;  %v5046_v33 = vld [vmem:[#allocation25 + $0x5e0] sm:$0xff] }
 0x8d1   :  { %5063 = vmatpush1.msra.mxu0 %v5004_v50  ;;  %v5042_v50 = vld [vmem:[#allocation25 + $0x5c0] sm:$0xff] }
 0x8d2   :  { %5064 = vmatprep.subr.mxu0 %v5003_v53  ;;  %v5040_v53 = vld [vmem:[#allocation25 + $0x5b0] sm:$0xff] }
 0x8d3   :  { %5065 = vmatpush1.msra.mxu0 %v5002_v37  ;;  %v5038_v37 = vld [vmem:[#allocation25 + $0x5a0] sm:$0xff] }
 0x8d4   :  { %5066 = vmatprep.subr.mxu0 %v5001_v54  ;;  %v5036_v54 = vld [vmem:[#allocation25 + $0x590] sm:$0xff] }
 0x8d5   :  { %5067 = vmatpush1.msra.mxu0 %v5000_v57  ;;  %v7662_v57 = vsub.s32 4, %v7287_v41 }
 0x8d6   :  { %5068 = vmatprep.subr.mxu0 %v4999_v60  ;;  %v5033_v60 = vld [vmem:[#allocation25 + $0x578] sm:$0xff] }
 0x8d7   :  { %5069 = vmatpush1.msra.mxu0 %v4998_v61  ;;  %v3758_v24 = vrot.slane %v7577_v29, %v7662_v57  ;;  %v5032_v61 = vld [vmem:[#allocation25 + $0x570] sm:$0xff]  ;;  %v7669_v47 = vrot.slane %v7645_v5, %v7662_v57 }
 0x8d8   :  { %5070 = vmatprep.subr.mxu0 %v4997_v0  ;;  %v5030_v0 = vld [vmem:[#allocation25 + $0x560] sm:$0xff]  ;;  %v5024_v29 = vld [vmem:[#allocation25 + $0x530] sm:$0xff] }
 0x8d9   :  { %5071 = vmatpush1.msra.mxu0 %v4996_v1  ;;  %v3988_v1 = vadd.f32 %v7617_v63, %v3758_v24  ;;  %v5021_v63 = vld [vmem:[#allocation25 + $0x518] sm:$0xff] }
 0x8da   :  { %5072 = vmatprep.subr.mxu0 %v4995_v8  ;;  %v5027_v8 = vld [vmem:[#allocation25 + $0x548] sm:$0xff] }
 0x8db   :  { %5073 = vmatpush1.msra.mxu0 %v4994_v18  ;;  %v5025_v18 = vld [vmem:[#allocation25 + $0x538] sm:$0xff]  ;;  %v4067_v10 = vmax.f32 %v3988_v1, 0.0 }
 0x8dc   :  { %5074 = vmatprep.subr.mxu0 %v4993_v39  ;;  %v5023_v39 = vld [vmem:[#allocation25 + $0x528] sm:$0xff] }
 0x8dd   :  { %5075 = vmatpush1.msra.mxu0 %v4992_v52  ;;  %v5022_v52 = vld [vmem:[#allocation25 + $0x520] sm:$0xff]  ;;  %v4075_v9 = vmul.f32 %v4067_v10, %v7669_v47 }
 0x8de   :  { %5076 = vmatprep.subr.mxu0 %v4991_v11  ;;  %v5020_v11 = vld [vmem:[#allocation25 + $0x510] sm:$0xff] }
 0x8df   :  { %5077 = vmatpush1.msra.mxu0 %v4990_v12  ;;  %v7674_v12 = vrot.slane %v7653_v7, %v7662_v57 }
 0x8e0   :  { %5078 = vmatprep.subr.mxu0 %v4989_v27 }
 0x8e1   :  { %5079 = vmatpush1.msra.mxu0 %v4988_v16  ;;  %v4083_v27 = vadd.f32 %v4075_v9, %v7674_v12  ;;  %v4818_v16 = vld [vmem:[#allocation28 + $0x1a8] sm:$0xff] }
 0x8e2   :  { %5080 = vmatprep.subr.mxu0 %v4987_v20  ;;  %5831 = vmatprep.subr.mxu1 %v4818_v16  ;;  %v4802_v20 = vld [vmem:[#allocation28 + $0x128] sm:$0xff] }
 0x8e3   :  { %5081 = vmatpush1.msra.mxu0 %v4986_v62  ;;  %5832 = vmatpush3.msra.mxu1 %v4802_v20  ;;  %v4817_v62 = vld [vmem:[#allocation28 + $0x1a0] sm:$0xff]  ;;  %v4949_v20 = vld [vmem:[#allocation24 + $0x4e0] sm:$0xff] }
 0x8e4   :  { %5082 = vmatprep.subr.mxu0 %v5049_v40  ;;  %5833 = vmatprep.subr.mxu1 %v4817_v62  ;;  %v4801_v40 = vld [vmem:[#allocation28 + $0x120] sm:$0xff]  ;;  %v4948_v62 = vld [vmem:[#allocation24 + $0x4d8] sm:$0xff] }
 0x8e5   :  { %5083 = vmatpush2.msra.mxu0 %v5048_v3  ;;  %5834 = vmatpush3.msra.mxu1 %v4801_v40  ;;  %v4816_v3 = vld [vmem:[#allocation28 + $0x198] sm:$0xff]  ;;  %v4947_v40 = vld [vmem:[#allocation24 + $0x4d0] sm:$0xff] }
 0x8e6   :  { %5084 = vmatprep.subr.mxu0 %v5047_v31  ;;  %5835 = vmatprep.subr.mxu1 %v4816_v3  ;;  %v4800_v31 = vld [vmem:[#allocation28 + $0x118] sm:$0xff] }
 0x8e7   :  { %5085 = vmatpush2.msra.mxu0 %v5046_v33  ;;  %5836 = vmatpush3.msra.mxu1 %v4800_v31  ;;  %v4815_v33 = vld [vmem:[#allocation28 + $0x190] sm:$0xff]  ;;  %v4945_v3 = vld [vmem:[#allocation24 + $0x4c0] sm:$0xff] }
 0x8e8   :  { %5086 = vmatprep.subr.mxu0 %v5045_v35  ;;  %5837 = vmatprep.subr.mxu1 %v4815_v33  ;;  %v4799_v35 = vld [vmem:[#allocation28 + $0x110] sm:$0xff]  ;;  %v4943_v33 = vld [vmem:[#allocation24 + $0x4b0] sm:$0xff] }
 0x8e9   :  { %5087 = vmatpush2.msra.mxu0 %v5044_v23  ;;  %v4814_v23 = vld [vmem:[#allocation28 + $0x188] sm:$0xff]  ;;  %5838 = vmatpush3.msra.mxu1 %v4799_v35  ;;  %v4944_v31 = vld [vmem:[#allocation24 + $0x4b8] sm:$0xff]  ;;  %v4942_v35 = vld [vmem:[#allocation24 + $0x4a8] sm:$0xff] }
 0x8ea   :  { %5088 = vmatprep.subr.mxu0 %v5043_v38  ;;  %v4798_v38 = vld [vmem:[#allocation28 + $0x108] sm:$0xff]  ;;  %5839 = vmatprep.subr.mxu1 %v4814_v23  ;;  %v4941_v23 = vld [vmem:[#allocation24 + $0x4a0] sm:$0xff] }
 0x8eb   :  { %5089 = vmatpush2.msra.mxu0 %v5042_v50  ;;  %v4813_v50 = vld [vmem:[#allocation28 + $0x180] sm:$0xff]  ;;  %5840 = vmatpush3.msra.mxu1 %v4798_v38  ;;  %v4939_v38 = vld [vmem:[#allocation24 + $0x490] sm:$0xff] }
 0x8ec   :  { %5090 = vmatprep.subr.mxu0 %v5041_v55  ;;  %v4797_v55 = vld [vmem:[#allocation28 + $0x100] sm:$0xff]  ;;  %5841 = vmatprep.subr.mxu1 %v4813_v50 }
 0x8ed   :  { %5091 = vmatpush2.msra.mxu0 %v5040_v53  ;;  %v4952_v53 = vld [vmem:[#allocation24 + $0x4f8] sm:$0xff]  ;;  %5842 = vmatpush3.msra.mxu1 %v4797_v55  ;;  %v4938_v50 = vld [vmem:[#allocation24 + $0x488] sm:$0xff]  ;;  %v4937_v55 = vld [vmem:[#allocation24 + $0x480] sm:$0xff] }
 0x8ee   :  { %5092 = vmatprep.subr.mxu0 %v5039_v34  ;;  %5121 = vmatprep.subr.mxu1 %v4952_v53  ;;  %v4936_v53 = vld [vmem:[#allocation24 + $0x478] sm:$0xff] }
 0x8ef   :  { %5093 = vmatpush2.msra.mxu0 %v5038_v37  ;;  %v7678_v37 = vand.u32 127, %v824_v30  ;;  %v3072_v30 = vrot.slane %v7621_v59, %v7637_v22 }
 0x8f0   :  { %5094 = vmatprep.subr.mxu0 %v5037_v4  ;;  %v5772_v4 = vld [vmem:[#allocation30] ss:$0 sm:$0xff] }
 0x8f1   :  { %5095 = vmatpush2.msra.mxu0 %v5036_v54  ;;  %vm4488_vm0 = vcmp.lt.s32.totalorder %v7678_v37, 3  ;;  %v3300_v1 = vadd.f32 %v7583_v43, %v3072_v30  ;;  %v4928_v30 = vld [vmem:[#allocation24 + $0x438] sm:$0xff]  ;;  %vm5324_vm2 = vcmp.lt.s32.totalorder %v7678_v37, 6  ;;  %vm5742_vm3 = vcmp.lt.s32.totalorder %v7678_v37, 4 }
 0x8f2   :  { %5096 = vmatprep.subr.mxu0 %v5035_v56 }
 0x8f3   :  { %5097 = vmatpush2.msra.mxu0 %v5034_v58 }
 0x8f4   :  { %5098 = vmatprep.subr.mxu0 %v5033_v60 }
 0x8f5   :  { %5099 = vmatpush2.msra.mxu0 %v5032_v61  ;;  %v4776_v61 = vld [vmem:[#allocation27 + $0x2] sm:$0x3] }
 0x8f6   :  { %5100 = vmatprep.subr.mxu0 %v5031_v26  ;;  %v4699_v26 = vpop.f32.mrf.mxu1 }
 0x8f7   :  { %5101 = vmatpush2.msra.mxu0 %v5030_v0  ;;  %v4781_v0 = vrot.slane %v4776_v61, %v7343_v42 }
 0x8f8   :  { %5102 = vmatprep.subr.mxu0 %v5029_v44 }
 0x8f9   :  { %5103 = vmatpush2.msra.mxu0 %v5028_v21 }
 0x8fa   :  { %5104 = vmatprep.subr.mxu0 %v5027_v8  ;;  %v4785_v8 = vrot.slane %v4776_v61, %v7348_v48  ;;  %v4929_v61 = vld [vmem:[#allocation24 + $0x440] sm:$0xff] }
 0x8fb   :  { %5105 = vmatpush2.msra.mxu0 %v5026_v32  ;;  %v4701_v32 = vpop.f32.mrf.mxu1 }
 0x8fc   :  { %5106 = vmatprep.subr.mxu0 %v5025_v18 }
 0x8fd   :  { %5107 = vmatpush2.msra.mxu0 %v5024_v29 }
 0x8fe   :  { %5108 = vmatprep.subr.mxu0 %v5023_v39  ;;  %v3378_v39 = vmax.f32 %v3300_v1, 0.0  ;;  %v4924_v1 = vld [vmem:[#allocation24 + $0x418] sm:$0xff] }
 0x8ff   :  { %5109 = vmatpush2.msra.mxu0 %v5022_v52 }
 0x900   :  { %5110 = vmatprep.subr.mxu0 %v5021_v63  ;;  %v3427_v22 = vmul.f32 %v7649_v51, %v3378_v39  ;;  %v4946_v51 = vld [vmem:[#allocation24 + $0x4c8] sm:$0xff]  ;;  %v4981_v39 = vld [vmem:[#allocation24 + $0x5e0] sm:$0xff] }
 0x901   :  { %5111 = vmatpush2.msra.mxu0 %v5020_v11 }
 0x902   :  { %5112 = vmatprep.subr.mxu0 %v5019_v15  ;;  %v3476_v16 = vadd.f32 %v7657_v36, %v3427_v22  ;;  %v4940_v36 = vld [vmem:[#allocation24 + $0x498] sm:$0xff] }
 0x903   :  { %5113 = vmatpush2.msra.mxu0 %v5018_v13  ;;  %v4976_v22 = vld [vmem:[#allocation24 + $0x5b8] sm:$0xff] }
 0x904   :  { %5115 = vmatmul.mubr.f32.vlgmr.msra.gmra.mxu0 %v4083_v27  ;;  %v4951_v27 = vld [vmem:[#allocation24 + $0x4f0] sm:$0xff] }
 0x944   :  { %v5808_v34 = vpop.f32.mrf.mxu0 }
 0x946   :  { %v5809_v54 = vpop.f32.mrf.mxu0 }
 0x947   :  { %v5810_v56 = vadd.f32 %v5809_v54, %v5808_v34  ;;  %v4935_v34 = vld [vmem:[#allocation24 + $0x470] sm:$0xff]  ;;  %v4933_v54 = vld [vmem:[#allocation24 + $0x460] sm:$0xff] }
 0x949   :  { %v4483_v58 = vadd.f32 %v5810_v56, %v5772_v4  ;;  %v4934_v4 = vld [vmem:[#allocation24 + $0x468] sm:$0xff]  ;;  %v4932_v56 = vld [vmem:[#allocation24 + $0x458] sm:$0xff] }
 0x94b   :  { %v7683_v60 = vsel %vm4488_vm0, %v4483_v58, -1e+30  ;;  %v4931_v58 = vld [vmem:[#allocation24 + $0x450] sm:$0xff] }
 0x94c   :  { %v4491_v24 = vsel %vm4490_vm1, %v7683_v60, -inf }
 0x94d   :  { %4492 = vmax.xlane.f32.xlu0 %v4491_v24  ;;  %v4930_v24 = vld [vmem:[#allocation24 + $0x448] sm:$0xff] }
 0x984   :  { %v4770_v44 = vpop.f32.mrf.mxu0 }
 0x985   :  { %v4771_v21 = vadd.f32 %v4770_v44, %v4699_v26  ;;  %v4927_v26 = vld [vmem:[#allocation24 + $0x430] sm:$0xff]  ;;  %v4925_v44 = vld [vmem:[#allocation24 + $0x420] sm:$0xff] }
 0x986   :  { %v4772_v18 = vpop.f32.mrf.mxu0 }
 0x987   :  { %v4788_v10 = vadd.f32 %v4781_v0, %v4771_v21  ;;  %v4773_v29 = vadd.f32 %v4772_v18, %v4701_v32  ;;  %v4926_v0 = vld [vmem:[#allocation24 + $0x428] sm:$0xff]  ;;  %v4923_v21 = vld [vmem:[#allocation24 + $0x410] sm:$0xff]  ;;  %v4921_v32 = vld [vmem:[#allocation24 + $0x400] sm:$0xff] }
 0x988   :  { %v4984_v18 = vld [vmem:[#allocation24 + $0x5f8] sm:$0xff] }
 0x989   :  { %v4790_v52 = vmax.f32 %v4788_v10, 0.0  ;;  %v4789_v63 = vadd.f32 %v4785_v8, %v4773_v29  ;;  %v4922_v8 = vld [vmem:[#allocation24 + $0x408] sm:$0xff]  ;;  %v4983_v10 = vld [vmem:[#allocation24 + $0x5f0] sm:$0xff] }
 0x98a   :  { %v4982_v29 = vld [vmem:[#allocation24 + $0x5e8] sm:$0xff] }
 0x98b   :  { %v4791_v9 = vmax.f32 %v4789_v63, 0.0  ;;  %v4792_v11 = vmul.f32 %v4790_v52, %v7418_v2  ;;  %v4980_v52 = vld [vmem:[#allocation24 + $0x5d8] sm:$0xff]  ;;  %v4979_v63 = vld [vmem:[#allocation24 + $0x5d0] sm:$0xff] }
 0x98d   :  { %v4793_v15 = vmul.f32 %v4791_v9, %v7421_v6  ;;  %v4794_v43 = vadd.f32 %v4792_v11, %v7431_v14  ;;  %v4978_v9 = vld [vmem:[#allocation24 + $0x5c8] sm:$0xff]  ;;  %v4977_v11 = vld [vmem:[#allocation24 + $0x5c0] sm:$0xff] }
 0x98f   :  { %v4795_v13 = vadd.f32 %v4793_v15, %v7424_v17  ;;  %v4975_v15 = vld [vmem:[#allocation24 + $0x5b0] sm:$0xff] }
 0x991   :  { %4901 = vmatprep.mubr.f32.mxu1 %v4795_v13  ;;  %v4974_v13 = vld [vmem:[#allocation24 + $0x5a8] sm:$0xff] }
 0x992   :  { %4902 = vmatmul.mubr.f32.vlgmr.msra.gmra.mxu1 %v4794_v43  ;;  %v4973_v43 = vld [vmem:[#allocation24 + $0x5a0] sm:$0xff] }
 0x993   :  { %5122 = vmatpush1.msra.mxu1 %v4951_v27  ;;  %5185 = vmatprep.mubr.f32.mxu1 %v3476_v16  ;;  %v4972_v27 = vld [vmem:[#allocation24 + $0x598] sm:$0xff]  ;;  %v4970_v16 = vld [vmem:[#allocation24 + $0x588] sm:$0xff] }
 0x994   :  { %5123 = vmatprep.subr.mxu1 %v4950_v28  ;;  %v4971_v28 = vld [vmem:[#allocation24 + $0x590] sm:$0xff] }
 0x995   :  { %5124 = vmatpush1.msra.mxu1 %v4949_v20  ;;  %v4969_v20 = vld [vmem:[#allocation24 + $0x580] sm:$0xff] }
 0x996   :  { %5125 = vmatprep.subr.mxu1 %v4948_v62  ;;  %v7699_v62 = vsub.s32 7, %v7287_v41 }
 0x997   :  { %5126 = vmatpush1.msra.mxu1 %v4947_v40  ;;  %v4968_v40 = vld [vmem:[#allocation24 + $0x578] sm:$0xff] }
 0x998   :  { %5127 = vmatprep.subr.mxu1 %v4946_v51  ;;  %v3068_v51 = vrot.slane %v7621_v59, %v7662_v57  ;;  %v4962_v59 = vld [vmem:[#allocation24 + $0x548] sm:$0xff]  ;;  %v4961_v57 = vld [vmem:[#allocation24 + $0x540] sm:$0xff] }
 0x999   :  { %5128 = vmatpush1.msra.mxu1 %v4945_v3  ;;  %v4967_v3 = vld [vmem:[#allocation24 + $0x570] sm:$0xff] }
 0x99a   :  { %5129 = vmatprep.subr.mxu1 %v4944_v31  ;;  %v7703_v31 = vld [vmem:[#allocation22 + $0x8] sm:$0xff] }
 0x99b   :  { %5130 = vmatpush1.msra.mxu1 %v4943_v33  ;;  %v3770_v33 = vrot.slane %v7703_v31, %v7699_v62 }
 0x99c   :  { %5131 = vmatprep.subr.mxu1 %v4942_v35  ;;  %v4966_v35 = vld [vmem:[#allocation24 + $0x568] sm:$0xff] }
 0x99d   :  { %5132 = vmatpush1.msra.mxu1 %v4941_v23  ;;  %v4965_v23 = vld [vmem:[#allocation24 + $0x560] sm:$0xff] }
 0x99e   :  { %5133 = vmatprep.subr.mxu1 %v4940_v36  ;;  %v4964_v36 = vld [vmem:[#allocation24 + $0x558] sm:$0xff] }
 0x99f   :  { %5134 = vmatpush1.msra.mxu1 %v4939_v38  ;;  %v3298_v38 = vadd.f32 %v7573_v25, %v3068_v51  ;;  %v7711_v25 = vrot.slane %v7645_v5, %v7699_v62  ;;  %v5243_v51 = vld [vmem:[#allocation28 + $0x2e8] sm:$0xff] }
 0x9a0   :  { %5135 = vmatprep.subr.mxu1 %v4938_v50  ;;  %v4963_v50 = vld [vmem:[#allocation24 + $0x550] sm:$0xff] }
 0x9a1   :  { %5136 = vmatpush1.msra.mxu1 %v4937_v55  ;;  %v4061_v55 = vadd.f32 %v7619_v19, %v3770_v33  ;;  %v4956_v19 = vld [vmem:[#allocation24 + $0x518] sm:$0xff]  ;;  %v5227_v33 = vld [vmem:[#allocation28 + $0x268] sm:$0xff] }
 0x9a2   :  { %5137 = vmatprep.subr.mxu1 %v4936_v53  ;;  %v4960_v53 = vld [vmem:[#allocation24 + $0x538] sm:$0xff] }
 0x9a3   :  { %5138 = vmatpush1.msra.mxu1 %v4935_v34  ;;  %v3377_v34 = vmax.f32 %v3298_v38, 0.0  ;;  %v5226_v38 = vld [vmem:[#allocation28 + $0x260] sm:$0xff] }
 0x9a4   :  { %5139 = vmatprep.subr.mxu1 %v4934_v4  ;;  %v4959_v4 = vld [vmem:[#allocation24 + $0x530] sm:$0xff] }
 0x9a5   :  { %5140 = vmatpush1.msra.mxu1 %v4933_v54  ;;  %v4070_v54 = vmax.f32 %v4061_v55, 0.0  ;;  %v5241_v55 = vld [vmem:[#allocation28 + $0x2d8] sm:$0xff] }
 0x9a6   :  { %5141 = vmatprep.subr.mxu1 %v4932_v56  ;;  %v4958_v56 = vld [vmem:[#allocation24 + $0x528] sm:$0xff] }
 0x9a7   :  { %5142 = vmatpush1.msra.mxu1 %v4931_v58  ;;  %v4957_v58 = vld [vmem:[#allocation24 + $0x520] sm:$0xff] }
 0x9a8   :  { %5143 = vmatprep.subr.mxu1 %v4930_v24  ;;  %v3426_v24 = vmul.f32 %v7669_v47, %v3377_v34  ;;  %v5240_v34 = vld [vmem:[#allocation28 + $0x2d0] sm:$0xff] }
 0x9a9   :  { %5144 = vmatpush1.msra.mxu1 %v4929_v61  ;;  %v4955_v61 = vld [vmem:[#allocation24 + $0x510] sm:$0xff] }
 0x9aa   :  { %5145 = vmatprep.subr.mxu1 %v4928_v30  ;;  %v4078_v30 = vmul.f32 %v4070_v54, %v7711_v25  ;;  %v3475_v5 = vadd.f32 %v7674_v12, %v3426_v24  ;;  %v5427_v12 = vld [vmem:[#allocation25 + $0x6b8] sm:$0xff]  ;;  %v5223_v24 = vld [vmem:[#allocation28 + $0x248] sm:$0xff] }
 0x9ab   :  { %5146 = vmatpush1.msra.mxu1 %v4927_v26  ;;  %v4954_v26 = vld [vmem:[#allocation24 + $0x508] sm:$0xff]  ;;  %v5224_v54 = vld [vmem:[#allocation28 + $0x250] sm:$0xff] }
 0x9ac   :  { %5147 = vmatprep.subr.mxu1 %v4926_v0  ;;  %v4953_v0 = vld [vmem:[#allocation24 + $0x500] sm:$0xff] }
 0x9ad   :  { %5148 = vmatpush1.msra.mxu1 %v4925_v44  ;;  %v5435_v44 = vld [vmem:[#allocation25 + $0x6f8] sm:$0xff] }
 0x9ae   :  { %5149 = vmatprep.subr.mxu1 %v4924_v1  ;;  %v7717_v1 = vrot.slane %v7653_v7, %v7699_v62  ;;  %v5428_v7 = vld [vmem:[#allocation25 + $0x6c0] sm:$0xff] }
 0x9af   :  { %5150 = vmatpush1.msra.mxu1 %v4923_v21  ;;  %v5434_v21 = vld [vmem:[#allocation25 + $0x6f0] sm:$0xff] }
 0x9b0   :  { %5151 = vmatprep.subr.mxu1 %v4922_v8  ;;  %v4086_v47 = vadd.f32 %v4078_v30, %v7717_v1  ;;  %v5433_v8 = vld [vmem:[#allocation25 + $0x6e8] sm:$0xff] }
 0x9b1   :  { %5152 = vmatpush1.msra.mxu1 %v4921_v32  ;;  %v5432_v32 = vld [vmem:[#allocation25 + $0x6e0] sm:$0xff]  ;;  %v5238_v30 = vld [vmem:[#allocation28 + $0x2c0] sm:$0xff] }
 0x9b2   :  { %5153 = vmatprep.subr.mxu1 %v4984_v18  ;;  %v5431_v18 = vld [vmem:[#allocation25 + $0x6d8] sm:$0xff] }
 0x9b3   :  { %5154 = vmatpush2.msra.mxu1 %v4983_v10  ;;  %v5430_v10 = vld [vmem:[#allocation25 + $0x6d0] sm:$0xff] }
 0x9b4   :  { %5155 = vmatprep.subr.mxu1 %v4982_v29  ;;  %v5429_v29 = vld [vmem:[#allocation25 + $0x6c8] sm:$0xff] }
 0x9b5   :  { %5156 = vmatpush2.msra.mxu1 %v4981_v39  ;;  %v5426_v39 = vld [vmem:[#allocation25 + $0x6b0] sm:$0xff] }
 0x9b6   :  { %5157 = vmatprep.subr.mxu1 %v4980_v52  ;;  %v5425_v52 = vld [vmem:[#allocation25 + $0x6a8] sm:$0xff] }
 0x9b7   :  { %5158 = vmatpush2.msra.mxu1 %v4979_v63  ;;  %v5424_v63 = vld [vmem:[#allocation25 + $0x6a0] sm:$0xff] }
 0x9b8   :  { %5159 = vmatprep.subr.mxu1 %v4978_v9  ;;  %v5423_v9 = vld [vmem:[#allocation25 + $0x698] sm:$0xff] }
 0x9b9   :  { %5160 = vmatpush2.msra.mxu1 %v4977_v11  ;;  %v5422_v11 = vld [vmem:[#allocation25 + $0x690] sm:$0xff] }
 0x9ba   :  { %5161 = vmatprep.subr.mxu1 %v4976_v22  ;;  %v5421_v22 = vld [vmem:[#allocation25 + $0x688] sm:$0xff] }
 0x9bb   :  { %5162 = vmatpush2.msra.mxu1 %v4975_v15  ;;  %v5420_v15 = vld [vmem:[#allocation25 + $0x680] sm:$0xff] }
 0x9bc   :  { %5163 = vmatprep.subr.mxu1 %v4974_v13  ;;  %v5419_v13 = vld [vmem:[#allocation25 + $0x678] sm:$0xff] }
 0x9bd   :  { %5164 = vmatpush2.msra.mxu1 %v4973_v43  ;;  %v5245_v43 = vld [vmem:[#allocation28 + $0x2f8] sm:$0xff] }
 0x9be   :  { %5165 = vmatprep.subr.mxu1 %v4972_v27  ;;  %v5229_v27 = vld [vmem:[#allocation28 + $0x278] sm:$0xff]  ;;  %5846 = vmatprep.subr.mxu0 %v5245_v43  ;;  %v5453_v43 = vld [vmem:[#allocation25 + $0x788] sm:$0xff] }
 0x9bf   :  { %5166 = vmatpush2.msra.mxu1 %v4971_v28  ;;  %v5244_v28 = vld [vmem:[#allocation28 + $0x2f0] sm:$0xff]  ;;  %5847 = vmatpush3.msra.mxu0 %v5229_v27  ;;  %v7722_v27 = vsub.s32 6, %v7287_v41  ;;  %v5446_v41 = vld [vmem:[#allocation25 + $0x750] sm:$0xff] }
 0x9c0   :  { %5167 = vmatprep.subr.mxu1 %v4970_v16  ;;  %v5418_v16 = vld [vmem:[#allocation25 + $0x670] sm:$0xff]  ;;  %5848 = vmatprep.subr.mxu0 %v5244_v28  ;;  %v5452_v28 = vld [vmem:[#allocation25 + $0x780] sm:$0xff] }
 0x9c1   :  { %5168 = vmatpush2.msra.mxu1 %v4969_v20  ;;  %v5228_v20 = vld [vmem:[#allocation28 + $0x270] sm:$0xff] }
 0x9c2   :  { %5169 = vmatprep.subr.mxu1 %v4968_v40  ;;  %v5417_v40 = vld [vmem:[#allocation25 + $0x668] sm:$0xff]  ;;  %5849 = vmatpush3.msra.mxu0 %v5228_v20  ;;  %v3766_v20 = vrot.slane %v7703_v31, %v7722_v27  ;;  %v5442_v31 = vld [vmem:[#allocation25 + $0x730] sm:$0xff] }
 0x9c3   :  { %5170 = vmatpush2.msra.mxu1 %v4967_v3  ;;  %v5416_v3 = vld [vmem:[#allocation25 + $0x660] sm:$0xff]  ;;  %5850 = vmatprep.subr.mxu0 %v5243_v51  ;;  %v5449_v51 = vld [vmem:[#allocation25 + $0x768] sm:$0xff] }
 0x9c4   :  { %5171 = vmatprep.subr.mxu1 %v4966_v35  ;;  %v5415_v35 = vld [vmem:[#allocation25 + $0x658] sm:$0xff]  ;;  %5851 = vmatpush3.msra.mxu0 %v5227_v33 }
 0x9c5   :  { %5172 = vmatpush2.msra.mxu1 %v4965_v23  ;;  %v5242_v23 = vld [vmem:[#allocation28 + $0x2e0] sm:$0xff]  ;;  %v5447_v33 = vld [vmem:[#allocation25 + $0x758] sm:$0xff] }
 0x9c6   :  { %5173 = vmatprep.subr.mxu1 %v4964_v36  ;;  %v5414_v36 = vld [vmem:[#allocation25 + $0x650] sm:$0xff]  ;;  %5852 = vmatprep.subr.mxu0 %v5242_v23  ;;  %v5445_v23 = vld [vmem:[#allocation25 + $0x748] sm:$0xff] }
 0x9c7   :  { %5174 = vmatpush2.msra.mxu1 %v4963_v50  ;;  %v5413_v50 = vld [vmem:[#allocation25 + $0x648] sm:$0xff]  ;;  %5853 = vmatpush3.msra.mxu0 %v5226_v38  ;;  %v5443_v38 = vld [vmem:[#allocation25 + $0x738] sm:$0xff] }
 0x9c8   :  { %5175 = vmatprep.subr.mxu1 %v4962_v59  ;;  %v5412_v59 = vld [vmem:[#allocation25 + $0x640] sm:$0xff]  ;;  %5854 = vmatprep.subr.mxu0 %v5241_v55  ;;  %v5441_v55 = vld [vmem:[#allocation25 + $0x728] sm:$0xff] }
 0x9c9   :  { %5176 = vmatpush2.msra.mxu1 %v4961_v57  ;;  %v5225_v57 = vld [vmem:[#allocation28 + $0x258] sm:$0xff] }
 0x9ca   :  { %5177 = vmatprep.subr.mxu1 %v4960_v53  ;;  %v5411_v53 = vld [vmem:[#allocation25 + $0x638] sm:$0xff]  ;;  %5855 = vmatpush3.msra.mxu0 %v5225_v57 }
 0x9cb   :  { %5178 = vmatpush2.msra.mxu1 %v4959_v4  ;;  %v5410_v4 = vld [vmem:[#allocation25 + $0x630] sm:$0xff]  ;;  %5856 = vmatprep.subr.mxu0 %v5240_v34 }
 0x9cc   :  { %5179 = vmatprep.subr.mxu1 %v4958_v56  ;;  %v5409_v56 = vld [vmem:[#allocation25 + $0x628] sm:$0xff]  ;;  %5857 = vmatpush3.msra.mxu0 %v5224_v54 }
 0x9cd   :  { %5180 = vmatpush2.msra.mxu1 %v4957_v58  ;;  %v5239_v58 = vld [vmem:[#allocation28 + $0x2c8] sm:$0xff]  ;;  %v5437_v54 = vld [vmem:[#allocation25 + $0x708] sm:$0xff] }
 0x9ce   :  { %5181 = vmatprep.subr.mxu1 %v4956_v19  ;;  %v5408_v19 = vld [vmem:[#allocation25 + $0x620] sm:$0xff]  ;;  %5858 = vmatprep.subr.mxu0 %v5239_v58 }
 0x9cf   :  { %5182 = vmatpush2.msra.mxu1 %v4955_v61  ;;  %v5407_v61 = vld [vmem:[#allocation25 + $0x618] sm:$0xff]  ;;  %5859 = vmatpush3.msra.mxu0 %v5223_v24 }
 0x9d0   :  { %5183 = vmatprep.subr.mxu1 %v4954_v26  ;;  %v5406_v26 = vld [vmem:[#allocation25 + $0x610] sm:$0xff]  ;;  %5860 = vmatprep.subr.mxu0 %v5238_v30 }
 0x9d1   :  { %5184 = vmatpush2.msra.mxu1 %v4953_v0  ;;  %v5222_v0 = vld [vmem:[#allocation28 + $0x240] sm:$0xff]  ;;  %v5235_v30 = vld [vmem:[#allocation28 + $0x2a8] sm:$0xff] }
 0x9d2   :  { %5186 = vmatmul.mubr.f32.vlgmr.msra.gmra.mxu1 %v3475_v5  ;;  %5468 = vmatprep.subr.mxu1 %v5435_v44  ;;  %v5405_v44 = vld [vmem:[#allocation25 + $0x608] sm:$0xff]  ;;  %v5237_v5 = vld [vmem:[#allocation28 + $0x2b8] sm:$0xff] }
 0x9d3   :  { %5469 = vmatpush1.msra.mxu1 %v5434_v21  ;;  %5532 = vmatprep.mubr.f32.mxu1 %v4086_v47  ;;  %v5404_v21 = vld [vmem:[#allocation25 + $0x600] sm:$0xff] }
 0x9d4   :  { %5470 = vmatprep.subr.mxu1 %v5433_v8  ;;  %v5221_v47 = vld [vmem:[#allocation28 + $0x238] sm:$0xff]  ;;  %v5467_v8 = vld [vmem:[#allocation25 + $0x7f8] sm:$0xff]  ;;  %5861 = vmatpush3.msra.mxu0 %v5222_v0  ;;  %v5234_v0 = vld [vmem:[#allocation28 + $0x2a0] sm:$0xff] }
 0x9d5   :  { %5471 = vmatpush1.msra.mxu1 %v5432_v32  ;;  %v5236_v32 = vld [vmem:[#allocation28 + $0x2b0] sm:$0xff]  ;;  %5862 = vmatprep.subr.mxu0 %v5237_v5  ;;  %v5233_v5 = vld [vmem:[#allocation28 + $0x298] sm:$0xff] }
 0x9d6   :  { %5472 = vmatprep.subr.mxu1 %v5431_v18  ;;  %v5466_v18 = vld [vmem:[#allocation25 + $0x7f0] sm:$0xff]  ;;  %5863 = vmatpush3.msra.mxu0 %v5221_v47  ;;  %v5232_v47 = vld [vmem:[#allocation28 + $0x290] sm:$0xff] }
 0x9d7   :  { %5473 = vmatpush1.msra.mxu1 %v5430_v10  ;;  %v5465_v10 = vld [vmem:[#allocation25 + $0x7e8] sm:$0xff]  ;;  %5864 = vmatprep.subr.mxu0 %v5236_v32  ;;  %v5231_v32 = vld [vmem:[#allocation28 + $0x288] sm:$0xff] }
 0x9d8   :  { %5474 = vmatprep.subr.mxu1 %v5429_v29  ;;  %v5464_v29 = vld [vmem:[#allocation25 + $0x7e0] sm:$0xff] }
 0x9d9   :  { %5475 = vmatpush1.msra.mxu1 %v5428_v7  ;;  %v5463_v7 = vld [vmem:[#allocation25 + $0x7d8] sm:$0xff] }
 0x9da   :  { %5476 = vmatprep.subr.mxu1 %v5427_v12  ;;  %v5462_v12 = vld [vmem:[#allocation25 + $0x7d0] sm:$0xff] }
 0x9db   :  { %5477 = vmatpush1.msra.mxu1 %v5426_v39  ;;  %v5461_v39 = vld [vmem:[#allocation25 + $0x7c8] sm:$0xff] }
 0x9dc   :  { %5478 = vmatprep.subr.mxu1 %v5425_v52  ;;  %v5460_v52 = vld [vmem:[#allocation25 + $0x7c0] sm:$0xff] }
 0x9dd   :  { %5479 = vmatpush1.msra.mxu1 %v5424_v63  ;;  %v5459_v63 = vld [vmem:[#allocation25 + $0x7b8] sm:$0xff] }
 0x9de   :  { %5480 = vmatprep.subr.mxu1 %v5423_v9  ;;  %v5458_v9 = vld [vmem:[#allocation25 + $0x7b0] sm:$0xff] }
 0x9df   :  { %5481 = vmatpush1.msra.mxu1 %v5422_v11  ;;  %v5457_v11 = vld [vmem:[#allocation25 + $0x7a8] sm:$0xff] }
 0x9e0   :  { %5482 = vmatprep.subr.mxu1 %v5421_v22  ;;  %v5456_v22 = vld [vmem:[#allocation25 + $0x7a0] sm:$0xff] }
 0x9e1   :  { %5483 = vmatpush1.msra.mxu1 %v5420_v15  ;;  %v5455_v15 = vld [vmem:[#allocation25 + $0x798] sm:$0xff] }
 0x9e2   :  { %5484 = vmatprep.subr.mxu1 %v5419_v13  ;;  %v5454_v13 = vld [vmem:[#allocation25 + $0x790] sm:$0xff] }
 0x9e3   :  { %5485 = vmatpush1.msra.mxu1 %v5418_v16  ;;  %v5451_v16 = vld [vmem:[#allocation25 + $0x778] sm:$0xff] }
 0x9e4   :  { %5486 = vmatprep.subr.mxu1 %v5417_v40  ;;  %v5450_v40 = vld [vmem:[#allocation25 + $0x770] sm:$0xff] }
 0x9e5   :  { %5487 = vmatpush1.msra.mxu1 %v5416_v3  ;;  %v5448_v3 = vld [vmem:[#allocation25 + $0x760] sm:$0xff] }
 0x9e6   :  { %5488 = vmatprep.subr.mxu1 %v5415_v35  ;;  %v4059_v35 = vadd.f32 %v7615_v49, %v3766_v20  ;;  %v5439_v49 = vld [vmem:[#allocation25 + $0x718] sm:$0xff]  ;;  %v7746_v20 = vld [vmem:[#allocation22] sm:$0xff] }
 0x9e7   :  { %5489 = vmatpush1.msra.mxu1 %v5414_v36  ;;  %v5444_v36 = vld [vmem:[#allocation25 + $0x740] sm:$0xff] }
 0x9e8   :  { %5490 = vmatprep.subr.mxu1 %v5413_v50  ;;  %v4069_v50 = vmax.f32 %v4059_v35, 0.0 }
 0x9e9   :  { %5491 = vmatpush1.msra.mxu1 %v5412_v59  ;;  %v6674_v59 = vld [vmem:[#allocation18] sm:$0xff] }
 0x9ea   :  { %5492 = vmatprep.subr.mxu1 %v5411_v53  ;;  %v7728_v57 = vrot.slane %v6674_v59, %v7722_v27  ;;  %v5440_v53 = vld [vmem:[#allocation25 + $0x720] sm:$0xff] }
 0x9eb   :  { %5493 = vmatpush1.msra.mxu1 %v5410_v4  ;;  %v5438_v4 = vld [vmem:[#allocation25 + $0x710] sm:$0xff] }
 0x9ec   :  { %5494 = vmatprep.subr.mxu1 %v5409_v56  ;;  %v4077_v34 = vmul.f32 %v4069_v50, %v7728_v57  ;;  %v6675_v56 = vld [vmem:[#allocation19] sm:$0xff] }
 0x9ed   :  { %5495 = vmatpush1.msra.mxu1 %v5408_v19  ;;  %v7732_v58 = vrot.slane %v6675_v56, %v7722_v27  ;;  %v5436_v19 = vld [vmem:[#allocation25 + $0x700] sm:$0xff]  ;;  %v5369_v56 = vld [vmem:[#allocation24 + $0x6f0] sm:$0xff] }
 0x9ee   :  { %5496 = vmatprep.subr.mxu1 %v5407_v61  ;;  %v5220_v61 = vld [vmem:[#allocation28 + $0x230] sm:$0xff] }
 0x9ef   :  { %5497 = vmatpush1.msra.mxu1 %v5406_v26  ;;  %v4085_v24 = vadd.f32 %v4077_v34, %v7732_v58  ;;  %5865 = vmatpush3.msra.mxu0 %v5220_v61  ;;  %v5219_v26 = vld [vmem:[#allocation28 + $0x228] sm:$0xff]  ;;  %v5367_v61 = vld [vmem:[#allocation24 + $0x6e0] sm:$0xff] }
 0x9f0   :  { %5498 = vmatprep.subr.mxu1 %v5405_v44  ;;  %5866 = vmatprep.subr.mxu0 %v5235_v30  ;;  %v5218_v44 = vld [vmem:[#allocation28 + $0x220] sm:$0xff]  ;;  %v5366_v30 = vld [vmem:[#allocation24 + $0x6d8] sm:$0xff] }
 0x9f1   :  { %5499 = vmatpush1.msra.mxu1 %v5404_v21  ;;  %5867 = vmatpush3.msra.mxu0 %v5219_v26  ;;  %v5217_v21 = vld [vmem:[#allocation28 + $0x218] sm:$0xff]  ;;  %v5365_v26 = vld [vmem:[#allocation24 + $0x6d0] sm:$0xff] }
 0x9f2   :  { %5500 = vmatprep.subr.mxu1 %v5467_v8  ;;  %5868 = vmatprep.subr.mxu0 %v5234_v0  ;;  %v5216_v8 = vld [vmem:[#allocation28 + $0x210] sm:$0xff]  ;;  %v5363_v0 = vld [vmem:[#allocation24 + $0x6c0] sm:$0xff] }
 0x9f3   :  { %5501 = vmatpush2.msra.mxu1 %v5466_v18  ;;  %5869 = vmatpush3.msra.mxu0 %v5218_v44  ;;  %v5215_v18 = vld [vmem:[#allocation28 + $0x208] sm:$0xff]  ;;  %v5362_v44 = vld [vmem:[#allocation24 + $0x6b8] sm:$0xff] }
 0x9f4   :  { %5502 = vmatprep.subr.mxu1 %v5465_v10  ;;  %5870 = vmatprep.subr.mxu0 %v5233_v5  ;;  %v5230_v10 = vld [vmem:[#allocation28 + $0x280] sm:$0xff]  ;;  %v5361_v5 = vld [vmem:[#allocation24 + $0x6b0] sm:$0xff] }
 0x9f5   :  { %5503 = vmatpush2.msra.mxu1 %v5464_v29  ;;  %5871 = vmatpush3.msra.mxu0 %v5217_v21  ;;  %v5214_v29 = vld [vmem:[#allocation28 + $0x200] sm:$0xff] }
 0x9f6   :  { %5504 = vmatprep.subr.mxu1 %v5463_v7  ;;  %5872 = vmatprep.subr.mxu0 %v5232_v47  ;;  %v5370_v7 = vld [vmem:[#allocation24 + $0x6f8] sm:$0xff]  ;;  %v5360_v21 = vld [vmem:[#allocation24 + $0x6a8] sm:$0xff]  ;;  %v5359_v47 = vld [vmem:[#allocation24 + $0x6a0] sm:$0xff] }
 0x9f7   :  { %5505 = vmatpush2.msra.mxu1 %v5462_v12  ;;  %5873 = vmatpush3.msra.mxu0 %v5216_v8  ;;  %v4493_v12 = vpop.xlane.xlu0 %4492  ;;  %v5357_v8 = vld [vmem:[#allocation24 + $0x690] sm:$0xff] }
 0x9f8   :  { %5506 = vmatprep.subr.mxu1 %v5461_v39  ;;  %5874 = vmatprep.subr.mxu0 %v5231_v32  ;;  %v4494_v39 = vsub.f32 %v7683_v60, %v4493_v12  ;;  %v5356_v32 = vld [vmem:[#allocation24 + $0x688] sm:$0xff]  ;;  %v5351_v12 = vld [vmem:[#allocation24 + $0x660] sm:$0xff] }
 0x9f9   :  { %5507 = vmatpush2.msra.mxu1 %v5460_v52  ;;  %5875 = vmatpush3.msra.mxu0 %v5215_v18  ;;  %v5355_v18 = vld [vmem:[#allocation24 + $0x680] sm:$0xff] }
 0x9fa   :  { %5508 = vmatprep.subr.mxu1 %v5459_v63  ;;  %5876 = vmatprep.subr.mxu0 %v5230_v10  ;;  %v4495_v52 = vmul.f32 1.442695, %v4494_v39  ;;  %v5354_v10 = vld [vmem:[#allocation24 + $0x678] sm:$0xff] }
 0x9fb   :  { %5509 = vmatpush2.msra.mxu1 %v5458_v9  ;;  %5877 = vmatpush3.msra.mxu0 %v5214_v29  ;;  %v5773_v9 = vld [vmem:[#allocation30 + $0x1] ss:$0 sm:$0xff]  ;;  %v5353_v29 = vld [vmem:[#allocation24 + $0x670] sm:$0xff]  ;;  %v5350_v39 = vld [vmem:[#allocation24 + $0x658] sm:$0xff] }
 0x9fc   :  { %5510 = vmatprep.subr.mxu1 %v5457_v11  ;;  %5539 = vmatprep.subr.mxu0 %v5370_v7  ;;  %5950 = vpow2.f32 %v4495_v52  ;;  %v5352_v7 = vld [vmem:[#allocation24 + $0x668] sm:$0xff]  ;;  %v5349_v52 = vld [vmem:[#allocation24 + $0x650] sm:$0xff] }
 0x9fd   :  { %5511 = vmatpush2.msra.mxu1 %v5456_v22 }
 0x9fe   :  { %5512 = vmatprep.subr.mxu1 %v5455_v15 }
 0x9ff   :  { %5513 = vmatpush2.msra.mxu1 %v5454_v13 }
 0xa00   :  { %5514 = vmatprep.subr.mxu1 %v5453_v43 }
 0xa01   :  { %5515 = vmatpush2.msra.mxu1 %v5452_v28 }
 0xa02   :  { %5516 = vmatprep.subr.mxu1 %v5451_v16  ;;  %v5193_v16 = vld [vmem:[#allocation27 + $0x4] sm:$0x3] }
 0xa03   :  { %5517 = vmatpush2.msra.mxu1 %v5450_v40  ;;  %v3080_v40 = vrot.slane %v7746_v20, %v7699_v62 }
 0xa04   :  { %5518 = vmatprep.subr.mxu1 %v5449_v51  ;;  %v5116_v51 = vpop.f32.mrf.mxu0 }
 0xa05   :  { %5519 = vmatpush2.msra.mxu1 %v5448_v3  ;;  %v5198_v3 = vrot.slane %v5193_v16, %v7343_v42  ;;  %v3371_v35 = vadd.f32 %v7585_v46, %v3080_v40  ;;  %v5340_v40 = vld [vmem:[#allocation24 + $0x608] sm:$0xff] }
 0xa06   :  { %5520 = vmatprep.subr.mxu1 %v5447_v33 }
 0xa07   :  { %5521 = vmatpush2.msra.mxu1 %v5446_v41 }
 0xa08   :  { %5522 = vmatprep.subr.mxu1 %v5445_v23  ;;  %v5202_v23 = vrot.slane %v5193_v16, %v7348_v48  ;;  %v5341_v16 = vld [vmem:[#allocation24 + $0x610] sm:$0xff] }
 0xa09   :  { %5523 = vmatpush2.msra.mxu1 %v5444_v36  ;;  %v7742_v28 = vpop.eup %5950  ;;  %v5118_v36 = vpop.f32.mrf.mxu0 }
 0xa0a   :  { %5524 = vmatprep.subr.mxu1 %v5443_v38  ;;  %v4497_v60 = vsel %vm4490_vm1, %v7742_v28, 0.0 }
 0xa0b   :  { %5525 = vmatpush2.msra.mxu1 %v5442_v31 }
 0xa0c   :  { %5526 = vmatprep.subr.mxu1 %v5441_v55  ;;  %v3380_v55 = vmax.f32 %v3371_v35, 0.0  ;;  %v5400_v35 = vld [vmem:[#allocation24 + $0x7e8] sm:$0xff] }
 0xa0d   :  { %5527 = vmatpush2.msra.mxu1 %v5440_v53 }
 0xa0e   :  { %5528 = vmatprep.subr.mxu1 %v5439_v49  ;;  %v3429_v62 = vmul.f32 %v7711_v25, %v3380_v55  ;;  %v5364_v25 = vld [vmem:[#allocation24 + $0x6c8] sm:$0xff]  ;;  %v5393_v55 = vld [vmem:[#allocation24 + $0x7b0] sm:$0xff] }
 0xa0f   :  { %5529 = vmatpush2.msra.mxu1 %v5438_v4 }
 0xa10   :  { %5530 = vmatprep.subr.mxu1 %v5437_v54 }
 0xa11   :  { %5531 = vmatpush2.msra.mxu1 %v5436_v19  ;;  %v5368_v19 = vld [vmem:[#allocation24 + $0x6e8] sm:$0xff] }
 0xa12   :  { %5533 = vmatmul.mubr.f32.vlgmr.msra.gmra.mxu1 %v4085_v24  ;;  %v3478_v24 = vadd.f32 %v7717_v1, %v3429_v62  ;;  %v5358_v1 = vld [vmem:[#allocation24 + $0x698] sm:$0xff]  ;;  %v5388_v62 = vld [vmem:[#allocation24 + $0x788] sm:$0xff] }
 0xa52   :  { %v5843_v63 = vpop.f32.mrf.mxu1 }
 0xa54   :  { %v5844_v11 = vpop.f32.mrf.mxu1 }
 0xa55   :  { %v5845_v22 = vadd.f32 %v5844_v11, %v5843_v63  ;;  %v5348_v63 = vld [vmem:[#allocation24 + $0x648] sm:$0xff]  ;;  %v5346_v11 = vld [vmem:[#allocation24 + $0x638] sm:$0xff] }
 0xa57   :  { %v4904_v15 = vadd.f32 %v5845_v22, %v5773_v9  ;;  %v5347_v9 = vld [vmem:[#allocation24 + $0x640] sm:$0xff]  ;;  %v5345_v22 = vld [vmem:[#allocation24 + $0x630] sm:$0xff] }
 0xa59   :  { %v7738_v13 = vsel %vm4488_vm0, %v4904_v15, -1e+30  ;;  %v5344_v15 = vld [vmem:[#allocation24 + $0x628] sm:$0xff] }
 0xa5a   :  { %v4908_v43 = vsel %vm4490_vm1, %v7738_v13, -inf }
 0xa5b   :  { %4909 = vmax.xlane.f32.xlu0 %v4908_v43  ;;  %v5343_v43 = vld [vmem:[#allocation24 + $0x620] sm:$0xff] }
 0xa5f   :  { %4498 = vadd.xlane.f32.xlu0 %v4497_v60  ;;  %v5342_v60 = vld [vmem:[#allocation24 + $0x618] sm:$0xff] }
 0xa92   :  { %v5187_v33 = vpop.f32.mrf.mxu1 }
 0xa93   :  { %v5188_v41 = vadd.f32 %v5187_v33, %v5116_v51  ;;  %v5339_v51 = vld [vmem:[#allocation24 + $0x600] sm:$0xff]  ;;  %v5401_v33 = vld [vmem:[#allocation24 + $0x7f0] sm:$0xff] }
 0xa94   :  { %v5189_v38 = vpop.f32.mrf.mxu1 }
 0xa95   :  { %v5205_v50 = vadd.f32 %v5198_v3, %v5188_v41  ;;  %v5190_v31 = vadd.f32 %v5189_v38, %v5118_v36  ;;  %v5402_v3 = vld [vmem:[#allocation24 + $0x7f8] sm:$0xff]  ;;  %v5399_v41 = vld [vmem:[#allocation24 + $0x7e0] sm:$0xff]  ;;  %v5397_v36 = vld [vmem:[#allocation24 + $0x7d0] sm:$0xff] }
 0xa96   :  { %v5396_v38 = vld [vmem:[#allocation24 + $0x7c8] sm:$0xff] }
 0xa97   :  { %v5207_v59 = vmax.f32 %v5205_v50, 0.0  ;;  %v5206_v53 = vadd.f32 %v5202_v23, %v5190_v31  ;;  %v5398_v23 = vld [vmem:[#allocation24 + $0x7d8] sm:$0xff]  ;;  %v5395_v50 = vld [vmem:[#allocation24 + $0x7c0] sm:$0xff] }
 0xa98   :  { %v5394_v31 = vld [vmem:[#allocation24 + $0x7b8] sm:$0xff] }
 0xa99   :  { %v5208_v49 = vmax.f32 %v5206_v53, 0.0  ;;  %v5209_v34 = vmul.f32 %v5207_v59, %v7418_v2  ;;  %v5392_v59 = vld [vmem:[#allocation24 + $0x7a8] sm:$0xff]  ;;  %v5391_v53 = vld [vmem:[#allocation24 + $0x7a0] sm:$0xff] }
 0xa9b   :  { %v5210_v4 = vmul.f32 %v5208_v49, %v7421_v6  ;;  %v5211_v46 = vadd.f32 %v5209_v34, %v7431_v14  ;;  %v5390_v49 = vld [vmem:[#allocation24 + $0x798] sm:$0xff]  ;;  %v5389_v34 = vld [vmem:[#allocation24 + $0x790] sm:$0xff] }
 0xa9d   :  { %v5212_v54 = vadd.f32 %v5210_v4, %v7424_v17  ;;  %v5387_v4 = vld [vmem:[#allocation24 + $0x780] sm:$0xff] }
 0xa9f   :  { %5318 = vmatprep.mubr.f32.mxu0 %v5212_v54  ;;  %v5386_v54 = vld [vmem:[#allocation24 + $0x778] sm:$0xff] }
 0xaa0   :  { %5319 = vmatmul.mubr.f32.vlgmr.msra.gmra.mxu0 %v5211_v46  ;;  %v3076_v46 = vrot.slane %v7746_v20, %v7722_v27  ;;  %v5377_v27 = vld [vmem:[#allocation24 + $0x730] sm:$0xff]  ;;  %v5376_v20 = vld [vmem:[#allocation24 + $0x728] sm:$0xff] }
 0xaa1   :  { %5540 = vmatpush1.msra.mxu0 %v5369_v56  ;;  %5603 = vmatprep.mubr.f32.mxu0 %v3478_v24  ;;  %v5385_v56 = vld [vmem:[#allocation24 + $0x770] sm:$0xff]  ;;  %v5383_v24 = vld [vmem:[#allocation24 + $0x760] sm:$0xff] }
 0xaa2   :  { %5541 = vmatprep.subr.mxu0 %v5368_v19  ;;  %v5384_v19 = vld [vmem:[#allocation24 + $0x768] sm:$0xff] }
 0xaa3   :  { %5542 = vmatpush1.msra.mxu0 %v5367_v61  ;;  %v5382_v61 = vld [vmem:[#allocation24 + $0x758] sm:$0xff] }
 0xaa4   :  { %5543 = vmatprep.subr.mxu0 %v5366_v30  ;;  %v3369_v30 = vadd.f32 %v7575_v45, %v3076_v46  ;;  %v5373_v45 = vld [vmem:[#allocation24 + $0x710] sm:$0xff] }
 0xaa5   :  { %5544 = vmatpush1.msra.mxu0 %v5365_v26  ;;  %v5381_v26 = vld [vmem:[#allocation24 + $0x750] sm:$0xff] }
 0xaa6   :  { %5545 = vmatprep.subr.mxu0 %v5364_v25  ;;  %v5380_v25 = vld [vmem:[#allocation24 + $0x748] sm:$0xff] }
 0xaa7   :  { %5546 = vmatpush1.msra.mxu0 %v5363_v0  ;;  %v5379_v0 = vld [vmem:[#allocation24 + $0x740] sm:$0xff] }
 0xaa8   :  { %5547 = vmatprep.subr.mxu0 %v5362_v44  ;;  %v5378_v44 = vld [vmem:[#allocation24 + $0x738] sm:$0xff] }
 0xaa9   :  { %5548 = vmatpush1.msra.mxu0 %v5361_v5  ;;  %v3379_v5 = vmax.f32 %v3369_v30, 0.0 }
 0xaaa   :  { %5549 = vmatprep.subr.mxu0 %v5360_v21  ;;  %v5375_v21 = vld [vmem:[#allocation24 + $0x720] sm:$0xff] }
 0xaab   :  { %5550 = vmatpush1.msra.mxu0 %v5359_v47  ;;  %v5374_v47 = vld [vmem:[#allocation24 + $0x718] sm:$0xff] }
 0xaac   :  { %5551 = vmatprep.subr.mxu0 %v5358_v1  ;;  %v3428_v1 = vmul.f32 %v7728_v57, %v3379_v5  ;;  %v5646_v57 = vld [vmem:[#allocation28 + $0x370] sm:$0xff] }
 0xaad   :  { %5552 = vmatpush1.msra.mxu0 %v5357_v8  ;;  %v5372_v8 = vld [vmem:[#allocation24 + $0x708] sm:$0xff] }
 0xaae   :  { %5553 = vmatprep.subr.mxu0 %v5356_v32  ;;  %v5371_v32 = vld [vmem:[#allocation24 + $0x700] sm:$0xff] }
 0xaaf   :  { %5554 = vmatpush1.msra.mxu0 %v5355_v18  ;;  %v3477_v18 = vadd.f32 %v7732_v58, %v3428_v1  ;;  %v5644_v58 = vld [vmem:[#allocation28 + $0x360] sm:$0xff] }
 0xab0   :  { %5555 = vmatprep.subr.mxu0 %v5354_v10 }
 0xab1   :  { %5556 = vmatpush1.msra.mxu0 %v5353_v29 }
 0xab2   :  { %5557 = vmatprep.subr.mxu0 %v5352_v7  ;;  %v5663_v7 = vld [vmem:[#allocation28 + $0x3f8] sm:$0xff] }
 0xab3   :  { %5558 = vmatpush1.msra.mxu0 %v5351_v12  ;;  %v5647_v12 = vld [vmem:[#allocation28 + $0x378] sm:$0xff]  ;;  %5881 = vmatprep.subr.mxu1 %v5663_v7 }
 0xab4   :  { %5559 = vmatprep.subr.mxu0 %v5350_v39  ;;  %v5662_v39 = vld [vmem:[#allocation28 + $0x3f0] sm:$0xff]  ;;  %5882 = vmatpush3.msra.mxu1 %v5647_v12 }
 0xab5   :  { %5560 = vmatpush1.msra.mxu0 %v5349_v52  ;;  %v5661_v52 = vld [vmem:[#allocation28 + $0x3e8] sm:$0xff]  ;;  %5883 = vmatprep.subr.mxu1 %v5662_v39 }
 0xab6   :  { %5561 = vmatprep.subr.mxu0 %v5348_v63  ;;  %v5645_v63 = vld [vmem:[#allocation28 + $0x368] sm:$0xff]  ;;  %5884 = vmatpush3.msra.mxu1 %v5646_v57 }
 0xab7   :  { %5562 = vmatpush1.msra.mxu0 %v5347_v9  ;;  %v5660_v9 = vld [vmem:[#allocation28 + $0x3e0] sm:$0xff]  ;;  %5885 = vmatprep.subr.mxu1 %v5661_v52 }
 0xab8   :  { %5563 = vmatprep.subr.mxu0 %v5346_v11  ;;  %5886 = vmatpush3.msra.mxu1 %v5645_v63  ;;  %v5659_v11 = vld [vmem:[#allocation28 + $0x3d8] sm:$0xff] }
 0xab9   :  { %5564 = vmatpush1.msra.mxu0 %v5345_v22  ;;  %5887 = vmatprep.subr.mxu1 %v5660_v9  ;;  %v5643_v22 = vld [vmem:[#allocation28 + $0x358] sm:$0xff] }
 0xaba   :  { %5565 = vmatprep.subr.mxu0 %v5344_v15  ;;  %5888 = vmatpush3.msra.mxu1 %v5644_v58  ;;  %v5658_v15 = vld [vmem:[#allocation28 + $0x3d0] sm:$0xff]  ;;  %v5775_v58 = vld [vmem:[#allocation30 + $0x3] ss:$0 sm:$0xff] }
 0xabb   :  { %5566 = vmatpush1.msra.mxu0 %v5343_v43  ;;  %5889 = vmatprep.subr.mxu1 %v5659_v11  ;;  %v5642_v43 = vld [vmem:[#allocation28 + $0x350] sm:$0xff] }
 0xabc   :  { %5567 = vmatprep.subr.mxu0 %v5342_v60  ;;  %5890 = vmatpush3.msra.mxu1 %v5643_v22  ;;  %v5657_v60 = vld [vmem:[#allocation28 + $0x3c8] sm:$0xff] }
 0xabd   :  { %5568 = vmatpush1.msra.mxu0 %v5341_v16  ;;  %5891 = vmatprep.subr.mxu1 %v5658_v15  ;;  %v5641_v16 = vld [vmem:[#allocation28 + $0x348] sm:$0xff] }
 0xabe   :  { %5569 = vmatprep.subr.mxu0 %v5340_v40  ;;  %5892 = vmatpush3.msra.mxu1 %v5642_v43  ;;  %v5656_v40 = vld [vmem:[#allocation28 + $0x3c0] sm:$0xff] }
 0xabf   :  { %5570 = vmatpush1.msra.mxu0 %v5339_v51  ;;  %5893 = vmatprep.subr.mxu1 %v5657_v60  ;;  %v5640_v51 = vld [vmem:[#allocation28 + $0x340] sm:$0xff] }
 0xac0   :  { %5571 = vmatprep.subr.mxu0 %v5402_v3  ;;  %5894 = vmatpush3.msra.mxu1 %v5641_v16 }
 0xac1   :  { %5572 = vmatpush2.msra.mxu0 %v5401_v33  ;;  %v5655_v33 = vld [vmem:[#allocation28 + $0x3b8] sm:$0xff]  ;;  %5895 = vmatprep.subr.mxu1 %v5656_v40 }
 0xac2   :  { %5573 = vmatprep.subr.mxu0 %v5400_v35  ;;  %5896 = vmatpush3.msra.mxu1 %v5640_v51 }
 0xac3   :  { %5574 = vmatpush2.msra.mxu0 %v5399_v41  ;;  %v5639_v41 = vld [vmem:[#allocation28 + $0x338] sm:$0xff]  ;;  %5897 = vmatprep.subr.mxu1 %v5655_v33 }
 0xac4   :  { %5575 = vmatprep.subr.mxu0 %v5398_v23  ;;  %5898 = vmatpush3.msra.mxu1 %v5639_v41  ;;  %v5654_v23 = vld [vmem:[#allocation28 + $0x3b0] sm:$0xff] }
 0xac5   :  { %5576 = vmatpush2.msra.mxu0 %v5397_v36  ;;  %5899 = vmatprep.subr.mxu1 %v5654_v23  ;;  %v5638_v36 = vld [vmem:[#allocation28 + $0x330] sm:$0xff] }
 0xac6   :  { %5577 = vmatprep.subr.mxu0 %v5396_v38  ;;  %5900 = vmatpush3.msra.mxu1 %v5638_v36  ;;  %v5653_v38 = vld [vmem:[#allocation28 + $0x3a8] sm:$0xff] }
 0xac7   :  { %5578 = vmatpush2.msra.mxu0 %v5395_v50  ;;  %5901 = vmatprep.subr.mxu1 %v5653_v38  ;;  %v5637_v50 = vld [vmem:[#allocation28 + $0x328] sm:$0xff] }
 0xac8   :  { %5579 = vmatprep.subr.mxu0 %v5394_v31  ;;  %5902 = vmatpush3.msra.mxu1 %v5637_v50  ;;  %v5652_v31 = vld [vmem:[#allocation28 + $0x3a0] sm:$0xff] }
 0xac9   :  { %5580 = vmatpush2.msra.mxu0 %v5393_v55  ;;  %5903 = vmatprep.subr.mxu1 %v5652_v31  ;;  %v5651_v55 = vld [vmem:[#allocation28 + $0x398] sm:$0xff] }
 0xaca   :  { %5581 = vmatprep.subr.mxu0 %v5392_v59  ;;  %v5635_v59 = vld [vmem:[#allocation28 + $0x318] sm:$0xff] }
 0xacb   :  { %5582 = vmatpush2.msra.mxu0 %v5391_v53  ;;  %v5650_v53 = vld [vmem:[#allocation28 + $0x390] sm:$0xff] }
 0xacc   :  { %5583 = vmatprep.subr.mxu0 %v5390_v49  ;;  %v5634_v49 = vld [vmem:[#allocation28 + $0x310] sm:$0xff] }
 0xacd   :  { %5584 = vmatpush2.msra.mxu0 %v5389_v34  ;;  %v5649_v34 = vld [vmem:[#allocation28 + $0x388] sm:$0xff] }
 0xace   :  { %5585 = vmatprep.subr.mxu0 %v5388_v62  ;;  %v5633_v62 = vld [vmem:[#allocation28 + $0x308] sm:$0xff] }
 0xacf   :  { %5586 = vmatpush2.msra.mxu0 %v5387_v4  ;;  %v5648_v4 = vld [vmem:[#allocation28 + $0x380] sm:$0xff] }
 0xad0   :  { %5587 = vmatprep.subr.mxu0 %v5386_v54  ;;  %v5632_v54 = vld [vmem:[#allocation28 + $0x300] sm:$0xff] }
 0xad1   :  { %5588 = vmatpush2.msra.mxu0 %v5385_v56  ;;  %v5774_v56 = vld [vmem:[#allocation30 + $0x2] ss:$0 sm:$0xff] }
 0xad2   :  { %5589 = vmatprep.subr.mxu0 %v5384_v19 }
 0xad3   :  { %5590 = vmatpush2.msra.mxu0 %v5383_v24 }
 0xad4   :  { %5591 = vmatprep.subr.mxu0 %v5382_v61 }
 0xad5   :  { %5592 = vmatpush2.msra.mxu0 %v5381_v26 }
 0xad6   :  { %5593 = vmatprep.subr.mxu0 %v5380_v25  ;;  %v5611_v25 = vld [vmem:[#allocation27 + $0x6] sm:$0x3] }
 0xad7   :  { %5594 = vmatpush2.msra.mxu0 %v5379_v0  ;;  %v5534_v0 = vpop.f32.mrf.mxu1 }
 0xad8   :  { %5595 = vmatprep.subr.mxu0 %v5378_v44  ;;  %v5616_v44 = vrot.slane %v5611_v25, %v7343_v42 }
 0xad9   :  { %5596 = vmatpush2.msra.mxu0 %v5377_v27 }
 0xada   :  { %5597 = vmatprep.subr.mxu0 %v5376_v20  ;;  %v5620_v20 = vrot.slane %v5611_v25, %v7348_v48 }
 0xadb   :  { %5598 = vmatpush2.msra.mxu0 %v5375_v21  ;;  %v5536_v21 = vpop.f32.mrf.mxu1 }
 0xadc   :  { %5599 = vmatprep.subr.mxu0 %v5374_v47 }
 0xadd   :  { %5600 = vmatpush2.msra.mxu0 %v5373_v45 }
 0xade   :  { %5601 = vmatprep.subr.mxu0 %v5372_v8 }
 0xadf   :  { %5602 = vmatpush2.msra.mxu0 %v5371_v32 }
 0xae0   :  { %5604 = vmatmul.mubr.f32.vlgmr.msra.gmra.mxu0 %v3477_v18 }
 0xae4   :  { %v7764_v10 = vpop.xlane.xlu0 %4909 }
 0xae5   :  { %v4911_v9 = vsub.f32 %v7738_v13, %v7764_v10 }
 0xae8   :  { %v4499_v29 = vpop.xlane.xlu0 %4498 }
 0xae9   :  { %5952 = vrcp.f32 %v4499_v29 }
 0xaf6   :  { %v5953_v3 = vpop.eup %5952 }
 0xaf7   :  { %v4501_v35 = vmul.f32 %v5953_v3, %v7742_v28  ;;  %v5636_v28 = vld [vmem:[#allocation28 + $0x320] sm:$0xff] }
 0xaf8   :  { %5904 = vmatpush3.msra.mxu1 %v5636_v28 }
 0xaf9   :  { %4502 = vst [vmem:[%s7814_s20] sm:$0x3] %v4501_v35  ;;  %5905 = vmatprep.subr.mxu1 %v5651_v55 }
 0xafa   :  { %5906 = vmatpush3.msra.mxu1 %v5635_v59 }
 0xafb   :  { %5907 = vmatprep.subr.mxu1 %v5650_v53 }
 0xafc   :  { %5908 = vmatpush3.msra.mxu1 %v5634_v49 }
 0xafd   :  { %5909 = vmatprep.subr.mxu1 %v5649_v34 }
 0xafe   :  { %5910 = vmatpush3.msra.mxu1 %v5633_v62 }
 0xaff   :  { %5911 = vmatprep.subr.mxu1 %v5648_v4 }
 0xb00   :  { %5912 = vmatpush3.msra.mxu1 %v5632_v54 }
 0xb60   :  { %v5878_v46 = vpop.f32.mrf.mxu0 }
 0xb62   :  { %v5879_v19 = vpop.f32.mrf.mxu0 }
 0xb63   :  { %v5880_v24 = vadd.f32 %v5879_v19, %v5878_v46 }
 0xb65   :  { %v5321_v61 = vadd.f32 %v5880_v24, %v5774_v56 }
 0xb67   :  { %v5325_v30 = vsel %vm5324_vm2, %v5321_v61, -1e+30 }
 0xb68   :  { %v5326_v26 = vsel %vm4490_vm1, %v5325_v30, -inf }
 0xb69   :  { %5327 = vmax.xlane.f32.xlu1 %v5326_v26 }
 0xba0   :  { %v5605_v5 = vpop.f32.mrf.mxu0 }
 0xba1   :  { %v5606_v27 = vadd.f32 %v5605_v5, %v5534_v0 }
 0xba2   :  { %v5607_v47 = vpop.f32.mrf.mxu0 }
 0xba3   :  { %v5623_v1 = vadd.f32 %v5616_v44, %v5606_v27  ;;  %v5608_v45 = vadd.f32 %v5607_v47, %v5536_v21 }
 0xba5   :  { %v5625_v8 = vmax.f32 %v5623_v1, 0.0  ;;  %v5624_v32 = vadd.f32 %v5620_v20, %v5608_v45 }
 0xba7   :  { %v5626_v18 = vmax.f32 %v5624_v32, 0.0  ;;  %v5627_v29 = vmul.f32 %v5625_v8, %v7418_v2  ;;  %v4912_v2 = vmul.f32 1.442695, %v4911_v9 }
 0xba9   :  { %v5628_v7 = vmul.f32 %v5626_v18, %v7421_v6  ;;  %v5629_v39 = vadd.f32 %v5627_v29, %v7431_v14 }
 0xbab   :  { %v5630_v12 = vadd.f32 %v5628_v7, %v7424_v17 }
 0xbad   :  { %5736 = vmatprep.mubr.f32.mxu1 %v5630_v12 }
 0xbae   :  { %5737 = vmatmul.mubr.f32.vlgmr.msra.gmra.mxu1 %v5629_v39 }
 0xbf2   :  { %v5328_v42 = vpop.xlane.xlu1 %5327 }
 0xbf3   :  { %v5329_v57 = vsub.f32 %v5325_v30, %v5328_v42 }
 0xbf5   :  { %v5330_v48 = vmul.f32 1.442695, %v5329_v57 }
 0xbf7   :  { %5954 = vpow2.f32 %v5330_v48 }
 0xbf8   :  { %5956 = vpow2.f32 %v4912_v2 }
 0xc04   :  { %v5955_v52 = vpop.eup %5954 }
 0xc05   :  { %v5332_v63 = vsel %vm4490_vm1, %v5955_v52, 0.0  ;;  %v5957_v43 = vpop.eup %5956 }
 0xc06   :  { %5333 = vadd.xlane.f32.xlu0 %v5332_v63  ;;  %v4914_v60 = vsel %vm4490_vm1, %v5957_v43, 0.0 }
 0xc6e   :  { %v5913_v6 = vpop.f32.mrf.mxu1 }
 0xc70   :  { %v5914_v17 = vpop.f32.mrf.mxu1 }
 0xc71   :  { %v5915_v11 = vadd.f32 %v5914_v17, %v5913_v6 }
 0xc73   :  { %v5739_v14 = vadd.f32 %v5915_v11, %v5775_v58 }
 0xc75   :  { %v5743_v22 = vsel %vm5742_vm3, %v5739_v14, -1e+30 }
 0xc76   :  { %v5744_v15 = vsel %vm4490_vm1, %v5743_v22, -inf }
 0xc77   :  { %5745 = vmax.xlane.f32.xlu1 %v5744_v15 }
 0xc7b   :  { %4915 = vadd.xlane.f32.xlu1 %v4914_v60 }
 0xc8f   :  { %v5334_v16 = vpop.xlane.xlu0 %5333 }
 0xc90   :  { %5958 = vrcp.f32 %v5334_v16 }
 0xc9d   :  { %v5959_v13 = vpop.eup %5958 }
 0xc9e   :  { %v5336_v10 = vmul.f32 %v5959_v13, %v5955_v52 }
 0xca0   :  { %5337 = vst [vmem:[%s7814_s20 + $0x4] sm:$0x3] %v5336_v10 }
 0xd00   :  { %v5746_v40 = vpop.xlane.xlu1 %5745 }
 0xd01   :  { %v5747_v51 = vsub.f32 %v5743_v22, %v5746_v40 }
 0xd03   :  { %v5748_v37 = vmul.f32 1.442695, %v5747_v51 }
 0xd04   :  { %v4916_v3 = vpop.xlane.xlu1 %4915 }
 0xd05   :  { %5960 = vpow2.f32 %v5748_v37 }
 0xd06   :  { %5962 = vrcp.f32 %v4916_v3 }
 0xd12   :  { %v5961_v33 = vpop.eup %5960 }
 0xd13   :  { %v5963_v35 = vpop.eup %5962  ;;  %v5750_v41 = vsel %vm4490_vm1, %v5961_v33, 0.0 }
 0xd14   :  { %v4918_v23 = vmul.f32 %v5963_v35, %v5957_v43  ;;  %5751 = vadd.xlane.f32.xlu1 %v5750_v41 }
 0xd16   :  { %4919 = vst [vmem:[%s7814_s20 + $0x2] sm:$0x3] %v4918_v23 }
 0xd9d   :  { %v5752_v36 = vpop.xlane.xlu1 %5751 }
 0xd9e   :  { %5964 = vrcp.f32 %v5752_v36 }
 0xdab   :  { %v5965_v38 = vpop.eup %5964 }
 0xdac   :  { %v5754_v50 = vmul.f32 %v5965_v38, %v5961_v33 }
 0xdae   :  { %5755 = vst [vmem:[%s7814_s20 + $0x6] sm:$0x3] %v5754_v50 }
 0xdaf   :  { %5760 = vsyncpa [#allocation3], 1 }
 0xdb0   :  { %5761 = vsyncpa [#allocation5], 1 }
 0xdb1   :  { %5762 = vsyncpa [#allocation8], 1 }
 0xdb2   :  { %5763 = vsyncpa [#allocation11], 1 }
 0xdb3   :  { %5764 = vsyncpa [#allocation14], 1 }
 0xdb4   :  { %5765 = vsyncpa [#allocation17], 1 }
 0xdb5   :  { %5766 = vsyncpa [#allocation20], 1 }
 0xdb6   :  { %5767 = vsyncpa [#allocation23], 1 }
 0xdb7   :  { %5768 = vsyncpa [#allocation26], 1 }
 0xdb8   :  { %5769 = vsyncpa [#allocation29], 1 }

</bundles_post_ra>
